<compile_context>
chip_gen: v7x
topology: tpu7x:2x2x1
jax: 0.10.0
libtpu: 0.0.40
codegen_flags: <defaults>
</compile_context>

<pallas_src>
import math
import functools

import jax
import jax.numpy as jnp
from jax.experimental import pallas as pl
from jax.experimental.pallas import tpu as pltpu


# ----------------------------------------------------------------------------
# helpers
# ----------------------------------------------------------------------------
def _fullspec(shape):
    """Whole-array block for a gridless pallas_call."""
    return pl.BlockSpec(shape, lambda: (0,) * len(shape))


# ----------------------------------------------------------------------------
# Fused kernel: cross-MHA -> self-MHA -> 2-layer BiLSTM, all in VMEM
# ----------------------------------------------------------------------------
def _fused_kernel(hp_ref, hq_ref, qmask_ref, pmask_ref,
                  wp_ref, bp_ref, wkv_ref, bkv_ref, wo1_ref, bo1_ref,
                  wqkv_ref, bqkv_ref, wo2_ref, bo2_ref,
                  *rest, n_heads, num_layers):
    lstm_refs = rest[:3 * num_layers]            # per layer: wih_merged, whh_blockdiag, bias
    m_ref = rest[3 * num_layers]                 # output (B, T, 2H)
    sf_ref = rest[3 * num_layers + 1]            # scratch (B, T, H): fwd outputs of cur layer
    sb_ref = rest[3 * num_layers + 2]            # scratch (B, T, H): bwd outputs of cur layer

    f32, bf16 = jnp.float32, jnp.bfloat16
    B, p, E1 = hp_ref.shape                      # E1 = 2*hidden (cross-attn embed)
    q = hq_ref.shape[1]
    E2 = 2 * E1                                  # self-attn embed = 4*hidden

    hp_rows = hp_ref[...].reshape(B * p, E1)
    hq_rows = hq_ref[...].reshape(B * q, E1)
    hp_b = hp_rows.astype(bf16)
    hq_b = hq_rows.astype(bf16)

    # ---- masks -> additive score bias, hoisted & broadcast ONCE (not per head) ----
    neg = jnp.float32(-1e30)
    zero = jnp.float32(0.0)
    bias_q = jnp.broadcast_to(jnp.where(qmask_ref[...] > 0.5, zero, neg), (B, p, q))
    bias_p = jnp.broadcast_to(jnp.where(pmask_ref[...] > 0.5, zero, neg), (B, p, p))

    def mha_core(X3, K3, V3, bias, wo_ref, bo_ref):
        """Multi-head attention on already-projected tensors.

        X3: (B, p, E) "P" (1/sqrt(d) pre-folded), K3/V3: (B, L, E), bias: (B, p, L) additive.
        Scores are formed in (p, L) orientation so masked_softmax(dim=-2) becomes a softmax
        over the last (lane) axis.  Head outputs are lane-concatenated and projected with a
        single (E, E) matmul (no per-head output matmuls).  Returns (B*p, E) f32.
        """
        Bb, pp, E = X3.shape
        d = E // n_heads
        ys = []
        for h in range(n_heads):                 # static unroll; heavy math batched over B
            sl = slice(h * d, (h + 1) * d)
            s = jnp.einsum('bpd,bqd->bpq',
                           X3[:, :, sl].astype(bf16), K3[:, :, sl].astype(bf16),
                           preferred_element_type=f32)
            s = s + bias                                           # exact masking (|s| << 1e30)
            s = s - jnp.max(s, axis=-1, keepdims=True)
            e = jnp.exp(s)
            c = e * pl.reciprocal(jnp.sum(e, axis=-1, keepdims=True), approx=True)
            ys.append(jnp.einsum('bpq,bqd->bpd',
                                 c.astype(bf16), V3[:, :, sl].astype(bf16),
                                 preferred_element_type=f32))      # attn dropout = identity
        y = jnp.concatenate(ys, axis=-1).reshape(Bb * pp, E)       # head-concat buffer
        return jnp.dot(y.astype(bf16), wo_ref[...],
                       preferred_element_type=f32) + bo_ref[...]   # resid dropout = identity

    # ---- cross attention: att = MHA(H_p, H_q, q_mask) ----
    P = jnp.dot(hp_b, wp_ref[...], preferred_element_type=f32) + bp_ref[...]    # (B*p, E1)
    KV = jnp.dot(hq_b, wkv_ref[...], preferred_element_type=f32) + bkv_ref[...]  # (B*q, 2E1)
    P3 = P.reshape(B, p, E1)
    KV3 = KV.reshape(B, q, 2 * E1)
    att = mha_core(P3, KV3[:, :, 0:E1], KV3[:, :, E1:2 * E1], bias_q, wo1_ref, bo1_ref)
    att_b = att.astype(bf16)

    # ---- self attention on U_p = [H_p | att] (never materialized): split-weight fused QKV ----
    QKV = (jnp.dot(hp_b, wqkv_ref[0:E1, :], preferred_element_type=f32)
           + jnp.dot(att_b, wqkv_ref[E1:E2, :], preferred_element_type=f32)
           + bqkv_ref[...])                                                     # (B*p, 3*E2)
    QKV3 = QKV.reshape(B, p, 3 * E2)
    uphat = mha_core(QKV3[:, :, 0:E2], QKV3[:, :, E2:2 * E2], QKV3[:, :, 2 * E2:3 * E2],
                     bias_p, wo2_ref, bo2_ref)                                  # (B*p, E2)
    uphat_b = uphat.astype(bf16)

    # ---- 2-layer bidirectional LSTM on U = [H_p | att | U_phat] ----
    H2, _ = lstm_refs[1].shape                   # block-diag whh: (2H, 8H)
    H = H2 // 2
    H4 = 4 * H
    T = p

    def cell(g, c):                              # PyTorch gate order [i | f | g | o]
        i = jax.nn.sigmoid(g[:, 0 * H:1 * H])
        f = jax.nn.sigmoid(g[:, 1 * H:2 * H])
        gg = jnp.tanh(g[:, 2 * H:3 * H])
        o = jax.nn.sigmoid(g[:, 3 * H:4 * H])
        c_new = f * c + i * gg                   # cell state kept in f32
        return o * jnp.tanh(c_new), c_new

    for layer in range(num_layers):
        wih_ref, whh_ref, b_ref = lstm_refs[3 * layer:3 * layer + 3]
        if layer == 0:
            # merged fwd|bwd input projection; U concat elided via split-weight matmuls
            gates = (jnp.dot(hp_b, wih_ref[0:E1, :], preferred_element_type=f32)
                     + jnp.dot(att_b, wih_ref[E1:2 * E1, :], preferred_element_type=f32)
                     + jnp.dot(uphat_b, wih_ref[2 * E1:4 * E1, :], preferred_element_type=f32)
                     + b_ref[...])                                   # (B*T, 8H), lane-dense 256
        else:
            # layer handoff read from VMEM scratch (no nested concats); split-weight again
            xf = sf_ref[...].reshape(B * T, H).astype(bf16)
            xb = sb_ref[...].reshape(B * T, H).astype(bf16)
            gates = (jnp.dot(xf, wih_ref[0:H, :], preferred_element_type=f32)
                     + jnp.dot(xb, wih_ref[H:2 * H, :], preferred_element_type=f32)
                     + b_ref[...])                                   # (B*T, 8H)
        g3 = gates.reshape(B, T, 2 * H4)
        whh = whh_ref[...]                                           # (2H, 8H) block-diag bf16

        cf = jnp.zeros((B, H), f32)
        cb = jnp.zeros((B, H), f32)
        hboth = jnp.zeros((B, 2 * H), f32)
        # statically unrolled time loop (T is small); fwd and bwd recurrences share ONE matmul
        for t in range(T):
            rt = T - 1 - t
            gf_t = g3[:, t, 0:H4]                # forward gates at time t
            gb_t = g3[:, rt, H4:2 * H4]          # backward gates at time rt
            if t > 0:
                grec = jnp.dot(hboth.astype(bf16), whh, preferred_element_type=f32)  # (B, 8H)
                gf_t = gf_t + grec[:, 0:H4]
                gb_t = gb_t + grec[:, H4:2 * H4]
            hf, cf = cell(gf_t, cf)
            hb, cb = cell(gb_t, cb)
            sf_ref[:, t, :] = hf                 # scratch writes bound live ranges
            sb_ref[:, rt, :] = hb
            if t + 1 < T:
                hboth = jnp.concatenate([hf, hb], axis=-1)

    # single lane-dense slab store of M = [h_fwd | h_bwd]
    m_ref[...] = jnp.concatenate([sf_ref[...], sb_ref[...]], axis=-1).astype(m_ref.dtype)


# ----------------------------------------------------------------------------
# Wrapper
# ----------------------------------------------------------------------------
def multi_head_memory_generation(H_p, H_q, p_mask, q_mask, params, *, n_heads):
    B, p, _ = H_p.shape
    num_layers = len(params['lstm'])
    H = params['lstm'][0][1].shape[0] // 2       # whh_blockdiag: (2H, 8H)
    qmask3 = q_mask.astype(jnp.float32)[:, None, :]      # (B, 1, q) lane-major
    pmask3 = p_mask.astype(jnp.float32)[:, None, :]      # (B, 1, p)
    ca, sa = params['f_attn'], params['f_selfattn']
    lstm_flat = [w for layer in params['lstm'] for w in layer]
    args = (H_p, H_q, qmask3, pmask3,
            ca['wp'], ca['bp'], ca['wkv'], ca['bkv'], ca['wo'], ca['bo'],
            sa['wqkv'], sa['bqkv'], sa['wo'], sa['bo'],
            *lstm_flat)
    kernel = functools.partial(_fused_kernel, n_heads=n_heads, num_layers=num_layers)
    return pl.pallas_call(
        kernel,
        out_shape=jax.ShapeDtypeStruct((B, p, 2 * H), jnp.float32),
        in_specs=[_fullspec(a.shape) for a in args],
        out_specs=_fullspec((B, p, 2 * H)),
        scratch_shapes=[pltpu.VMEM((B, p, H), jnp.float32),   # fwd LSTM outputs (per layer)
                        pltpu.VMEM((B, p, H), jnp.float32)],  # bwd LSTM outputs (per layer)
    )(*args)


# ----------------------------------------------------------------------------
# Deterministic parameter init (synthetic; PyTorch-style uniform bounds) + kernel-layout prep
# ----------------------------------------------------------------------------
def init_linear(key, fan_in, fan_out):
    k1, k2 = jax.random.split(key)
    bound = 1.0 / math.sqrt(fan_in)
    W = jax.random.uniform(k1, (fan_in, fan_out), jnp.float32, -bound, bound)  # x @ W layout
    b = jax.random.uniform(k2, (1, fan_out), jnp.float32, -bound, bound)
    return W, b


def init_mha_raw(key, E):
    kp, kk, kv, ko = jax.random.split(key, 4)
    return {'P': init_linear(kp, E, E), 'K': init_linear(kk, E, E),
            'V': init_linear(kv, E, E), 'O': init_linear(ko, E, E)}


def init_lstm_raw(key, input_size, hidden_size, num_layers):
    params = []
    bound = 1.0 / math.sqrt(hidden_size)
    for layer in range(num_layers):
        d_in = input_size if layer == 0 else 2 * hidden_size
        layer_p = []
        for _direction in range(2):
            key, k1, k2, k3 = jax.random.split(key, 4)
            wih = jax.random.uniform(k1, (d_in, 4 * hidden_size), jnp.float32, -bound, bound)
            whh = jax.random.uniform(k2, (hidden_size, 4 * hidden_size), jnp.float32,
                                     -bound, bound)
            # combined bias (b_ih + b_hh)
            b = jax.random.uniform(k3, (1, 4 * hidden_size), jnp.float32, -2 * bound, 2 * bound)
            layer_p.append((wih, whh, b))
        params.append(layer_p)
    return params


def prepare_params(raw, n_heads):
    """Kernel weight layout: fused / scaled / bf16 matmul operands (biases stay f32)."""
    bf16 = jnp.bfloat16

    def prep_mha(m, self_attention):
        (wp, bp), (wk, bk), (wv, bv), (wo, bo) = m['P'], m['K'], m['V'], m['O']
        E = wp.shape[0]
        scale = 1.0 / math.sqrt(E // n_heads)
        # PyTorch scales the full post-bias score (key @ P^T) * 1/sqrt(d);
        # folding the scale into BOTH W_P and b_P is exact.
        wp_s, bp_s = wp * scale, bp * scale
        if self_attention:
            return {'wqkv': jnp.concatenate([wp_s, wk, wv], axis=1).astype(bf16),
                    'bqkv': jnp.concatenate([bp_s, bk, bv], axis=1),
                    'wo': wo.astype(bf16), 'bo': bo}
        return {'wp': wp_s.astype(bf16), 'bp': bp_s,
                'wkv': jnp.concatenate([wk, wv], axis=1).astype(bf16),
                'bkv': jnp.concatenate([bk, bv], axis=1),
                'wo': wo.astype(bf16), 'bo': bo}

    lstm = []
    for (wih_f, whh_f, b_f), (wih_b, whh_b, b_b) in raw['lstm']:
        H = whh_f.shape[0]
        wih_m = jnp.concatenate([wih_f, wih_b], axis=1).astype(bf16)          # (D_in, 8H)
        z = jnp.zeros((H, 4 * H), jnp.float32)
        whh_blk = jnp.concatenate(
            [jnp.concatenate([whh_f, z], axis=1),
             jnp.concatenate([z, whh_b], axis=1)], axis=0).astype(bf16)       # (2H, 8H)
        b_m = jnp.concatenate([b_f, b_b], axis=1)                             # (1, 8H) f32
        lstm.append((wih_m, whh_blk, b_m))

    return {'f_attn': prep_mha(raw['f_attn'], False),
            'f_selfattn': prep_mha(raw['f_selfattn'], True),
            'lstm': lstm}


if __name__ == "__main__":
    hidden_size, n_heads, num_layers = 32, 4, 2
    B, p_len, q_len = 2, 8, 8

    key = jax.random.PRNGKey(0)
    k1, k2 = jax.random.split(key)
    H_p = jax.random.normal(k1, (B, p_len, 2 * hidden_size), jnp.float32)
    H_q = jax.random.normal(k2, (B, q_len, 2 * hidden_size), jnp.float32)
    p_mask = (jnp.arange(p_len)[None, :] < jnp.array([[p_len], [p_len - 1]])).astype(jnp.float32)
    q_mask = (jnp.arange(q_len)[None, :] < jnp.array([[q_len], [q_len - 2]])).astype(jnp.float32)

    pkey = jax.random.PRNGKey(42)
    ka, kb, kc = jax.random.split(pkey, 3)
    raw = {'f_attn': init_mha_raw(ka, 2 * hidden_size),
           'f_selfattn': init_mha_raw(kb, 4 * hidden_size),
           'lstm': init_lstm_raw(kc, 8 * hidden_size, hidden_size, num_layers)}
    params = prepare_params(raw, n_heads)   # fused/scaled/bf16 kernel layout (one-time)

    fwd = jax.jit(functools.partial(multi_head_memory_generation, n_heads=n_heads))
    M = fwd(H_p, H_q, p_mask, q_mask, params)
    jax.block_until_ready(M)
    assert M.shape == (B, p_len, 2 * hidden_size), M.shape
    print("KERNEL_OK")
</pallas_src>

<mosaic_0001>
module attributes {stable_mosaic.version = 11 : i64} {
  func.func @_fused_kernel(%arg0: memref<2x8x64xf32, #tpu.memory_space<vmem>>, %arg1: memref<2x8x64xf32, #tpu.memory_space<vmem>>, %arg2: memref<2x1x8xf32, #tpu.memory_space<vmem>>, %arg3: memref<2x1x8xf32, #tpu.memory_space<vmem>>, %arg4: memref<64x64xbf16, #tpu.memory_space<vmem>>, %arg5: memref<1x64xf32, #tpu.memory_space<vmem>>, %arg6: memref<64x128xbf16, #tpu.memory_space<vmem>>, %arg7: memref<1x128xf32, #tpu.memory_space<vmem>>, %arg8: memref<64x64xbf16, #tpu.memory_space<vmem>>, %arg9: memref<1x64xf32, #tpu.memory_space<vmem>>, %arg10: memref<128x384xbf16, #tpu.memory_space<vmem>>, %arg11: memref<1x384xf32, #tpu.memory_space<vmem>>, %arg12: memref<128x128xbf16, #tpu.memory_space<vmem>>, %arg13: memref<1x128xf32, #tpu.memory_space<vmem>>, %arg14: memref<256x256xbf16, #tpu.memory_space<vmem>>, %arg15: memref<64x256xbf16, #tpu.memory_space<vmem>>, %arg16: memref<1x256xf32, #tpu.memory_space<vmem>>, %arg17: memref<64x256xbf16, #tpu.memory_space<vmem>>, %arg18: memref<64x256xbf16, #tpu.memory_space<vmem>>, %arg19: memref<1x256xf32, #tpu.memory_space<vmem>>, %arg20: memref<2x8x64xf32, #tpu.memory_space<vmem>>, %arg21: memref<2x8x32xf32, #tpu.memory_space<vmem>>, %arg22: memref<2x8x32xf32, #tpu.memory_space<vmem>>) attributes {dimension_semantics = [], scalar_prefetch = 0 : i64, scratch_operands = 2 : i64, tpu.core_type = #tpu.core_type<tc>} {
    %c0 = arith.constant 0 : index
    %c0_0 = arith.constant 0 : index
    %c0_1 = arith.constant 0 : index
    %0 = vector.load %arg0[%c0, %c0_0, %c0_1] : memref<2x8x64xf32, #tpu.memory_space<vmem>>, vector<2x8x64xf32>
    %1 = vector.shape_cast %0 : vector<2x8x64xf32> to vector<16x64xf32>
    %c0_2 = arith.constant 0 : index
    %c0_3 = arith.constant 0 : index
    %c0_4 = arith.constant 0 : index
    %2 = vector.load %arg1[%c0_2, %c0_3, %c0_4] : memref<2x8x64xf32, #tpu.memory_space<vmem>>, vector<2x8x64xf32>
    %3 = vector.shape_cast %2 : vector<2x8x64xf32> to vector<16x64xf32>
    %4 = arith.truncf %1 : vector<16x64xf32> to vector<16x64xbf16>
    %5 = arith.truncf %3 : vector<16x64xf32> to vector<16x64xbf16>
    %c0_5 = arith.constant 0 : index
    %c0_6 = arith.constant 0 : index
    %c0_7 = arith.constant 0 : index
    %6 = vector.load %arg2[%c0_5, %c0_6, %c0_7] : memref<2x1x8xf32, #tpu.memory_space<vmem>>, vector<2x1x8xf32>
    %cst = arith.constant 5.000000e-01 : f32
    %7 = vector.broadcast %cst : f32 to vector<2x1x8xf32>
    %8 = arith.cmpf ogt, %6, %7 : vector<2x1x8xf32>
    %cst_8 = arith.constant 0.000000e+00 : f32
    %cst_9 = arith.constant -1.000000e+30 : f32
    %9 = vector.broadcast %cst_8 : f32 to vector<2x1x8xf32>
    %10 = vector.broadcast %cst_9 : f32 to vector<2x1x8xf32>
    %11 = arith.select %8, %9, %10 : vector<2x1x8xi1>, vector<2x1x8xf32>
    %12 = vector.shape_cast %11 : vector<2x1x8xf32> to vector<2x1x8xf32>
    %13 = vector.broadcast %12 : vector<2x1x8xf32> to vector<2x8x8xf32>
    %c0_10 = arith.constant 0 : index
    %c0_11 = arith.constant 0 : index
    %c0_12 = arith.constant 0 : index
    %14 = vector.load %arg3[%c0_10, %c0_11, %c0_12] : memref<2x1x8xf32, #tpu.memory_space<vmem>>, vector<2x1x8xf32>
    %cst_13 = arith.constant 5.000000e-01 : f32
    %15 = vector.broadcast %cst_13 : f32 to vector<2x1x8xf32>
    %16 = arith.cmpf ogt, %14, %15 : vector<2x1x8xf32>
    %cst_14 = arith.constant 0.000000e+00 : f32
    %cst_15 = arith.constant -1.000000e+30 : f32
    %17 = vector.broadcast %cst_14 : f32 to vector<2x1x8xf32>
    %18 = vector.broadcast %cst_15 : f32 to vector<2x1x8xf32>
    %19 = arith.select %16, %17, %18 : vector<2x1x8xi1>, vector<2x1x8xf32>
    %20 = vector.shape_cast %19 : vector<2x1x8xf32> to vector<2x1x8xf32>
    %21 = vector.broadcast %20 : vector<2x1x8xf32> to vector<2x8x8xf32>
    %c0_16 = arith.constant 0 : index
    %c0_17 = arith.constant 0 : index
    %22 = vector.load %arg4[%c0_16, %c0_17] : memref<64x64xbf16, #tpu.memory_space<vmem>>, vector<64x64xbf16>
    %cst_18 = arith.constant dense<0.000000e+00> : vector<16x64xf32>
    %23 = tpu.matmul %4, %22, %cst_18 {dimension_numbers = #tpu.dot_dimension_numbers<[1], [0], [0], [1], [0, 0, 1, 1], [], []>} : vector<16x64xbf16>, vector<64x64xbf16>, vector<16x64xf32> -> vector<16x64xf32>
    %c0_19 = arith.constant 0 : index
    %c0_20 = arith.constant 0 : index
    %24 = vector.load %arg5[%c0_19, %c0_20] : memref<1x64xf32, #tpu.memory_space<vmem>>, vector<1x64xf32>
    %25 = vector.broadcast %24 : vector<1x64xf32> to vector<16x64xf32>
    %26 = arith.addf %23, %25 : vector<16x64xf32>
    %c0_21 = arith.constant 0 : index
    %c0_22 = arith.constant 0 : index
    %27 = vector.load %arg6[%c0_21, %c0_22] : memref<64x128xbf16, #tpu.memory_space<vmem>>, vector<64x128xbf16>
    %cst_23 = arith.constant dense<0.000000e+00> : vector<16x128xf32>
    %28 = tpu.matmul %5, %27, %cst_23 {dimension_numbers = #tpu.dot_dimension_numbers<[1], [0], [0], [1], [0, 0, 1, 1], [], []>} : vector<16x64xbf16>, vector<64x128xbf16>, vector<16x128xf32> -> vector<16x128xf32>
    %c0_24 = arith.constant 0 : index
    %c0_25 = arith.constant 0 : index
    %29 = vector.load %arg7[%c0_24, %c0_25] : memref<1x128xf32, #tpu.memory_space<vmem>>, vector<1x128xf32>
    %30 = vector.broadcast %29 : vector<1x128xf32> to vector<16x128xf32>
    %31 = arith.addf %28, %30 : vector<16x128xf32>
    %32 = vector.shape_cast %26 : vector<16x64xf32> to vector<2x8x64xf32>
    %33 = vector.shape_cast %31 : vector<16x128xf32> to vector<2x8x128xf32>
    %34 = vector.extract_strided_slice %33 {offsets = [0, 0, 0], sizes = [2, 8, 64], strides = [1, 1, 1]} : vector<2x8x128xf32> to vector<2x8x64xf32>
    %35 = vector.extract_strided_slice %33 {offsets = [0, 0, 64], sizes = [2, 8, 64], strides = [1, 1, 1]} : vector<2x8x128xf32> to vector<2x8x64xf32>
    %36 = vector.extract_strided_slice %32 {offsets = [0, 0, 0], sizes = [2, 8, 16], strides = [1, 1, 1]} : vector<2x8x64xf32> to vector<2x8x16xf32>
    %37 = arith.truncf %36 : vector<2x8x16xf32> to vector<2x8x16xbf16>
    %38 = vector.extract_strided_slice %34 {offsets = [0, 0, 0], sizes = [2, 8, 16], strides = [1, 1, 1]} : vector<2x8x64xf32> to vector<2x8x16xf32>
    %39 = arith.truncf %38 : vector<2x8x16xf32> to vector<2x8x16xbf16>
    "tpu.trace_start"() <{level = 10 : i32, message = "bpd,bqd->bpq"}> : () -> ()
    %cst_26 = arith.constant dense<0.000000e+00> : vector<2x8x8xf32>
    %40 = tpu.matmul %37, %39, %cst_26 {dimension_numbers = #tpu.dot_dimension_numbers<[2], [2], [1], [1], [0, 0, 0, 1, 1, 1], [0], [0]>} : vector<2x8x16xbf16>, vector<2x8x16xbf16>, vector<2x8x8xf32> -> vector<2x8x8xf32>
    "tpu.trace_stop"() : () -> ()
    %41 = arith.addf %40, %13 : vector<2x8x8xf32>
    %cst_27 = arith.constant dense<0xFF800000> : vector<2x8xf32>
    %42 = vector.multi_reduction <maximumf>, %41, %cst_27 [2] : vector<2x8x8xf32> to vector<2x8xf32>
    %43 = vector.shape_cast %42 : vector<2x8xf32> to vector<2x8x1xf32>
    %44 = vector.broadcast %43 : vector<2x8x1xf32> to vector<2x8x8xf32>
    %45 = arith.subf %41, %44 : vector<2x8x8xf32>
    %46 = math.exp %45 : vector<2x8x8xf32>
    %cst_28 = arith.constant dense<0.000000e+00> : vector<2x8xf32>
    %47 = vector.multi_reduction <add>, %46, %cst_28 [2] : vector<2x8x8xf32> to vector<2x8xf32>
    %48 = vector.shape_cast %47 : vector<2x8xf32> to vector<2x8x1xf32>
    %49 = tpu.reciprocal %48 {approx = true} : vector<2x8x1xf32> -> vector<2x8x1xf32>
    %50 = vector.broadcast %49 : vector<2x8x1xf32> to vector<2x8x8xf32>
    %51 = arith.mulf %46, %50 : vector<2x8x8xf32>
    %52 = arith.truncf %51 : vector<2x8x8xf32> to vector<2x8x8xbf16>
    %53 = vector.extract_strided_slice %35 {offsets = [0, 0, 0], sizes = [2, 8, 16], strides = [1, 1, 1]} : vector<2x8x64xf32> to vector<2x8x16xf32>
    %54 = arith.truncf %53 : vector<2x8x16xf32> to vector<2x8x16xbf16>
    "tpu.trace_start"() <{level = 10 : i32, message = "bpq,bqd->bpd"}> : () -> ()
    %cst_29 = arith.constant dense<0.000000e+00> : vector<2x8x16xf32>
    %55 = tpu.matmul %52, %54, %cst_29 {dimension_numbers = #tpu.dot_dimension_numbers<[2], [1], [1], [2], [0, 0, 0, 1, 1, 2], [0], [0]>} : vector<2x8x8xbf16>, vector<2x8x16xbf16>, vector<2x8x16xf32> -> vector<2x8x16xf32>
    "tpu.trace_stop"() : () -> ()
    %56 = vector.extract_strided_slice %32 {offsets = [0, 0, 16], sizes = [2, 8, 16], strides = [1, 1, 1]} : vector<2x8x64xf32> to vector<2x8x16xf32>
    %57 = arith.truncf %56 : vector<2x8x16xf32> to vector<2x8x16xbf16>
    %58 = vector.extract_strided_slice %34 {offsets = [0, 0, 16], sizes = [2, 8, 16], strides = [1, 1, 1]} : vector<2x8x64xf32> to vector<2x8x16xf32>
    %59 = arith.truncf %58 : vector<2x8x16xf32> to vector<2x8x16xbf16>
    "tpu.trace_start"() <{level = 10 : i32, message = "bpd,bqd->bpq"}> : () -> ()
    %cst_30 = arith.constant dense<0.000000e+00> : vector<2x8x8xf32>
    %60 = tpu.matmul %57, %59, %cst_30 {dimension_numbers = #tpu.dot_dimension_numbers<[2], [2], [1], [1], [0, 0, 0, 1, 1, 1], [0], [0]>} : vector<2x8x16xbf16>, vector<2x8x16xbf16>, vector<2x8x8xf32> -> vector<2x8x8xf32>
    "tpu.trace_stop"() : () -> ()
    %61 = arith.addf %60, %13 : vector<2x8x8xf32>
    %cst_31 = arith.constant dense<0xFF800000> : vector<2x8xf32>
    %62 = vector.multi_reduction <maximumf>, %61, %cst_31 [2] : vector<2x8x8xf32> to vector<2x8xf32>
    %63 = vector.shape_cast %62 : vector<2x8xf32> to vector<2x8x1xf32>
    %64 = vector.broadcast %63 : vector<2x8x1xf32> to vector<2x8x8xf32>
    %65 = arith.subf %61, %64 : vector<2x8x8xf32>
    %66 = math.exp %65 : vector<2x8x8xf32>
    %cst_32 = arith.constant dense<0.000000e+00> : vector<2x8xf32>
    %67 = vector.multi_reduction <add>, %66, %cst_32 [2] : vector<2x8x8xf32> to vector<2x8xf32>
    %68 = vector.shape_cast %67 : vector<2x8xf32> to vector<2x8x1xf32>
    %69 = tpu.reciprocal %68 {approx = true} : vector<2x8x1xf32> -> vector<2x8x1xf32>
    %70 = vector.broadcast %69 : vector<2x8x1xf32> to vector<2x8x8xf32>
    %71 = arith.mulf %66, %70 : vector<2x8x8xf32>
    %72 = arith.truncf %71 : vector<2x8x8xf32> to vector<2x8x8xbf16>
    %73 = vector.extract_strided_slice %35 {offsets = [0, 0, 16], sizes = [2, 8, 16], strides = [1, 1, 1]} : vector<2x8x64xf32> to vector<2x8x16xf32>
    %74 = arith.truncf %73 : vector<2x8x16xf32> to vector<2x8x16xbf16>
    "tpu.trace_start"() <{level = 10 : i32, message = "bpq,bqd->bpd"}> : () -> ()
    %cst_33 = arith.constant dense<0.000000e+00> : vector<2x8x16xf32>
    %75 = tpu.matmul %72, %74, %cst_33 {dimension_numbers = #tpu.dot_dimension_numbers<[2], [1], [1], [2], [0, 0, 0, 1, 1, 2], [0], [0]>} : vector<2x8x8xbf16>, vector<2x8x16xbf16>, vector<2x8x16xf32> -> vector<2x8x16xf32>
    "tpu.trace_stop"() : () -> ()
    %76 = vector.extract_strided_slice %32 {offsets = [0, 0, 32], sizes = [2, 8, 16], strides = [1, 1, 1]} : vector<2x8x64xf32> to vector<2x8x16xf32>
    %77 = arith.truncf %76 : vector<2x8x16xf32> to vector<2x8x16xbf16>
    %78 = vector.extract_strided_slice %34 {offsets = [0, 0, 32], sizes = [2, 8, 16], strides = [1, 1, 1]} : vector<2x8x64xf32> to vector<2x8x16xf32>
    %79 = arith.truncf %78 : vector<2x8x16xf32> to vector<2x8x16xbf16>
    "tpu.trace_start"() <{level = 10 : i32, message = "bpd,bqd->bpq"}> : () -> ()
    %cst_34 = arith.constant dense<0.000000e+00> : vector<2x8x8xf32>
    %80 = tpu.matmul %77, %79, %cst_34 {dimension_numbers = #tpu.dot_dimension_numbers<[2], [2], [1], [1], [0, 0, 0, 1, 1, 1], [0], [0]>} : vector<2x8x16xbf16>, vector<2x8x16xbf16>, vector<2x8x8xf32> -> vector<2x8x8xf32>
    "tpu.trace_stop"() : () -> ()
    %81 = arith.addf %80, %13 : vector<2x8x8xf32>
    %cst_35 = arith.constant dense<0xFF800000> : vector<2x8xf32>
    %82 = vector.multi_reduction <maximumf>, %81, %cst_35 [2] : vector<2x8x8xf32> to vector<2x8xf32>
    %83 = vector.shape_cast %82 : vector<2x8xf32> to vector<2x8x1xf32>
    %84 = vector.broadcast %83 : vector<2x8x1xf32> to vector<2x8x8xf32>
    %85 = arith.subf %81, %84 : vector<2x8x8xf32>
    %86 = math.exp %85 : vector<2x8x8xf32>
    %cst_36 = arith.constant dense<0.000000e+00> : vector<2x8xf32>
    %87 = vector.multi_reduction <add>, %86, %cst_36 [2] : vector<2x8x8xf32> to vector<2x8xf32>
    %88 = vector.shape_cast %87 : vector<2x8xf32> to vector<2x8x1xf32>
    %89 = tpu.reciprocal %88 {approx = true} : vector<2x8x1xf32> -> vector<2x8x1xf32>
    %90 = vector.broadcast %89 : vector<2x8x1xf32> to vector<2x8x8xf32>
    %91 = arith.mulf %86, %90 : vector<2x8x8xf32>
    %92 = arith.truncf %91 : vector<2x8x8xf32> to vector<2x8x8xbf16>
    %93 = vector.extract_strided_slice %35 {offsets = [0, 0, 32], sizes = [2, 8, 16], strides = [1, 1, 1]} : vector<2x8x64xf32> to vector<2x8x16xf32>
    %94 = arith.truncf %93 : vector<2x8x16xf32> to vector<2x8x16xbf16>
    "tpu.trace_start"() <{level = 10 : i32, message = "bpq,bqd->bpd"}> : () -> ()
    %cst_37 = arith.constant dense<0.000000e+00> : vector<2x8x16xf32>
    %95 = tpu.matmul %92, %94, %cst_37 {dimension_numbers = #tpu.dot_dimension_numbers<[2], [1], [1], [2], [0, 0, 0, 1, 1, 2], [0], [0]>} : vector<2x8x8xbf16>, vector<2x8x16xbf16>, vector<2x8x16xf32> -> vector<2x8x16xf32>
    "tpu.trace_stop"() : () -> ()
    %96 = vector.extract_strided_slice %32 {offsets = [0, 0, 48], sizes = [2, 8, 16], strides = [1, 1, 1]} : vector<2x8x64xf32> to vector<2x8x16xf32>
    %97 = arith.truncf %96 : vector<2x8x16xf32> to vector<2x8x16xbf16>
    %98 = vector.extract_strided_slice %34 {offsets = [0, 0, 48], sizes = [2, 8, 16], strides = [1, 1, 1]} : vector<2x8x64xf32> to vector<2x8x16xf32>
    %99 = arith.truncf %98 : vector<2x8x16xf32> to vector<2x8x16xbf16>
    "tpu.trace_start"() <{level = 10 : i32, message = "bpd,bqd->bpq"}> : () -> ()
    %cst_38 = arith.constant dense<0.000000e+00> : vector<2x8x8xf32>
    %100 = tpu.matmul %97, %99, %cst_38 {dimension_numbers = #tpu.dot_dimension_numbers<[2], [2], [1], [1], [0, 0, 0, 1, 1, 1], [0], [0]>} : vector<2x8x16xbf16>, vector<2x8x16xbf16>, vector<2x8x8xf32> -> vector<2x8x8xf32>
    "tpu.trace_stop"() : () -> ()
    %101 = arith.addf %100, %13 : vector<2x8x8xf32>
    %cst_39 = arith.constant dense<0xFF800000> : vector<2x8xf32>
    %102 = vector.multi_reduction <maximumf>, %101, %cst_39 [2] : vector<2x8x8xf32> to vector<2x8xf32>
    %103 = vector.shape_cast %102 : vector<2x8xf32> to vector<2x8x1xf32>
    %104 = vector.broadcast %103 : vector<2x8x1xf32> to vector<2x8x8xf32>
    %105 = arith.subf %101, %104 : vector<2x8x8xf32>
    %106 = math.exp %105 : vector<2x8x8xf32>
    %cst_40 = arith.constant dense<0.000000e+00> : vector<2x8xf32>
    %107 = vector.multi_reduction <add>, %106, %cst_40 [2] : vector<2x8x8xf32> to vector<2x8xf32>
    %108 = vector.shape_cast %107 : vector<2x8xf32> to vector<2x8x1xf32>
    %109 = tpu.reciprocal %108 {approx = true} : vector<2x8x1xf32> -> vector<2x8x1xf32>
    %110 = vector.broadcast %109 : vector<2x8x1xf32> to vector<2x8x8xf32>
    %111 = arith.mulf %106, %110 : vector<2x8x8xf32>
    %112 = arith.truncf %111 : vector<2x8x8xf32> to vector<2x8x8xbf16>
    %113 = vector.extract_strided_slice %35 {offsets = [0, 0, 48], sizes = [2, 8, 16], strides = [1, 1, 1]} : vector<2x8x64xf32> to vector<2x8x16xf32>
    %114 = arith.truncf %113 : vector<2x8x16xf32> to vector<2x8x16xbf16>
    "tpu.trace_start"() <{level = 10 : i32, message = "bpq,bqd->bpd"}> : () -> ()
    %cst_41 = arith.constant dense<0.000000e+00> : vector<2x8x16xf32>
    %115 = tpu.matmul %112, %114, %cst_41 {dimension_numbers = #tpu.dot_dimension_numbers<[2], [1], [1], [2], [0, 0, 0, 1, 1, 2], [0], [0]>} : vector<2x8x8xbf16>, vector<2x8x16xbf16>, vector<2x8x16xf32> -> vector<2x8x16xf32>
    "tpu.trace_stop"() : () -> ()
    %116 = tpu.concatenate %55, %75, %95, %115 in 2 : vector<2x8x16xf32>, vector<2x8x16xf32>, vector<2x8x16xf32>, vector<2x8x16xf32> -> vector<2x8x64xf32>
    %117 = vector.shape_cast %116 : vector<2x8x64xf32> to vector<16x64xf32>
    %118 = arith.truncf %117 : vector<16x64xf32> to vector<16x64xbf16>
    %c0_42 = arith.constant 0 : index
    %c0_43 = arith.constant 0 : index
    %119 = vector.load %arg8[%c0_42, %c0_43] : memref<64x64xbf16, #tpu.memory_space<vmem>>, vector<64x64xbf16>
    %cst_44 = arith.constant dense<0.000000e+00> : vector<16x64xf32>
    %120 = tpu.matmul %118, %119, %cst_44 {dimension_numbers = #tpu.dot_dimension_numbers<[1], [0], [0], [1], [0, 0, 1, 1], [], []>} : vector<16x64xbf16>, vector<64x64xbf16>, vector<16x64xf32> -> vector<16x64xf32>
    %c0_45 = arith.constant 0 : index
    %c0_46 = arith.constant 0 : index
    %121 = vector.load %arg9[%c0_45, %c0_46] : memref<1x64xf32, #tpu.memory_space<vmem>>, vector<1x64xf32>
    %122 = vector.broadcast %121 : vector<1x64xf32> to vector<16x64xf32>
    %123 = arith.addf %120, %122 : vector<16x64xf32>
    %124 = arith.truncf %123 : vector<16x64xf32> to vector<16x64xbf16>
    %c0_47 = arith.constant 0 : index
    %c0_48 = arith.constant 0 : index
    %125 = vector.load %arg10[%c0_47, %c0_48] : memref<128x384xbf16, #tpu.memory_space<vmem>>, vector<64x384xbf16>
    %cst_49 = arith.constant dense<0.000000e+00> : vector<16x384xf32>
    %126 = tpu.matmul %4, %125, %cst_49 {dimension_numbers = #tpu.dot_dimension_numbers<[1], [0], [0], [1], [0, 0, 1, 1], [], []>} : vector<16x64xbf16>, vector<64x384xbf16>, vector<16x384xf32> -> vector<16x384xf32>
    %c64 = arith.constant 64 : index
    %c0_50 = arith.constant 0 : index
    %127 = vector.load %arg10[%c64, %c0_50] : memref<128x384xbf16, #tpu.memory_space<vmem>>, vector<64x384xbf16>
    %cst_51 = arith.constant dense<0.000000e+00> : vector<16x384xf32>
    %128 = tpu.matmul %124, %127, %cst_51 {dimension_numbers = #tpu.dot_dimension_numbers<[1], [0], [0], [1], [0, 0, 1, 1], [], []>} : vector<16x64xbf16>, vector<64x384xbf16>, vector<16x384xf32> -> vector<16x384xf32>
    %129 = arith.addf %126, %128 : vector<16x384xf32>
    %c0_52 = arith.constant 0 : index
    %c0_53 = arith.constant 0 : index
    %130 = vector.load %arg11[%c0_52, %c0_53] : memref<1x384xf32, #tpu.memory_space<vmem>>, vector<1x384xf32>
    %131 = vector.broadcast %130 : vector<1x384xf32> to vector<16x384xf32>
    %132 = arith.addf %129, %131 : vector<16x384xf32>
    %133 = vector.shape_cast %132 : vector<16x384xf32> to vector<2x8x384xf32>
    %134 = vector.extract_strided_slice %133 {offsets = [0, 0, 0], sizes = [2, 8, 128], strides = [1, 1, 1]} : vector<2x8x384xf32> to vector<2x8x128xf32>
    %135 = vector.extract_strided_slice %133 {offsets = [0, 0, 128], sizes = [2, 8, 128], strides = [1, 1, 1]} : vector<2x8x384xf32> to vector<2x8x128xf32>
    %136 = vector.extract_strided_slice %133 {offsets = [0, 0, 256], sizes = [2, 8, 128], strides = [1, 1, 1]} : vector<2x8x384xf32> to vector<2x8x128xf32>
    %137 = vector.extract_strided_slice %134 {offsets = [0, 0, 0], sizes = [2, 8, 32], strides = [1, 1, 1]} : vector<2x8x128xf32> to vector<2x8x32xf32>
    %138 = arith.truncf %137 : vector<2x8x32xf32> to vector<2x8x32xbf16>
    %139 = vector.extract_strided_slice %135 {offsets = [0, 0, 0], sizes = [2, 8, 32], strides = [1, 1, 1]} : vector<2x8x128xf32> to vector<2x8x32xf32>
    %140 = arith.truncf %139 : vector<2x8x32xf32> to vector<2x8x32xbf16>
    "tpu.trace_start"() <{level = 10 : i32, message = "bpd,bqd->bpq"}> : () -> ()
    %cst_54 = arith.constant dense<0.000000e+00> : vector<2x8x8xf32>
    %141 = tpu.matmul %138, %140, %cst_54 {dimension_numbers = #tpu.dot_dimension_numbers<[2], [2], [1], [1], [0, 0, 0, 1, 1, 1], [0], [0]>} : vector<2x8x32xbf16>, vector<2x8x32xbf16>, vector<2x8x8xf32> -> vector<2x8x8xf32>
    "tpu.trace_stop"() : () -> ()
    %142 = arith.addf %141, %21 : vector<2x8x8xf32>
    %cst_55 = arith.constant dense<0xFF800000> : vector<2x8xf32>
    %143 = vector.multi_reduction <maximumf>, %142, %cst_55 [2] : vector<2x8x8xf32> to vector<2x8xf32>
    %144 = vector.shape_cast %143 : vector<2x8xf32> to vector<2x8x1xf32>
    %145 = vector.broadcast %144 : vector<2x8x1xf32> to vector<2x8x8xf32>
    %146 = arith.subf %142, %145 : vector<2x8x8xf32>
    %147 = math.exp %146 : vector<2x8x8xf32>
    %cst_56 = arith.constant dense<0.000000e+00> : vector<2x8xf32>
    %148 = vector.multi_reduction <add>, %147, %cst_56 [2] : vector<2x8x8xf32> to vector<2x8xf32>
    %149 = vector.shape_cast %148 : vector<2x8xf32> to vector<2x8x1xf32>
    %150 = tpu.reciprocal %149 {approx = true} : vector<2x8x1xf32> -> vector<2x8x1xf32>
    %151 = vector.broadcast %150 : vector<2x8x1xf32> to vector<2x8x8xf32>
    %152 = arith.mulf %147, %151 : vector<2x8x8xf32>
    %153 = arith.truncf %152 : vector<2x8x8xf32> to vector<2x8x8xbf16>
    %154 = vector.extract_strided_slice %136 {offsets = [0, 0, 0], sizes = [2, 8, 32], strides = [1, 1, 1]} : vector<2x8x128xf32> to vector<2x8x32xf32>
    %155 = arith.truncf %154 : vector<2x8x32xf32> to vector<2x8x32xbf16>
    "tpu.trace_start"() <{level = 10 : i32, message = "bpq,bqd->bpd"}> : () -> ()
    %cst_57 = arith.constant dense<0.000000e+00> : vector<2x8x32xf32>
    %156 = tpu.matmul %153, %155, %cst_57 {dimension_numbers = #tpu.dot_dimension_numbers<[2], [1], [1], [2], [0, 0, 0, 1, 1, 2], [0], [0]>} : vector<2x8x8xbf16>, vector<2x8x32xbf16>, vector<2x8x32xf32> -> vector<2x8x32xf32>
    "tpu.trace_stop"() : () -> ()
    %157 = vector.extract_strided_slice %134 {offsets = [0, 0, 32], sizes = [2, 8, 32], strides = [1, 1, 1]} : vector<2x8x128xf32> to vector<2x8x32xf32>
    %158 = arith.truncf %157 : vector<2x8x32xf32> to vector<2x8x32xbf16>
    %159 = vector.extract_strided_slice %135 {offsets = [0, 0, 32], sizes = [2, 8, 32], strides = [1, 1, 1]} : vector<2x8x128xf32> to vector<2x8x32xf32>
    %160 = arith.truncf %159 : vector<2x8x32xf32> to vector<2x8x32xbf16>
    "tpu.trace_start"() <{level = 10 : i32, message = "bpd,bqd->bpq"}> : () -> ()
    %cst_58 = arith.constant dense<0.000000e+00> : vector<2x8x8xf32>
    %161 = tpu.matmul %158, %160, %cst_58 {dimension_numbers = #tpu.dot_dimension_numbers<[2], [2], [1], [1], [0, 0, 0, 1, 1, 1], [0], [0]>} : vector<2x8x32xbf16>, vector<2x8x32xbf16>, vector<2x8x8xf32> -> vector<2x8x8xf32>
    "tpu.trace_stop"() : () -> ()
    %162 = arith.addf %161, %21 : vector<2x8x8xf32>
    %cst_59 = arith.constant dense<0xFF800000> : vector<2x8xf32>
    %163 = vector.multi_reduction <maximumf>, %162, %cst_59 [2] : vector<2x8x8xf32> to vector<2x8xf32>
    %164 = vector.shape_cast %163 : vector<2x8xf32> to vector<2x8x1xf32>
    %165 = vector.broadcast %164 : vector<2x8x1xf32> to vector<2x8x8xf32>
    %166 = arith.subf %162, %165 : vector<2x8x8xf32>
    %167 = math.exp %166 : vector<2x8x8xf32>
    %cst_60 = arith.constant dense<0.000000e+00> : vector<2x8xf32>
    %168 = vector.multi_reduction <add>, %167, %cst_60 [2] : vector<2x8x8xf32> to vector<2x8xf32>
    %169 = vector.shape_cast %168 : vector<2x8xf32> to vector<2x8x1xf32>
    %170 = tpu.reciprocal %169 {approx = true} : vector<2x8x1xf32> -> vector<2x8x1xf32>
    %171 = vector.broadcast %170 : vector<2x8x1xf32> to vector<2x8x8xf32>
    %172 = arith.mulf %167, %171 : vector<2x8x8xf32>
    %173 = arith.truncf %172 : vector<2x8x8xf32> to vector<2x8x8xbf16>
    %174 = vector.extract_strided_slice %136 {offsets = [0, 0, 32], sizes = [2, 8, 32], strides = [1, 1, 1]} : vector<2x8x128xf32> to vector<2x8x32xf32>
    %175 = arith.truncf %174 : vector<2x8x32xf32> to vector<2x8x32xbf16>
    "tpu.trace_start"() <{level = 10 : i32, message = "bpq,bqd->bpd"}> : () -> ()
    %cst_61 = arith.constant dense<0.000000e+00> : vector<2x8x32xf32>
    %176 = tpu.matmul %173, %175, %cst_61 {dimension_numbers = #tpu.dot_dimension_numbers<[2], [1], [1], [2], [0, 0, 0, 1, 1, 2], [0], [0]>} : vector<2x8x8xbf16>, vector<2x8x32xbf16>, vector<2x8x32xf32> -> vector<2x8x32xf32>
    "tpu.trace_stop"() : () -> ()
    %177 = vector.extract_strided_slice %134 {offsets = [0, 0, 64], sizes = [2, 8, 32], strides = [1, 1, 1]} : vector<2x8x128xf32> to vector<2x8x32xf32>
    %178 = arith.truncf %177 : vector<2x8x32xf32> to vector<2x8x32xbf16>
    %179 = vector.extract_strided_slice %135 {offsets = [0, 0, 64], sizes = [2, 8, 32], strides = [1, 1, 1]} : vector<2x8x128xf32> to vector<2x8x32xf32>
    %180 = arith.truncf %179 : vector<2x8x32xf32> to vector<2x8x32xbf16>
    "tpu.trace_start"() <{level = 10 : i32, message = "bpd,bqd->bpq"}> : () -> ()
    %cst_62 = arith.constant dense<0.000000e+00> : vector<2x8x8xf32>
    %181 = tpu.matmul %178, %180, %cst_62 {dimension_numbers = #tpu.dot_dimension_numbers<[2], [2], [1], [1], [0, 0, 0, 1, 1, 1], [0], [0]>} : vector<2x8x32xbf16>, vector<2x8x32xbf16>, vector<2x8x8xf32> -> vector<2x8x8xf32>
    "tpu.trace_stop"() : () -> ()
    %182 = arith.addf %181, %21 : vector<2x8x8xf32>
    %cst_63 = arith.constant dense<0xFF800000> : vector<2x8xf32>
    %183 = vector.multi_reduction <maximumf>, %182, %cst_63 [2] : vector<2x8x8xf32> to vector<2x8xf32>
    %184 = vector.shape_cast %183 : vector<2x8xf32> to vector<2x8x1xf32>
    %185 = vector.broadcast %184 : vector<2x8x1xf32> to vector<2x8x8xf32>
    %186 = arith.subf %182, %185 : vector<2x8x8xf32>
    %187 = math.exp %186 : vector<2x8x8xf32>
    %cst_64 = arith.constant dense<0.000000e+00> : vector<2x8xf32>
    %188 = vector.multi_reduction <add>, %187, %cst_64 [2] : vector<2x8x8xf32> to vector<2x8xf32>
    %189 = vector.shape_cast %188 : vector<2x8xf32> to vector<2x8x1xf32>
    %190 = tpu.reciprocal %189 {approx = true} : vector<2x8x1xf32> -> vector<2x8x1xf32>
    %191 = vector.broadcast %190 : vector<2x8x1xf32> to vector<2x8x8xf32>
    %192 = arith.mulf %187, %191 : vector<2x8x8xf32>
    %193 = arith.truncf %192 : vector<2x8x8xf32> to vector<2x8x8xbf16>
    %194 = vector.extract_strided_slice %136 {offsets = [0, 0, 64], sizes = [2, 8, 32], strides = [1, 1, 1]} : vector<2x8x128xf32> to vector<2x8x32xf32>
    %195 = arith.truncf %194 : vector<2x8x32xf32> to vector<2x8x32xbf16>
    "tpu.trace_start"() <{level = 10 : i32, message = "bpq,bqd->bpd"}> : () -> ()
    %cst_65 = arith.constant dense<0.000000e+00> : vector<2x8x32xf32>
    %196 = tpu.matmul %193, %195, %cst_65 {dimension_numbers = #tpu.dot_dimension_numbers<[2], [1], [1], [2], [0, 0, 0, 1, 1, 2], [0], [0]>} : vector<2x8x8xbf16>, vector<2x8x32xbf16>, vector<2x8x32xf32> -> vector<2x8x32xf32>
    "tpu.trace_stop"() : () -> ()
    %197 = vector.extract_strided_slice %134 {offsets = [0, 0, 96], sizes = [2, 8, 32], strides = [1, 1, 1]} : vector<2x8x128xf32> to vector<2x8x32xf32>
    %198 = arith.truncf %197 : vector<2x8x32xf32> to vector<2x8x32xbf16>
    %199 = vector.extract_strided_slice %135 {offsets = [0, 0, 96], sizes = [2, 8, 32], strides = [1, 1, 1]} : vector<2x8x128xf32> to vector<2x8x32xf32>
    %200 = arith.truncf %199 : vector<2x8x32xf32> to vector<2x8x32xbf16>
    "tpu.trace_start"() <{level = 10 : i32, message = "bpd,bqd->bpq"}> : () -> ()
    %cst_66 = arith.constant dense<0.000000e+00> : vector<2x8x8xf32>
    %201 = tpu.matmul %198, %200, %cst_66 {dimension_numbers = #tpu.dot_dimension_numbers<[2], [2], [1], [1], [0, 0, 0, 1, 1, 1], [0], [0]>} : vector<2x8x32xbf16>, vector<2x8x32xbf16>, vector<2x8x8xf32> -> vector<2x8x8xf32>
    "tpu.trace_stop"() : () -> ()
    %202 = arith.addf %201, %21 : vector<2x8x8xf32>
    %cst_67 = arith.constant dense<0xFF800000> : vector<2x8xf32>
    %203 = vector.multi_reduction <maximumf>, %202, %cst_67 [2] : vector<2x8x8xf32> to vector<2x8xf32>
    %204 = vector.shape_cast %203 : vector<2x8xf32> to vector<2x8x1xf32>
    %205 = vector.broadcast %204 : vector<2x8x1xf32> to vector<2x8x8xf32>
    %206 = arith.subf %202, %205 : vector<2x8x8xf32>
    %207 = math.exp %206 : vector<2x8x8xf32>
    %cst_68 = arith.constant dense<0.000000e+00> : vector<2x8xf32>
    %208 = vector.multi_reduction <add>, %207, %cst_68 [2] : vector<2x8x8xf32> to vector<2x8xf32>
    %209 = vector.shape_cast %208 : vector<2x8xf32> to vector<2x8x1xf32>
    %210 = tpu.reciprocal %209 {approx = true} : vector<2x8x1xf32> -> vector<2x8x1xf32>
    %211 = vector.broadcast %210 : vector<2x8x1xf32> to vector<2x8x8xf32>
    %212 = arith.mulf %207, %211 : vector<2x8x8xf32>
    %213 = arith.truncf %212 : vector<2x8x8xf32> to vector<2x8x8xbf16>
    %214 = vector.extract_strided_slice %136 {offsets = [0, 0, 96], sizes = [2, 8, 32], strides = [1, 1, 1]} : vector<2x8x128xf32> to vector<2x8x32xf32>
    %215 = arith.truncf %214 : vector<2x8x32xf32> to vector<2x8x32xbf16>
    "tpu.trace_start"() <{level = 10 : i32, message = "bpq,bqd->bpd"}> : () -> ()
    %cst_69 = arith.constant dense<0.000000e+00> : vector<2x8x32xf32>
    %216 = tpu.matmul %213, %215, %cst_69 {dimension_numbers = #tpu.dot_dimension_numbers<[2], [1], [1], [2], [0, 0, 0, 1, 1, 2], [0], [0]>} : vector<2x8x8xbf16>, vector<2x8x32xbf16>, vector<2x8x32xf32> -> vector<2x8x32xf32>
    "tpu.trace_stop"() : () -> ()
    %217 = tpu.concatenate %156, %176, %196, %216 in 2 : vector<2x8x32xf32>, vector<2x8x32xf32>, vector<2x8x32xf32>, vector<2x8x32xf32> -> vector<2x8x128xf32>
    %218 = vector.shape_cast %217 : vector<2x8x128xf32> to vector<16x128xf32>
    %219 = arith.truncf %218 : vector<16x128xf32> to vector<16x128xbf16>
    %c0_70 = arith.constant 0 : index
    %c0_71 = arith.constant 0 : index
    %220 = vector.load %arg12[%c0_70, %c0_71] : memref<128x128xbf16, #tpu.memory_space<vmem>>, vector<128x128xbf16>
    %cst_72 = arith.constant dense<0.000000e+00> : vector<16x128xf32>
    %221 = tpu.matmul %219, %220, %cst_72 {dimension_numbers = #tpu.dot_dimension_numbers<[1], [0], [0], [1], [0, 0, 1, 1], [], []>} : vector<16x128xbf16>, vector<128x128xbf16>, vector<16x128xf32> -> vector<16x128xf32>
    %c0_73 = arith.constant 0 : index
    %c0_74 = arith.constant 0 : index
    %222 = vector.load %arg13[%c0_73, %c0_74] : memref<1x128xf32, #tpu.memory_space<vmem>>, vector<1x128xf32>
    %223 = vector.broadcast %222 : vector<1x128xf32> to vector<16x128xf32>
    %224 = arith.addf %221, %223 : vector<16x128xf32>
    %225 = arith.truncf %224 : vector<16x128xf32> to vector<16x128xbf16>
    %c0_75 = arith.constant 0 : index
    %c0_76 = arith.constant 0 : index
    %226 = vector.load %arg14[%c0_75, %c0_76] : memref<256x256xbf16, #tpu.memory_space<vmem>>, vector<64x256xbf16>
    %cst_77 = arith.constant dense<0.000000e+00> : vector<16x256xf32>
    %227 = tpu.matmul %4, %226, %cst_77 {dimension_numbers = #tpu.dot_dimension_numbers<[1], [0], [0], [1], [0, 0, 1, 1], [], []>} : vector<16x64xbf16>, vector<64x256xbf16>, vector<16x256xf32> -> vector<16x256xf32>
    %c64_78 = arith.constant 64 : index
    %c0_79 = arith.constant 0 : index
    %228 = vector.load %arg14[%c64_78, %c0_79] : memref<256x256xbf16, #tpu.memory_space<vmem>>, vector<64x256xbf16>
    %cst_80 = arith.constant dense<0.000000e+00> : vector<16x256xf32>
    %229 = tpu.matmul %124, %228, %cst_80 {dimension_numbers = #tpu.dot_dimension_numbers<[1], [0], [0], [1], [0, 0, 1, 1], [], []>} : vector<16x64xbf16>, vector<64x256xbf16>, vector<16x256xf32> -> vector<16x256xf32>
    %230 = arith.addf %227, %229 : vector<16x256xf32>
    %c128 = arith.constant 128 : index
    %c0_81 = arith.constant 0 : index
    %231 = vector.load %arg14[%c128, %c0_81] : memref<256x256xbf16, #tpu.memory_space<vmem>>, vector<128x256xbf16>
    %cst_82 = arith.constant dense<0.000000e+00> : vector<16x256xf32>
    %232 = tpu.matmul %225, %231, %cst_82 {dimension_numbers = #tpu.dot_dimension_numbers<[1], [0], [0], [1], [0, 0, 1, 1], [], []>} : vector<16x128xbf16>, vector<128x256xbf16>, vector<16x256xf32> -> vector<16x256xf32>
    %233 = arith.addf %230, %232 : vector<16x256xf32>
    %c0_83 = arith.constant 0 : index
    %c0_84 = arith.constant 0 : index
    %234 = vector.load %arg16[%c0_83, %c0_84] : memref<1x256xf32, #tpu.memory_space<vmem>>, vector<1x256xf32>
    %235 = vector.broadcast %234 : vector<1x256xf32> to vector<16x256xf32>
    %236 = arith.addf %233, %235 : vector<16x256xf32>
    %237 = vector.shape_cast %236 : vector<16x256xf32> to vector<2x8x256xf32>
    %c0_85 = arith.constant 0 : index
    %c0_86 = arith.constant 0 : index
    %238 = vector.load %arg15[%c0_85, %c0_86] : memref<64x256xbf16, #tpu.memory_space<vmem>>, vector<64x256xbf16>
    %cst_87 = arith.constant 0.000000e+00 : f32
    %239 = vector.broadcast %cst_87 : f32 to vector<2x32xf32>
    %cst_88 = arith.constant 0.000000e+00 : f32
    %240 = vector.broadcast %cst_88 : f32 to vector<2x32xf32>
    %241 = vector.extract_strided_slice %237 {offsets = [0, 0, 0], sizes = [2, 1, 128], strides = [1, 1, 1]} : vector<2x8x256xf32> to vector<2x1x128xf32>
    %242 = vector.shape_cast %241 : vector<2x1x128xf32> to vector<2x128xf32>
    %243 = vector.extract_strided_slice %237 {offsets = [0, 7, 128], sizes = [2, 1, 128], strides = [1, 1, 1]} : vector<2x8x256xf32> to vector<2x1x128xf32>
    %244 = vector.shape_cast %243 : vector<2x1x128xf32> to vector<2x128xf32>
    %245 = vector.extract_strided_slice %242 {offsets = [0, 0], sizes = [2, 32], strides = [1, 1]} : vector<2x128xf32> to vector<2x32xf32>
    %246 = arith.negf %245 : vector<2x32xf32>
    %247 = math.exp %246 : vector<2x32xf32>
    %cst_89 = arith.constant 1.000000e+00 : f32
    %248 = vector.broadcast %cst_89 : f32 to vector<2x32xf32>
    %249 = arith.addf %248, %247 : vector<2x32xf32>
    %250 = arith.divf %248, %249 : vector<2x32xf32>
    %251 = vector.extract_strided_slice %242 {offsets = [0, 32], sizes = [2, 32], strides = [1, 1]} : vector<2x128xf32> to vector<2x32xf32>
    %252 = arith.negf %251 : vector<2x32xf32>
    %253 = math.exp %252 : vector<2x32xf32>
    %cst_90 = arith.constant 1.000000e+00 : f32
    %254 = vector.broadcast %cst_90 : f32 to vector<2x32xf32>
    %255 = arith.addf %254, %253 : vector<2x32xf32>
    %256 = arith.divf %254, %255 : vector<2x32xf32>
    %257 = vector.extract_strided_slice %242 {offsets = [0, 64], sizes = [2, 32], strides = [1, 1]} : vector<2x128xf32> to vector<2x32xf32>
    %258 = math.tanh %257 : vector<2x32xf32>
    %259 = vector.extract_strided_slice %242 {offsets = [0, 96], sizes = [2, 32], strides = [1, 1]} : vector<2x128xf32> to vector<2x32xf32>
    %260 = arith.negf %259 : vector<2x32xf32>
    %261 = math.exp %260 : vector<2x32xf32>
    %cst_91 = arith.constant 1.000000e+00 : f32
    %262 = vector.broadcast %cst_91 : f32 to vector<2x32xf32>
    %263 = arith.addf %262, %261 : vector<2x32xf32>
    %264 = arith.divf %262, %263 : vector<2x32xf32>
    %265 = arith.mulf %256, %239 : vector<2x32xf32>
    %266 = arith.mulf %250, %258 : vector<2x32xf32>
    %267 = arith.addf %265, %266 : vector<2x32xf32>
    %268 = math.tanh %267 : vector<2x32xf32>
    %269 = arith.mulf %264, %268 : vector<2x32xf32>
    %270 = vector.extract_strided_slice %244 {offsets = [0, 0], sizes = [2, 32], strides = [1, 1]} : vector<2x128xf32> to vector<2x32xf32>
    %271 = arith.negf %270 : vector<2x32xf32>
    %272 = math.exp %271 : vector<2x32xf32>
    %cst_92 = arith.constant 1.000000e+00 : f32
    %273 = vector.broadcast %cst_92 : f32 to vector<2x32xf32>
    %274 = arith.addf %273, %272 : vector<2x32xf32>
    %275 = arith.divf %273, %274 : vector<2x32xf32>
    %276 = vector.extract_strided_slice %244 {offsets = [0, 32], sizes = [2, 32], strides = [1, 1]} : vector<2x128xf32> to vector<2x32xf32>
    %277 = arith.negf %276 : vector<2x32xf32>
    %278 = math.exp %277 : vector<2x32xf32>
    %cst_93 = arith.constant 1.000000e+00 : f32
    %279 = vector.broadcast %cst_93 : f32 to vector<2x32xf32>
    %280 = arith.addf %279, %278 : vector<2x32xf32>
    %281 = arith.divf %279, %280 : vector<2x32xf32>
    %282 = vector.extract_strided_slice %244 {offsets = [0, 64], sizes = [2, 32], strides = [1, 1]} : vector<2x128xf32> to vector<2x32xf32>
    %283 = math.tanh %282 : vector<2x32xf32>
    %284 = vector.extract_strided_slice %244 {offsets = [0, 96], sizes = [2, 32], strides = [1, 1]} : vector<2x128xf32> to vector<2x32xf32>
    %285 = arith.negf %284 : vector<2x32xf32>
    %286 = math.exp %285 : vector<2x32xf32>
    %cst_94 = arith.constant 1.000000e+00 : f32
    %287 = vector.broadcast %cst_94 : f32 to vector<2x32xf32>
    %288 = arith.addf %287, %286 : vector<2x32xf32>
    %289 = arith.divf %287, %288 : vector<2x32xf32>
    %290 = arith.mulf %281, %240 : vector<2x32xf32>
    %291 = arith.mulf %275, %283 : vector<2x32xf32>
    %292 = arith.addf %290, %291 : vector<2x32xf32>
    %293 = math.tanh %292 : vector<2x32xf32>
    %294 = arith.mulf %289, %293 : vector<2x32xf32>
    %c0_95 = arith.constant 0 : index
    %c0_96 = arith.constant 0 : index
    %c0_97 = arith.constant 0 : index
    %295 = vector.load %arg21[%c0_95, %c0_96, %c0_97] : memref<2x8x32xf32, #tpu.memory_space<vmem>>, vector<2x1x32xf32>
    %296 = vector.shape_cast %295 : vector<2x1x32xf32> to vector<2x32xf32>
    %297 = vector.shape_cast %269 : vector<2x32xf32> to vector<2x1x32xf32>
    tpu.vector_store %arg21[%c0_95, %c0_96, %c0_97], %297 {strides = array<i32>} : memref<2x8x32xf32, #tpu.memory_space<vmem>>, vector<2x1x32xf32>,
    %c0_98 = arith.constant 0 : index
    %c7 = arith.constant 7 : index
    %c0_99 = arith.constant 0 : index
    %298 = vector.load %arg22[%c0_98, %c7, %c0_99] : memref<2x8x32xf32, #tpu.memory_space<vmem>>, vector<2x1x32xf32>
    %299 = vector.shape_cast %298 : vector<2x1x32xf32> to vector<2x32xf32>
    %300 = vector.shape_cast %294 : vector<2x32xf32> to vector<2x1x32xf32>
    tpu.vector_store %arg22[%c0_98, %c7, %c0_99], %300 {strides = array<i32>} : memref<2x8x32xf32, #tpu.memory_space<vmem>>, vector<2x1x32xf32>,
    %301 = tpu.concatenate %269, %294 in 1 : vector<2x32xf32>, vector<2x32xf32> -> vector<2x64xf32>
    %302 = vector.extract_strided_slice %237 {offsets = [0, 1, 0], sizes = [2, 1, 128], strides = [1, 1, 1]} : vector<2x8x256xf32> to vector<2x1x128xf32>
    %303 = vector.shape_cast %302 : vector<2x1x128xf32> to vector<2x128xf32>
    %304 = vector.extract_strided_slice %237 {offsets = [0, 6, 128], sizes = [2, 1, 128], strides = [1, 1, 1]} : vector<2x8x256xf32> to vector<2x1x128xf32>
    %305 = vector.shape_cast %304 : vector<2x1x128xf32> to vector<2x128xf32>
    %306 = arith.truncf %301 : vector<2x64xf32> to vector<2x64xbf16>
    %cst_100 = arith.constant dense<0.000000e+00> : vector<2x256xf32>
    %307 = tpu.matmul %306, %238, %cst_100 {dimension_numbers = #tpu.dot_dimension_numbers<[1], [0], [0], [1], [0, 0, 1, 1], [], []>} : vector<2x64xbf16>, vector<64x256xbf16>, vector<2x256xf32> -> vector<2x256xf32>
    %308 = vector.extract_strided_slice %307 {offsets = [0, 0], sizes = [2, 128], strides = [1, 1]} : vector<2x256xf32> to vector<2x128xf32>
    %309 = arith.addf %303, %308 : vector<2x128xf32>
    %310 = vector.extract_strided_slice %307 {offsets = [0, 128], sizes = [2, 128], strides = [1, 1]} : vector<2x256xf32> to vector<2x128xf32>
    %311 = arith.addf %305, %310 : vector<2x128xf32>
    %312 = vector.extract_strided_slice %309 {offsets = [0, 0], sizes = [2, 32], strides = [1, 1]} : vector<2x128xf32> to vector<2x32xf32>
    %313 = arith.negf %312 : vector<2x32xf32>
    %314 = math.exp %313 : vector<2x32xf32>
    %cst_101 = arith.constant 1.000000e+00 : f32
    %315 = vector.broadcast %cst_101 : f32 to vector<2x32xf32>
    %316 = arith.addf %315, %314 : vector<2x32xf32>
    %317 = arith.divf %315, %316 : vector<2x32xf32>
    %318 = vector.extract_strided_slice %309 {offsets = [0, 32], sizes = [2, 32], strides = [1, 1]} : vector<2x128xf32> to vector<2x32xf32>
    %319 = arith.negf %318 : vector<2x32xf32>
    %320 = math.exp %319 : vector<2x32xf32>
    %cst_102 = arith.constant 1.000000e+00 : f32
    %321 = vector.broadcast %cst_102 : f32 to vector<2x32xf32>
    %322 = arith.addf %321, %320 : vector<2x32xf32>
    %323 = arith.divf %321, %322 : vector<2x32xf32>
    %324 = vector.extract_strided_slice %309 {offsets = [0, 64], sizes = [2, 32], strides = [1, 1]} : vector<2x128xf32> to vector<2x32xf32>
    %325 = math.tanh %324 : vector<2x32xf32>
    %326 = vector.extract_strided_slice %309 {offsets = [0, 96], sizes = [2, 32], strides = [1, 1]} : vector<2x128xf32> to vector<2x32xf32>
    %327 = arith.negf %326 : vector<2x32xf32>
    %328 = math.exp %327 : vector<2x32xf32>
    %cst_103 = arith.constant 1.000000e+00 : f32
    %329 = vector.broadcast %cst_103 : f32 to vector<2x32xf32>
    %330 = arith.addf %329, %328 : vector<2x32xf32>
    %331 = arith.divf %329, %330 : vector<2x32xf32>
    %332 = arith.mulf %323, %267 : vector<2x32xf32>
    %333 = arith.mulf %317, %325 : vector<2x32xf32>
    %334 = arith.addf %332, %333 : vector<2x32xf32>
    %335 = math.tanh %334 : vector<2x32xf32>
    %336 = arith.mulf %331, %335 : vector<2x32xf32>
    %337 = vector.extract_strided_slice %311 {offsets = [0, 0], sizes = [2, 32], strides = [1, 1]} : vector<2x128xf32> to vector<2x32xf32>
    %338 = arith.negf %337 : vector<2x32xf32>
    %339 = math.exp %338 : vector<2x32xf32>
    %cst_104 = arith.constant 1.000000e+00 : f32
    %340 = vector.broadcast %cst_104 : f32 to vector<2x32xf32>
    %341 = arith.addf %340, %339 : vector<2x32xf32>
    %342 = arith.divf %340, %341 : vector<2x32xf32>
    %343 = vector.extract_strided_slice %311 {offsets = [0, 32], sizes = [2, 32], strides = [1, 1]} : vector<2x128xf32> to vector<2x32xf32>
    %344 = arith.negf %343 : vector<2x32xf32>
    %345 = math.exp %344 : vector<2x32xf32>
    %cst_105 = arith.constant 1.000000e+00 : f32
    %346 = vector.broadcast %cst_105 : f32 to vector<2x32xf32>
    %347 = arith.addf %346, %345 : vector<2x32xf32>
    %348 = arith.divf %346, %347 : vector<2x32xf32>
    %349 = vector.extract_strided_slice %311 {offsets = [0, 64], sizes = [2, 32], strides = [1, 1]} : vector<2x128xf32> to vector<2x32xf32>
    %350 = math.tanh %349 : vector<2x32xf32>
    %351 = vector.extract_strided_slice %311 {offsets = [0, 96], sizes = [2, 32], strides = [1, 1]} : vector<2x128xf32> to vector<2x32xf32>
    %352 = arith.negf %351 : vector<2x32xf32>
    %353 = math.exp %352 : vector<2x32xf32>
    %cst_106 = arith.constant 1.000000e+00 : f32
    %354 = vector.broadcast %cst_106 : f32 to vector<2x32xf32>
    %355 = arith.addf %354, %353 : vector<2x32xf32>
    %356 = arith.divf %354, %355 : vector<2x32xf32>
    %357 = arith.mulf %348, %292 : vector<2x32xf32>
    %358 = arith.mulf %342, %350 : vector<2x32xf32>
    %359 = arith.addf %357, %358 : vector<2x32xf32>
    %360 = math.tanh %359 : vector<2x32xf32>
    %361 = arith.mulf %356, %360 : vector<2x32xf32>
    %c0_107 = arith.constant 0 : index
    %c1 = arith.constant 1 : index
    %c0_108 = arith.constant 0 : index
    %362 = vector.load %arg21[%c0_107, %c1, %c0_108] : memref<2x8x32xf32, #tpu.memory_space<vmem>>, vector<2x1x32xf32>
    %363 = vector.shape_cast %362 : vector<2x1x32xf32> to vector<2x32xf32>
    %364 = vector.shape_cast %336 : vector<2x32xf32> to vector<2x1x32xf32>
    tpu.vector_store %arg21[%c0_107, %c1, %c0_108], %364 {strides = array<i32>} : memref<2x8x32xf32, #tpu.memory_space<vmem>>, vector<2x1x32xf32>,
    %c0_109 = arith.constant 0 : index
    %c6 = arith.constant 6 : index
    %c0_110 = arith.constant 0 : index
    %365 = vector.load %arg22[%c0_109, %c6, %c0_110] : memref<2x8x32xf32, #tpu.memory_space<vmem>>, vector<2x1x32xf32>
    %366 = vector.shape_cast %365 : vector<2x1x32xf32> to vector<2x32xf32>
    %367 = vector.shape_cast %361 : vector<2x32xf32> to vector<2x1x32xf32>
    tpu.vector_store %arg22[%c0_109, %c6, %c0_110], %367 {strides = array<i32>} : memref<2x8x32xf32, #tpu.memory_space<vmem>>, vector<2x1x32xf32>,
    %368 = tpu.concatenate %336, %361 in 1 : vector<2x32xf32>, vector<2x32xf32> -> vector<2x64xf32>
    %369 = vector.extract_strided_slice %237 {offsets = [0, 2, 0], sizes = [2, 1, 128], strides = [1, 1, 1]} : vector<2x8x256xf32> to vector<2x1x128xf32>
    %370 = vector.shape_cast %369 : vector<2x1x128xf32> to vector<2x128xf32>
    %371 = vector.extract_strided_slice %237 {offsets = [0, 5, 128], sizes = [2, 1, 128], strides = [1, 1, 1]} : vector<2x8x256xf32> to vector<2x1x128xf32>
    %372 = vector.shape_cast %371 : vector<2x1x128xf32> to vector<2x128xf32>
    %373 = arith.truncf %368 : vector<2x64xf32> to vector<2x64xbf16>
    %cst_111 = arith.constant dense<0.000000e+00> : vector<2x256xf32>
    %374 = tpu.matmul %373, %238, %cst_111 {dimension_numbers = #tpu.dot_dimension_numbers<[1], [0], [0], [1], [0, 0, 1, 1], [], []>} : vector<2x64xbf16>, vector<64x256xbf16>, vector<2x256xf32> -> vector<2x256xf32>
    %375 = vector.extract_strided_slice %374 {offsets = [0, 0], sizes = [2, 128], strides = [1, 1]} : vector<2x256xf32> to vector<2x128xf32>
    %376 = arith.addf %370, %375 : vector<2x128xf32>
    %377 = vector.extract_strided_slice %374 {offsets = [0, 128], sizes = [2, 128], strides = [1, 1]} : vector<2x256xf32> to vector<2x128xf32>
    %378 = arith.addf %372, %377 : vector<2x128xf32>
    %379 = vector.extract_strided_slice %376 {offsets = [0, 0], sizes = [2, 32], strides = [1, 1]} : vector<2x128xf32> to vector<2x32xf32>
    %380 = arith.negf %379 : vector<2x32xf32>
    %381 = math.exp %380 : vector<2x32xf32>
    %cst_112 = arith.constant 1.000000e+00 : f32
    %382 = vector.broadcast %cst_112 : f32 to vector<2x32xf32>
    %383 = arith.addf %382, %381 : vector<2x32xf32>
    %384 = arith.divf %382, %383 : vector<2x32xf32>
    %385 = vector.extract_strided_slice %376 {offsets = [0, 32], sizes = [2, 32], strides = [1, 1]} : vector<2x128xf32> to vector<2x32xf32>
    %386 = arith.negf %385 : vector<2x32xf32>
    %387 = math.exp %386 : vector<2x32xf32>
    %cst_113 = arith.constant 1.000000e+00 : f32
    %388 = vector.broadcast %cst_113 : f32 to vector<2x32xf32>
    %389 = arith.addf %388, %387 : vector<2x32xf32>
    %390 = arith.divf %388, %389 : vector<2x32xf32>
    %391 = vector.extract_strided_slice %376 {offsets = [0, 64], sizes = [2, 32], strides = [1, 1]} : vector<2x128xf32> to vector<2x32xf32>
    %392 = math.tanh %391 : vector<2x32xf32>
    %393 = vector.extract_strided_slice %376 {offsets = [0, 96], sizes = [2, 32], strides = [1, 1]} : vector<2x128xf32> to vector<2x32xf32>
    %394 = arith.negf %393 : vector<2x32xf32>
    %395 = math.exp %394 : vector<2x32xf32>
    %cst_114 = arith.constant 1.000000e+00 : f32
    %396 = vector.broadcast %cst_114 : f32 to vector<2x32xf32>
    %397 = arith.addf %396, %395 : vector<2x32xf32>
    %398 = arith.divf %396, %397 : vector<2x32xf32>
    %399 = arith.mulf %390, %334 : vector<2x32xf32>
    %400 = arith.mulf %384, %392 : vector<2x32xf32>
    %401 = arith.addf %399, %400 : vector<2x32xf32>
    %402 = math.tanh %401 : vector<2x32xf32>
    %403 = arith.mulf %398, %402 : vector<2x32xf32>
    %404 = vector.extract_strided_slice %378 {offsets = [0, 0], sizes = [2, 32], strides = [1, 1]} : vector<2x128xf32> to vector<2x32xf32>
    %405 = arith.negf %404 : vector<2x32xf32>
    %406 = math.exp %405 : vector<2x32xf32>
    %cst_115 = arith.constant 1.000000e+00 : f32
    %407 = vector.broadcast %cst_115 : f32 to vector<2x32xf32>
    %408 = arith.addf %407, %406 : vector<2x32xf32>
    %409 = arith.divf %407, %408 : vector<2x32xf32>
    %410 = vector.extract_strided_slice %378 {offsets = [0, 32], sizes = [2, 32], strides = [1, 1]} : vector<2x128xf32> to vector<2x32xf32>
    %411 = arith.negf %410 : vector<2x32xf32>
    %412 = math.exp %411 : vector<2x32xf32>
    %cst_116 = arith.constant 1.000000e+00 : f32
    %413 = vector.broadcast %cst_116 : f32 to vector<2x32xf32>
    %414 = arith.addf %413, %412 : vector<2x32xf32>
    %415 = arith.divf %413, %414 : vector<2x32xf32>
    %416 = vector.extract_strided_slice %378 {offsets = [0, 64], sizes = [2, 32], strides = [1, 1]} : vector<2x128xf32> to vector<2x32xf32>
    %417 = math.tanh %416 : vector<2x32xf32>
    %418 = vector.extract_strided_slice %378 {offsets = [0, 96], sizes = [2, 32], strides = [1, 1]} : vector<2x128xf32> to vector<2x32xf32>
    %419 = arith.negf %418 : vector<2x32xf32>
    %420 = math.exp %419 : vector<2x32xf32>
    %cst_117 = arith.constant 1.000000e+00 : f32
    %421 = vector.broadcast %cst_117 : f32 to vector<2x32xf32>
    %422 = arith.addf %421, %420 : vector<2x32xf32>
    %423 = arith.divf %421, %422 : vector<2x32xf32>
    %424 = arith.mulf %415, %359 : vector<2x32xf32>
    %425 = arith.mulf %409, %417 : vector<2x32xf32>
    %426 = arith.addf %424, %425 : vector<2x32xf32>
    %427 = math.tanh %426 : vector<2x32xf32>
    %428 = arith.mulf %423, %427 : vector<2x32xf32>
    %c0_118 = arith.constant 0 : index
    %c2 = arith.constant 2 : index
    %c0_119 = arith.constant 0 : index
    %429 = vector.load %arg21[%c0_118, %c2, %c0_119] : memref<2x8x32xf32, #tpu.memory_space<vmem>>, vector<2x1x32xf32>
    %430 = vector.shape_cast %429 : vector<2x1x32xf32> to vector<2x32xf32>
    %431 = vector.shape_cast %403 : vector<2x32xf32> to vector<2x1x32xf32>
    tpu.vector_store %arg21[%c0_118, %c2, %c0_119], %431 {strides = array<i32>} : memref<2x8x32xf32, #tpu.memory_space<vmem>>, vector<2x1x32xf32>,
    %c0_120 = arith.constant 0 : index
    %c5 = arith.constant 5 : index
    %c0_121 = arith.constant 0 : index
    %432 = vector.load %arg22[%c0_120, %c5, %c0_121] : memref<2x8x32xf32, #tpu.memory_space<vmem>>, vector<2x1x32xf32>
    %433 = vector.shape_cast %432 : vector<2x1x32xf32> to vector<2x32xf32>
    %434 = vector.shape_cast %428 : vector<2x32xf32> to vector<2x1x32xf32>
    tpu.vector_store %arg22[%c0_120, %c5, %c0_121], %434 {strides = array<i32>} : memref<2x8x32xf32, #tpu.memory_space<vmem>>, vector<2x1x32xf32>,
    %435 = tpu.concatenate %403, %428 in 1 : vector<2x32xf32>, vector<2x32xf32> -> vector<2x64xf32>
    %436 = vector.extract_strided_slice %237 {offsets = [0, 3, 0], sizes = [2, 1, 128], strides = [1, 1, 1]} : vector<2x8x256xf32> to vector<2x1x128xf32>
    %437 = vector.shape_cast %436 : vector<2x1x128xf32> to vector<2x128xf32>
    %438 = vector.extract_strided_slice %237 {offsets = [0, 4, 128], sizes = [2, 1, 128], strides = [1, 1, 1]} : vector<2x8x256xf32> to vector<2x1x128xf32>
    %439 = vector.shape_cast %438 : vector<2x1x128xf32> to vector<2x128xf32>
    %440 = arith.truncf %435 : vector<2x64xf32> to vector<2x64xbf16>
    %cst_122 = arith.constant dense<0.000000e+00> : vector<2x256xf32>
    %441 = tpu.matmul %440, %238, %cst_122 {dimension_numbers = #tpu.dot_dimension_numbers<[1], [0], [0], [1], [0, 0, 1, 1], [], []>} : vector<2x64xbf16>, vector<64x256xbf16>, vector<2x256xf32> -> vector<2x256xf32>
    %442 = vector.extract_strided_slice %441 {offsets = [0, 0], sizes = [2, 128], strides = [1, 1]} : vector<2x256xf32> to vector<2x128xf32>
    %443 = arith.addf %437, %442 : vector<2x128xf32>
    %444 = vector.extract_strided_slice %441 {offsets = [0, 128], sizes = [2, 128], strides = [1, 1]} : vector<2x256xf32> to vector<2x128xf32>
    %445 = arith.addf %439, %444 : vector<2x128xf32>
    %446 = vector.extract_strided_slice %443 {offsets = [0, 0], sizes = [2, 32], strides = [1, 1]} : vector<2x128xf32> to vector<2x32xf32>
    %447 = arith.negf %446 : vector<2x32xf32>
    %448 = math.exp %447 : vector<2x32xf32>
    %cst_123 = arith.constant 1.000000e+00 : f32
    %449 = vector.broadcast %cst_123 : f32 to vector<2x32xf32>
    %450 = arith.addf %449, %448 : vector<2x32xf32>
    %451 = arith.divf %449, %450 : vector<2x32xf32>
    %452 = vector.extract_strided_slice %443 {offsets = [0, 32], sizes = [2, 32], strides = [1, 1]} : vector<2x128xf32> to vector<2x32xf32>
    %453 = arith.negf %452 : vector<2x32xf32>
    %454 = math.exp %453 : vector<2x32xf32>
    %cst_124 = arith.constant 1.000000e+00 : f32
    %455 = vector.broadcast %cst_124 : f32 to vector<2x32xf32>
    %456 = arith.addf %455, %454 : vector<2x32xf32>
    %457 = arith.divf %455, %456 : vector<2x32xf32>
    %458 = vector.extract_strided_slice %443 {offsets = [0, 64], sizes = [2, 32], strides = [1, 1]} : vector<2x128xf32> to vector<2x32xf32>
    %459 = math.tanh %458 : vector<2x32xf32>
    %460 = vector.extract_strided_slice %443 {offsets = [0, 96], sizes = [2, 32], strides = [1, 1]} : vector<2x128xf32> to vector<2x32xf32>
    %461 = arith.negf %460 : vector<2x32xf32>
    %462 = math.exp %461 : vector<2x32xf32>
    %cst_125 = arith.constant 1.000000e+00 : f32
    %463 = vector.broadcast %cst_125 : f32 to vector<2x32xf32>
    %464 = arith.addf %463, %462 : vector<2x32xf32>
    %465 = arith.divf %463, %464 : vector<2x32xf32>
    %466 = arith.mulf %457, %401 : vector<2x32xf32>
    %467 = arith.mulf %451, %459 : vector<2x32xf32>
    %468 = arith.addf %466, %467 : vector<2x32xf32>
    %469 = math.tanh %468 : vector<2x32xf32>
    %470 = arith.mulf %465, %469 : vector<2x32xf32>
    %471 = vector.extract_strided_slice %445 {offsets = [0, 0], sizes = [2, 32], strides = [1, 1]} : vector<2x128xf32> to vector<2x32xf32>
    %472 = arith.negf %471 : vector<2x32xf32>
    %473 = math.exp %472 : vector<2x32xf32>
    %cst_126 = arith.constant 1.000000e+00 : f32
    %474 = vector.broadcast %cst_126 : f32 to vector<2x32xf32>
    %475 = arith.addf %474, %473 : vector<2x32xf32>
    %476 = arith.divf %474, %475 : vector<2x32xf32>
    %477 = vector.extract_strided_slice %445 {offsets = [0, 32], sizes = [2, 32], strides = [1, 1]} : vector<2x128xf32> to vector<2x32xf32>
    %478 = arith.negf %477 : vector<2x32xf32>
    %479 = math.exp %478 : vector<2x32xf32>
    %cst_127 = arith.constant 1.000000e+00 : f32
    %480 = vector.broadcast %cst_127 : f32 to vector<2x32xf32>
    %481 = arith.addf %480, %479 : vector<2x32xf32>
    %482 = arith.divf %480, %481 : vector<2x32xf32>
    %483 = vector.extract_strided_slice %445 {offsets = [0, 64], sizes = [2, 32], strides = [1, 1]} : vector<2x128xf32> to vector<2x32xf32>
    %484 = math.tanh %483 : vector<2x32xf32>
    %485 = vector.extract_strided_slice %445 {offsets = [0, 96], sizes = [2, 32], strides = [1, 1]} : vector<2x128xf32> to vector<2x32xf32>
    %486 = arith.negf %485 : vector<2x32xf32>
    %487 = math.exp %486 : vector<2x32xf32>
    %cst_128 = arith.constant 1.000000e+00 : f32
    %488 = vector.broadcast %cst_128 : f32 to vector<2x32xf32>
    %489 = arith.addf %488, %487 : vector<2x32xf32>
    %490 = arith.divf %488, %489 : vector<2x32xf32>
    %491 = arith.mulf %482, %426 : vector<2x32xf32>
    %492 = arith.mulf %476, %484 : vector<2x32xf32>
    %493 = arith.addf %491, %492 : vector<2x32xf32>
    %494 = math.tanh %493 : vector<2x32xf32>
    %495 = arith.mulf %490, %494 : vector<2x32xf32>
    %c0_129 = arith.constant 0 : index
    %c3 = arith.constant 3 : index
    %c0_130 = arith.constant 0 : index
    %496 = vector.load %arg21[%c0_129, %c3, %c0_130] : memref<2x8x32xf32, #tpu.memory_space<vmem>>, vector<2x1x32xf32>
    %497 = vector.shape_cast %496 : vector<2x1x32xf32> to vector<2x32xf32>
    %498 = vector.shape_cast %470 : vector<2x32xf32> to vector<2x1x32xf32>
    tpu.vector_store %arg21[%c0_129, %c3, %c0_130], %498 {strides = array<i32>} : memref<2x8x32xf32, #tpu.memory_space<vmem>>, vector<2x1x32xf32>,
    %c0_131 = arith.constant 0 : index
    %c4 = arith.constant 4 : index
    %c0_132 = arith.constant 0 : index
    %499 = vector.load %arg22[%c0_131, %c4, %c0_132] : memref<2x8x32xf32, #tpu.memory_space<vmem>>, vector<2x1x32xf32>
    %500 = vector.shape_cast %499 : vector<2x1x32xf32> to vector<2x32xf32>
    %501 = vector.shape_cast %495 : vector<2x32xf32> to vector<2x1x32xf32>
    tpu.vector_store %arg22[%c0_131, %c4, %c0_132], %501 {strides = array<i32>} : memref<2x8x32xf32, #tpu.memory_space<vmem>>, vector<2x1x32xf32>,
    %502 = tpu.concatenate %470, %495 in 1 : vector<2x32xf32>, vector<2x32xf32> -> vector<2x64xf32>
    %503 = vector.extract_strided_slice %237 {offsets = [0, 4, 0], sizes = [2, 1, 128], strides = [1, 1, 1]} : vector<2x8x256xf32> to vector<2x1x128xf32>
    %504 = vector.shape_cast %503 : vector<2x1x128xf32> to vector<2x128xf32>
    %505 = vector.extract_strided_slice %237 {offsets = [0, 3, 128], sizes = [2, 1, 128], strides = [1, 1, 1]} : vector<2x8x256xf32> to vector<2x1x128xf32>
    %506 = vector.shape_cast %505 : vector<2x1x128xf32> to vector<2x128xf32>
    %507 = arith.truncf %502 : vector<2x64xf32> to vector<2x64xbf16>
    %cst_133 = arith.constant dense<0.000000e+00> : vector<2x256xf32>
    %508 = tpu.matmul %507, %238, %cst_133 {dimension_numbers = #tpu.dot_dimension_numbers<[1], [0], [0], [1], [0, 0, 1, 1], [], []>} : vector<2x64xbf16>, vector<64x256xbf16>, vector<2x256xf32> -> vector<2x256xf32>
    %509 = vector.extract_strided_slice %508 {offsets = [0, 0], sizes = [2, 128], strides = [1, 1]} : vector<2x256xf32> to vector<2x128xf32>
    %510 = arith.addf %504, %509 : vector<2x128xf32>
    %511 = vector.extract_strided_slice %508 {offsets = [0, 128], sizes = [2, 128], strides = [1, 1]} : vector<2x256xf32> to vector<2x128xf32>
    %512 = arith.addf %506, %511 : vector<2x128xf32>
    %513 = vector.extract_strided_slice %510 {offsets = [0, 0], sizes = [2, 32], strides = [1, 1]} : vector<2x128xf32> to vector<2x32xf32>
    %514 = arith.negf %513 : vector<2x32xf32>
    %515 = math.exp %514 : vector<2x32xf32>
    %cst_134 = arith.constant 1.000000e+00 : f32
    %516 = vector.broadcast %cst_134 : f32 to vector<2x32xf32>
    %517 = arith.addf %516, %515 : vector<2x32xf32>
    %518 = arith.divf %516, %517 : vector<2x32xf32>
    %519 = vector.extract_strided_slice %510 {offsets = [0, 32], sizes = [2, 32], strides = [1, 1]} : vector<2x128xf32> to vector<2x32xf32>
    %520 = arith.negf %519 : vector<2x32xf32>
    %521 = math.exp %520 : vector<2x32xf32>
    %cst_135 = arith.constant 1.000000e+00 : f32
    %522 = vector.broadcast %cst_135 : f32 to vector<2x32xf32>
    %523 = arith.addf %522, %521 : vector<2x32xf32>
    %524 = arith.divf %522, %523 : vector<2x32xf32>
    %525 = vector.extract_strided_slice %510 {offsets = [0, 64], sizes = [2, 32], strides = [1, 1]} : vector<2x128xf32> to vector<2x32xf32>
    %526 = math.tanh %525 : vector<2x32xf32>
    %527 = vector.extract_strided_slice %510 {offsets = [0, 96], sizes = [2, 32], strides = [1, 1]} : vector<2x128xf32> to vector<2x32xf32>
    %528 = arith.negf %527 : vector<2x32xf32>
    %529 = math.exp %528 : vector<2x32xf32>
    %cst_136 = arith.constant 1.000000e+00 : f32
    %530 = vector.broadcast %cst_136 : f32 to vector<2x32xf32>
    %531 = arith.addf %530, %529 : vector<2x32xf32>
    %532 = arith.divf %530, %531 : vector<2x32xf32>
    %533 = arith.mulf %524, %468 : vector<2x32xf32>
    %534 = arith.mulf %518, %526 : vector<2x32xf32>
    %535 = arith.addf %533, %534 : vector<2x32xf32>
    %536 = math.tanh %535 : vector<2x32xf32>
    %537 = arith.mulf %532, %536 : vector<2x32xf32>
    %538 = vector.extract_strided_slice %512 {offsets = [0, 0], sizes = [2, 32], strides = [1, 1]} : vector<2x128xf32> to vector<2x32xf32>
    %539 = arith.negf %538 : vector<2x32xf32>
    %540 = math.exp %539 : vector<2x32xf32>
    %cst_137 = arith.constant 1.000000e+00 : f32
    %541 = vector.broadcast %cst_137 : f32 to vector<2x32xf32>
    %542 = arith.addf %541, %540 : vector<2x32xf32>
    %543 = arith.divf %541, %542 : vector<2x32xf32>
    %544 = vector.extract_strided_slice %512 {offsets = [0, 32], sizes = [2, 32], strides = [1, 1]} : vector<2x128xf32> to vector<2x32xf32>
    %545 = arith.negf %544 : vector<2x32xf32>
    %546 = math.exp %545 : vector<2x32xf32>
    %cst_138 = arith.constant 1.000000e+00 : f32
    %547 = vector.broadcast %cst_138 : f32 to vector<2x32xf32>
    %548 = arith.addf %547, %546 : vector<2x32xf32>
    %549 = arith.divf %547, %548 : vector<2x32xf32>
    %550 = vector.extract_strided_slice %512 {offsets = [0, 64], sizes = [2, 32], strides = [1, 1]} : vector<2x128xf32> to vector<2x32xf32>
    %551 = math.tanh %550 : vector<2x32xf32>
    %552 = vector.extract_strided_slice %512 {offsets = [0, 96], sizes = [2, 32], strides = [1, 1]} : vector<2x128xf32> to vector<2x32xf32>
    %553 = arith.negf %552 : vector<2x32xf32>
    %554 = math.exp %553 : vector<2x32xf32>
    %cst_139 = arith.constant 1.000000e+00 : f32
    %555 = vector.broadcast %cst_139 : f32 to vector<2x32xf32>
    %556 = arith.addf %555, %554 : vector<2x32xf32>
    %557 = arith.divf %555, %556 : vector<2x32xf32>
    %558 = arith.mulf %549, %493 : vector<2x32xf32>
    %559 = arith.mulf %543, %551 : vector<2x32xf32>
    %560 = arith.addf %558, %559 : vector<2x32xf32>
    %561 = math.tanh %560 : vector<2x32xf32>
    %562 = arith.mulf %557, %561 : vector<2x32xf32>
    %c0_140 = arith.constant 0 : index
    %c4_141 = arith.constant 4 : index
    %c0_142 = arith.constant 0 : index
    %563 = vector.load %arg21[%c0_140, %c4_141, %c0_142] : memref<2x8x32xf32, #tpu.memory_space<vmem>>, vector<2x1x32xf32>
    %564 = vector.shape_cast %563 : vector<2x1x32xf32> to vector<2x32xf32>
    %565 = vector.shape_cast %537 : vector<2x32xf32> to vector<2x1x32xf32>
    tpu.vector_store %arg21[%c0_140, %c4_141, %c0_142], %565 {strides = array<i32>} : memref<2x8x32xf32, #tpu.memory_space<vmem>>, vector<2x1x32xf32>,
    %c0_143 = arith.constant 0 : index
    %c3_144 = arith.constant 3 : index
    %c0_145 = arith.constant 0 : index
    %566 = vector.load %arg22[%c0_143, %c3_144, %c0_145] : memref<2x8x32xf32, #tpu.memory_space<vmem>>, vector<2x1x32xf32>
    %567 = vector.shape_cast %566 : vector<2x1x32xf32> to vector<2x32xf32>
    %568 = vector.shape_cast %562 : vector<2x32xf32> to vector<2x1x32xf32>
    tpu.vector_store %arg22[%c0_143, %c3_144, %c0_145], %568 {strides = array<i32>} : memref<2x8x32xf32, #tpu.memory_space<vmem>>, vector<2x1x32xf32>,
    %569 = tpu.concatenate %537, %562 in 1 : vector<2x32xf32>, vector<2x32xf32> -> vector<2x64xf32>
    %570 = vector.extract_strided_slice %237 {offsets = [0, 5, 0], sizes = [2, 1, 128], strides = [1, 1, 1]} : vector<2x8x256xf32> to vector<2x1x128xf32>
    %571 = vector.shape_cast %570 : vector<2x1x128xf32> to vector<2x128xf32>
    %572 = vector.extract_strided_slice %237 {offsets = [0, 2, 128], sizes = [2, 1, 128], strides = [1, 1, 1]} : vector<2x8x256xf32> to vector<2x1x128xf32>
    %573 = vector.shape_cast %572 : vector<2x1x128xf32> to vector<2x128xf32>
    %574 = arith.truncf %569 : vector<2x64xf32> to vector<2x64xbf16>
    %cst_146 = arith.constant dense<0.000000e+00> : vector<2x256xf32>
    %575 = tpu.matmul %574, %238, %cst_146 {dimension_numbers = #tpu.dot_dimension_numbers<[1], [0], [0], [1], [0, 0, 1, 1], [], []>} : vector<2x64xbf16>, vector<64x256xbf16>, vector<2x256xf32> -> vector<2x256xf32>
    %576 = vector.extract_strided_slice %575 {offsets = [0, 0], sizes = [2, 128], strides = [1, 1]} : vector<2x256xf32> to vector<2x128xf32>
    %577 = arith.addf %571, %576 : vector<2x128xf32>
    %578 = vector.extract_strided_slice %575 {offsets = [0, 128], sizes = [2, 128], strides = [1, 1]} : vector<2x256xf32> to vector<2x128xf32>
    %579 = arith.addf %573, %578 : vector<2x128xf32>
    %580 = vector.extract_strided_slice %577 {offsets = [0, 0], sizes = [2, 32], strides = [1, 1]} : vector<2x128xf32> to vector<2x32xf32>
    %581 = arith.negf %580 : vector<2x32xf32>
    %582 = math.exp %581 : vector<2x32xf32>
    %cst_147 = arith.constant 1.000000e+00 : f32
    %583 = vector.broadcast %cst_147 : f32 to vector<2x32xf32>
    %584 = arith.addf %583, %582 : vector<2x32xf32>
    %585 = arith.divf %583, %584 : vector<2x32xf32>
    %586 = vector.extract_strided_slice %577 {offsets = [0, 32], sizes = [2, 32], strides = [1, 1]} : vector<2x128xf32> to vector<2x32xf32>
    %587 = arith.negf %586 : vector<2x32xf32>
    %588 = math.exp %587 : vector<2x32xf32>
    %cst_148 = arith.constant 1.000000e+00 : f32
    %589 = vector.broadcast %cst_148 : f32 to vector<2x32xf32>
    %590 = arith.addf %589, %588 : vector<2x32xf32>
    %591 = arith.divf %589, %590 : vector<2x32xf32>
    %592 = vector.extract_strided_slice %577 {offsets = [0, 64], sizes = [2, 32], strides = [1, 1]} : vector<2x128xf32> to vector<2x32xf32>
    %593 = math.tanh %592 : vector<2x32xf32>
    %594 = vector.extract_strided_slice %577 {offsets = [0, 96], sizes = [2, 32], strides = [1, 1]} : vector<2x128xf32> to vector<2x32xf32>
    %595 = arith.negf %594 : vector<2x32xf32>
    %596 = math.exp %595 : vector<2x32xf32>
    %cst_149 = arith.constant 1.000000e+00 : f32
    %597 = vector.broadcast %cst_149 : f32 to vector<2x32xf32>
    %598 = arith.addf %597, %596 : vector<2x32xf32>
    %599 = arith.divf %597, %598 : vector<2x32xf32>
    %600 = arith.mulf %591, %535 : vector<2x32xf32>
    %601 = arith.mulf %585, %593 : vector<2x32xf32>
    %602 = arith.addf %600, %601 : vector<2x32xf32>
    %603 = math.tanh %602 : vector<2x32xf32>
    %604 = arith.mulf %599, %603 : vector<2x32xf32>
    %605 = vector.extract_strided_slice %579 {offsets = [0, 0], sizes = [2, 32], strides = [1, 1]} : vector<2x128xf32> to vector<2x32xf32>
    %606 = arith.negf %605 : vector<2x32xf32>
    %607 = math.exp %606 : vector<2x32xf32>
    %cst_150 = arith.constant 1.000000e+00 : f32
    %608 = vector.broadcast %cst_150 : f32 to vector<2x32xf32>
    %609 = arith.addf %608, %607 : vector<2x32xf32>
    %610 = arith.divf %608, %609 : vector<2x32xf32>
    %611 = vector.extract_strided_slice %579 {offsets = [0, 32], sizes = [2, 32], strides = [1, 1]} : vector<2x128xf32> to vector<2x32xf32>
    %612 = arith.negf %611 : vector<2x32xf32>
    %613 = math.exp %612 : vector<2x32xf32>
    %cst_151 = arith.constant 1.000000e+00 : f32
    %614 = vector.broadcast %cst_151 : f32 to vector<2x32xf32>
    %615 = arith.addf %614, %613 : vector<2x32xf32>
    %616 = arith.divf %614, %615 : vector<2x32xf32>
    %617 = vector.extract_strided_slice %579 {offsets = [0, 64], sizes = [2, 32], strides = [1, 1]} : vector<2x128xf32> to vector<2x32xf32>
    %618 = math.tanh %617 : vector<2x32xf32>
    %619 = vector.extract_strided_slice %579 {offsets = [0, 96], sizes = [2, 32], strides = [1, 1]} : vector<2x128xf32> to vector<2x32xf32>
    %620 = arith.negf %619 : vector<2x32xf32>
    %621 = math.exp %620 : vector<2x32xf32>
    %cst_152 = arith.constant 1.000000e+00 : f32
    %622 = vector.broadcast %cst_152 : f32 to vector<2x32xf32>
    %623 = arith.addf %622, %621 : vector<2x32xf32>
    %624 = arith.divf %622, %623 : vector<2x32xf32>
    %625 = arith.mulf %616, %560 : vector<2x32xf32>
    %626 = arith.mulf %610, %618 : vector<2x32xf32>
    %627 = arith.addf %625, %626 : vector<2x32xf32>
    %628 = math.tanh %627 : vector<2x32xf32>
    %629 = arith.mulf %624, %628 : vector<2x32xf32>
    %c0_153 = arith.constant 0 : index
    %c5_154 = arith.constant 5 : index
    %c0_155 = arith.constant 0 : index
    %630 = vector.load %arg21[%c0_153, %c5_154, %c0_155] : memref<2x8x32xf32, #tpu.memory_space<vmem>>, vector<2x1x32xf32>
    %631 = vector.shape_cast %630 : vector<2x1x32xf32> to vector<2x32xf32>
    %632 = vector.shape_cast %604 : vector<2x32xf32> to vector<2x1x32xf32>
    tpu.vector_store %arg21[%c0_153, %c5_154, %c0_155], %632 {strides = array<i32>} : memref<2x8x32xf32, #tpu.memory_space<vmem>>, vector<2x1x32xf32>,
    %c0_156 = arith.constant 0 : index
    %c2_157 = arith.constant 2 : index
    %c0_158 = arith.constant 0 : index
    %633 = vector.load %arg22[%c0_156, %c2_157, %c0_158] : memref<2x8x32xf32, #tpu.memory_space<vmem>>, vector<2x1x32xf32>
    %634 = vector.shape_cast %633 : vector<2x1x32xf32> to vector<2x32xf32>
    %635 = vector.shape_cast %629 : vector<2x32xf32> to vector<2x1x32xf32>
    tpu.vector_store %arg22[%c0_156, %c2_157, %c0_158], %635 {strides = array<i32>} : memref<2x8x32xf32, #tpu.memory_space<vmem>>, vector<2x1x32xf32>,
    %636 = tpu.concatenate %604, %629 in 1 : vector<2x32xf32>, vector<2x32xf32> -> vector<2x64xf32>
    %637 = vector.extract_strided_slice %237 {offsets = [0, 6, 0], sizes = [2, 1, 128], strides = [1, 1, 1]} : vector<2x8x256xf32> to vector<2x1x128xf32>
    %638 = vector.shape_cast %637 : vector<2x1x128xf32> to vector<2x128xf32>
    %639 = vector.extract_strided_slice %237 {offsets = [0, 1, 128], sizes = [2, 1, 128], strides = [1, 1, 1]} : vector<2x8x256xf32> to vector<2x1x128xf32>
    %640 = vector.shape_cast %639 : vector<2x1x128xf32> to vector<2x128xf32>
    %641 = arith.truncf %636 : vector<2x64xf32> to vector<2x64xbf16>
    %cst_159 = arith.constant dense<0.000000e+00> : vector<2x256xf32>
    %642 = tpu.matmul %641, %238, %cst_159 {dimension_numbers = #tpu.dot_dimension_numbers<[1], [0], [0], [1], [0, 0, 1, 1], [], []>} : vector<2x64xbf16>, vector<64x256xbf16>, vector<2x256xf32> -> vector<2x256xf32>
    %643 = vector.extract_strided_slice %642 {offsets = [0, 0], sizes = [2, 128], strides = [1, 1]} : vector<2x256xf32> to vector<2x128xf32>
    %644 = arith.addf %638, %643 : vector<2x128xf32>
    %645 = vector.extract_strided_slice %642 {offsets = [0, 128], sizes = [2, 128], strides = [1, 1]} : vector<2x256xf32> to vector<2x128xf32>
    %646 = arith.addf %640, %645 : vector<2x128xf32>
    %647 = vector.extract_strided_slice %644 {offsets = [0, 0], sizes = [2, 32], strides = [1, 1]} : vector<2x128xf32> to vector<2x32xf32>
    %648 = arith.negf %647 : vector<2x32xf32>
    %649 = math.exp %648 : vector<2x32xf32>
    %cst_160 = arith.constant 1.000000e+00 : f32
    %650 = vector.broadcast %cst_160 : f32 to vector<2x32xf32>
    %651 = arith.addf %650, %649 : vector<2x32xf32>
    %652 = arith.divf %650, %651 : vector<2x32xf32>
    %653 = vector.extract_strided_slice %644 {offsets = [0, 32], sizes = [2, 32], strides = [1, 1]} : vector<2x128xf32> to vector<2x32xf32>
    %654 = arith.negf %653 : vector<2x32xf32>
    %655 = math.exp %654 : vector<2x32xf32>
    %cst_161 = arith.constant 1.000000e+00 : f32
    %656 = vector.broadcast %cst_161 : f32 to vector<2x32xf32>
    %657 = arith.addf %656, %655 : vector<2x32xf32>
    %658 = arith.divf %656, %657 : vector<2x32xf32>
    %659 = vector.extract_strided_slice %644 {offsets = [0, 64], sizes = [2, 32], strides = [1, 1]} : vector<2x128xf32> to vector<2x32xf32>
    %660 = math.tanh %659 : vector<2x32xf32>
    %661 = vector.extract_strided_slice %644 {offsets = [0, 96], sizes = [2, 32], strides = [1, 1]} : vector<2x128xf32> to vector<2x32xf32>
    %662 = arith.negf %661 : vector<2x32xf32>
    %663 = math.exp %662 : vector<2x32xf32>
    %cst_162 = arith.constant 1.000000e+00 : f32
    %664 = vector.broadcast %cst_162 : f32 to vector<2x32xf32>
    %665 = arith.addf %664, %663 : vector<2x32xf32>
    %666 = arith.divf %664, %665 : vector<2x32xf32>
    %667 = arith.mulf %658, %602 : vector<2x32xf32>
    %668 = arith.mulf %652, %660 : vector<2x32xf32>
    %669 = arith.addf %667, %668 : vector<2x32xf32>
    %670 = math.tanh %669 : vector<2x32xf32>
    %671 = arith.mulf %666, %670 : vector<2x32xf32>
    %672 = vector.extract_strided_slice %646 {offsets = [0, 0], sizes = [2, 32], strides = [1, 1]} : vector<2x128xf32> to vector<2x32xf32>
    %673 = arith.negf %672 : vector<2x32xf32>
    %674 = math.exp %673 : vector<2x32xf32>
    %cst_163 = arith.constant 1.000000e+00 : f32
    %675 = vector.broadcast %cst_163 : f32 to vector<2x32xf32>
    %676 = arith.addf %675, %674 : vector<2x32xf32>
    %677 = arith.divf %675, %676 : vector<2x32xf32>
    %678 = vector.extract_strided_slice %646 {offsets = [0, 32], sizes = [2, 32], strides = [1, 1]} : vector<2x128xf32> to vector<2x32xf32>
    %679 = arith.negf %678 : vector<2x32xf32>
    %680 = math.exp %679 : vector<2x32xf32>
    %cst_164 = arith.constant 1.000000e+00 : f32
    %681 = vector.broadcast %cst_164 : f32 to vector<2x32xf32>
    %682 = arith.addf %681, %680 : vector<2x32xf32>
    %683 = arith.divf %681, %682 : vector<2x32xf32>
    %684 = vector.extract_strided_slice %646 {offsets = [0, 64], sizes = [2, 32], strides = [1, 1]} : vector<2x128xf32> to vector<2x32xf32>
    %685 = math.tanh %684 : vector<2x32xf32>
    %686 = vector.extract_strided_slice %646 {offsets = [0, 96], sizes = [2, 32], strides = [1, 1]} : vector<2x128xf32> to vector<2x32xf32>
    %687 = arith.negf %686 : vector<2x32xf32>
    %688 = math.exp %687 : vector<2x32xf32>
    %cst_165 = arith.constant 1.000000e+00 : f32
    %689 = vector.broadcast %cst_165 : f32 to vector<2x32xf32>
    %690 = arith.addf %689, %688 : vector<2x32xf32>
    %691 = arith.divf %689, %690 : vector<2x32xf32>
    %692 = arith.mulf %683, %627 : vector<2x32xf32>
    %693 = arith.mulf %677, %685 : vector<2x32xf32>
    %694 = arith.addf %692, %693 : vector<2x32xf32>
    %695 = math.tanh %694 : vector<2x32xf32>
    %696 = arith.mulf %691, %695 : vector<2x32xf32>
    %c0_166 = arith.constant 0 : index
    %c6_167 = arith.constant 6 : index
    %c0_168 = arith.constant 0 : index
    %697 = vector.load %arg21[%c0_166, %c6_167, %c0_168] : memref<2x8x32xf32, #tpu.memory_space<vmem>>, vector<2x1x32xf32>
    %698 = vector.shape_cast %697 : vector<2x1x32xf32> to vector<2x32xf32>
    %699 = vector.shape_cast %671 : vector<2x32xf32> to vector<2x1x32xf32>
    tpu.vector_store %arg21[%c0_166, %c6_167, %c0_168], %699 {strides = array<i32>} : memref<2x8x32xf32, #tpu.memory_space<vmem>>, vector<2x1x32xf32>,
    %c0_169 = arith.constant 0 : index
    %c1_170 = arith.constant 1 : index
    %c0_171 = arith.constant 0 : index
    %700 = vector.load %arg22[%c0_169, %c1_170, %c0_171] : memref<2x8x32xf32, #tpu.memory_space<vmem>>, vector<2x1x32xf32>
    %701 = vector.shape_cast %700 : vector<2x1x32xf32> to vector<2x32xf32>
    %702 = vector.shape_cast %696 : vector<2x32xf32> to vector<2x1x32xf32>
    tpu.vector_store %arg22[%c0_169, %c1_170, %c0_171], %702 {strides = array<i32>} : memref<2x8x32xf32, #tpu.memory_space<vmem>>, vector<2x1x32xf32>,
    %703 = tpu.concatenate %671, %696 in 1 : vector<2x32xf32>, vector<2x32xf32> -> vector<2x64xf32>
    %704 = vector.extract_strided_slice %237 {offsets = [0, 7, 0], sizes = [2, 1, 128], strides = [1, 1, 1]} : vector<2x8x256xf32> to vector<2x1x128xf32>
    %705 = vector.shape_cast %704 : vector<2x1x128xf32> to vector<2x128xf32>
    %706 = vector.extract_strided_slice %237 {offsets = [0, 0, 128], sizes = [2, 1, 128], strides = [1, 1, 1]} : vector<2x8x256xf32> to vector<2x1x128xf32>
    %707 = vector.shape_cast %706 : vector<2x1x128xf32> to vector<2x128xf32>
    %708 = arith.truncf %703 : vector<2x64xf32> to vector<2x64xbf16>
    %cst_172 = arith.constant dense<0.000000e+00> : vector<2x256xf32>
    %709 = tpu.matmul %708, %238, %cst_172 {dimension_numbers = #tpu.dot_dimension_numbers<[1], [0], [0], [1], [0, 0, 1, 1], [], []>} : vector<2x64xbf16>, vector<64x256xbf16>, vector<2x256xf32> -> vector<2x256xf32>
    %710 = vector.extract_strided_slice %709 {offsets = [0, 0], sizes = [2, 128], strides = [1, 1]} : vector<2x256xf32> to vector<2x128xf32>
    %711 = arith.addf %705, %710 : vector<2x128xf32>
    %712 = vector.extract_strided_slice %709 {offsets = [0, 128], sizes = [2, 128], strides = [1, 1]} : vector<2x256xf32> to vector<2x128xf32>
    %713 = arith.addf %707, %712 : vector<2x128xf32>
    %714 = vector.extract_strided_slice %711 {offsets = [0, 0], sizes = [2, 32], strides = [1, 1]} : vector<2x128xf32> to vector<2x32xf32>
    %715 = arith.negf %714 : vector<2x32xf32>
    %716 = math.exp %715 : vector<2x32xf32>
    %cst_173 = arith.constant 1.000000e+00 : f32
    %717 = vector.broadcast %cst_173 : f32 to vector<2x32xf32>
    %718 = arith.addf %717, %716 : vector<2x32xf32>
    %719 = arith.divf %717, %718 : vector<2x32xf32>
    %720 = vector.extract_strided_slice %711 {offsets = [0, 32], sizes = [2, 32], strides = [1, 1]} : vector<2x128xf32> to vector<2x32xf32>
    %721 = arith.negf %720 : vector<2x32xf32>
    %722 = math.exp %721 : vector<2x32xf32>
    %cst_174 = arith.constant 1.000000e+00 : f32
    %723 = vector.broadcast %cst_174 : f32 to vector<2x32xf32>
    %724 = arith.addf %723, %722 : vector<2x32xf32>
    %725 = arith.divf %723, %724 : vector<2x32xf32>
    %726 = vector.extract_strided_slice %711 {offsets = [0, 64], sizes = [2, 32], strides = [1, 1]} : vector<2x128xf32> to vector<2x32xf32>
    %727 = math.tanh %726 : vector<2x32xf32>
    %728 = vector.extract_strided_slice %711 {offsets = [0, 96], sizes = [2, 32], strides = [1, 1]} : vector<2x128xf32> to vector<2x32xf32>
    %729 = arith.negf %728 : vector<2x32xf32>
    %730 = math.exp %729 : vector<2x32xf32>
    %cst_175 = arith.constant 1.000000e+00 : f32
    %731 = vector.broadcast %cst_175 : f32 to vector<2x32xf32>
    %732 = arith.addf %731, %730 : vector<2x32xf32>
    %733 = arith.divf %731, %732 : vector<2x32xf32>
    %734 = arith.mulf %725, %669 : vector<2x32xf32>
    %735 = arith.mulf %719, %727 : vector<2x32xf32>
    %736 = arith.addf %734, %735 : vector<2x32xf32>
    %737 = math.tanh %736 : vector<2x32xf32>
    %738 = arith.mulf %733, %737 : vector<2x32xf32>
    %739 = vector.extract_strided_slice %713 {offsets = [0, 0], sizes = [2, 32], strides = [1, 1]} : vector<2x128xf32> to vector<2x32xf32>
    %740 = arith.negf %739 : vector<2x32xf32>
    %741 = math.exp %740 : vector<2x32xf32>
    %cst_176 = arith.constant 1.000000e+00 : f32
    %742 = vector.broadcast %cst_176 : f32 to vector<2x32xf32>
    %743 = arith.addf %742, %741 : vector<2x32xf32>
    %744 = arith.divf %742, %743 : vector<2x32xf32>
    %745 = vector.extract_strided_slice %713 {offsets = [0, 32], sizes = [2, 32], strides = [1, 1]} : vector<2x128xf32> to vector<2x32xf32>
    %746 = arith.negf %745 : vector<2x32xf32>
    %747 = math.exp %746 : vector<2x32xf32>
    %cst_177 = arith.constant 1.000000e+00 : f32
    %748 = vector.broadcast %cst_177 : f32 to vector<2x32xf32>
    %749 = arith.addf %748, %747 : vector<2x32xf32>
    %750 = arith.divf %748, %749 : vector<2x32xf32>
    %751 = vector.extract_strided_slice %713 {offsets = [0, 64], sizes = [2, 32], strides = [1, 1]} : vector<2x128xf32> to vector<2x32xf32>
    %752 = math.tanh %751 : vector<2x32xf32>
    %753 = vector.extract_strided_slice %713 {offsets = [0, 96], sizes = [2, 32], strides = [1, 1]} : vector<2x128xf32> to vector<2x32xf32>
    %754 = arith.negf %753 : vector<2x32xf32>
    %755 = math.exp %754 : vector<2x32xf32>
    %cst_178 = arith.constant 1.000000e+00 : f32
    %756 = vector.broadcast %cst_178 : f32 to vector<2x32xf32>
    %757 = arith.addf %756, %755 : vector<2x32xf32>
    %758 = arith.divf %756, %757 : vector<2x32xf32>
    %759 = arith.mulf %750, %694 : vector<2x32xf32>
    %760 = arith.mulf %744, %752 : vector<2x32xf32>
    %761 = arith.addf %759, %760 : vector<2x32xf32>
    %762 = math.tanh %761 : vector<2x32xf32>
    %763 = arith.mulf %758, %762 : vector<2x32xf32>
    %c0_179 = arith.constant 0 : index
    %c7_180 = arith.constant 7 : index
    %c0_181 = arith.constant 0 : index
    %764 = vector.load %arg21[%c0_179, %c7_180, %c0_181] : memref<2x8x32xf32, #tpu.memory_space<vmem>>, vector<2x1x32xf32>
    %765 = vector.shape_cast %764 : vector<2x1x32xf32> to vector<2x32xf32>
    %766 = vector.shape_cast %738 : vector<2x32xf32> to vector<2x1x32xf32>
    tpu.vector_store %arg21[%c0_179, %c7_180, %c0_181], %766 {strides = array<i32>} : memref<2x8x32xf32, #tpu.memory_space<vmem>>, vector<2x1x32xf32>,
    %c0_182 = arith.constant 0 : index
    %c0_183 = arith.constant 0 : index
    %c0_184 = arith.constant 0 : index
    %767 = vector.load %arg22[%c0_182, %c0_183, %c0_184] : memref<2x8x32xf32, #tpu.memory_space<vmem>>, vector<2x1x32xf32>
    %768 = vector.shape_cast %767 : vector<2x1x32xf32> to vector<2x32xf32>
    %769 = vector.shape_cast %763 : vector<2x32xf32> to vector<2x1x32xf32>
    tpu.vector_store %arg22[%c0_182, %c0_183, %c0_184], %769 {strides = array<i32>} : memref<2x8x32xf32, #tpu.memory_space<vmem>>, vector<2x1x32xf32>,
    %c0_185 = arith.constant 0 : index
    %c0_186 = arith.constant 0 : index
    %c0_187 = arith.constant 0 : index
    %770 = vector.load %arg21[%c0_185, %c0_186, %c0_187] : memref<2x8x32xf32, #tpu.memory_space<vmem>>, vector<2x8x32xf32>
    %771 = vector.shape_cast %770 : vector<2x8x32xf32> to vector<16x32xf32>
    %772 = arith.truncf %771 : vector<16x32xf32> to vector<16x32xbf16>
    %c0_188 = arith.constant 0 : index
    %c0_189 = arith.constant 0 : index
    %c0_190 = arith.constant 0 : index
    %773 = vector.load %arg22[%c0_188, %c0_189, %c0_190] : memref<2x8x32xf32, #tpu.memory_space<vmem>>, vector<2x8x32xf32>
    %774 = vector.shape_cast %773 : vector<2x8x32xf32> to vector<16x32xf32>
    %775 = arith.truncf %774 : vector<16x32xf32> to vector<16x32xbf16>
    %c0_191 = arith.constant 0 : index
    %c0_192 = arith.constant 0 : index
    %776 = vector.load %arg17[%c0_191, %c0_192] : memref<64x256xbf16, #tpu.memory_space<vmem>>, vector<32x256xbf16>
    %cst_193 = arith.constant dense<0.000000e+00> : vector<16x256xf32>
    %777 = tpu.matmul %772, %776, %cst_193 {dimension_numbers = #tpu.dot_dimension_numbers<[1], [0], [0], [1], [0, 0, 1, 1], [], []>} : vector<16x32xbf16>, vector<32x256xbf16>, vector<16x256xf32> -> vector<16x256xf32>
    %c32 = arith.constant 32 : index
    %c0_194 = arith.constant 0 : index
    %778 = vector.load %arg17[%c32, %c0_194] : memref<64x256xbf16, #tpu.memory_space<vmem>>, vector<32x256xbf16>
    %cst_195 = arith.constant dense<0.000000e+00> : vector<16x256xf32>
    %779 = tpu.matmul %775, %778, %cst_195 {dimension_numbers = #tpu.dot_dimension_numbers<[1], [0], [0], [1], [0, 0, 1, 1], [], []>} : vector<16x32xbf16>, vector<32x256xbf16>, vector<16x256xf32> -> vector<16x256xf32>
    %780 = arith.addf %777, %779 : vector<16x256xf32>
    %c0_196 = arith.constant 0 : index
    %c0_197 = arith.constant 0 : index
    %781 = vector.load %arg19[%c0_196, %c0_197] : memref<1x256xf32, #tpu.memory_space<vmem>>, vector<1x256xf32>
    %782 = vector.broadcast %781 : vector<1x256xf32> to vector<16x256xf32>
    %783 = arith.addf %780, %782 : vector<16x256xf32>
    %784 = vector.shape_cast %783 : vector<16x256xf32> to vector<2x8x256xf32>
    %c0_198 = arith.constant 0 : index
    %c0_199 = arith.constant 0 : index
    %785 = vector.load %arg18[%c0_198, %c0_199] : memref<64x256xbf16, #tpu.memory_space<vmem>>, vector<64x256xbf16>
    %cst_200 = arith.constant 0.000000e+00 : f32
    %786 = vector.broadcast %cst_200 : f32 to vector<2x32xf32>
    %cst_201 = arith.constant 0.000000e+00 : f32
    %787 = vector.broadcast %cst_201 : f32 to vector<2x32xf32>
    %788 = vector.extract_strided_slice %784 {offsets = [0, 0, 0], sizes = [2, 1, 128], strides = [1, 1, 1]} : vector<2x8x256xf32> to vector<2x1x128xf32>
    %789 = vector.shape_cast %788 : vector<2x1x128xf32> to vector<2x128xf32>
    %790 = vector.extract_strided_slice %784 {offsets = [0, 7, 128], sizes = [2, 1, 128], strides = [1, 1, 1]} : vector<2x8x256xf32> to vector<2x1x128xf32>
    %791 = vector.shape_cast %790 : vector<2x1x128xf32> to vector<2x128xf32>
    %792 = vector.extract_strided_slice %789 {offsets = [0, 0], sizes = [2, 32], strides = [1, 1]} : vector<2x128xf32> to vector<2x32xf32>
    %793 = arith.negf %792 : vector<2x32xf32>
    %794 = math.exp %793 : vector<2x32xf32>
    %cst_202 = arith.constant 1.000000e+00 : f32
    %795 = vector.broadcast %cst_202 : f32 to vector<2x32xf32>
    %796 = arith.addf %795, %794 : vector<2x32xf32>
    %797 = arith.divf %795, %796 : vector<2x32xf32>
    %798 = vector.extract_strided_slice %789 {offsets = [0, 32], sizes = [2, 32], strides = [1, 1]} : vector<2x128xf32> to vector<2x32xf32>
    %799 = arith.negf %798 : vector<2x32xf32>
    %800 = math.exp %799 : vector<2x32xf32>
    %cst_203 = arith.constant 1.000000e+00 : f32
    %801 = vector.broadcast %cst_203 : f32 to vector<2x32xf32>
    %802 = arith.addf %801, %800 : vector<2x32xf32>
    %803 = arith.divf %801, %802 : vector<2x32xf32>
    %804 = vector.extract_strided_slice %789 {offsets = [0, 64], sizes = [2, 32], strides = [1, 1]} : vector<2x128xf32> to vector<2x32xf32>
    %805 = math.tanh %804 : vector<2x32xf32>
    %806 = vector.extract_strided_slice %789 {offsets = [0, 96], sizes = [2, 32], strides = [1, 1]} : vector<2x128xf32> to vector<2x32xf32>
    %807 = arith.negf %806 : vector<2x32xf32>
    %808 = math.exp %807 : vector<2x32xf32>
    %cst_204 = arith.constant 1.000000e+00 : f32
    %809 = vector.broadcast %cst_204 : f32 to vector<2x32xf32>
    %810 = arith.addf %809, %808 : vector<2x32xf32>
    %811 = arith.divf %809, %810 : vector<2x32xf32>
    %812 = arith.mulf %803, %786 : vector<2x32xf32>
    %813 = arith.mulf %797, %805 : vector<2x32xf32>
    %814 = arith.addf %812, %813 : vector<2x32xf32>
    %815 = math.tanh %814 : vector<2x32xf32>
    %816 = arith.mulf %811, %815 : vector<2x32xf32>
    %817 = vector.extract_strided_slice %791 {offsets = [0, 0], sizes = [2, 32], strides = [1, 1]} : vector<2x128xf32> to vector<2x32xf32>
    %818 = arith.negf %817 : vector<2x32xf32>
    %819 = math.exp %818 : vector<2x32xf32>
    %cst_205 = arith.constant 1.000000e+00 : f32
    %820 = vector.broadcast %cst_205 : f32 to vector<2x32xf32>
    %821 = arith.addf %820, %819 : vector<2x32xf32>
    %822 = arith.divf %820, %821 : vector<2x32xf32>
    %823 = vector.extract_strided_slice %791 {offsets = [0, 32], sizes = [2, 32], strides = [1, 1]} : vector<2x128xf32> to vector<2x32xf32>
    %824 = arith.negf %823 : vector<2x32xf32>
    %825 = math.exp %824 : vector<2x32xf32>
    %cst_206 = arith.constant 1.000000e+00 : f32
    %826 = vector.broadcast %cst_206 : f32 to vector<2x32xf32>
    %827 = arith.addf %826, %825 : vector<2x32xf32>
    %828 = arith.divf %826, %827 : vector<2x32xf32>
    %829 = vector.extract_strided_slice %791 {offsets = [0, 64], sizes = [2, 32], strides = [1, 1]} : vector<2x128xf32> to vector<2x32xf32>
    %830 = math.tanh %829 : vector<2x32xf32>
    %831 = vector.extract_strided_slice %791 {offsets = [0, 96], sizes = [2, 32], strides = [1, 1]} : vector<2x128xf32> to vector<2x32xf32>
    %832 = arith.negf %831 : vector<2x32xf32>
    %833 = math.exp %832 : vector<2x32xf32>
    %cst_207 = arith.constant 1.000000e+00 : f32
    %834 = vector.broadcast %cst_207 : f32 to vector<2x32xf32>
    %835 = arith.addf %834, %833 : vector<2x32xf32>
    %836 = arith.divf %834, %835 : vector<2x32xf32>
    %837 = arith.mulf %828, %787 : vector<2x32xf32>
    %838 = arith.mulf %822, %830 : vector<2x32xf32>
    %839 = arith.addf %837, %838 : vector<2x32xf32>
    %840 = math.tanh %839 : vector<2x32xf32>
    %841 = arith.mulf %836, %840 : vector<2x32xf32>
    %c0_208 = arith.constant 0 : index
    %c0_209 = arith.constant 0 : index
    %c0_210 = arith.constant 0 : index
    %842 = vector.load %arg21[%c0_208, %c0_209, %c0_210] : memref<2x8x32xf32, #tpu.memory_space<vmem>>, vector<2x1x32xf32>
    %843 = vector.shape_cast %842 : vector<2x1x32xf32> to vector<2x32xf32>
    %844 = vector.shape_cast %816 : vector<2x32xf32> to vector<2x1x32xf32>
    tpu.vector_store %arg21[%c0_208, %c0_209, %c0_210], %844 {strides = array<i32>} : memref<2x8x32xf32, #tpu.memory_space<vmem>>, vector<2x1x32xf32>,
    %c0_211 = arith.constant 0 : index
    %c7_212 = arith.constant 7 : index
    %c0_213 = arith.constant 0 : index
    %845 = vector.load %arg22[%c0_211, %c7_212, %c0_213] : memref<2x8x32xf32, #tpu.memory_space<vmem>>, vector<2x1x32xf32>
    %846 = vector.shape_cast %845 : vector<2x1x32xf32> to vector<2x32xf32>
    %847 = vector.shape_cast %841 : vector<2x32xf32> to vector<2x1x32xf32>
    tpu.vector_store %arg22[%c0_211, %c7_212, %c0_213], %847 {strides = array<i32>} : memref<2x8x32xf32, #tpu.memory_space<vmem>>, vector<2x1x32xf32>,
    %848 = tpu.concatenate %816, %841 in 1 : vector<2x32xf32>, vector<2x32xf32> -> vector<2x64xf32>
    %849 = vector.extract_strided_slice %784 {offsets = [0, 1, 0], sizes = [2, 1, 128], strides = [1, 1, 1]} : vector<2x8x256xf32> to vector<2x1x128xf32>
    %850 = vector.shape_cast %849 : vector<2x1x128xf32> to vector<2x128xf32>
    %851 = vector.extract_strided_slice %784 {offsets = [0, 6, 128], sizes = [2, 1, 128], strides = [1, 1, 1]} : vector<2x8x256xf32> to vector<2x1x128xf32>
    %852 = vector.shape_cast %851 : vector<2x1x128xf32> to vector<2x128xf32>
    %853 = arith.truncf %848 : vector<2x64xf32> to vector<2x64xbf16>
    %cst_214 = arith.constant dense<0.000000e+00> : vector<2x256xf32>
    %854 = tpu.matmul %853, %785, %cst_214 {dimension_numbers = #tpu.dot_dimension_numbers<[1], [0], [0], [1], [0, 0, 1, 1], [], []>} : vector<2x64xbf16>, vector<64x256xbf16>, vector<2x256xf32> -> vector<2x256xf32>
    %855 = vector.extract_strided_slice %854 {offsets = [0, 0], sizes = [2, 128], strides = [1, 1]} : vector<2x256xf32> to vector<2x128xf32>
    %856 = arith.addf %850, %855 : vector<2x128xf32>
    %857 = vector.extract_strided_slice %854 {offsets = [0, 128], sizes = [2, 128], strides = [1, 1]} : vector<2x256xf32> to vector<2x128xf32>
    %858 = arith.addf %852, %857 : vector<2x128xf32>
    %859 = vector.extract_strided_slice %856 {offsets = [0, 0], sizes = [2, 32], strides = [1, 1]} : vector<2x128xf32> to vector<2x32xf32>
    %860 = arith.negf %859 : vector<2x32xf32>
    %861 = math.exp %860 : vector<2x32xf32>
    %cst_215 = arith.constant 1.000000e+00 : f32
    %862 = vector.broadcast %cst_215 : f32 to vector<2x32xf32>
    %863 = arith.addf %862, %861 : vector<2x32xf32>
    %864 = arith.divf %862, %863 : vector<2x32xf32>
    %865 = vector.extract_strided_slice %856 {offsets = [0, 32], sizes = [2, 32], strides = [1, 1]} : vector<2x128xf32> to vector<2x32xf32>
    %866 = arith.negf %865 : vector<2x32xf32>
    %867 = math.exp %866 : vector<2x32xf32>
    %cst_216 = arith.constant 1.000000e+00 : f32
    %868 = vector.broadcast %cst_216 : f32 to vector<2x32xf32>
    %869 = arith.addf %868, %867 : vector<2x32xf32>
    %870 = arith.divf %868, %869 : vector<2x32xf32>
    %871 = vector.extract_strided_slice %856 {offsets = [0, 64], sizes = [2, 32], strides = [1, 1]} : vector<2x128xf32> to vector<2x32xf32>
    %872 = math.tanh %871 : vector<2x32xf32>
    %873 = vector.extract_strided_slice %856 {offsets = [0, 96], sizes = [2, 32], strides = [1, 1]} : vector<2x128xf32> to vector<2x32xf32>
    %874 = arith.negf %873 : vector<2x32xf32>
    %875 = math.exp %874 : vector<2x32xf32>
    %cst_217 = arith.constant 1.000000e+00 : f32
    %876 = vector.broadcast %cst_217 : f32 to vector<2x32xf32>
    %877 = arith.addf %876, %875 : vector<2x32xf32>
    %878 = arith.divf %876, %877 : vector<2x32xf32>
    %879 = arith.mulf %870, %814 : vector<2x32xf32>
    %880 = arith.mulf %864, %872 : vector<2x32xf32>
    %881 = arith.addf %879, %880 : vector<2x32xf32>
    %882 = math.tanh %881 : vector<2x32xf32>
    %883 = arith.mulf %878, %882 : vector<2x32xf32>
    %884 = vector.extract_strided_slice %858 {offsets = [0, 0], sizes = [2, 32], strides = [1, 1]} : vector<2x128xf32> to vector<2x32xf32>
    %885 = arith.negf %884 : vector<2x32xf32>
    %886 = math.exp %885 : vector<2x32xf32>
    %cst_218 = arith.constant 1.000000e+00 : f32
    %887 = vector.broadcast %cst_218 : f32 to vector<2x32xf32>
    %888 = arith.addf %887, %886 : vector<2x32xf32>
    %889 = arith.divf %887, %888 : vector<2x32xf32>
    %890 = vector.extract_strided_slice %858 {offsets = [0, 32], sizes = [2, 32], strides = [1, 1]} : vector<2x128xf32> to vector<2x32xf32>
    %891 = arith.negf %890 : vector<2x32xf32>
    %892 = math.exp %891 : vector<2x32xf32>
    %cst_219 = arith.constant 1.000000e+00 : f32
    %893 = vector.broadcast %cst_219 : f32 to vector<2x32xf32>
    %894 = arith.addf %893, %892 : vector<2x32xf32>
    %895 = arith.divf %893, %894 : vector<2x32xf32>
    %896 = vector.extract_strided_slice %858 {offsets = [0, 64], sizes = [2, 32], strides = [1, 1]} : vector<2x128xf32> to vector<2x32xf32>
    %897 = math.tanh %896 : vector<2x32xf32>
    %898 = vector.extract_strided_slice %858 {offsets = [0, 96], sizes = [2, 32], strides = [1, 1]} : vector<2x128xf32> to vector<2x32xf32>
    %899 = arith.negf %898 : vector<2x32xf32>
    %900 = math.exp %899 : vector<2x32xf32>
    %cst_220 = arith.constant 1.000000e+00 : f32
    %901 = vector.broadcast %cst_220 : f32 to vector<2x32xf32>
    %902 = arith.addf %901, %900 : vector<2x32xf32>
    %903 = arith.divf %901, %902 : vector<2x32xf32>
    %904 = arith.mulf %895, %839 : vector<2x32xf32>
    %905 = arith.mulf %889, %897 : vector<2x32xf32>
    %906 = arith.addf %904, %905 : vector<2x32xf32>
    %907 = math.tanh %906 : vector<2x32xf32>
    %908 = arith.mulf %903, %907 : vector<2x32xf32>
    %c0_221 = arith.constant 0 : index
    %c1_222 = arith.constant 1 : index
    %c0_223 = arith.constant 0 : index
    %909 = vector.load %arg21[%c0_221, %c1_222, %c0_223] : memref<2x8x32xf32, #tpu.memory_space<vmem>>, vector<2x1x32xf32>
    %910 = vector.shape_cast %909 : vector<2x1x32xf32> to vector<2x32xf32>
    %911 = vector.shape_cast %883 : vector<2x32xf32> to vector<2x1x32xf32>
    tpu.vector_store %arg21[%c0_221, %c1_222, %c0_223], %911 {strides = array<i32>} : memref<2x8x32xf32, #tpu.memory_space<vmem>>, vector<2x1x32xf32>,
    %c0_224 = arith.constant 0 : index
    %c6_225 = arith.constant 6 : index
    %c0_226 = arith.constant 0 : index
    %912 = vector.load %arg22[%c0_224, %c6_225, %c0_226] : memref<2x8x32xf32, #tpu.memory_space<vmem>>, vector<2x1x32xf32>
    %913 = vector.shape_cast %912 : vector<2x1x32xf32> to vector<2x32xf32>
    %914 = vector.shape_cast %908 : vector<2x32xf32> to vector<2x1x32xf32>
    tpu.vector_store %arg22[%c0_224, %c6_225, %c0_226], %914 {strides = array<i32>} : memref<2x8x32xf32, #tpu.memory_space<vmem>>, vector<2x1x32xf32>,
    %915 = tpu.concatenate %883, %908 in 1 : vector<2x32xf32>, vector<2x32xf32> -> vector<2x64xf32>
    %916 = vector.extract_strided_slice %784 {offsets = [0, 2, 0], sizes = [2, 1, 128], strides = [1, 1, 1]} : vector<2x8x256xf32> to vector<2x1x128xf32>
    %917 = vector.shape_cast %916 : vector<2x1x128xf32> to vector<2x128xf32>
    %918 = vector.extract_strided_slice %784 {offsets = [0, 5, 128], sizes = [2, 1, 128], strides = [1, 1, 1]} : vector<2x8x256xf32> to vector<2x1x128xf32>
    %919 = vector.shape_cast %918 : vector<2x1x128xf32> to vector<2x128xf32>
    %920 = arith.truncf %915 : vector<2x64xf32> to vector<2x64xbf16>
    %cst_227 = arith.constant dense<0.000000e+00> : vector<2x256xf32>
    %921 = tpu.matmul %920, %785, %cst_227 {dimension_numbers = #tpu.dot_dimension_numbers<[1], [0], [0], [1], [0, 0, 1, 1], [], []>} : vector<2x64xbf16>, vector<64x256xbf16>, vector<2x256xf32> -> vector<2x256xf32>
    %922 = vector.extract_strided_slice %921 {offsets = [0, 0], sizes = [2, 128], strides = [1, 1]} : vector<2x256xf32> to vector<2x128xf32>
    %923 = arith.addf %917, %922 : vector<2x128xf32>
    %924 = vector.extract_strided_slice %921 {offsets = [0, 128], sizes = [2, 128], strides = [1, 1]} : vector<2x256xf32> to vector<2x128xf32>
    %925 = arith.addf %919, %924 : vector<2x128xf32>
    %926 = vector.extract_strided_slice %923 {offsets = [0, 0], sizes = [2, 32], strides = [1, 1]} : vector<2x128xf32> to vector<2x32xf32>
    %927 = arith.negf %926 : vector<2x32xf32>
    %928 = math.exp %927 : vector<2x32xf32>
    %cst_228 = arith.constant 1.000000e+00 : f32
    %929 = vector.broadcast %cst_228 : f32 to vector<2x32xf32>
    %930 = arith.addf %929, %928 : vector<2x32xf32>
    %931 = arith.divf %929, %930 : vector<2x32xf32>
    %932 = vector.extract_strided_slice %923 {offsets = [0, 32], sizes = [2, 32], strides = [1, 1]} : vector<2x128xf32> to vector<2x32xf32>
    %933 = arith.negf %932 : vector<2x32xf32>
    %934 = math.exp %933 : vector<2x32xf32>
    %cst_229 = arith.constant 1.000000e+00 : f32
    %935 = vector.broadcast %cst_229 : f32 to vector<2x32xf32>
    %936 = arith.addf %935, %934 : vector<2x32xf32>
    %937 = arith.divf %935, %936 : vector<2x32xf32>
    %938 = vector.extract_strided_slice %923 {offsets = [0, 64], sizes = [2, 32], strides = [1, 1]} : vector<2x128xf32> to vector<2x32xf32>
    %939 = math.tanh %938 : vector<2x32xf32>
    %940 = vector.extract_strided_slice %923 {offsets = [0, 96], sizes = [2, 32], strides = [1, 1]} : vector<2x128xf32> to vector<2x32xf32>
    %941 = arith.negf %940 : vector<2x32xf32>
    %942 = math.exp %941 : vector<2x32xf32>
    %cst_230 = arith.constant 1.000000e+00 : f32
    %943 = vector.broadcast %cst_230 : f32 to vector<2x32xf32>
    %944 = arith.addf %943, %942 : vector<2x32xf32>
    %945 = arith.divf %943, %944 : vector<2x32xf32>
    %946 = arith.mulf %937, %881 : vector<2x32xf32>
    %947 = arith.mulf %931, %939 : vector<2x32xf32>
    %948 = arith.addf %946, %947 : vector<2x32xf32>
    %949 = math.tanh %948 : vector<2x32xf32>
    %950 = arith.mulf %945, %949 : vector<2x32xf32>
    %951 = vector.extract_strided_slice %925 {offsets = [0, 0], sizes = [2, 32], strides = [1, 1]} : vector<2x128xf32> to vector<2x32xf32>
    %952 = arith.negf %951 : vector<2x32xf32>
    %953 = math.exp %952 : vector<2x32xf32>
    %cst_231 = arith.constant 1.000000e+00 : f32
    %954 = vector.broadcast %cst_231 : f32 to vector<2x32xf32>
    %955 = arith.addf %954, %953 : vector<2x32xf32>
    %956 = arith.divf %954, %955 : vector<2x32xf32>
    %957 = vector.extract_strided_slice %925 {offsets = [0, 32], sizes = [2, 32], strides = [1, 1]} : vector<2x128xf32> to vector<2x32xf32>
    %958 = arith.negf %957 : vector<2x32xf32>
    %959 = math.exp %958 : vector<2x32xf32>
    %cst_232 = arith.constant 1.000000e+00 : f32
    %960 = vector.broadcast %cst_232 : f32 to vector<2x32xf32>
    %961 = arith.addf %960, %959 : vector<2x32xf32>
    %962 = arith.divf %960, %961 : vector<2x32xf32>
    %963 = vector.extract_strided_slice %925 {offsets = [0, 64], sizes = [2, 32], strides = [1, 1]} : vector<2x128xf32> to vector<2x32xf32>
    %964 = math.tanh %963 : vector<2x32xf32>
    %965 = vector.extract_strided_slice %925 {offsets = [0, 96], sizes = [2, 32], strides = [1, 1]} : vector<2x128xf32> to vector<2x32xf32>
    %966 = arith.negf %965 : vector<2x32xf32>
    %967 = math.exp %966 : vector<2x32xf32>
    %cst_233 = arith.constant 1.000000e+00 : f32
    %968 = vector.broadcast %cst_233 : f32 to vector<2x32xf32>
    %969 = arith.addf %968, %967 : vector<2x32xf32>
    %970 = arith.divf %968, %969 : vector<2x32xf32>
    %971 = arith.mulf %962, %906 : vector<2x32xf32>
    %972 = arith.mulf %956, %964 : vector<2x32xf32>
    %973 = arith.addf %971, %972 : vector<2x32xf32>
    %974 = math.tanh %973 : vector<2x32xf32>
    %975 = arith.mulf %970, %974 : vector<2x32xf32>
    %c0_234 = arith.constant 0 : index
    %c2_235 = arith.constant 2 : index
    %c0_236 = arith.constant 0 : index
    %976 = vector.load %arg21[%c0_234, %c2_235, %c0_236] : memref<2x8x32xf32, #tpu.memory_space<vmem>>, vector<2x1x32xf32>
    %977 = vector.shape_cast %976 : vector<2x1x32xf32> to vector<2x32xf32>
    %978 = vector.shape_cast %950 : vector<2x32xf32> to vector<2x1x32xf32>
    tpu.vector_store %arg21[%c0_234, %c2_235, %c0_236], %978 {strides = array<i32>} : memref<2x8x32xf32, #tpu.memory_space<vmem>>, vector<2x1x32xf32>,
    %c0_237 = arith.constant 0 : index
    %c5_238 = arith.constant 5 : index
    %c0_239 = arith.constant 0 : index
    %979 = vector.load %arg22[%c0_237, %c5_238, %c0_239] : memref<2x8x32xf32, #tpu.memory_space<vmem>>, vector<2x1x32xf32>
    %980 = vector.shape_cast %979 : vector<2x1x32xf32> to vector<2x32xf32>
    %981 = vector.shape_cast %975 : vector<2x32xf32> to vector<2x1x32xf32>
    tpu.vector_store %arg22[%c0_237, %c5_238, %c0_239], %981 {strides = array<i32>} : memref<2x8x32xf32, #tpu.memory_space<vmem>>, vector<2x1x32xf32>,
    %982 = tpu.concatenate %950, %975 in 1 : vector<2x32xf32>, vector<2x32xf32> -> vector<2x64xf32>
    %983 = vector.extract_strided_slice %784 {offsets = [0, 3, 0], sizes = [2, 1, 128], strides = [1, 1, 1]} : vector<2x8x256xf32> to vector<2x1x128xf32>
    %984 = vector.shape_cast %983 : vector<2x1x128xf32> to vector<2x128xf32>
    %985 = vector.extract_strided_slice %784 {offsets = [0, 4, 128], sizes = [2, 1, 128], strides = [1, 1, 1]} : vector<2x8x256xf32> to vector<2x1x128xf32>
    %986 = vector.shape_cast %985 : vector<2x1x128xf32> to vector<2x128xf32>
    %987 = arith.truncf %982 : vector<2x64xf32> to vector<2x64xbf16>
    %cst_240 = arith.constant dense<0.000000e+00> : vector<2x256xf32>
    %988 = tpu.matmul %987, %785, %cst_240 {dimension_numbers = #tpu.dot_dimension_numbers<[1], [0], [0], [1], [0, 0, 1, 1], [], []>} : vector<2x64xbf16>, vector<64x256xbf16>, vector<2x256xf32> -> vector<2x256xf32>
    %989 = vector.extract_strided_slice %988 {offsets = [0, 0], sizes = [2, 128], strides = [1, 1]} : vector<2x256xf32> to vector<2x128xf32>
    %990 = arith.addf %984, %989 : vector<2x128xf32>
    %991 = vector.extract_strided_slice %988 {offsets = [0, 128], sizes = [2, 128], strides = [1, 1]} : vector<2x256xf32> to vector<2x128xf32>
    %992 = arith.addf %986, %991 : vector<2x128xf32>
    %993 = vector.extract_strided_slice %990 {offsets = [0, 0], sizes = [2, 32], strides = [1, 1]} : vector<2x128xf32> to vector<2x32xf32>
    %994 = arith.negf %993 : vector<2x32xf32>
    %995 = math.exp %994 : vector<2x32xf32>
    %cst_241 = arith.constant 1.000000e+00 : f32
    %996 = vector.broadcast %cst_241 : f32 to vector<2x32xf32>
    %997 = arith.addf %996, %995 : vector<2x32xf32>
    %998 = arith.divf %996, %997 : vector<2x32xf32>
    %999 = vector.extract_strided_slice %990 {offsets = [0, 32], sizes = [2, 32], strides = [1, 1]} : vector<2x128xf32> to vector<2x32xf32>
    %1000 = arith.negf %999 : vector<2x32xf32>
    %1001 = math.exp %1000 : vector<2x32xf32>
    %cst_242 = arith.constant 1.000000e+00 : f32
    %1002 = vector.broadcast %cst_242 : f32 to vector<2x32xf32>
    %1003 = arith.addf %1002, %1001 : vector<2x32xf32>
    %1004 = arith.divf %1002, %1003 : vector<2x32xf32>
    %1005 = vector.extract_strided_slice %990 {offsets = [0, 64], sizes = [2, 32], strides = [1, 1]} : vector<2x128xf32> to vector<2x32xf32>
    %1006 = math.tanh %1005 : vector<2x32xf32>
    %1007 = vector.extract_strided_slice %990 {offsets = [0, 96], sizes = [2, 32], strides = [1, 1]} : vector<2x128xf32> to vector<2x32xf32>
    %1008 = arith.negf %1007 : vector<2x32xf32>
    %1009 = math.exp %1008 : vector<2x32xf32>
    %cst_243 = arith.constant 1.000000e+00 : f32
    %1010 = vector.broadcast %cst_243 : f32 to vector<2x32xf32>
    %1011 = arith.addf %1010, %1009 : vector<2x32xf32>
    %1012 = arith.divf %1010, %1011 : vector<2x32xf32>
    %1013 = arith.mulf %1004, %948 : vector<2x32xf32>
    %1014 = arith.mulf %998, %1006 : vector<2x32xf32>
    %1015 = arith.addf %1013, %1014 : vector<2x32xf32>
    %1016 = math.tanh %1015 : vector<2x32xf32>
    %1017 = arith.mulf %1012, %1016 : vector<2x32xf32>
    %1018 = vector.extract_strided_slice %992 {offsets = [0, 0], sizes = [2, 32], strides = [1, 1]} : vector<2x128xf32> to vector<2x32xf32>
    %1019 = arith.negf %1018 : vector<2x32xf32>
    %1020 = math.exp %1019 : vector<2x32xf32>
    %cst_244 = arith.constant 1.000000e+00 : f32
    %1021 = vector.broadcast %cst_244 : f32 to vector<2x32xf32>
    %1022 = arith.addf %1021, %1020 : vector<2x32xf32>
    %1023 = arith.divf %1021, %1022 : vector<2x32xf32>
    %1024 = vector.extract_strided_slice %992 {offsets = [0, 32], sizes = [2, 32], strides = [1, 1]} : vector<2x128xf32> to vector<2x32xf32>
    %1025 = arith.negf %1024 : vector<2x32xf32>
    %1026 = math.exp %1025 : vector<2x32xf32>
    %cst_245 = arith.constant 1.000000e+00 : f32
    %1027 = vector.broadcast %cst_245 : f32 to vector<2x32xf32>
    %1028 = arith.addf %1027, %1026 : vector<2x32xf32>
    %1029 = arith.divf %1027, %1028 : vector<2x32xf32>
    %1030 = vector.extract_strided_slice %992 {offsets = [0, 64], sizes = [2, 32], strides = [1, 1]} : vector<2x128xf32> to vector<2x32xf32>
    %1031 = math.tanh %1030 : vector<2x32xf32>
    %1032 = vector.extract_strided_slice %992 {offsets = [0, 96], sizes = [2, 32], strides = [1, 1]} : vector<2x128xf32> to vector<2x32xf32>
    %1033 = arith.negf %1032 : vector<2x32xf32>
    %1034 = math.exp %1033 : vector<2x32xf32>
    %cst_246 = arith.constant 1.000000e+00 : f32
    %1035 = vector.broadcast %cst_246 : f32 to vector<2x32xf32>
    %1036 = arith.addf %1035, %1034 : vector<2x32xf32>
    %1037 = arith.divf %1035, %1036 : vector<2x32xf32>
    %1038 = arith.mulf %1029, %973 : vector<2x32xf32>
    %1039 = arith.mulf %1023, %1031 : vector<2x32xf32>
    %1040 = arith.addf %1038, %1039 : vector<2x32xf32>
    %1041 = math.tanh %1040 : vector<2x32xf32>
    %1042 = arith.mulf %1037, %1041 : vector<2x32xf32>
    %c0_247 = arith.constant 0 : index
    %c3_248 = arith.constant 3 : index
    %c0_249 = arith.constant 0 : index
    %1043 = vector.load %arg21[%c0_247, %c3_248, %c0_249] : memref<2x8x32xf32, #tpu.memory_space<vmem>>, vector<2x1x32xf32>
    %1044 = vector.shape_cast %1043 : vector<2x1x32xf32> to vector<2x32xf32>
    %1045 = vector.shape_cast %1017 : vector<2x32xf32> to vector<2x1x32xf32>
    tpu.vector_store %arg21[%c0_247, %c3_248, %c0_249], %1045 {strides = array<i32>} : memref<2x8x32xf32, #tpu.memory_space<vmem>>, vector<2x1x32xf32>,
    %c0_250 = arith.constant 0 : index
    %c4_251 = arith.constant 4 : index
    %c0_252 = arith.constant 0 : index
    %1046 = vector.load %arg22[%c0_250, %c4_251, %c0_252] : memref<2x8x32xf32, #tpu.memory_space<vmem>>, vector<2x1x32xf32>
    %1047 = vector.shape_cast %1046 : vector<2x1x32xf32> to vector<2x32xf32>
    %1048 = vector.shape_cast %1042 : vector<2x32xf32> to vector<2x1x32xf32>
    tpu.vector_store %arg22[%c0_250, %c4_251, %c0_252], %1048 {strides = array<i32>} : memref<2x8x32xf32, #tpu.memory_space<vmem>>, vector<2x1x32xf32>,
    %1049 = tpu.concatenate %1017, %1042 in 1 : vector<2x32xf32>, vector<2x32xf32> -> vector<2x64xf32>
    %1050 = vector.extract_strided_slice %784 {offsets = [0, 4, 0], sizes = [2, 1, 128], strides = [1, 1, 1]} : vector<2x8x256xf32> to vector<2x1x128xf32>
    %1051 = vector.shape_cast %1050 : vector<2x1x128xf32> to vector<2x128xf32>
    %1052 = vector.extract_strided_slice %784 {offsets = [0, 3, 128], sizes = [2, 1, 128], strides = [1, 1, 1]} : vector<2x8x256xf32> to vector<2x1x128xf32>
    %1053 = vector.shape_cast %1052 : vector<2x1x128xf32> to vector<2x128xf32>
    %1054 = arith.truncf %1049 : vector<2x64xf32> to vector<2x64xbf16>
    %cst_253 = arith.constant dense<0.000000e+00> : vector<2x256xf32>
    %1055 = tpu.matmul %1054, %785, %cst_253 {dimension_numbers = #tpu.dot_dimension_numbers<[1], [0], [0], [1], [0, 0, 1, 1], [], []>} : vector<2x64xbf16>, vector<64x256xbf16>, vector<2x256xf32> -> vector<2x256xf32>
    %1056 = vector.extract_strided_slice %1055 {offsets = [0, 0], sizes = [2, 128], strides = [1, 1]} : vector<2x256xf32> to vector<2x128xf32>
    %1057 = arith.addf %1051, %1056 : vector<2x128xf32>
    %1058 = vector.extract_strided_slice %1055 {offsets = [0, 128], sizes = [2, 128], strides = [1, 1]} : vector<2x256xf32> to vector<2x128xf32>
    %1059 = arith.addf %1053, %1058 : vector<2x128xf32>
    %1060 = vector.extract_strided_slice %1057 {offsets = [0, 0], sizes = [2, 32], strides = [1, 1]} : vector<2x128xf32> to vector<2x32xf32>
    %1061 = arith.negf %1060 : vector<2x32xf32>
    %1062 = math.exp %1061 : vector<2x32xf32>
    %cst_254 = arith.constant 1.000000e+00 : f32
    %1063 = vector.broadcast %cst_254 : f32 to vector<2x32xf32>
    %1064 = arith.addf %1063, %1062 : vector<2x32xf32>
    %1065 = arith.divf %1063, %1064 : vector<2x32xf32>
    %1066 = vector.extract_strided_slice %1057 {offsets = [0, 32], sizes = [2, 32], strides = [1, 1]} : vector<2x128xf32> to vector<2x32xf32>
    %1067 = arith.negf %1066 : vector<2x32xf32>
    %1068 = math.exp %1067 : vector<2x32xf32>
    %cst_255 = arith.constant 1.000000e+00 : f32
    %1069 = vector.broadcast %cst_255 : f32 to vector<2x32xf32>
    %1070 = arith.addf %1069, %1068 : vector<2x32xf32>
    %1071 = arith.divf %1069, %1070 : vector<2x32xf32>
    %1072 = vector.extract_strided_slice %1057 {offsets = [0, 64], sizes = [2, 32], strides = [1, 1]} : vector<2x128xf32> to vector<2x32xf32>
    %1073 = math.tanh %1072 : vector<2x32xf32>
    %1074 = vector.extract_strided_slice %1057 {offsets = [0, 96], sizes = [2, 32], strides = [1, 1]} : vector<2x128xf32> to vector<2x32xf32>
    %1075 = arith.negf %1074 : vector<2x32xf32>
    %1076 = math.exp %1075 : vector<2x32xf32>
    %cst_256 = arith.constant 1.000000e+00 : f32
    %1077 = vector.broadcast %cst_256 : f32 to vector<2x32xf32>
    %1078 = arith.addf %1077, %1076 : vector<2x32xf32>
    %1079 = arith.divf %1077, %1078 : vector<2x32xf32>
    %1080 = arith.mulf %1071, %1015 : vector<2x32xf32>
    %1081 = arith.mulf %1065, %1073 : vector<2x32xf32>
    %1082 = arith.addf %1080, %1081 : vector<2x32xf32>
    %1083 = math.tanh %1082 : vector<2x32xf32>
    %1084 = arith.mulf %1079, %1083 : vector<2x32xf32>
    %1085 = vector.extract_strided_slice %1059 {offsets = [0, 0], sizes = [2, 32], strides = [1, 1]} : vector<2x128xf32> to vector<2x32xf32>
    %1086 = arith.negf %1085 : vector<2x32xf32>
    %1087 = math.exp %1086 : vector<2x32xf32>
    %cst_257 = arith.constant 1.000000e+00 : f32
    %1088 = vector.broadcast %cst_257 : f32 to vector<2x32xf32>
    %1089 = arith.addf %1088, %1087 : vector<2x32xf32>
    %1090 = arith.divf %1088, %1089 : vector<2x32xf32>
    %1091 = vector.extract_strided_slice %1059 {offsets = [0, 32], sizes = [2, 32], strides = [1, 1]} : vector<2x128xf32> to vector<2x32xf32>
    %1092 = arith.negf %1091 : vector<2x32xf32>
    %1093 = math.exp %1092 : vector<2x32xf32>
    %cst_258 = arith.constant 1.000000e+00 : f32
    %1094 = vector.broadcast %cst_258 : f32 to vector<2x32xf32>
    %1095 = arith.addf %1094, %1093 : vector<2x32xf32>
    %1096 = arith.divf %1094, %1095 : vector<2x32xf32>
    %1097 = vector.extract_strided_slice %1059 {offsets = [0, 64], sizes = [2, 32], strides = [1, 1]} : vector<2x128xf32> to vector<2x32xf32>
    %1098 = math.tanh %1097 : vector<2x32xf32>
    %1099 = vector.extract_strided_slice %1059 {offsets = [0, 96], sizes = [2, 32], strides = [1, 1]} : vector<2x128xf32> to vector<2x32xf32>
    %1100 = arith.negf %1099 : vector<2x32xf32>
    %1101 = math.exp %1100 : vector<2x32xf32>
    %cst_259 = arith.constant 1.000000e+00 : f32
    %1102 = vector.broadcast %cst_259 : f32 to vector<2x32xf32>
    %1103 = arith.addf %1102, %1101 : vector<2x32xf32>
    %1104 = arith.divf %1102, %1103 : vector<2x32xf32>
    %1105 = arith.mulf %1096, %1040 : vector<2x32xf32>
    %1106 = arith.mulf %1090, %1098 : vector<2x32xf32>
    %1107 = arith.addf %1105, %1106 : vector<2x32xf32>
    %1108 = math.tanh %1107 : vector<2x32xf32>
    %1109 = arith.mulf %1104, %1108 : vector<2x32xf32>
    %c0_260 = arith.constant 0 : index
    %c4_261 = arith.constant 4 : index
    %c0_262 = arith.constant 0 : index
    %1110 = vector.load %arg21[%c0_260, %c4_261, %c0_262] : memref<2x8x32xf32, #tpu.memory_space<vmem>>, vector<2x1x32xf32>
    %1111 = vector.shape_cast %1110 : vector<2x1x32xf32> to vector<2x32xf32>
    %1112 = vector.shape_cast %1084 : vector<2x32xf32> to vector<2x1x32xf32>
    tpu.vector_store %arg21[%c0_260, %c4_261, %c0_262], %1112 {strides = array<i32>} : memref<2x8x32xf32, #tpu.memory_space<vmem>>, vector<2x1x32xf32>,
    %c0_263 = arith.constant 0 : index
    %c3_264 = arith.constant 3 : index
    %c0_265 = arith.constant 0 : index
    %1113 = vector.load %arg22[%c0_263, %c3_264, %c0_265] : memref<2x8x32xf32, #tpu.memory_space<vmem>>, vector<2x1x32xf32>
    %1114 = vector.shape_cast %1113 : vector<2x1x32xf32> to vector<2x32xf32>
    %1115 = vector.shape_cast %1109 : vector<2x32xf32> to vector<2x1x32xf32>
    tpu.vector_store %arg22[%c0_263, %c3_264, %c0_265], %1115 {strides = array<i32>} : memref<2x8x32xf32, #tpu.memory_space<vmem>>, vector<2x1x32xf32>,
    %1116 = tpu.concatenate %1084, %1109 in 1 : vector<2x32xf32>, vector<2x32xf32> -> vector<2x64xf32>
    %1117 = vector.extract_strided_slice %784 {offsets = [0, 5, 0], sizes = [2, 1, 128], strides = [1, 1, 1]} : vector<2x8x256xf32> to vector<2x1x128xf32>
    %1118 = vector.shape_cast %1117 : vector<2x1x128xf32> to vector<2x128xf32>
    %1119 = vector.extract_strided_slice %784 {offsets = [0, 2, 128], sizes = [2, 1, 128], strides = [1, 1, 1]} : vector<2x8x256xf32> to vector<2x1x128xf32>
    %1120 = vector.shape_cast %1119 : vector<2x1x128xf32> to vector<2x128xf32>
    %1121 = arith.truncf %1116 : vector<2x64xf32> to vector<2x64xbf16>
    %cst_266 = arith.constant dense<0.000000e+00> : vector<2x256xf32>
    %1122 = tpu.matmul %1121, %785, %cst_266 {dimension_numbers = #tpu.dot_dimension_numbers<[1], [0], [0], [1], [0, 0, 1, 1], [], []>} : vector<2x64xbf16>, vector<64x256xbf16>, vector<2x256xf32> -> vector<2x256xf32>
    %1123 = vector.extract_strided_slice %1122 {offsets = [0, 0], sizes = [2, 128], strides = [1, 1]} : vector<2x256xf32> to vector<2x128xf32>
    %1124 = arith.addf %1118, %1123 : vector<2x128xf32>
    %1125 = vector.extract_strided_slice %1122 {offsets = [0, 128], sizes = [2, 128], strides = [1, 1]} : vector<2x256xf32> to vector<2x128xf32>
    %1126 = arith.addf %1120, %1125 : vector<2x128xf32>
    %1127 = vector.extract_strided_slice %1124 {offsets = [0, 0], sizes = [2, 32], strides = [1, 1]} : vector<2x128xf32> to vector<2x32xf32>
    %1128 = arith.negf %1127 : vector<2x32xf32>
    %1129 = math.exp %1128 : vector<2x32xf32>
    %cst_267 = arith.constant 1.000000e+00 : f32
    %1130 = vector.broadcast %cst_267 : f32 to vector<2x32xf32>
    %1131 = arith.addf %1130, %1129 : vector<2x32xf32>
    %1132 = arith.divf %1130, %1131 : vector<2x32xf32>
    %1133 = vector.extract_strided_slice %1124 {offsets = [0, 32], sizes = [2, 32], strides = [1, 1]} : vector<2x128xf32> to vector<2x32xf32>
    %1134 = arith.negf %1133 : vector<2x32xf32>
    %1135 = math.exp %1134 : vector<2x32xf32>
    %cst_268 = arith.constant 1.000000e+00 : f32
    %1136 = vector.broadcast %cst_268 : f32 to vector<2x32xf32>
    %1137 = arith.addf %1136, %1135 : vector<2x32xf32>
    %1138 = arith.divf %1136, %1137 : vector<2x32xf32>
    %1139 = vector.extract_strided_slice %1124 {offsets = [0, 64], sizes = [2, 32], strides = [1, 1]} : vector<2x128xf32> to vector<2x32xf32>
    %1140 = math.tanh %1139 : vector<2x32xf32>
    %1141 = vector.extract_strided_slice %1124 {offsets = [0, 96], sizes = [2, 32], strides = [1, 1]} : vector<2x128xf32> to vector<2x32xf32>
    %1142 = arith.negf %1141 : vector<2x32xf32>
    %1143 = math.exp %1142 : vector<2x32xf32>
    %cst_269 = arith.constant 1.000000e+00 : f32
    %1144 = vector.broadcast %cst_269 : f32 to vector<2x32xf32>
    %1145 = arith.addf %1144, %1143 : vector<2x32xf32>
    %1146 = arith.divf %1144, %1145 : vector<2x32xf32>
    %1147 = arith.mulf %1138, %1082 : vector<2x32xf32>
    %1148 = arith.mulf %1132, %1140 : vector<2x32xf32>
    %1149 = arith.addf %1147, %1148 : vector<2x32xf32>
    %1150 = math.tanh %1149 : vector<2x32xf32>
    %1151 = arith.mulf %1146, %1150 : vector<2x32xf32>
    %1152 = vector.extract_strided_slice %1126 {offsets = [0, 0], sizes = [2, 32], strides = [1, 1]} : vector<2x128xf32> to vector<2x32xf32>
    %1153 = arith.negf %1152 : vector<2x32xf32>
    %1154 = math.exp %1153 : vector<2x32xf32>
    %cst_270 = arith.constant 1.000000e+00 : f32
    %1155 = vector.broadcast %cst_270 : f32 to vector<2x32xf32>
    %1156 = arith.addf %1155, %1154 : vector<2x32xf32>
    %1157 = arith.divf %1155, %1156 : vector<2x32xf32>
    %1158 = vector.extract_strided_slice %1126 {offsets = [0, 32], sizes = [2, 32], strides = [1, 1]} : vector<2x128xf32> to vector<2x32xf32>
    %1159 = arith.negf %1158 : vector<2x32xf32>
    %1160 = math.exp %1159 : vector<2x32xf32>
    %cst_271 = arith.constant 1.000000e+00 : f32
    %1161 = vector.broadcast %cst_271 : f32 to vector<2x32xf32>
    %1162 = arith.addf %1161, %1160 : vector<2x32xf32>
    %1163 = arith.divf %1161, %1162 : vector<2x32xf32>
    %1164 = vector.extract_strided_slice %1126 {offsets = [0, 64], sizes = [2, 32], strides = [1, 1]} : vector<2x128xf32> to vector<2x32xf32>
    %1165 = math.tanh %1164 : vector<2x32xf32>
    %1166 = vector.extract_strided_slice %1126 {offsets = [0, 96], sizes = [2, 32], strides = [1, 1]} : vector<2x128xf32> to vector<2x32xf32>
    %1167 = arith.negf %1166 : vector<2x32xf32>
    %1168 = math.exp %1167 : vector<2x32xf32>
    %cst_272 = arith.constant 1.000000e+00 : f32
    %1169 = vector.broadcast %cst_272 : f32 to vector<2x32xf32>
    %1170 = arith.addf %1169, %1168 : vector<2x32xf32>
    %1171 = arith.divf %1169, %1170 : vector<2x32xf32>
    %1172 = arith.mulf %1163, %1107 : vector<2x32xf32>
    %1173 = arith.mulf %1157, %1165 : vector<2x32xf32>
    %1174 = arith.addf %1172, %1173 : vector<2x32xf32>
    %1175 = math.tanh %1174 : vector<2x32xf32>
    %1176 = arith.mulf %1171, %1175 : vector<2x32xf32>
    %c0_273 = arith.constant 0 : index
    %c5_274 = arith.constant 5 : index
    %c0_275 = arith.constant 0 : index
    %1177 = vector.load %arg21[%c0_273, %c5_274, %c0_275] : memref<2x8x32xf32, #tpu.memory_space<vmem>>, vector<2x1x32xf32>
    %1178 = vector.shape_cast %1177 : vector<2x1x32xf32> to vector<2x32xf32>
    %1179 = vector.shape_cast %1151 : vector<2x32xf32> to vector<2x1x32xf32>
    tpu.vector_store %arg21[%c0_273, %c5_274, %c0_275], %1179 {strides = array<i32>} : memref<2x8x32xf32, #tpu.memory_space<vmem>>, vector<2x1x32xf32>,
    %c0_276 = arith.constant 0 : index
    %c2_277 = arith.constant 2 : index
    %c0_278 = arith.constant 0 : index
    %1180 = vector.load %arg22[%c0_276, %c2_277, %c0_278] : memref<2x8x32xf32, #tpu.memory_space<vmem>>, vector<2x1x32xf32>
    %1181 = vector.shape_cast %1180 : vector<2x1x32xf32> to vector<2x32xf32>
    %1182 = vector.shape_cast %1176 : vector<2x32xf32> to vector<2x1x32xf32>
    tpu.vector_store %arg22[%c0_276, %c2_277, %c0_278], %1182 {strides = array<i32>} : memref<2x8x32xf32, #tpu.memory_space<vmem>>, vector<2x1x32xf32>,
    %1183 = tpu.concatenate %1151, %1176 in 1 : vector<2x32xf32>, vector<2x32xf32> -> vector<2x64xf32>
    %1184 = vector.extract_strided_slice %784 {offsets = [0, 6, 0], sizes = [2, 1, 128], strides = [1, 1, 1]} : vector<2x8x256xf32> to vector<2x1x128xf32>
    %1185 = vector.shape_cast %1184 : vector<2x1x128xf32> to vector<2x128xf32>
    %1186 = vector.extract_strided_slice %784 {offsets = [0, 1, 128], sizes = [2, 1, 128], strides = [1, 1, 1]} : vector<2x8x256xf32> to vector<2x1x128xf32>
    %1187 = vector.shape_cast %1186 : vector<2x1x128xf32> to vector<2x128xf32>
    %1188 = arith.truncf %1183 : vector<2x64xf32> to vector<2x64xbf16>
    %cst_279 = arith.constant dense<0.000000e+00> : vector<2x256xf32>
    %1189 = tpu.matmul %1188, %785, %cst_279 {dimension_numbers = #tpu.dot_dimension_numbers<[1], [0], [0], [1], [0, 0, 1, 1], [], []>} : vector<2x64xbf16>, vector<64x256xbf16>, vector<2x256xf32> -> vector<2x256xf32>
    %1190 = vector.extract_strided_slice %1189 {offsets = [0, 0], sizes = [2, 128], strides = [1, 1]} : vector<2x256xf32> to vector<2x128xf32>
    %1191 = arith.addf %1185, %1190 : vector<2x128xf32>
    %1192 = vector.extract_strided_slice %1189 {offsets = [0, 128], sizes = [2, 128], strides = [1, 1]} : vector<2x256xf32> to vector<2x128xf32>
    %1193 = arith.addf %1187, %1192 : vector<2x128xf32>
    %1194 = vector.extract_strided_slice %1191 {offsets = [0, 0], sizes = [2, 32], strides = [1, 1]} : vector<2x128xf32> to vector<2x32xf32>
    %1195 = arith.negf %1194 : vector<2x32xf32>
    %1196 = math.exp %1195 : vector<2x32xf32>
    %cst_280 = arith.constant 1.000000e+00 : f32
    %1197 = vector.broadcast %cst_280 : f32 to vector<2x32xf32>
    %1198 = arith.addf %1197, %1196 : vector<2x32xf32>
    %1199 = arith.divf %1197, %1198 : vector<2x32xf32>
    %1200 = vector.extract_strided_slice %1191 {offsets = [0, 32], sizes = [2, 32], strides = [1, 1]} : vector<2x128xf32> to vector<2x32xf32>
    %1201 = arith.negf %1200 : vector<2x32xf32>
    %1202 = math.exp %1201 : vector<2x32xf32>
    %cst_281 = arith.constant 1.000000e+00 : f32
    %1203 = vector.broadcast %cst_281 : f32 to vector<2x32xf32>
    %1204 = arith.addf %1203, %1202 : vector<2x32xf32>
    %1205 = arith.divf %1203, %1204 : vector<2x32xf32>
    %1206 = vector.extract_strided_slice %1191 {offsets = [0, 64], sizes = [2, 32], strides = [1, 1]} : vector<2x128xf32> to vector<2x32xf32>
    %1207 = math.tanh %1206 : vector<2x32xf32>
    %1208 = vector.extract_strided_slice %1191 {offsets = [0, 96], sizes = [2, 32], strides = [1, 1]} : vector<2x128xf32> to vector<2x32xf32>
    %1209 = arith.negf %1208 : vector<2x32xf32>
    %1210 = math.exp %1209 : vector<2x32xf32>
    %cst_282 = arith.constant 1.000000e+00 : f32
    %1211 = vector.broadcast %cst_282 : f32 to vector<2x32xf32>
    %1212 = arith.addf %1211, %1210 : vector<2x32xf32>
    %1213 = arith.divf %1211, %1212 : vector<2x32xf32>
    %1214 = arith.mulf %1205, %1149 : vector<2x32xf32>
    %1215 = arith.mulf %1199, %1207 : vector<2x32xf32>
    %1216 = arith.addf %1214, %1215 : vector<2x32xf32>
    %1217 = math.tanh %1216 : vector<2x32xf32>
    %1218 = arith.mulf %1213, %1217 : vector<2x32xf32>
    %1219 = vector.extract_strided_slice %1193 {offsets = [0, 0], sizes = [2, 32], strides = [1, 1]} : vector<2x128xf32> to vector<2x32xf32>
    %1220 = arith.negf %1219 : vector<2x32xf32>
    %1221 = math.exp %1220 : vector<2x32xf32>
    %cst_283 = arith.constant 1.000000e+00 : f32
    %1222 = vector.broadcast %cst_283 : f32 to vector<2x32xf32>
    %1223 = arith.addf %1222, %1221 : vector<2x32xf32>
    %1224 = arith.divf %1222, %1223 : vector<2x32xf32>
    %1225 = vector.extract_strided_slice %1193 {offsets = [0, 32], sizes = [2, 32], strides = [1, 1]} : vector<2x128xf32> to vector<2x32xf32>
    %1226 = arith.negf %1225 : vector<2x32xf32>
    %1227 = math.exp %1226 : vector<2x32xf32>
    %cst_284 = arith.constant 1.000000e+00 : f32
    %1228 = vector.broadcast %cst_284 : f32 to vector<2x32xf32>
    %1229 = arith.addf %1228, %1227 : vector<2x32xf32>
    %1230 = arith.divf %1228, %1229 : vector<2x32xf32>
    %1231 = vector.extract_strided_slice %1193 {offsets = [0, 64], sizes = [2, 32], strides = [1, 1]} : vector<2x128xf32> to vector<2x32xf32>
    %1232 = math.tanh %1231 : vector<2x32xf32>
    %1233 = vector.extract_strided_slice %1193 {offsets = [0, 96], sizes = [2, 32], strides = [1, 1]} : vector<2x128xf32> to vector<2x32xf32>
    %1234 = arith.negf %1233 : vector<2x32xf32>
    %1235 = math.exp %1234 : vector<2x32xf32>
    %cst_285 = arith.constant 1.000000e+00 : f32
    %1236 = vector.broadcast %cst_285 : f32 to vector<2x32xf32>
    %1237 = arith.addf %1236, %1235 : vector<2x32xf32>
    %1238 = arith.divf %1236, %1237 : vector<2x32xf32>
    %1239 = arith.mulf %1230, %1174 : vector<2x32xf32>
    %1240 = arith.mulf %1224, %1232 : vector<2x32xf32>
    %1241 = arith.addf %1239, %1240 : vector<2x32xf32>
    %1242 = math.tanh %1241 : vector<2x32xf32>
    %1243 = arith.mulf %1238, %1242 : vector<2x32xf32>
    %c0_286 = arith.constant 0 : index
    %c6_287 = arith.constant 6 : index
    %c0_288 = arith.constant 0 : index
    %1244 = vector.load %arg21[%c0_286, %c6_287, %c0_288] : memref<2x8x32xf32, #tpu.memory_space<vmem>>, vector<2x1x32xf32>
    %1245 = vector.shape_cast %1244 : vector<2x1x32xf32> to vector<2x32xf32>
    %1246 = vector.shape_cast %1218 : vector<2x32xf32> to vector<2x1x32xf32>
    tpu.vector_store %arg21[%c0_286, %c6_287, %c0_288], %1246 {strides = array<i32>} : memref<2x8x32xf32, #tpu.memory_space<vmem>>, vector<2x1x32xf32>,
    %c0_289 = arith.constant 0 : index
    %c1_290 = arith.constant 1 : index
    %c0_291 = arith.constant 0 : index
    %1247 = vector.load %arg22[%c0_289, %c1_290, %c0_291] : memref<2x8x32xf32, #tpu.memory_space<vmem>>, vector<2x1x32xf32>
    %1248 = vector.shape_cast %1247 : vector<2x1x32xf32> to vector<2x32xf32>
    %1249 = vector.shape_cast %1243 : vector<2x32xf32> to vector<2x1x32xf32>
    tpu.vector_store %arg22[%c0_289, %c1_290, %c0_291], %1249 {strides = array<i32>} : memref<2x8x32xf32, #tpu.memory_space<vmem>>, vector<2x1x32xf32>,
    %1250 = tpu.concatenate %1218, %1243 in 1 : vector<2x32xf32>, vector<2x32xf32> -> vector<2x64xf32>
    %1251 = vector.extract_strided_slice %784 {offsets = [0, 7, 0], sizes = [2, 1, 128], strides = [1, 1, 1]} : vector<2x8x256xf32> to vector<2x1x128xf32>
    %1252 = vector.shape_cast %1251 : vector<2x1x128xf32> to vector<2x128xf32>
    %1253 = vector.extract_strided_slice %784 {offsets = [0, 0, 128], sizes = [2, 1, 128], strides = [1, 1, 1]} : vector<2x8x256xf32> to vector<2x1x128xf32>
    %1254 = vector.shape_cast %1253 : vector<2x1x128xf32> to vector<2x128xf32>
    %1255 = arith.truncf %1250 : vector<2x64xf32> to vector<2x64xbf16>
    %cst_292 = arith.constant dense<0.000000e+00> : vector<2x256xf32>
    %1256 = tpu.matmul %1255, %785, %cst_292 {dimension_numbers = #tpu.dot_dimension_numbers<[1], [0], [0], [1], [0, 0, 1, 1], [], []>} : vector<2x64xbf16>, vector<64x256xbf16>, vector<2x256xf32> -> vector<2x256xf32>
    %1257 = vector.extract_strided_slice %1256 {offsets = [0, 0], sizes = [2, 128], strides = [1, 1]} : vector<2x256xf32> to vector<2x128xf32>
    %1258 = arith.addf %1252, %1257 : vector<2x128xf32>
    %1259 = vector.extract_strided_slice %1256 {offsets = [0, 128], sizes = [2, 128], strides = [1, 1]} : vector<2x256xf32> to vector<2x128xf32>
    %1260 = arith.addf %1254, %1259 : vector<2x128xf32>
    %1261 = vector.extract_strided_slice %1258 {offsets = [0, 0], sizes = [2, 32], strides = [1, 1]} : vector<2x128xf32> to vector<2x32xf32>
    %1262 = arith.negf %1261 : vector<2x32xf32>
    %1263 = math.exp %1262 : vector<2x32xf32>
    %cst_293 = arith.constant 1.000000e+00 : f32
    %1264 = vector.broadcast %cst_293 : f32 to vector<2x32xf32>
    %1265 = arith.addf %1264, %1263 : vector<2x32xf32>
    %1266 = arith.divf %1264, %1265 : vector<2x32xf32>
    %1267 = vector.extract_strided_slice %1258 {offsets = [0, 32], sizes = [2, 32], strides = [1, 1]} : vector<2x128xf32> to vector<2x32xf32>
    %1268 = arith.negf %1267 : vector<2x32xf32>
    %1269 = math.exp %1268 : vector<2x32xf32>
    %cst_294 = arith.constant 1.000000e+00 : f32
    %1270 = vector.broadcast %cst_294 : f32 to vector<2x32xf32>
    %1271 = arith.addf %1270, %1269 : vector<2x32xf32>
    %1272 = arith.divf %1270, %1271 : vector<2x32xf32>
    %1273 = vector.extract_strided_slice %1258 {offsets = [0, 64], sizes = [2, 32], strides = [1, 1]} : vector<2x128xf32> to vector<2x32xf32>
    %1274 = math.tanh %1273 : vector<2x32xf32>
    %1275 = vector.extract_strided_slice %1258 {offsets = [0, 96], sizes = [2, 32], strides = [1, 1]} : vector<2x128xf32> to vector<2x32xf32>
    %1276 = arith.negf %1275 : vector<2x32xf32>
    %1277 = math.exp %1276 : vector<2x32xf32>
    %cst_295 = arith.constant 1.000000e+00 : f32
    %1278 = vector.broadcast %cst_295 : f32 to vector<2x32xf32>
    %1279 = arith.addf %1278, %1277 : vector<2x32xf32>
    %1280 = arith.divf %1278, %1279 : vector<2x32xf32>
    %1281 = arith.mulf %1272, %1216 : vector<2x32xf32>
    %1282 = arith.mulf %1266, %1274 : vector<2x32xf32>
    %1283 = arith.addf %1281, %1282 : vector<2x32xf32>
    %1284 = math.tanh %1283 : vector<2x32xf32>
    %1285 = arith.mulf %1280, %1284 : vector<2x32xf32>
    %1286 = vector.extract_strided_slice %1260 {offsets = [0, 0], sizes = [2, 32], strides = [1, 1]} : vector<2x128xf32> to vector<2x32xf32>
    %1287 = arith.negf %1286 : vector<2x32xf32>
    %1288 = math.exp %1287 : vector<2x32xf32>
    %cst_296 = arith.constant 1.000000e+00 : f32
    %1289 = vector.broadcast %cst_296 : f32 to vector<2x32xf32>
    %1290 = arith.addf %1289, %1288 : vector<2x32xf32>
    %1291 = arith.divf %1289, %1290 : vector<2x32xf32>
    %1292 = vector.extract_strided_slice %1260 {offsets = [0, 32], sizes = [2, 32], strides = [1, 1]} : vector<2x128xf32> to vector<2x32xf32>
    %1293 = arith.negf %1292 : vector<2x32xf32>
    %1294 = math.exp %1293 : vector<2x32xf32>
    %cst_297 = arith.constant 1.000000e+00 : f32
    %1295 = vector.broadcast %cst_297 : f32 to vector<2x32xf32>
    %1296 = arith.addf %1295, %1294 : vector<2x32xf32>
    %1297 = arith.divf %1295, %1296 : vector<2x32xf32>
    %1298 = vector.extract_strided_slice %1260 {offsets = [0, 64], sizes = [2, 32], strides = [1, 1]} : vector<2x128xf32> to vector<2x32xf32>
    %1299 = math.tanh %1298 : vector<2x32xf32>
    %1300 = vector.extract_strided_slice %1260 {offsets = [0, 96], sizes = [2, 32], strides = [1, 1]} : vector<2x128xf32> to vector<2x32xf32>
    %1301 = arith.negf %1300 : vector<2x32xf32>
    %1302 = math.exp %1301 : vector<2x32xf32>
    %cst_298 = arith.constant 1.000000e+00 : f32
    %1303 = vector.broadcast %cst_298 : f32 to vector<2x32xf32>
    %1304 = arith.addf %1303, %1302 : vector<2x32xf32>
    %1305 = arith.divf %1303, %1304 : vector<2x32xf32>
    %1306 = arith.mulf %1297, %1241 : vector<2x32xf32>
    %1307 = arith.mulf %1291, %1299 : vector<2x32xf32>
    %1308 = arith.addf %1306, %1307 : vector<2x32xf32>
    %1309 = math.tanh %1308 : vector<2x32xf32>
    %1310 = arith.mulf %1305, %1309 : vector<2x32xf32>
    %c0_299 = arith.constant 0 : index
    %c7_300 = arith.constant 7 : index
    %c0_301 = arith.constant 0 : index
    %1311 = vector.load %arg21[%c0_299, %c7_300, %c0_301] : memref<2x8x32xf32, #tpu.memory_space<vmem>>, vector<2x1x32xf32>
    %1312 = vector.shape_cast %1311 : vector<2x1x32xf32> to vector<2x32xf32>
    %1313 = vector.shape_cast %1285 : vector<2x32xf32> to vector<2x1x32xf32>
    tpu.vector_store %arg21[%c0_299, %c7_300, %c0_301], %1313 {strides = array<i32>} : memref<2x8x32xf32, #tpu.memory_space<vmem>>, vector<2x1x32xf32>,
    %c0_302 = arith.constant 0 : index
    %c0_303 = arith.constant 0 : index
    %c0_304 = arith.constant 0 : index
    %1314 = vector.load %arg22[%c0_302, %c0_303, %c0_304] : memref<2x8x32xf32, #tpu.memory_space<vmem>>, vector<2x1x32xf32>
    %1315 = vector.shape_cast %1314 : vector<2x1x32xf32> to vector<2x32xf32>
    %1316 = vector.shape_cast %1310 : vector<2x32xf32> to vector<2x1x32xf32>
    tpu.vector_store %arg22[%c0_302, %c0_303, %c0_304], %1316 {strides = array<i32>} : memref<2x8x32xf32, #tpu.memory_space<vmem>>, vector<2x1x32xf32>,
    %c0_305 = arith.constant 0 : index
    %c0_306 = arith.constant 0 : index
    %c0_307 = arith.constant 0 : index
    %1317 = vector.load %arg21[%c0_305, %c0_306, %c0_307] : memref<2x8x32xf32, #tpu.memory_space<vmem>>, vector<2x8x32xf32>
    %c0_308 = arith.constant 0 : index
    %c0_309 = arith.constant 0 : index
    %c0_310 = arith.constant 0 : index
    %1318 = vector.load %arg22[%c0_308, %c0_309, %c0_310] : memref<2x8x32xf32, #tpu.memory_space<vmem>>, vector<2x8x32xf32>
    %1319 = tpu.concatenate %1317, %1318 in 2 : vector<2x8x32xf32>, vector<2x8x32xf32> -> vector<2x8x64xf32>
    %c0_311 = arith.constant 0 : index
    %c0_312 = arith.constant 0 : index
    %c0_313 = arith.constant 0 : index
    %1320 = vector.load %arg20[%c0_311, %c0_312, %c0_313] : memref<2x8x64xf32, #tpu.memory_space<vmem>>, vector<2x8x64xf32>
    tpu.vector_store %arg20[%c0_311, %c0_312, %c0_313], %1319 {strides = array<i32>} : memref<2x8x64xf32, #tpu.memory_space<vmem>>, vector<2x8x64xf32>,
    return
  }
}

</mosaic_0001>

<bundles_post_ra>
// kernel: multi_head_memory_generation.1
= control target key start
LH: loop header
LB: loop body
LE: loop exit
PB: predicated region body
PF: predicated region fallthrough
CT: control target
= control target key end

     0   :  { %s10480_s0 = inlined_call_operand.hbm [shape: f32[2,8,64], index: 0, kind: input, shape index: {}]   ;;  %s10481_s1 = inlined_call_operand.hbm [shape: f32[2,8,64], index: 1, kind: input, shape index: {}]   ;;  %s10482_s2 = inlined_call_operand.hbm [shape: f32[2,1,8], index: 2, kind: input, shape index: {}]   ;;  %s10483_s3 = inlined_call_operand.hbm [shape: f32[2,1,8], index: 3, kind: input, shape index: {}]   ;;  %s10484_s4 = inlined_call_operand.hbm [shape: bf16[64,64], index: 4, kind: input, shape index: {}]   ;;  %s10485_s5 = inlined_call_operand.hbm [shape: f32[1,64], index: 5, kind: input, shape index: {}]   ;;  %s10486_s6 = inlined_call_operand.hbm [shape: bf16[64,128], index: 6, kind: input, shape index: {}]   ;;  %s10487_s7 = inlined_call_operand.hbm [shape: f32[1,128], index: 7, kind: input, shape index: {}]   ;;  %s10488_s8 = inlined_call_operand.hbm [shape: bf16[64,64], index: 8, kind: input, shape index: {}]   ;;  %s10489_s9 = inlined_call_operand.hbm [shape: f32[1,64], index: 9, kind: input, shape index: {}]   ;;  %s10490_s10 = inlined_call_operand.hbm [shape: bf16[128,384], index: 10, kind: input, shape index: {}]   ;;  %s10491_s11 = inlined_call_operand.hbm [shape: f32[1,384], index: 11, kind: input, shape index: {}]   ;;  %s10492_s12 = inlined_call_operand.hbm [shape: bf16[128,128], index: 12, kind: input, shape index: {}]   ;;  %s10493_s13 = inlined_call_operand.hbm [shape: f32[1,128], index: 13, kind: input, shape index: {}]   ;;  %s10494_s14 = inlined_call_operand.hbm [shape: bf16[256,256], index: 14, kind: input, shape index: {}]   ;;  %s10495_s15 = inlined_call_operand.vmem [shape: bf16[64,256], index: 15, kind: input, shape index: {}]   ;;  %s10496_s16 = inlined_call_operand.vmem [shape: f32[1,256], index: 16, kind: input, shape index: {}]   ;;  %s10497_s17 = inlined_call_operand.hbm [shape: bf16[64,256], index: 17, kind: input, shape index: {}]   ;;  %s10498_s18 = inlined_call_operand.hbm [shape: bf16[64,256], index: 18, kind: input, shape index: {}]   ;;  %s10499_s19 = inlined_call_operand.vmem [shape: f32[1,256], index: 19, kind: input, shape index: {}]   ;;  %s10500_s20 = inlined_call_operand.hbm [shape: f32[2,8,64], index: 20, kind: output, shape index: {}]  }
   0x1   :  { %10509 = sst [smem:[#allocation42_spill]] %s10480_s0 }
   0x2   :  { %10510 = sst [smem:[#allocation43_spill]] %s10481_s1 }
   0x3   :  { %10511 = sst [smem:[#allocation44_spill]] %s10482_s2 }
   0x4   :  { %10512 = sst [smem:[#allocation45_spill]] %s10483_s3 }
   0x5   :  { %10513 = sst [smem:[#allocation46_spill]] %s10484_s4 }
   0x6   :  { %10514 = sst [smem:[#allocation47_spill]] %s10495_s15 }
   0x7   :  { %10515 = sst [smem:[#allocation48_spill]] %s10499_s19 }
   0x8   :  { %10516 = sst [smem:[#allocation49_spill]] %s10500_s20 }
   0x9   :  { %25 = vsyncpa [#allocation5], 0 }
   0xa   :  { %26 = vsyncpa [#allocation8], 0 }
   0xb   :  { %27 = vsyncpa [#allocation11], 0 }
   0xc   :  { %28 = vsyncpa [#allocation14], 0 }
   0xd   :  { %29 = vsyncpa [#allocation17], 0 }
   0xe   :  { %30 = vsyncpa [#allocation20], 0 }
   0xf   :  { %31 = vsyncpa [#allocation23], 0 }
  0x10   :  { %32 = vsyncpa [#allocation26], 0 }
  0x11   :  { %33 = vsyncpa [#allocation29], 0 }
  0x12   :  { %34 = vsyncpa [#allocation6], 0  ;;  %s8414_s1 = smov [#allocation7]   ;;  %s10517_s2 = sld [smem:[#allocation43_spill]] }
  0x13   :  { %s52_s22 = sshll.u32 %s8414_s1, 4  ;;  %s53_s22 = int_to_ptr.vmem [resolvable:$true] %s52_s22 }
  0x18   :  { %s7998_s25 = scalar_lea.hbm %s10517_s2, 256 }
  0x19   :  { %p7999_p0 = scmp.ne.s32.totalorder %s10517_s2, %s7998_s25  ;;  %p8002_p1 = scmp.lt.u32.totalorder %s7998_s25, %s10517_s2 }
  0x1b   :  { %p8004_p2 = pnand %p8002_p1, %p7999_p0 }
  0x1d   :  { %8007 = shalt.err (!%p8004_p2)
}
  0x1e   :  { %s8008_s4 = scalar_lea.vmem %s53_s22, 256  ;;  %p8013_p4 = scmp.lt.s32.totalorder %s53_s22, %s53_s22 }
  0x1f   :  { %p8009_p3 = scmp.ne.s32.totalorder %s53_s22, %s8008_s4  ;;  %p8014_p5 = scmp.lt.s32.totalorder %s8008_s4, %s8008_s4 }
  0x21   :  { %p8015_p6 = por %p8014_p5, %p8013_p4 }
  0x23   :  { %p8016_p7 = pnand %p8015_p6, %p8009_p3 }
  0x25   :  { %8019 = shalt.err (!%p8016_p7)
}
  0x26   :  { %s8415_s29 = smov 128   ;;  %s8416_s30 = smov 8  }
  0x27   :  { %58 = dma.hbm_to_vmem [thread:$0]  %s10517_s2, 256, %s53_s22, [#allocation8], %s8415_s29, %s8415_s29, %s8416_s30  }
  0x28   :  { %s8417_s1 = smov [#allocation10]   ;;  %s8418_s24 = smov [#allocation13]  }
  0x29   :  { %s76_s23 = sshll.u32 %s8417_s1, 4  ;;  %s101_s25 = sshll.u32 %s8418_s24, 4  ;;  %s77_s23 = int_to_ptr.vmem [resolvable:$true] %s76_s23  ;;  %s102_s25 = int_to_ptr.vmem [resolvable:$true] %s101_s25 }
  0x2a   :  { %s10518_s27 = sld [smem:[#allocation45_spill]] }
  0x30   :  { %s8020_s28 = scalar_lea.hbm %s10518_s27, 32 }
  0x31   :  { %p8021_p8 = scmp.ne.s32.totalorder %s10518_s27, %s8020_s28  ;;  %p8024_p9 = scmp.lt.u32.totalorder %s8020_s28, %s10518_s27 }
  0x33   :  { %p8026_p10 = pnand %p8024_p9, %p8021_p8 }
  0x35   :  { %8029 = shalt.err (!%p8026_p10)
}
  0x36   :  { %s8030_s22 = scalar_lea.vmem %s77_s23, 32  ;;  %p8035_p12 = scmp.lt.s32.totalorder %s77_s23, %s77_s23 }
  0x37   :  { %p8031_p11 = scmp.ne.s32.totalorder %s77_s23, %s8030_s22  ;;  %p8036_p13 = scmp.lt.s32.totalorder %s8030_s22, %s8030_s22 }
  0x39   :  { %p8037_p0 = por %p8036_p13, %p8035_p12 }
  0x3b   :  { %p8038_p1 = pnand %p8037_p0, %p8031_p11 }
  0x3d   :  { %8041 = shalt.err (!%p8038_p1)
}
  0x3e   :  { %s8419_s2 = smov 16   ;;  %s8420_s0 = smov 1  }
  0x3f   :  { %82 = dma.hbm_to_vmem [thread:$0]  %s10518_s27, 32, %s77_s23, [#allocation11], %s8419_s2, %s8419_s2, %s8420_s0  }
  0x40   :  { %s8042_s1 = scalar_lea.hbm %s10485_s5, 16 }
  0x41   :  { %p8043_p2 = scmp.ne.s32.totalorder %s10485_s5, %s8042_s1  ;;  %p8046_p3 = scmp.lt.u32.totalorder %s8042_s1, %s10485_s5 }
  0x43   :  { %p8048_p4 = pnand %p8046_p3, %p8043_p2 }
  0x45   :  { %8051 = shalt.err (!%p8048_p4)
}
  0x46   :  { %s8052_s4 = scalar_lea.vmem %s102_s25, 16  ;;  %s8056_s22 = scalar_lea.vmem %s102_s25, 32 }
  0x47   :  { %p8053_p5 = scmp.ne.s32.totalorder %s102_s25, %s8052_s4  ;;  %p8057_p6 = scmp.lt.s32.totalorder %s102_s25, %s102_s25 }
  0x48   :  { %p8058_p7 = scmp.lt.s32.totalorder %s8056_s22, %s8052_s4 }
  0x4a   :  { %p8059_p8 = por %p8058_p7, %p8057_p6 }
  0x4c   :  { %p8060_p9 = pnand %p8059_p8, %p8053_p5 }
  0x4e   :  { %8063 = shalt.err (!%p8060_p9)
}
  0x4f   :  { %104 = dma.hbm_to_vmem [thread:$0]  %s10485_s5, 16, %s102_s25, [#allocation14]  }
  0x50   :  { %s8421_s20 = smov [#allocation16]   ;;  %s8422_s15 = smov [#allocation19]  }
  0x51   :  { %s123_s21 = sshll.u32 %s8421_s20, 4  ;;  %s145_s19 = sshll.u32 %s8422_s15, 4  ;;  %s124_s21 = int_to_ptr.vmem [resolvable:$true] %s123_s21  ;;  %s146_s19 = int_to_ptr.vmem [resolvable:$true] %s145_s19 }
  0x52   :  { %s8064_s3 = scalar_lea.hbm %s10487_s7, 16 }
  0x53   :  { %p8065_p10 = scmp.ne.s32.totalorder %s10487_s7, %s8064_s3  ;;  %p8068_p11 = scmp.lt.u32.totalorder %s8064_s3, %s10487_s7 }
  0x55   :  { %p8070_p12 = pnand %p8068_p11, %p8065_p10 }
  0x57   :  { %8073 = shalt.err (!%p8070_p12)
}
  0x58   :  { %s8074_s5 = scalar_lea.vmem %s124_s21, 16  ;;  %s8078_s25 = scalar_lea.vmem %s124_s21, 32 }
  0x59   :  { %p8075_p13 = scmp.ne.s32.totalorder %s124_s21, %s8074_s5  ;;  %p8079_p0 = scmp.lt.s32.totalorder %s124_s21, %s124_s21 }
  0x5a   :  { %p8080_p1 = scmp.lt.s32.totalorder %s8078_s25, %s8074_s5 }
  0x5c   :  { %p8081_p2 = por %p8080_p1, %p8079_p0 }
  0x5e   :  { %p8082_p3 = pnand %p8081_p2, %p8075_p13 }
  0x60   :  { %8085 = shalt.err (!%p8082_p3)
}
  0x61   :  { %126 = dma.hbm_to_vmem [thread:$0]  %s10487_s7, 16, %s124_s21, [#allocation17]  }
  0x62   :  { %s8086_s1 = scalar_lea.hbm %s10489_s9, 16 }
  0x63   :  { %p8087_p4 = scmp.ne.s32.totalorder %s10489_s9, %s8086_s1  ;;  %p8090_p5 = scmp.lt.u32.totalorder %s8086_s1, %s10489_s9 }
  0x65   :  { %p8092_p6 = pnand %p8090_p5, %p8087_p4 }
  0x67   :  { %8095 = shalt.err (!%p8092_p6)
}
  0x68   :  { %s8096_s4 = scalar_lea.vmem %s146_s19, 16  ;;  %s8100_s22 = scalar_lea.vmem %s146_s19, 32 }
  0x69   :  { %p8097_p7 = scmp.ne.s32.totalorder %s146_s19, %s8096_s4  ;;  %p8101_p8 = scmp.lt.s32.totalorder %s146_s19, %s146_s19 }
  0x6a   :  { %p8102_p9 = scmp.lt.s32.totalorder %s8100_s22, %s8096_s4 }
  0x6c   :  { %p8103_p10 = por %p8102_p9, %p8101_p8 }
  0x6e   :  { %p8104_p11 = pnand %p8103_p10, %p8097_p7 }
  0x70   :  { %8107 = shalt.err (!%p8104_p11)
}
  0x71   :  { %148 = dma.hbm_to_vmem [thread:$0]  %s10489_s9, 16, %s146_s19, [#allocation20]  }
  0x72   :  { %s8423_s5 = smov [#allocation22]   ;;  %s8424_s23 = smov [#allocation25]  }
  0x73   :  { %s167_s25 = sshll.u32 %s8423_s5, 4  ;;  %s189_s27 = sshll.u32 %s8424_s23, 4  ;;  %s168_s25 = int_to_ptr.vmem [resolvable:$true] %s167_s25  ;;  %s190_s27 = int_to_ptr.vmem [resolvable:$true] %s189_s27 }
  0x74   :  { %s8108_s1 = scalar_lea.hbm %s10491_s11, 48 }
  0x75   :  { %p8109_p12 = scmp.ne.s32.totalorder %s10491_s11, %s8108_s1  ;;  %p8112_p13 = scmp.lt.u32.totalorder %s8108_s1, %s10491_s11 }
  0x77   :  { %p8114_p0 = pnand %p8112_p13, %p8109_p12 }
  0x79   :  { %8117 = shalt.err (!%p8114_p0)
}
  0x7a   :  { %s8118_s9 = scalar_lea.vmem %s168_s25, 48  ;;  %s8122_s19 = scalar_lea.vmem %s168_s25, 64 }
  0x7b   :  { %p8119_p1 = scmp.ne.s32.totalorder %s168_s25, %s8118_s9  ;;  %p8123_p2 = scmp.lt.s32.totalorder %s168_s25, %s168_s25 }
  0x7c   :  { %p8124_p3 = scmp.lt.s32.totalorder %s8122_s19, %s8118_s9 }
  0x7e   :  { %p8125_p4 = por %p8124_p3, %p8123_p2 }
  0x80   :  { %p8126_p5 = pnand %p8125_p4, %p8119_p1 }
  0x82   :  { %8129 = shalt.err (!%p8126_p5)
}
  0x83   :  { %170 = dma.hbm_to_vmem [thread:$0]  %s10491_s11, 48, %s168_s25, [#allocation23]  }
  0x84   :  { %s8130_s5 = scalar_lea.hbm %s10493_s13, 16 }
  0x85   :  { %p8131_p6 = scmp.ne.s32.totalorder %s10493_s13, %s8130_s5  ;;  %p8134_p7 = scmp.lt.u32.totalorder %s8130_s5, %s10493_s13 }
  0x87   :  { %p8136_p8 = pnand %p8134_p7, %p8131_p6 }
  0x89   :  { %8139 = shalt.err (!%p8136_p8)
}
  0x8a   :  { %s8140_s24 = scalar_lea.vmem %s190_s27, 16  ;;  %s8144_s3 = scalar_lea.vmem %s190_s27, 32 }
  0x8b   :  { %p8141_p9 = scmp.ne.s32.totalorder %s190_s27, %s8140_s24  ;;  %p8145_p10 = scmp.lt.s32.totalorder %s190_s27, %s190_s27 }
  0x8c   :  { %p8146_p11 = scmp.lt.s32.totalorder %s8144_s3, %s8140_s24 }
  0x8e   :  { %p8147_p12 = por %p8146_p11, %p8145_p10 }
  0x90   :  { %p8148_p13 = pnand %p8147_p12, %p8141_p9 }
  0x92   :  { %8151 = shalt.err (!%p8148_p13)
}
  0x93   :  { %192 = dma.hbm_to_vmem [thread:$0]  %s10493_s13, 16, %s190_s27, [#allocation26]  }
  0x94   :  { %s8425_s26 = smov [#allocation28]   ;;  %s8426_s9 = smov [#allocation4]  }
  0x95   :  { %s214_s28 = sshll.u32 %s8425_s26, 4  ;;  %s40_s19 = sshll.u32 %s8426_s9, 4  ;;  %s215_s28 = int_to_ptr.vmem [resolvable:$true] %s214_s28  ;;  %s41_s19 = int_to_ptr.vmem [resolvable:$true] %s40_s19 }
  0x96   :  { %s8152_s7 = scalar_lea.hbm %s10497_s17, 1024 }
  0x97   :  { %p8153_p0 = scmp.ne.s32.totalorder %s10497_s17, %s8152_s7  ;;  %p8156_p1 = scmp.lt.u32.totalorder %s8152_s7, %s10497_s17 }
  0x99   :  { %p8158_p2 = pnand %p8156_p1, %p8153_p0 }
  0x9b   :  { %8161 = shalt.err (!%p8158_p2)
}
  0x9c   :  { %s8162_s13 = scalar_lea.vmem %s215_s28, 1024  ;;  %p8167_p4 = scmp.lt.s32.totalorder %s215_s28, %s215_s28 }
  0x9d   :  { %p8163_p3 = scmp.ne.s32.totalorder %s215_s28, %s8162_s13  ;;  %p8168_p5 = scmp.lt.s32.totalorder %s8162_s13, %s8162_s13 }
  0x9f   :  { %p8169_p6 = por %p8168_p5, %p8167_p4 }
  0xa1   :  { %p8170_p7 = pnand %p8169_p6, %p8163_p3 }
  0xa3   :  { %8173 = shalt.err (!%p8170_p7)
}
  0xa4   :  { %220 = dma.hbm_to_vmem [thread:$0]  %s10497_s17, 1024, %s215_s28, [#allocation29], %s8415_s29, %s8415_s29, %s8416_s30  }
  0xa5   :  { %s10519_s3 = sld [smem:[#allocation42_spill]] }
  0xab   :  { %s8174_s11 = scalar_lea.hbm %s10519_s3, 256 }
  0xac   :  { %p8175_p8 = scmp.ne.s32.totalorder %s10519_s3, %s8174_s11  ;;  %p8178_p9 = scmp.lt.u32.totalorder %s8174_s11, %s10519_s3 }
  0xae   :  { %p8180_p10 = pnand %p8178_p9, %p8175_p8 }
  0xb0   :  { %8183 = shalt.err (!%p8180_p10)
}
  0xb1   :  { %s8184_s22 = scalar_lea.vmem %s41_s19, 256  ;;  %p8189_p12 = scmp.lt.s32.totalorder %s41_s19, %s41_s19 }
  0xb2   :  { %p8185_p11 = scmp.ne.s32.totalorder %s41_s19, %s8184_s22  ;;  %p8190_p13 = scmp.lt.s32.totalorder %s8184_s22, %s8184_s22 }
  0xb4   :  { %p8191_p0 = por %p8190_p13, %p8189_p12 }
  0xb6   :  { %p8192_p1 = pnand %p8191_p0, %p8185_p11 }
  0xb8   :  { %8195 = shalt.err (!%p8192_p1)
}
  0xb9   :  { %46 = dma.hbm_to_vmem [thread:$0]  %s10519_s3, 256, %s41_s19, [#allocation5], %s8415_s29, %s8415_s29, %s8416_s30  }
  0xba   :  { %s8427_s7 = smov [#allocation9]   ;;  %s8428_s5 = smov [#allocation12]  }
  0xbb   :  { %s64_s21 = sshll.u32 %s8427_s7, 4  ;;  %s88_s23 = sshll.u32 %s8428_s5, 4  ;;  %s65_s21 = int_to_ptr.vmem [resolvable:$true] %s64_s21  ;;  %s89_s23 = int_to_ptr.vmem [resolvable:$true] %s88_s23 }
  0xbc   :  { %s10520_s27 = sld [smem:[#allocation44_spill]] }
  0xc2   :  { %s8196_s15 = scalar_lea.hbm %s10520_s27, 32 }
  0xc3   :  { %p8197_p2 = scmp.ne.s32.totalorder %s10520_s27, %s8196_s15  ;;  %p8200_p3 = scmp.lt.u32.totalorder %s8196_s15, %s10520_s27 }
  0xc5   :  { %p8202_p4 = pnand %p8200_p3, %p8197_p2 }
  0xc7   :  { %8205 = shalt.err (!%p8202_p4)
}
  0xc8   :  { %s8206_s19 = scalar_lea.vmem %s65_s21, 32  ;;  %p8211_p6 = scmp.lt.s32.totalorder %s65_s21, %s65_s21 }
  0xc9   :  { %p8207_p5 = scmp.ne.s32.totalorder %s65_s21, %s8206_s19  ;;  %p8212_p7 = scmp.lt.s32.totalorder %s8206_s19, %s8206_s19 }
  0xcb   :  { %p8213_p8 = por %p8212_p7, %p8211_p6 }
  0xcd   :  { %p8214_p9 = pnand %p8213_p8, %p8207_p5 }
  0xcf   :  { %8217 = shalt.err (!%p8214_p9)
}
  0xd0   :  { %70 = dma.hbm_to_vmem [thread:$0]  %s10520_s27, 32, %s65_s21, [#allocation8], %s8419_s2, %s8419_s2, %s8420_s0  }
  0xd1   :  { %s10521_s22 = sld [smem:[#allocation46_spill]] }
  0xd7   :  { %s8218_s17 = scalar_lea.hbm %s10521_s22, 512 }
  0xd8   :  { %p8219_p10 = scmp.ne.s32.totalorder %s10521_s22, %s8218_s17  ;;  %p8222_p11 = scmp.lt.u32.totalorder %s8218_s17, %s10521_s22 }
  0xda   :  { %p8224_p12 = pnand %p8222_p11, %p8219_p10 }
  0xdc   :  { %8227 = shalt.err (!%p8224_p12)
}
  0xdd   :  { %s8228_s13 = scalar_lea.vmem %s89_s23, 512  ;;  %p8233_p0 = scmp.lt.s32.totalorder %s89_s23, %s89_s23 }
  0xde   :  { %p8229_p13 = scmp.ne.s32.totalorder %s89_s23, %s8228_s13  ;;  %p8234_p1 = scmp.lt.s32.totalorder %s8228_s13, %s8228_s13 }
  0xe0   :  { %p8235_p2 = por %p8234_p1, %p8233_p0 }
  0xe2   :  { %p8236_p3 = pnand %p8235_p2, %p8229_p13 }
  0xe4   :  { %8239 = shalt.err (!%p8236_p3)
}
  0xe5   :  { %s8429_s0 = smov 64   ;;  %s8430_s21 = smov 4  }
  0xe6   :  { %94 = dma.hbm_to_vmem [thread:$0]  %s10521_s22, 512, %s89_s23, [#allocation11], %s8429_s0, %s8429_s0, %s8430_s21  }
  0xe7   :  { %s8431_s1 = smov [#allocation15]   ;;  %s8432_s11 = smov [#allocation18]  }
  0xe8   :  { %s110_s24 = sshll.u32 %s8431_s1, 4  ;;  %s132_s25 = sshll.u32 %s8432_s11, 4  ;;  %s111_s24 = int_to_ptr.vmem [resolvable:$true] %s110_s24  ;;  %s133_s25 = int_to_ptr.vmem [resolvable:$true] %s132_s25 }
  0xe9   :  { %s8240_s26 = scalar_lea.hbm %s10486_s6, 512 }
  0xea   :  { %p8241_p4 = scmp.ne.s32.totalorder %s10486_s6, %s8240_s26  ;;  %p8244_p5 = scmp.lt.u32.totalorder %s8240_s26, %s10486_s6 }
  0xec   :  { %p8246_p6 = pnand %p8244_p5, %p8241_p4 }
  0xee   :  { %8249 = shalt.err (!%p8246_p6)
}
  0xef   :  { %s8250_s23 = scalar_lea.vmem %s111_s24, 512  ;;  %p8255_p8 = scmp.lt.s32.totalorder %s111_s24, %s111_s24 }
  0xf0   :  { %p8251_p7 = scmp.ne.s32.totalorder %s111_s24, %s8250_s23  ;;  %p8256_p9 = scmp.lt.s32.totalorder %s8250_s23, %s8250_s23 }
  0xf2   :  { %p8257_p10 = por %p8256_p9, %p8255_p8 }
  0xf4   :  { %p8258_p11 = pnand %p8257_p10, %p8251_p7 }
  0xf6   :  { %8261 = shalt.err (!%p8258_p11)
}
  0xf7   :  { %116 = dma.hbm_to_vmem [thread:$0]  %s10486_s6, 512, %s111_s24, [#allocation14], %s8429_s0, %s8429_s0, %s8430_s21  }
  0xf8   :  { %s8262_s13 = scalar_lea.hbm %s10488_s8, 512 }
  0xf9   :  { %p8263_p12 = scmp.ne.s32.totalorder %s10488_s8, %s8262_s13  ;;  %p8266_p13 = scmp.lt.u32.totalorder %s8262_s13, %s10488_s8 }
  0xfb   :  { %p8268_p0 = pnand %p8266_p13, %p8263_p12 }
  0xfd   :  { %8271 = shalt.err (!%p8268_p0)
}
  0xfe   :  { %s8272_s19 = scalar_lea.vmem %s133_s25, 512  ;;  %p8277_p2 = scmp.lt.s32.totalorder %s133_s25, %s133_s25 }
  0xff   :  { %p8273_p1 = scmp.ne.s32.totalorder %s133_s25, %s8272_s19  ;;  %p8278_p3 = scmp.lt.s32.totalorder %s8272_s19, %s8272_s19 }
 0x101   :  { %p8279_p4 = por %p8278_p3, %p8277_p2 }
 0x103   :  { %p8280_p5 = pnand %p8279_p4, %p8273_p1 }
 0x105   :  { %8283 = shalt.err (!%p8280_p5)
}
 0x106   :  { %138 = dma.hbm_to_vmem [thread:$0]  %s10488_s8, 512, %s133_s25, [#allocation17], %s8429_s0, %s8429_s0, %s8430_s21  }
 0x107   :  { %s8433_s3 = smov [#allocation21]   ;;  %s8284_s17 = scalar_lea.hbm %s10490_s10, 3072 }
 0x108   :  { %s154_s26 = sshll.u32 %s8433_s3, 4  ;;  %p8285_p6 = scmp.ne.s32.totalorder %s10490_s10, %s8284_s17  ;;  %s155_s26 = int_to_ptr.vmem [resolvable:$true] %s154_s26 }
 0x109   :  { %p8288_p7 = scmp.lt.u32.totalorder %s8284_s17, %s10490_s10 }
 0x10b   :  { %p8290_p8 = pnand %p8288_p7, %p8285_p6 }
 0x10d   :  { %8293 = shalt.err (!%p8290_p8)
}
 0x10e   :  { %s8294_s5 = scalar_lea.vmem %s155_s26, 3072  ;;  %p8299_p10 = scmp.lt.s32.totalorder %s155_s26, %s155_s26 }
 0x10f   :  { %p8295_p9 = scmp.ne.s32.totalorder %s155_s26, %s8294_s5  ;;  %p8300_p11 = scmp.lt.s32.totalorder %s8294_s5, %s8294_s5 }
 0x111   :  { %p8301_p12 = por %p8300_p11, %p8299_p10 }
 0x113   :  { %p8302_p13 = pnand %p8301_p12, %p8295_p9 }
 0x115   :  { %8305 = shalt.err (!%p8302_p13)
}
 0x116   :  { %s8434_s8 = smov 192   ;;  %s8435_s25 = smov 12  }
 0x117   :  { %160 = dma.hbm_to_vmem [thread:$0]  %s10490_s10, 3072, %s155_s26, [#allocation20], %s8434_s8, %s8434_s8, %s8435_s25  }
 0x118   :  { %s8436_s27 = smov [#allocation24]   ;;  %s8437_s1 = smov [#allocation27]  }
 0x119   :  { %s176_s15 = sshll.u32 %s8436_s27, 4  ;;  %s198_s11 = sshll.u32 %s8437_s1, 4  ;;  %s177_s15 = int_to_ptr.vmem [resolvable:$true] %s176_s15  ;;  %s8746_s11 = int_to_ptr.vmem [resolvable:$true] %s198_s11 }
 0x11a   :  { %s8306_s24 = scalar_lea.hbm %s10492_s12, 1024 }
 0x11b   :  { %p8307_p0 = scmp.ne.s32.totalorder %s10492_s12, %s8306_s24  ;;  %p8310_p1 = scmp.lt.u32.totalorder %s8306_s24, %s10492_s12 }
 0x11d   :  { %p8312_p2 = pnand %p8310_p1, %p8307_p0 }
 0x11f   :  { %8315 = shalt.err (!%p8312_p2)
}
 0x120   :  { %s8316_s10 = scalar_lea.vmem %s177_s15, 1024  ;;  %p8321_p4 = scmp.lt.s32.totalorder %s177_s15, %s177_s15 }
 0x121   :  { %p8317_p3 = scmp.ne.s32.totalorder %s177_s15, %s8316_s10  ;;  %p8322_p5 = scmp.lt.s32.totalorder %s8316_s10, %s8316_s10 }
 0x123   :  { %p8323_p6 = por %p8322_p5, %p8321_p4 }
 0x125   :  { %p8324_p7 = pnand %p8323_p6, %p8317_p3 }
 0x127   :  { %8327 = shalt.err (!%p8324_p7)
}
 0x128   :  { %182 = dma.hbm_to_vmem [thread:$0]  %s10492_s12, 1024, %s177_s15, [#allocation23], %s8429_s0, %s8429_s0, %s8430_s21  }
 0x129   :  { %s8328_s7 = scalar_lea.hbm %s10494_s14, 4096 }
 0x12a   :  { %p8329_p8 = scmp.ne.s32.totalorder %s10494_s14, %s8328_s7  ;;  %p8332_p9 = scmp.lt.u32.totalorder %s8328_s7, %s10494_s14 }
 0x12c   :  { %p8334_p10 = pnand %p8332_p9, %p8329_p8 }
 0x12e   :  { %8337 = shalt.err (!%p8334_p10)
}
 0x12f   :  { %s8338_s13 = scalar_lea.vmem %s8746_s11, 4096  ;;  %p8343_p12 = scmp.lt.s32.totalorder %s8746_s11, %s8746_s11 }
 0x130   :  { %p8339_p11 = scmp.ne.s32.totalorder %s8746_s11, %s8338_s13  ;;  %p8344_p13 = scmp.lt.s32.totalorder %s8338_s13, %s8338_s13 }
 0x132   :  { %p8345_p0 = por %p8344_p13, %p8343_p12 }
 0x134   :  { %p8346_p1 = pnand %p8345_p0, %p8339_p11 }
 0x136   :  { %8349 = shalt.err (!%p8346_p1)
}
 0x137   :  { %204 = dma.hbm_to_vmem [thread:$0]  %s10494_s14, 4096, %s8746_s11, [#allocation26], %s8415_s29, %s8415_s29, %s8416_s30  }
 0x138   :  { %s8438_s27 = smov [#allocation30]   ;;  %s8350_s6 = scalar_lea.hbm %s10498_s18, 1024 }
 0x139   :  { %s226_s15 = sshll.u32 %s8438_s27, 4  ;;  %p8351_p2 = scmp.ne.s32.totalorder %s10498_s18, %s8350_s6  ;;  %s227_s15 = int_to_ptr.vmem [resolvable:$true] %s226_s15 }
 0x13a   :  { %p8354_p3 = scmp.lt.u32.totalorder %s8350_s6, %s10498_s18 }
 0x13c   :  { %p8356_p4 = pnand %p8354_p3, %p8351_p2 }
 0x13e   :  { %8359 = shalt.err (!%p8356_p4)
}
 0x13f   :  { %s8360_s17 = scalar_lea.vmem %s227_s15, 1024  ;;  %p8365_p6 = scmp.lt.s32.totalorder %s227_s15, %s227_s15 }
 0x140   :  { %p8361_p5 = scmp.ne.s32.totalorder %s227_s15, %s8360_s17  ;;  %p8366_p7 = scmp.lt.s32.totalorder %s8360_s17, %s8360_s17 }
 0x142   :  { %p8367_p8 = por %p8366_p7, %p8365_p6 }
 0x144   :  { %p8368_p9 = pnand %p8367_p8, %p8361_p5 }
 0x146   :  { %8371 = shalt.err (!%p8368_p9)
}
 0x147   :  { %232 = dma.hbm_to_vmem [thread:$0]  %s10498_s18, 1024, %s227_s15, [#allocation29], %s8415_s29, %s8415_s29, %s8416_s30  }
 0x148   :  { %8394 = dma.done.wait [#allocation5], 256  }
 0x149   :  { %8395 = vsyncadd [#allocation5], 4294967040 }
 0x14a   :  { %8396 = dma.done.wait [#allocation8], 288  }
 0x14b   :  { %8397 = vsyncadd [#allocation8], 4294967008 }
 0x14c   :  { %8398 = dma.done.wait [#allocation11], 544  }
 0x14d   :  { %8399 = vsyncadd [#allocation11], 4294966752 }
 0x14e   :  { %8400 = dma.done.wait [#allocation14], 528  }
 0x14f   :  { %8401 = vsyncadd [#allocation14], 4294966768 }
 0x150   :  { %8402 = dma.done.wait [#allocation17], 528  }
 0x151   :  { %8403 = vsyncadd [#allocation17], 4294966768 }
 0x152   :  { %8404 = dma.done.wait [#allocation20], 3088  }
 0x153   :  { %8405 = vsyncadd [#allocation20], 4294964208 }
 0x154   :  { %8406 = dma.done.wait [#allocation23], 1072  }
 0x155   :  { %8407 = vsyncadd [#allocation23], 4294966224 }
 0x156   :  { %8408 = dma.done.wait [#allocation26], 4112  }
 0x157   :  { %8409 = vsyncadd [#allocation26], 4294963184 }
 0x158   :  { %8410 = dma.done.wait [#allocation29], 2048  }
 0x159   :  { %8411 = vsyncadd [#allocation29], 4294965248  ;;  %v8439_v0 = vmov 0.0   ;;  %vm8440_vm0 = vmmov 0   ;;  %v7274_v1 = vld [vmem:[#allocation15] sm:$0xff]   ;;  %v7275_v2 = vld [vmem:[#allocation15 + $0x8] sm:$0xff]   ;;  %v301_v37 = vlaneseq }
 0x15a   :  { %6933 = vmatprep.subr.bf16.mxu1 %v8439_v0  ;;  %6921 = vmatprep.subr.bf16.mxu0 %v8439_v0  ;;  %v7276_v3 = vld [vmem:[#allocation12] sm:$0xff]   ;;  %v7278_v4 = vld [vmem:[#allocation12 + $0x8] sm:$0xff]   ;;  %v7277_v5 = vld [vmem:[#allocation15 + $0x10] sm:$0xff]   ;;  %vm368_vm1 = vcmask 523264   ;;  %vm500_vm2 = vcmask 130048   ;;  %s8441_s18 = smov 112  }
 0x15b   :  { %6941 = vmatprep.mubr.msk.bf16.mxu1 %vm8440_vm0, %v8439_v0  ;;  %6929 = vmatprep.mubr.msk.bf16.mxu0 %vm8440_vm0, %v8439_v0  ;;  %v7279_v6 = vld [vmem:[#allocation15 + $0x18] sm:$0xff]   ;;  %v7280_v7 = vld [vmem:[#allocation12 + $0x10] sm:$0xff]   ;;  %v288_v12 = vld [vmem:[#allocation4 + $0x8] sm:$0xff]  ;;  %vm624_vm3 = vcmask 1043456   ;;  %v8849_v39 = vshrl.u32 %v301_v37, 7  ;;  %vm593_vm6 = vcmask 64512  }
 0x15c   :  { %6934 = vmatpush3.bf16.msra.mxu1 %v7274_v1  ;;  %6922 = vmatpush3.bf16.msra.mxu0 %v7276_v3  ;;  %v289_v8 = vld [vmem:[#allocation7] sm:$0xff]  ;;  %v290_v9 = vld [vmem:[#allocation7 + $0x8] sm:$0xff]  ;;  %v287_v11 = vld [vmem:[#allocation4] sm:$0xff]  ;;  %v8442_v41 = vmov -1e+30   ;;  %s8443_s10 = smov 48  }
 0x15d   :  { %6935 = vmatprep.subr.bf16.mxu1 %v8439_v0  ;;  %6923 = vmatprep.subr.bf16.mxu0 %v8439_v0  ;;  %v7281_v10 = vld [vmem:[#allocation12 + $0x18] sm:$0xff]   ;;  %v292_v13 = vpack.c.bf16 %v290_v9, %v289_v8  ;;  %v8810_v14 = vpack.c.bf16 %v288_v12, %v287_v11  ;;  %v6604_v15 = vld [vmem:[#allocation16] ss:$0 sm:$0xff]  ;;  %v6598_v20 = vld [vmem:[#allocation13] ss:$0 sm:$0xff]  ;;  %v8852_v40 = vsub.s32 0, %v8849_v39 }
 0x15e   :  { %v293_v38 = vld [vmem:[#allocation9] sm:$0x1]  ;;  %v294_v43 = vld [vmem:[#allocation9 + $0x1] sm:$0x1]  ;;  %s8444_s26 = smov 96   ;;  %s8445_s28 = smov 32  }
 0x15f   :  { %vm295_vm4 = vcmp.gt.f32.partialorder %v293_v38, 0.5  ;;  %vm296_vm5 = vcmp.gt.f32.partialorder %v294_v43, 0.5  ;;  %s8446_s23 = smov 80   ;;  %vm1405_vm7 = vcmask 261120   ;;  %vm1408_vm8 = vcmask 392192   ;;  %s10522_s5 = sld [smem:[#allocation47_spill]] }
 0x160   :  { %6936 = vmatpush3.bf16.msra.mxu1 %v7275_v2  ;;  %6924 = vmatpush3.bf16.msra.mxu0 %v7278_v4  ;;  %v297_v42 = vsel %vm295_vm4, 0.0, %v8442_v41  ;;  %v298_v49 = vsel %vm296_vm5, 0.0, %v8442_v41  ;;  %vm2758_vm11 = vcmask 785408   ;;  %vm3343_vm12 = vcmask 1041409   ;;  %s10523_s13 = sld [smem:[#allocation48_spill]] }
 0x161   :  { %6937 = vmatprep.subr.bf16.mxu1 %v8439_v0  ;;  %6925 = vmatprep.subr.bf16.mxu0 %v8439_v0  ;;  %v8856_v44 = vrot.slane %v297_v42, %v8852_v40  ;;  %v8862_v52 = vrot.slane %v298_v49, %v8852_v40  ;;  %vm3584_vm13 = vcmask 1042434   ;;  %vm3793_vm14 = vcmask 1043459  }
 0x162   :  { %vm3997_vm15 = vcmask 1044484   ;;  %vm3339_vm4 = vcmask 261127   ;;  %vm3580_vm5 = vcmask 260102  }
 0x164   :  { %6938 = vmatpush3.bf16.msra.mxu1 %v7277_v5  ;;  %6926 = vmatpush3.bf16.msra.mxu0 %v7280_v7 }
 0x165   :  { %6939 = vmatprep.subr.bf16.mxu1 %v8439_v0  ;;  %6927 = vmatprep.subr.bf16.mxu0 %v8439_v0 }
 0x168   :  { %6940 = vmatpush3.bf16.msra.mxu1 %v7279_v6  ;;  %6928 = vmatpush3.bf16.msra.mxu0 %v7281_v10 }
 0x169   :  { %6945 = vmatprep.subr.bf16.mxu1 %v8439_v0  ;;  %6957 = vmatprep.subr.bf16.mxu0 %v8439_v0 }
 0x16b   :  { %6942 = vmatmul.mubr.msk.bf16.vlgmr.msra.gmra.mrb[0].mxu1 %vm368_vm1, %v292_v13  ;;  %6930 = vmatmul.mubr.msk.bf16.vlgmr.msra.gmra.mrb[0].mxu0 %vm368_vm1, %v8810_v14 }
 0x16c   :  { %6947 = vmatprep.mubr.msk.bf16.mxu1 %vm8440_vm0, %v8439_v0  ;;  %6959 = vmatprep.mubr.msk.bf16.mxu0 %vm8440_vm0, %v8439_v0 }
 0x23e   :  { %v489_v16 = vpop.f32.mrb[0].mxu1  ;;  %v406_v21 = vpop.f32.mrb[0].mxu0 }
 0x23f   :  { %v490_v17 = vadd.f32 %v6604_v15, %v489_v16  ;;  %v6943_v18 = vpop.f32.mrb[1].mxu1  ;;  %v6931_v25 = vpop.f32.mrb[1].mxu0  ;;  %v407_v28 = vadd.f32 %v6598_v20, %v406_v21 }
 0x240   :  { %v492_v19 = vpop.f32.mrb[2].mxu1  ;;  %v409_v26 = vpop.f32.mrb[2].mxu0 }
 0x241   :  { %v8821_v22 = vpack.c.bf16 %v490_v17, %v490_v17  ;;  %v493_v23 = vadd.f32 %v6604_v15, %v492_v19  ;;  %v6944_v24 = vpop.f32.mrb[3].mxu1  ;;  %v6932_v30 = vpop.f32.mrb[3].mxu0  ;;  %v8830_v31 = vpack.c.bf16 %v407_v28, %v407_v28  ;;  %v410_v33 = vadd.f32 %v6598_v20, %v409_v26 }
 0x243   :  { %v8823_v27 = vpack.c.bf16 %v493_v23, %v493_v23  ;;  %v505_v29 = vsel %vm500_vm2, %v8821_v22, 0  ;;  %v8841_v34 = vpack.c.bf16 %v410_v33, %v410_v33 }
 0x244   :  { %6946 = vmatpush3.bf16.xpose.msra.mxu1 %v505_v29 }
 0x245   :  { %669 = vrot.lane.b32.xlu1 %v8823_v27, %s8429_s0  ;;  %6951 = vmatprep.subr.bf16.mxu1 %v8439_v0  ;;  %v551_v32 = vsel %vm500_vm2, %v8823_v27, 0 }
 0x249   :  { %720 = vrot.lane.b32.xlu1 %v8821_v22, %s8441_s18 }
 0x24b   :  { %6948 = vmatmul.mubr.msk.bf16.vlgmr.msra.gmra.mrb[4].mxu1 %vm500_vm2, %v8830_v31 }
 0x24c   :  { %6952 = vmatpush3.bf16.xpose.msra.mxu1 %v551_v32  ;;  %6953 = vmatprep.mubr.msk.bf16.mxu1 %vm8440_vm0, %v8439_v0 }
 0x24d   :  { %6963 = vmatprep.subr.bf16.mxu1 %v8439_v0 }
 0x253   :  { %6954 = vmatmul.mubr.msk.bf16.vlgmr.msra.gmra.mrb[8].mxu1 %vm500_vm2, %v8841_v34 }
 0x254   :  { %6965 = vmatprep.mubr.msk.bf16.mxu1 %vm8440_vm0, %v8439_v0 }
 0x2b7   :  { %v670_v35 = vpop.permute.xlu1 %669 }
 0x2b8   :  { %v675_v36 = vsel %vm624_vm3, %v670_v35, 0 }
 0x2b9   :  { %6964 = vmatpush3.bf16.msra.mxu1 %v675_v36 }
 0x2ba   :  { %6975 = vmatprep.subr.bf16.mxu1 %v8439_v0 }
 0x2bb   :  { %v721_v8 = vpop.permute.xlu1 %720 }
 0x2bc   :  { %v726_v15 = vsel %vm500_vm2, %v721_v8, 0 }
 0x31e   :  { %v541_v45 = vpop.f32.mrb[4].mxu1 }
 0x31f   :  { %v542_v46 = vadd.f32 %v541_v45, %v8856_v44  ;;  %v6949_v47 = vpop.f32.mrb[5].mxu1 }
 0x320   :  { %v544_v48 = vpop.f32.mrb[6].mxu1 }
 0x321   :  { %v6950_v50 = vpop.f32.mrb[7].mxu1  ;;  %v594_v51 = vsel %vm593_vm6, %v542_v46, -inf }
 0x322   :  { %595 = vmax.xlane.f32.xlu0 %v594_v51 }
 0x326   :  { %v587_v53 = vpop.f32.mrb[8].mxu1 }
 0x327   :  { %v588_v54 = vadd.f32 %v587_v53, %v8862_v52  ;;  %v6955_v55 = vpop.f32.mrb[9].mxu1 }
 0x328   :  { %v590_v56 = vpop.f32.mrb[10].mxu1 }
 0x329   :  { %v6956_v57 = vpop.f32.mrb[11].mxu1  ;;  %v597_v58 = vsel %vm593_vm6, %v588_v54, -inf }
 0x32a   :  { %598 = vmax.xlane.f32.xlu0 %v597_v58 }
 0x340   :  { %619 = vrot.lane.b32.xlu0 %v8821_v22, %s8429_s0 }
 0x344   :  { %718 = vrot.lane.b32.xlu0 %v8830_v31, %s8441_s18 }
 0x3af   :  { %v596_v59 = vpop.xlane.xlu0 %595 }
 0x3b0   :  { %v600_v60 = vsub.f32 %v542_v46, %v596_v59 }
 0x3b2   :  { %v602_v61 = vmul.f32 1.442695, %v600_v60 }
 0x3b4   :  { %7410 = vpow2.f32 %v602_v61 }
 0x3b7   :  { %v599_v62 = vpop.xlane.xlu0 %598 }
 0x3b8   :  { %v601_v63 = vsub.f32 %v588_v54, %v599_v62 }
 0x3ba   :  { %v604_v1 = vmul.f32 1.442695, %v601_v63 }
 0x3bb   :  { %v620_v2 = vpop.permute.xlu0 %619 }
 0x3bc   :  { %7412 = vpow2.f32 %v604_v1  ;;  %v626_v3 = vsel %vm624_vm3, %v620_v2, 0 }
 0x3bd   :  { %6958 = vmatpush3.bf16.msra.mxu0 %v626_v3 }
 0x3be   :  { %v7411_v4 = vpop.eup %7410  ;;  %6969 = vmatprep.subr.bf16.mxu0 %v8439_v0 }
 0x3bf   :  { %v606_v5 = vsel %vm593_vm6, %v7411_v4, 0.0  ;;  %v719_v20 = vpop.permute.xlu0 %718 }
 0x3c0   :  { %607 = vadd.xlane.f32.xlu1 %v606_v5 }
 0x3c6   :  { %v7413_v6 = vpop.eup %7412 }
 0x3c7   :  { %v609_v7 = vsel %vm593_vm6, %v7413_v6, 0.0 }
 0x3c8   :  { %610 = vadd.xlane.f32.xlu1 %v609_v7 }
 0x3d9   :  { %771 = vrot.lane.b32.xlu1 %v8823_v27, %s8441_s18 }
 0x3dd   :  { %769 = vrot.lane.b32.xlu1 %v8841_v34, %s8441_s18 }
 0x44d   :  { %v608_v9 = vpop.xlane.xlu1 %607 }
 0x44e   :  { %7414 = vrcp.f32 %v608_v9 }
 0x455   :  { %v611_v10 = vpop.xlane.xlu1 %610 }
 0x456   :  { %7416 = vrcp.f32 %v611_v10 }
 0x458   :  { %v7415_v11 = vpop.eup %7414 }
 0x459   :  { %v614_v12 = vmul.f32 %v7415_v11, %v7411_v4  ;;  %v772_v18 = vpop.permute.xlu1 %771 }
 0x45a   :  { %v777_v21 = vsel %vm500_vm2, %v772_v18, 0 }
 0x45b   :  { %v616_v13 = vpack.c.bf16 %v614_v12, %v614_v12 }
 0x45d   :  { %6960 = vmatmul.mubr.msk.bf16.vlgmr.msra.gmra.mrb[4].mxu0 %vm593_vm6, %v616_v13  ;;  %v770_v23 = vpop.permute.xlu1 %769 }
 0x45e   :  { %6970 = vmatpush3.bf16.xpose.msra.mxu0 %v726_v15  ;;  %6971 = vmatprep.mubr.msk.bf16.mxu0 %vm8440_vm0, %v8439_v0 }
 0x45f   :  { %6981 = vmatprep.subr.bf16.mxu0 %v8439_v0 }
 0x460   :  { %v7417_v16 = vpop.eup %7416 }
 0x461   :  { %v615_v17 = vmul.f32 %v7417_v16, %v7413_v6 }
 0x463   :  { %v617_v19 = vpack.c.bf16 %v615_v17, %v615_v17 }
 0x465   :  { %6966 = vmatmul.mubr.msk.bf16.vlgmr.msra.gmra.mrb[12].mxu1 %vm593_vm6, %v617_v19  ;;  %6972 = vmatmul.mubr.msk.bf16.vlgmr.msra.gmra.mrb[8].mxu0 %vm500_vm2, %v719_v20 }
 0x466   :  { %6976 = vmatpush3.bf16.xpose.msra.mxu1 %v777_v21  ;;  %6977 = vmatprep.mubr.msk.bf16.mxu1 %vm8440_vm0, %v8439_v0 }
 0x467   :  { %6987 = vmatprep.subr.bf16.mxu1 %v8439_v0  ;;  %6983 = vmatprep.mubr.msk.bf16.mxu0 %vm8440_vm0, %v8439_v0 }
 0x46d   :  { %6978 = vmatmul.mubr.msk.bf16.vlgmr.msra.gmra.mrb[16].mxu1 %vm500_vm2, %v770_v23 }
 0x46e   :  { %6989 = vmatprep.mubr.msk.bf16.mxu1 %vm8440_vm0, %v8439_v0 }
 0x530   :  { %v8894_v24 = vpop.f32.mrb[4].mxu0 }
 0x531   :  { %v6961_v25 = vpop.f32.mrb[5].mxu0 }
 0x532   :  { %v665_v26 = vpop.f32.mrb[6].mxu0 }
 0x533   :  { %v6962_v28 = vpop.f32.mrb[7].mxu0 }
 0x538   :  { %v8896_v29 = vpop.f32.mrb[12].mxu1  ;;  %v762_v30 = vpop.f32.mrb[8].mxu0 }
 0x539   :  { %v763_v32 = vadd.f32 %v762_v30, %v8856_v44  ;;  %v6967_v33 = vpop.f32.mrb[13].mxu1  ;;  %v6973_v35 = vpop.f32.mrb[9].mxu0 }
 0x53a   :  { %v714_v36 = vpop.f32.mrb[14].mxu1  ;;  %v765_v37 = vpop.f32.mrb[10].mxu0 }
 0x53b   :  { %v6968_v38 = vpop.f32.mrb[15].mxu1  ;;  %v6974_v42 = vpop.f32.mrb[11].mxu0  ;;  %v819_v43 = vsel %vm593_vm6, %v763_v32, -inf }
 0x53c   :  { %820 = vmax.xlane.f32.xlu0 %v819_v43 }
 0x540   :  { %v813_v45 = vpop.f32.mrb[16].mxu1 }
 0x541   :  { %v814_v46 = vadd.f32 %v813_v45, %v8862_v52  ;;  %v6979_v47 = vpop.f32.mrb[17].mxu1 }
 0x542   :  { %v816_v48 = vpop.f32.mrb[18].mxu1 }
 0x543   :  { %v6980_v49 = vpop.f32.mrb[19].mxu1  ;;  %v822_v50 = vsel %vm593_vm6, %v814_v46, -inf }
 0x544   :  { %823 = vmax.xlane.f32.xlu1 %v822_v50 }
 0x555   :  { %891 = vrot.lane.b32.xlu1 %v8823_v27, %s8443_s10 }
 0x559   :  { %941 = vrot.lane.b32.xlu1 %v8821_v22, %s8444_s26 }
 0x55d   :  { %991 = vrot.lane.b32.xlu1 %v8823_v27, %s8444_s26 }
 0x561   :  { %989 = vrot.lane.b32.xlu1 %v8841_v34, %s8444_s26 }
 0x5c9   :  { %v821_v51 = vpop.xlane.xlu0 %820 }
 0x5ca   :  { %v825_v53 = vsub.f32 %v763_v32, %v821_v51 }
 0x5cc   :  { %v827_v54 = vmul.f32 1.442695, %v825_v53 }
 0x5ce   :  { %7418 = vpow2.f32 %v827_v54 }
 0x5d1   :  { %v824_v55 = vpop.xlane.xlu1 %823 }
 0x5d2   :  { %v826_v56 = vsub.f32 %v814_v46, %v824_v55 }
 0x5d4   :  { %v829_v57 = vmul.f32 1.442695, %v826_v56 }
 0x5d5   :  { %v892_v58 = vpop.permute.xlu1 %891 }
 0x5d6   :  { %7420 = vpow2.f32 %v829_v57  ;;  %v897_v59 = vsel %vm624_vm3, %v892_v58, 0 }
 0x5d7   :  { %6988 = vmatpush3.bf16.msra.mxu1 %v897_v59 }
 0x5d8   :  { %v7419_v60 = vpop.eup %7418  ;;  %6999 = vmatprep.subr.bf16.mxu1 %v8439_v0 }
 0x5d9   :  { %v831_v61 = vsel %vm593_vm6, %v7419_v60, 0.0  ;;  %v942_v8 = vpop.permute.xlu1 %941 }
 0x5da   :  { %832 = vadd.xlane.f32.xlu0 %v831_v61  ;;  %v947_v12 = vsel %vm500_vm2, %v942_v8, 0 }
 0x5dd   :  { %v992_v11 = vpop.permute.xlu1 %991 }
 0x5de   :  { %v997_v15 = vsel %vm500_vm2, %v992_v11, 0 }
 0x5e0   :  { %v7421_v62 = vpop.eup %7420 }
 0x5e1   :  { %v834_v63 = vsel %vm593_vm6, %v7421_v62, 0.0  ;;  %v990_v17 = vpop.permute.xlu1 %989 }
 0x5e2   :  { %835 = vadd.xlane.f32.xlu0 %v834_v63 }
 0x5f8   :  { %843 = vrot.lane.b32.xlu0 %v8821_v22, %s8443_s10 }
 0x5fc   :  { %939 = vrot.lane.b32.xlu0 %v8830_v31, %s8444_s26 }
 0x667   :  { %v833_v1 = vpop.xlane.xlu0 %832 }
 0x668   :  { %7422 = vrcp.f32 %v833_v1 }
 0x66f   :  { %v836_v2 = vpop.xlane.xlu0 %835 }
 0x670   :  { %7424 = vrcp.f32 %v836_v2 }
 0x672   :  { %v7423_v3 = vpop.eup %7422 }
 0x673   :  { %v844_v4 = vpop.permute.xlu0 %843  ;;  %v839_v5 = vmul.f32 %v7423_v3, %v7419_v60 }
 0x674   :  { %v849_v6 = vsel %vm624_vm3, %v844_v4, 0 }
 0x675   :  { %6982 = vmatpush3.bf16.msra.mxu0 %v849_v6  ;;  %v841_v7 = vpack.c.bf16 %v839_v5, %v839_v5 }
 0x676   :  { %6993 = vmatprep.subr.bf16.mxu0 %v8439_v0 }
 0x677   :  { %v940_v16 = vpop.permute.xlu0 %939 }
 0x678   :  { %6984 = vmatmul.mubr.msk.bf16.vlgmr.msra.gmra.mrb[12].mxu0 %vm593_vm6, %v841_v7 }
 0x679   :  { %6995 = vmatprep.mubr.msk.bf16.mxu0 %vm8440_vm0, %v8439_v0 }
 0x67a   :  { %v7425_v9 = vpop.eup %7424 }
 0x67b   :  { %v840_v10 = vmul.f32 %v7425_v9, %v7421_v62 }
 0x67d   :  { %v842_v13 = vpack.c.bf16 %v840_v10, %v840_v10 }
 0x67e   :  { %6994 = vmatpush3.bf16.xpose.msra.mxu0 %v947_v12 }
 0x67f   :  { %6990 = vmatmul.mubr.msk.bf16.vlgmr.msra.gmra.mrb[20].mxu1 %vm593_vm6, %v842_v13  ;;  %7005 = vmatprep.subr.bf16.mxu0 %v8439_v0 }
 0x680   :  { %7000 = vmatpush3.bf16.xpose.msra.mxu1 %v997_v15  ;;  %7001 = vmatprep.mubr.msk.bf16.mxu1 %vm8440_vm0, %v8439_v0 }
 0x681   :  { %7011 = vmatprep.subr.bf16.mxu1 %v8439_v0 }
 0x685   :  { %6996 = vmatmul.mubr.msk.bf16.vlgmr.msra.gmra.mrb[16].mxu0 %vm500_vm2, %v940_v16 }
 0x686   :  { %7007 = vmatprep.mubr.msk.bf16.mxu0 %vm8440_vm0, %v8439_v0 }
 0x687   :  { %7002 = vmatmul.mubr.msk.bf16.vlgmr.msra.gmra.mrb[24].mxu1 %vm500_vm2, %v990_v17 }
 0x688   :  { %7013 = vmatprep.mubr.msk.bf16.mxu1 %vm8440_vm0, %v8439_v0 }
 0x74b   :  { %v8936_v18 = vpop.f32.mrb[12].mxu0 }
 0x74c   :  { %v6985_v19 = vpop.f32.mrb[13].mxu0 }
 0x74d   :  { %v888_v20 = vpop.f32.mrb[14].mxu0 }
 0x74e   :  { %v6986_v21 = vpop.f32.mrb[15].mxu0 }
 0x752   :  { %v8938_v23 = vpop.f32.mrb[20].mxu1 }
 0x753   :  { %v7244_v25 = vpack.i.bf16 %v8938_v23, %v8936_v18  ;;  %v6991_v26 = vpop.f32.mrb[21].mxu1 }
 0x754   :  { %v936_v28 = vpop.f32.mrb[22].mxu1 }
 0x755   :  { %v6992_v30 = vpop.f32.mrb[23].mxu1 }
 0x758   :  { %v983_v32 = vpop.f32.mrb[16].mxu0 }
 0x759   :  { %v984_v33 = vadd.f32 %v983_v32, %v8856_v44  ;;  %v6997_v35 = vpop.f32.mrb[17].mxu0 }
 0x75a   :  { %v986_v36 = vpop.f32.mrb[18].mxu0  ;;  %v1033_v37 = vpop.f32.mrb[24].mxu1 }
 0x75b   :  { %v1034_v38 = vadd.f32 %v1033_v37, %v8862_v52  ;;  %v6998_v42 = vpop.f32.mrb[19].mxu0  ;;  %v7003_v43 = vpop.f32.mrb[25].mxu1  ;;  %v1039_v45 = vsel %vm593_vm6, %v984_v33, -inf }
 0x75c   :  { %v1036_v46 = vpop.f32.mrb[26].mxu1  ;;  %1040 = vmax.xlane.f32.xlu0 %v1039_v45 }
 0x75d   :  { %v7004_v47 = vpop.f32.mrb[27].mxu1  ;;  %v1042_v48 = vsel %vm593_vm6, %v1034_v38, -inf }
 0x75e   :  { %1043 = vmax.xlane.f32.xlu1 %v1042_v48 }
 0x76f   :  { %1111 = vrot.lane.b32.xlu1 %v8823_v27, %s8445_s28 }
 0x773   :  { %1161 = vrot.lane.b32.xlu1 %v8821_v22, %s8446_s23 }
 0x777   :  { %1211 = vrot.lane.b32.xlu1 %v8823_v27, %s8446_s23 }
 0x77b   :  { %1209 = vrot.lane.b32.xlu1 %v8841_v34, %s8446_s23 }
 0x7e9   :  { %v1041_v49 = vpop.xlane.xlu0 %1040 }
 0x7ea   :  { %v1045_v50 = vsub.f32 %v984_v33, %v1041_v49 }
 0x7eb   :  { %v1044_v51 = vpop.xlane.xlu1 %1043 }
 0x7ec   :  { %v1047_v53 = vmul.f32 1.442695, %v1045_v50  ;;  %v1046_v54 = vsub.f32 %v1034_v38, %v1044_v51 }
 0x7ee   :  { %7426 = vpow2.f32 %v1047_v53  ;;  %v1049_v55 = vmul.f32 1.442695, %v1046_v54 }
 0x7ef   :  { %v1112_v56 = vpop.permute.xlu1 %1111 }
 0x7f0   :  { %7428 = vpow2.f32 %v1049_v55  ;;  %v1117_v57 = vsel %vm624_vm3, %v1112_v56, 0 }
 0x7f1   :  { %7012 = vmatpush3.bf16.msra.mxu1 %v1117_v57 }
 0x7f2   :  { %7023 = vmatprep.subr.bf16.mxu1 %v8439_v0 }
 0x7f3   :  { %v1162_v3 = vpop.permute.xlu1 %1161 }
 0x7f7   :  { %v1212_v8 = vpop.permute.xlu1 %1211 }
 0x7f8   :  { %v7427_v58 = vpop.eup %7426  ;;  %v1217_v10 = vsel %vm500_vm2, %v1212_v8, 0 }
 0x7f9   :  { %v1051_v59 = vsel %vm593_vm6, %v7427_v58, 0.0 }
 0x7fa   :  { %v7429_v60 = vpop.eup %7428  ;;  %1052 = vadd.xlane.f32.xlu0 %v1051_v59 }
 0x7fb   :  { %v1054_v34 = vsel %vm593_vm6, %v7429_v60, 0.0  ;;  %v1210_v12 = vpop.permute.xlu1 %1209 }
 0x7fe   :  { %1055 = vadd.xlane.f32.xlu0 %v1054_v34 }
 0x814   :  { %1063 = vrot.lane.b32.xlu0 %v8821_v22, %s8445_s28 }
 0x818   :  { %1159 = vrot.lane.b32.xlu0 %v8830_v31, %s8446_s23  ;;  %v1167_v31 = vsel %vm500_vm2, %v1162_v3, 0  ;;  %v7285_v3 = vld [vmem:[#allocation18 + $0x18] sm:$0xff]  }
 0x887   :  { %v1053_v61 = vpop.xlane.xlu0 %1052 }
 0x888   :  { %7430 = vrcp.f32 %v1053_v61 }
 0x88b   :  { %v1056_v62 = vpop.xlane.xlu0 %1055 }
 0x88c   :  { %7432 = vrcp.f32 %v1056_v62 }
 0x88f   :  { %v1064_v63 = vpop.permute.xlu0 %1063 }
 0x890   :  { %v1069_v1 = vsel %vm624_vm3, %v1064_v63, 0  ;;  %v7282_v63 = vld [vmem:[#allocation18] sm:$0xff]  }
 0x891   :  { %7006 = vmatpush3.bf16.msra.mxu0 %v1069_v1  ;;  %v7283_v1 = vld [vmem:[#allocation18 + $0x8] sm:$0xff]  }
 0x892   :  { %v7431_v2 = vpop.eup %7430  ;;  %7017 = vmatprep.subr.bf16.mxu0 %v8439_v0 }
 0x893   :  { %v1059_v4 = vmul.f32 %v7431_v2, %v7427_v58  ;;  %v1160_v11 = vpop.permute.xlu0 %1159  ;;  %v7284_v2 = vld [vmem:[#allocation18 + $0x10] sm:$0xff]  }
 0x895   :  { %v1061_v5 = vpack.c.bf16 %v1059_v4, %v1059_v4  ;;  %v7286_v4 = vld [vmem:[#allocation21 + $0x60] ss:$12 sps:$4 sm:$0xff]  }
 0x896   :  { %v7433_v6 = vpop.eup %7432 }
 0x897   :  { %7008 = vmatmul.mubr.msk.bf16.vlgmr.msra.gmra.mrb[20].mxu0 %vm593_vm6, %v1061_v5  ;;  %v1060_v7 = vmul.f32 %v7433_v6, %v7429_v60  ;;  %v7288_v5 = vld [vmem:[#allocation21 + $0x64] ss:$12 sps:$4 sm:$0xff]  }
 0x898   :  { %7019 = vmatprep.mubr.msk.bf16.mxu0 %vm8440_vm0, %v8439_v0 }
 0x899   :  { %v1062_v9 = vpack.c.bf16 %v1060_v7, %v1060_v7  ;;  %v7292_v7 = vld [vmem:[#allocation21 + $0x7c] ss:$12 sps:$4 sm:$0xff]  }
 0x89a   :  { %7018 = vmatpush3.bf16.xpose.msra.mxu0 %v1167_v31 }
 0x89b   :  { %7014 = vmatmul.mubr.msk.bf16.vlgmr.msra.gmra.mrb[28].mxu1 %vm593_vm6, %v1062_v9  ;;  %7029 = vmatprep.subr.bf16.mxu0 %v8439_v0  ;;  %v7290_v9 = vld [vmem:[#allocation21 + $0x78] ss:$12 sps:$4 sm:$0xff]  }
 0x89c   :  { %7024 = vmatpush3.bf16.xpose.msra.mxu1 %v1217_v10  ;;  %7025 = vmatprep.mubr.msk.bf16.mxu1 %vm8440_vm0, %v8439_v0 }
 0x89d   :  { %7035 = vmatprep.subr.bf16.mxu1 %v8439_v0 }
 0x8a1   :  { %7020 = vmatmul.mubr.msk.bf16.vlgmr.msra.gmra.mrb[24].mxu0 %vm500_vm2, %v1160_v11 }
 0x8a2   :  { %7031 = vmatprep.mubr.msk.bf16.mxu0 %vm8440_vm0, %v8439_v0 }
 0x8a3   :  { %7026 = vmatmul.mubr.msk.bf16.vlgmr.msra.gmra.mrb[32].mxu1 %vm500_vm2, %v1210_v12  ;;  %v7296_v12 = vld [vmem:[#allocation21 + $0x94] ss:$12 sps:$4 sm:$0xff]  }
 0x8a4   :  { %7037 = vmatprep.mubr.msk.bf16.mxu1 %vm8440_vm0, %v8439_v0 }
 0x96a   :  { %v1105_v13 = vpop.f32.mrb[20].mxu0 }
 0x96b   :  { %v7009_v15 = vpop.f32.mrb[21].mxu0 }
 0x96c   :  { %v1108_v16 = vpop.f32.mrb[22].mxu0 }
 0x96d   :  { %v7010_v17 = vpop.f32.mrb[23].mxu0 }
 0x96e   :  { %v1153_v19 = vpop.f32.mrb[28].mxu1  ;;  %v7294_v17 = vld [vmem:[#allocation21 + $0x90] ss:$12 sps:$4 sm:$0xff]  }
 0x96f   :  { %v7249_v20 = vpack.i.bf16 %v1153_v19, %v1105_v13  ;;  %v7015_v21 = vpop.f32.mrb[29].mxu1 }
 0x970   :  { %v1156_v26 = vpop.f32.mrb[30].mxu1 }
 0x971   :  { %v7016_v28 = vpop.f32.mrb[31].mxu1 }
 0x974   :  { %v1203_v30 = vpop.f32.mrb[24].mxu0 }
 0x975   :  { %v1204_v32 = vadd.f32 %v1203_v30, %v8856_v44  ;;  %v7021_v33 = vpop.f32.mrb[25].mxu0 }
 0x976   :  { %v1206_v35 = vpop.f32.mrb[26].mxu0  ;;  %v1253_v36 = vpop.f32.mrb[32].mxu1 }
 0x977   :  { %v1254_v37 = vadd.f32 %v1253_v36, %v8862_v52  ;;  %v7022_v38 = vpop.f32.mrb[27].mxu0  ;;  %v7027_v42 = vpop.f32.mrb[33].mxu1  ;;  %v1259_v43 = vsel %vm593_vm6, %v1204_v32, -inf }
 0x978   :  { %v1256_v45 = vpop.f32.mrb[34].mxu1  ;;  %1260 = vmax.xlane.f32.xlu0 %v1259_v43 }
 0x979   :  { %v7028_v46 = vpop.f32.mrb[35].mxu1  ;;  %v1262_v47 = vsel %vm593_vm6, %v1254_v37, -inf }
 0x97a   :  { %1263 = vmax.xlane.f32.xlu1 %v1262_v47  ;;  %v7289_v47 = vld [vmem:[#allocation21 + $0x68] ss:$12 sps:$4 sm:$0xff]  }
 0x98b   :  { %1331 = vrot.lane.b32.xlu1 %v8823_v27, %s8419_s2 }
 0x98f   :  { %7245 = vrot.lane.b32.xlu1 %v7244_v25, %s8419_s2 }
 0x993   :  { %7250 = vrot.lane.b32.xlu1 %v7249_v20, %s8445_s28 }
 0xa05   :  { %v1261_v44 = vpop.xlane.xlu0 %1260 }
 0xa06   :  { %v1265_v52 = vsub.f32 %v1204_v32, %v1261_v44 }
 0xa07   :  { %v1264_v48 = vpop.xlane.xlu1 %1263 }
 0xa08   :  { %v1267_v49 = vmul.f32 1.442695, %v1265_v52  ;;  %v1266_v50 = vsub.f32 %v1254_v37, %v1264_v48  ;;  %v7293_v52 = vld [vmem:[#allocation21 + $0x80] ss:$12 sps:$4 sm:$0xff]   ;;  %v7298_v48 = vld [vmem:[#allocation21 + $0xa8] ss:$12 sps:$4 sm:$0xff]  }
 0xa0a   :  { %7434 = vpow2.f32 %v1267_v49  ;;  %v1269_v51 = vmul.f32 1.442695, %v1266_v50  ;;  %v7301_v49 = vld [vmem:[#allocation21 + $0xb0] ss:$12 sps:$4 sm:$0xff]  }
 0xa0b   :  { %v1332_v53 = vpop.permute.xlu1 %1331  ;;  %v7304_v50 = vld [vmem:[#allocation21 + $0x4] ss:$12 sps:$4 sm:$0xff]  }
 0xa0c   :  { %7436 = vpow2.f32 %v1269_v51  ;;  %v1337_v54 = vsel %vm624_vm3, %v1332_v53, 0  ;;  %v8447_v51 = vmov 0   ;;  %v6626_v53 = vld [vmem:[#allocation19] ss:$0 sm:$0xff] }
 0xa0d   :  { %7036 = vmatpush3.bf16.msra.mxu1 %v1337_v54 }
 0xa0e   :  { %1595 = vmatprep.subr.bf16.mxu1 %v7288_v5 }
 0xa0f   :  { %v7246_v20 = vpop.permute.xlu1 %7245 }
 0xa10   :  { %v7248_v26 = vunpack.i.h.bf16 %v7246_v20  ;;  %v7247_v28 = vunpack.i.l.bf16 %v7246_v20 }
 0xa12   :  { %v1404_v35 = vsel %vm500_vm2, %v8896_v29, %v7248_v26  ;;  %v1403_v36 = vsel %vm500_vm2, %v8894_v24, %v7247_v28  ;;  %v7297_v24 = vld [vmem:[#allocation21 + $0x98] ss:$12 sps:$4 sm:$0xff]   ;;  %vm4406_vm2 = vcmask 1046534  }
 0xa13   :  { %v7251_v21 = vpop.permute.xlu1 %7250  ;;  %v7300_v29 = vld [vmem:[#allocation21 + $0xac] ss:$12 sps:$4 sm:$0xff]  }
 0xa14   :  { %v7435_v27 = vpop.eup %7434  ;;  %v7253_v30 = vunpack.i.h.bf16 %v7251_v21  ;;  %v7252_v32 = vunpack.i.l.bf16 %v7251_v21 }
 0xa15   :  { %v1271_v55 = vsel %vm593_vm6, %v7435_v27, 0.0 }
 0xa16   :  { %v7437_v56 = vpop.eup %7436  ;;  %1272 = vadd.xlane.f32.xlu0 %v1271_v55  ;;  %v1407_v42 = vsel %vm1405_vm7, %v1404_v35, %v7253_v30  ;;  %v1406_v43 = vsel %vm1405_vm7, %v1403_v36, %v7252_v32 }
 0xa17   :  { %v1274_v18 = vsel %vm593_vm6, %v7437_v56, 0.0 }
 0xa1a   :  { %1275 = vadd.xlane.f32.xlu0 %v1274_v18 }
 0xa30   :  { %1283 = vrot.lane.b32.xlu0 %v8821_v22, %s8419_s2 }
 0xaa3   :  { %v1273_v23 = vpop.xlane.xlu0 %1272 }
 0xaa4   :  { %7438 = vrcp.f32 %v1273_v23 }
 0xaa7   :  { %v1276_v25 = vpop.xlane.xlu0 %1275 }
 0xaa8   :  { %7440 = vrcp.f32 %v1276_v25  ;;  %v7302_v25 = vld [vmem:[#allocation21] ss:$12 sps:$4 sm:$0xff]  }
 0xaab   :  { %v1284_v57 = vpop.permute.xlu0 %1283 }
 0xaac   :  { %v1289_v58 = vsel %vm624_vm3, %v1284_v57, 0  ;;  %v7305_v57 = vld [vmem:[#allocation21 + $0x8] ss:$12 sps:$4 sm:$0xff]  }
 0xaad   :  { %7030 = vmatpush3.bf16.msra.mxu0 %v1289_v58 }
 0xaae   :  { %v7439_v59 = vpop.eup %7438  ;;  %7041 = vmatprep.subr.bf16.mxu0 %v8439_v0 }
 0xaaf   :  { %v1279_v60 = vmul.f32 %v7439_v59, %v7435_v27  ;;  %v7308_v59 = vld [vmem:[#allocation21 + $0x1c] ss:$12 sps:$4 sm:$0xff]  }
 0xab1   :  { %v1281_v34 = vpack.c.bf16 %v1279_v60, %v1279_v60  ;;  %v7306_v60 = vld [vmem:[#allocation21 + $0x18] ss:$12 sps:$4 sm:$0xff]  }
 0xab2   :  { %v7441_v61 = vpop.eup %7440 }
 0xab3   :  { %7032 = vmatmul.mubr.msk.bf16.vlgmr.msra.gmra.mrb[28].mxu0 %vm593_vm6, %v1281_v34  ;;  %v1280_v62 = vmul.f32 %v7441_v61, %v7437_v56  ;;  %v7309_v34 = vld [vmem:[#allocation21 + $0x20] ss:$12 sps:$4 sm:$0xff]  }
 0xab4   :  { %7049 = vmatprep.mubr.msk.bf16.mxu0 %vm8440_vm0, %v8439_v0  ;;  %7042 = vmatpush3.bf16.msra.mxu0 %v7282_v63  ;;  %v7312_v61 = vld [vmem:[#allocation21 + $0x34] ss:$12 sps:$4 sm:$0xff]   ;;  %v7316_v63 = vld [vmem:[#allocation21 + $0x4c] ss:$12 sps:$4 sm:$0xff]  }
 0xab5   :  { %v1282_v22 = vpack.c.bf16 %v1280_v62, %v1280_v62  ;;  %7043 = vmatprep.subr.bf16.mxu0 %v8439_v0  ;;  %v7310_v62 = vld [vmem:[#allocation21 + $0x30] ss:$12 sps:$4 sm:$0xff]  }
 0xab7   :  { %7038 = vmatmul.mubr.msk.bf16.vlgmr.msra.gmra.mrb[36].mxu1 %vm593_vm6, %v1282_v22  ;;  %v7313_v22 = vld [vmem:[#allocation21 + $0x38] ss:$12 sps:$4 sm:$0xff]  }
 0xab8   :  { %7044 = vmatpush3.bf16.msra.mxu0 %v7283_v1  ;;  %1596 = vmatpush1.bf16.msra.mxu1 %v7286_v4  ;;  %v7314_v1 = vld [vmem:[#allocation21 + $0x48] ss:$12 sps:$4 sm:$0xff]  }
 0xab9   :  { %7045 = vmatprep.subr.bf16.mxu0 %v8439_v0  ;;  %1597 = vmatprep.subr.bf16.mxu1 %v7292_v7  ;;  %v9040_v7 = vsub.s32 1, %v8849_v39 }
 0xaba   :  { %1627 = vmatprep.mubr.bf16.mxu1 %v8447_v51 }
 0xabc   :  { %7046 = vmatpush3.bf16.msra.mxu0 %v7284_v2  ;;  %1598 = vmatpush1.bf16.msra.mxu1 %v7290_v9  ;;  %v7317_v2 = vld [vmem:[#allocation21 + $0x50] ss:$12 sps:$4 sm:$0xff]  }
 0xabd   :  { %7047 = vmatprep.subr.bf16.mxu0 %v8439_v0  ;;  %1599 = vmatprep.subr.bf16.mxu1 %v7296_v12 }
 0xac0   :  { %7048 = vmatpush3.bf16.msra.mxu0 %v7285_v3  ;;  %1600 = vmatpush1.bf16.msra.mxu1 %v7294_v17 }
 0xac1   :  { %7053 = vmatprep.subr.bf16.mxu0 %v8439_v0  ;;  %1601 = vmatprep.subr.bf16.mxu1 %v7300_v29  ;;  %v311_v29 = vld [vmem:[#allocation10] sm:$0x1] }
 0xac2   :  { %vm313_vm9 = vcmp.gt.f32.partialorder %v311_v29, 0.5 }
 0xac4   :  { %1602 = vmatpush1.bf16.msra.mxu1 %v7298_v48  ;;  %v315_v48 = vsel %vm313_vm9, 0.0, %v8442_v41  ;;  %vm3982_vm9 = vcmask 257027  }
 0xac5   :  { %1743 = vmatprep.subr.bf16.mxu1 %v7304_v50  ;;  %v9079_v50 = vrot.slane %v315_v48, %v8852_v40 }
 0xb86   :  { %v1325_v6 = vpop.f32.mrb[28].mxu0 }
 0xb87   :  { %v7033_v8 = vpop.f32.mrb[29].mxu0 }
 0xb88   :  { %v1328_v31 = vpop.f32.mrb[30].mxu0  ;;  %v1827_v8 = vld [vmem:[#allocation22] sm:$0x7] }
 0xb89   :  { %v7034_v10 = vpop.f32.mrb[31].mxu0  ;;  %v1839_v31 = vsub.s32 2, %v8849_v39  ;;  %v1836_v9 = vrot.slane %v1827_v8, %v9040_v7  ;;  %v1832_v32 = vrot.slane %v1827_v8, %v8852_v40 }
 0xb8a   :  { %v1373_v11 = vpop.f32.mrb[36].mxu1 }
 0xb8b   :  { %v7254_v13 = vpack.i.bf16 %v1373_v11, %v1325_v6  ;;  %v7039_v15 = vpop.f32.mrb[37].mxu1  ;;  %v1840_v10 = vrot.slane %v1827_v8, %v1839_v31 }
 0xb8c   :  { %v1376_v16 = vpop.f32.mrb[38].mxu1 }
 0xb8d   :  { %v7040_v19 = vpop.f32.mrb[39].mxu1  ;;  %7255 = vrot.lane.b32.xlu0 %v7254_v13, %s8443_s10 }
 0xbff   :  { %v7256_v33 = vpop.permute.xlu0 %7255 }
 0xc00   :  { %v7258_v37 = vunpack.i.h.bf16 %v7256_v33  ;;  %v7257_v38 = vunpack.i.l.bf16 %v7256_v33 }
 0xc02   :  { %v1410_v45 = vsel %vm1408_vm8, %v1407_v42, %v7258_v37  ;;  %v1409_v46 = vsel %vm1408_vm8, %v1406_v43, %v7257_v38  ;;  %vm3993_vm8 = vcmask 258052  }
 0xc03   :  { %v1411_v44 = vpack.c.bf16 %v1410_v45, %v1409_v46 }
 0xc05   :  { %7050 = vmatmul.mubr.msk.bf16.vlgmr.msra.gmra.mrb[32].mxu0 %vm368_vm1, %v1411_v44 }
 0xc06   :  { %7054 = vmatpush3.bf16.msra.mxu0 %v7289_v47  ;;  %7061 = vmatprep.mubr.msk.bf16.mxu0 %vm8440_vm0, %v8439_v0 }
 0xc07   :  { %7055 = vmatprep.subr.bf16.mxu0 %v8439_v0 }
 0xc0a   :  { %7056 = vmatpush3.bf16.msra.mxu0 %v7293_v52 }
 0xc0b   :  { %7057 = vmatprep.subr.bf16.mxu0 %v8439_v0 }
 0xc0e   :  { %7058 = vmatpush3.bf16.msra.mxu0 %v7297_v24 }
 0xc0f   :  { %7059 = vmatprep.subr.bf16.mxu0 %v8439_v0 }
 0xc12   :  { %7060 = vmatpush3.bf16.msra.mxu0 %v7301_v49  ;;  %v312_v49 = vld [vmem:[#allocation10 + $0x1] sm:$0x1] }
 0xc13   :  { %7065 = vmatprep.subr.bf16.mxu0 %v8439_v0  ;;  %vm314_vm10 = vcmp.gt.f32.partialorder %v312_v49, 0.5 }
 0xcd8   :  { %v1488_v54 = vpop.f32.mrb[32].mxu0 }
 0xcd9   :  { %v7051_v27 = vpop.f32.mrb[33].mxu0  ;;  %v1489_v56 = vadd.f32 %v6626_v53, %v1488_v54 }
 0xcda   :  { %v1491_v55 = vpop.f32.mrb[34].mxu0 }
 0xcdb   :  { %v1492_v18 = vadd.f32 %v6626_v53, %v1491_v55  ;;  %v7052_v23 = vpop.f32.mrb[35].mxu0 }
 0xcdd   :  { %v9017_v58 = vpack.c.bf16 %v1492_v18, %v1489_v56  ;;  %v316_v56 = vsel %vm314_vm10, 0.0, %v8442_v41  ;;  %vm3778_vm10 = vcmask 256002  }
 0xcdf   :  { %6644 = vmatmul.mubr.msk.bf16.vlgmr.msra.gmra.mrb[40].mxu1 %vm368_vm1, %v9017_v58  ;;  %7062 = vmatmul.mubr.msk.bf16.vlgmr.msra.gmra.mrb[36].mxu0 %vm368_vm1, %v9017_v58 }
 0xce0   :  { %1744 = vmatpush1.bf16.msra.mxu1 %v7302_v25  ;;  %7066 = vmatpush3.bf16.msra.mxu0 %v7305_v57  ;;  %v9085_v25 = vrot.slane %v316_v56, %v8852_v40 }
 0xce1   :  { %1745 = vmatprep.subr.bf16.mxu1 %v7308_v59  ;;  %7067 = vmatprep.subr.bf16.mxu0 %v8439_v0 }
 0xce2   :  { %1775 = vmatprep.mubr.bf16.mxu1 %v8447_v51  ;;  %7073 = vmatprep.mubr.msk.bf16.mxu0 %vm8440_vm0, %v8439_v0 }
 0xce4   :  { %1746 = vmatpush1.bf16.msra.mxu1 %v7306_v60  ;;  %7068 = vmatpush3.bf16.msra.mxu0 %v7309_v34 }
 0xce5   :  { %1747 = vmatprep.subr.bf16.mxu1 %v7312_v61  ;;  %7069 = vmatprep.subr.bf16.mxu0 %v8439_v0 }
 0xce8   :  { %1748 = vmatpush1.bf16.msra.mxu1 %v7310_v62  ;;  %7070 = vmatpush3.bf16.msra.mxu0 %v7313_v22 }
 0xce9   :  { %1749 = vmatprep.subr.bf16.mxu1 %v7316_v63  ;;  %7071 = vmatprep.subr.bf16.mxu0 %v8439_v0 }
 0xcec   :  { %1750 = vmatpush1.bf16.msra.mxu1 %v7314_v1  ;;  %7072 = vmatpush3.bf16.msra.mxu0 %v7317_v2 }
 0xced   :  { %7077 = vmatprep.subr.bf16.mxu1 %v8439_v0  ;;  %7089 = vmatprep.subr.bf16.mxu0 %v8439_v0 }
 0xcef   :  { %6658 = vmatmul.mubr.msk.bf16.vlgmr.msra.gmra.mrb[40].mxu1 %vm368_vm1, %v8810_v14  ;;  %7074 = vmatmul.mubr.msk.bf16.vlgmr.msra.gmra.mrb[40].mxu0 %vm368_vm1, %v8810_v14 }
 0xcf0   :  { %7079 = vmatprep.mubr.msk.bf16.mxu1 %vm8440_vm0, %v8439_v0  ;;  %7091 = vmatprep.mubr.msk.bf16.mxu0 %vm8440_vm0, %v8439_v0 }
 0xdb2   :  { %v1672_v3 = vpop.f32.mrb[36].mxu0 }
 0xdb3   :  { %v7063_v4 = vpop.f32.mrb[37].mxu0 }
 0xdb4   :  { %v1675_v5 = vpop.f32.mrb[38].mxu0 }
 0xdb5   :  { %v7064_v6 = vpop.f32.mrb[39].mxu0 }
 0xdc2   :  { %v1777_v11 = vpop.f32.mrb[40].mxu1  ;;  %v1820_v12 = vpop.f32.mrb[40].mxu0 }
 0xdc3   :  { %v1821_v13 = vadd.f32 %v1820_v12, %v1672_v3  ;;  %v1779_v15 = vpop.f32.mrb[41].mxu1  ;;  %v7075_v16 = vpop.f32.mrb[41].mxu0  ;;  %v1844_v38 = vadd.f32 %v1832_v32, %v1777_v11 }
 0xdc4   :  { %v1845_v17 = vadd.f32 %v1836_v9, %v1779_v15  ;;  %v1781_v19 = vpop.f32.mrb[42].mxu1  ;;  %v1823_v20 = vpop.f32.mrb[42].mxu0 }
 0xdc5   :  { %v1846_v21 = vadd.f32 %v1840_v10, %v1821_v13  ;;  %v1824_v26 = vadd.f32 %v1823_v20, %v1675_v5  ;;  %v1783_v28 = vpop.f32.mrb[43].mxu1  ;;  %v7076_v30 = vpop.f32.mrb[43].mxu0  ;;  %v9057_v43 = vpack.c.bf16 %v1844_v38, %v1844_v38  ;;  %v1847_v47 = vadd.f32 %v1832_v32, %v1781_v19 }
 0xdc6   :  { %v9045_v33 = vpack.c.bf16 %v1845_v17, %v1845_v17  ;;  %v1848_v35 = vadd.f32 %v1836_v9, %v1783_v28 }
 0xdc7   :  { %v9047_v39 = vpack.c.bf16 %v1846_v21, %v1846_v21  ;;  %v1849_v45 = vadd.f32 %v1840_v10, %v1824_v26  ;;  %v9068_v52 = vpack.c.bf16 %v1847_v47, %v1847_v47 }
 0xdc8   :  { %v1858_v36 = vsel %vm1405_vm7, %v9045_v33, 0  ;;  %v9055_v42 = vpack.c.bf16 %v1848_v35, %v1848_v35 }
 0xdc9   :  { %7078 = vmatpush3.bf16.xpose.msra.mxu1 %v1858_v36  ;;  %v1976_v37 = vsel %vm624_vm3, %v9047_v39, 0  ;;  %v9066_v44 = vpack.c.bf16 %v1849_v45, %v1849_v45 }
 0xdca   :  { %7090 = vmatpush3.bf16.msra.mxu0 %v1976_v37  ;;  %7083 = vmatprep.subr.bf16.mxu1 %v8439_v0  ;;  %v1904_v46 = vsel %vm1405_vm7, %v9055_v42, 0 }
 0xdcb   :  { %7101 = vmatprep.subr.bf16.mxu0 %v8439_v0  ;;  %v2022_v24 = vsel %vm624_vm3, %v9066_v44, 0 }
 0xdd0   :  { %7080 = vmatmul.mubr.msk.bf16.vlgmr.msra.gmra.mrb[44].mxu1 %vm1405_vm7, %v9057_v43 }
 0xdd1   :  { %7084 = vmatpush3.bf16.xpose.msra.mxu1 %v1904_v46  ;;  %7085 = vmatprep.mubr.msk.bf16.mxu1 %vm8440_vm0, %v8439_v0 }
 0xdd2   :  { %7095 = vmatprep.subr.bf16.mxu1 %v8439_v0 }
 0xdd8   :  { %7086 = vmatmul.mubr.msk.bf16.vlgmr.msra.gmra.mrb[48].mxu1 %vm1405_vm7, %v9068_v52 }
 0xdd9   :  { %7096 = vmatpush3.bf16.msra.mxu1 %v2022_v24  ;;  %7097 = vmatprep.mubr.msk.bf16.mxu1 %vm8440_vm0, %v8439_v0 }
 0xdda   :  { %7107 = vmatprep.subr.bf16.mxu1 %v8439_v0 }
 0xea3   :  { %v1894_v53 = vpop.f32.mrb[44].mxu1 }
 0xea4   :  { %v1895_v54 = vadd.f32 %v1894_v53, %v9079_v50  ;;  %v7081_v27 = vpop.f32.mrb[45].mxu1 }
 0xea5   :  { %v1897_v55 = vpop.f32.mrb[46].mxu1 }
 0xea6   :  { %v7082_v18 = vpop.f32.mrb[47].mxu1  ;;  %v1946_v23 = vsel %vm593_vm6, %v1895_v54, -inf }
 0xea7   :  { %1947 = vmax.xlane.f32.xlu1 %v1946_v23 }
 0xeab   :  { %v1940_v57 = vpop.f32.mrb[48].mxu1 }
 0xeac   :  { %v1941_v59 = vadd.f32 %v1940_v57, %v9085_v25  ;;  %v7087_v60 = vpop.f32.mrb[49].mxu1 }
 0xead   :  { %v1943_v34 = vpop.f32.mrb[50].mxu1 }
 0xeae   :  { %v7088_v61 = vpop.f32.mrb[51].mxu1  ;;  %v1949_v62 = vsel %vm593_vm6, %v1941_v59, -inf }
 0xeaf   :  { %1950 = vmax.xlane.f32.xlu0 %v1949_v62 }
 0xeb8   :  { %2068 = vrot.lane.b32.xlu1 %v9045_v33, %s8444_s26 }
 0xebc   :  { %2065 = vrot.lane.b32.xlu1 %v9057_v43, %s8444_s26 }
 0xec0   :  { %2117 = vrot.lane.b32.xlu1 %v9068_v52, %s8444_s26 }
 0xf34   :  { %v1948_v41 = vpop.xlane.xlu1 %1947 }
 0xf35   :  { %v1952_v22 = vsub.f32 %v1895_v54, %v1948_v41 }
 0xf37   :  { %v1954_v63 = vmul.f32 1.442695, %v1952_v22 }
 0xf38   :  { %v2069_v12 = vpop.permute.xlu1 %2068 }
 0xf39   :  { %7442 = vpow2.f32 %v1954_v63  ;;  %v2074_v15 = vsel %vm1405_vm7, %v2069_v12, 0 }
 0xf3c   :  { %v1951_v1 = vpop.xlane.xlu0 %1950  ;;  %v2066_v21 = vpop.permute.xlu1 %2065 }
 0xf3d   :  { %v1953_v2 = vsub.f32 %v1941_v59, %v1951_v1 }
 0xf3f   :  { %v1956_v3 = vmul.f32 1.442695, %v1953_v2 }
 0xf40   :  { %v2118_v28 = vpop.permute.xlu1 %2117 }
 0xf41   :  { %7444 = vpow2.f32 %v1956_v3 }
 0xf43   :  { %v7443_v4 = vpop.eup %7442 }
 0xf44   :  { %v1958_v5 = vsel %vm593_vm6, %v7443_v4, 0.0 }
 0xf45   :  { %1959 = vadd.xlane.f32.xlu0 %v1958_v5 }
 0xf4b   :  { %v7445_v6 = vpop.eup %7444 }
 0xf4c   :  { %v1961_v8 = vsel %vm593_vm6, %v7445_v6, 0.0 }
 0xf4d   :  { %1962 = vadd.xlane.f32.xlu0 %v1961_v8 }
 0xf63   :  { %2120 = vrot.lane.b32.xlu0 %v9055_v42, %s8444_s26 }
 0xfd2   :  { %v1960_v31 = vpop.xlane.xlu0 %1959 }
 0xfd3   :  { %7446 = vrcp.f32 %v1960_v31 }
 0xfda   :  { %v1963_v9 = vpop.xlane.xlu0 %1962 }
 0xfdb   :  { %7448 = vrcp.f32 %v1963_v9 }
 0xfdd   :  { %v7447_v10 = vpop.eup %7446 }
 0xfde   :  { %v1966_v11 = vmul.f32 %v7447_v10, %v7443_v4  ;;  %v2121_v19 = vpop.permute.xlu0 %2120 }
 0xfdf   :  { %v2126_v26 = vsel %vm1405_vm7, %v2121_v19, 0 }
 0xfe0   :  { %v1968_v13 = vpack.c.bf16 %v1966_v11, %v1966_v11 }
 0xfe2   :  { %7092 = vmatmul.mubr.msk.bf16.vlgmr.msra.gmra.mrb[44].mxu0 %vm593_vm6, %v1968_v13 }
 0xfe3   :  { %7102 = vmatpush3.bf16.xpose.msra.mxu0 %v2074_v15  ;;  %7103 = vmatprep.mubr.msk.bf16.mxu0 %vm8440_vm0, %v8439_v0 }
 0xfe4   :  { %7113 = vmatprep.subr.bf16.mxu0 %v8439_v0 }
 0xfe5   :  { %v7449_v16 = vpop.eup %7448 }
 0xfe6   :  { %v1967_v17 = vmul.f32 %v7449_v16, %v7445_v6 }
 0xfe8   :  { %v1969_v20 = vpack.c.bf16 %v1967_v17, %v1967_v17 }
 0xfea   :  { %7098 = vmatmul.mubr.msk.bf16.vlgmr.msra.gmra.mrb[52].mxu1 %vm593_vm6, %v1969_v20  ;;  %7104 = vmatmul.mubr.msk.bf16.vlgmr.msra.gmra.mrb[48].mxu0 %vm1405_vm7, %v2066_v21 }
 0xfeb   :  { %7108 = vmatpush3.bf16.xpose.msra.mxu1 %v2126_v26  ;;  %7109 = vmatprep.mubr.msk.bf16.mxu1 %vm8440_vm0, %v8439_v0 }
 0xfec   :  { %7119 = vmatprep.subr.bf16.mxu1 %v8439_v0  ;;  %7115 = vmatprep.mubr.msk.bf16.mxu0 %vm8440_vm0, %v8439_v0 }
 0xff2   :  { %7110 = vmatmul.mubr.msk.bf16.vlgmr.msra.gmra.mrb[56].mxu1 %vm1405_vm7, %v2118_v28 }
 0xff3   :  { %7121 = vmatprep.mubr.msk.bf16.mxu1 %vm8440_vm0, %v8439_v0 }
0x10b5   :  { %v9115_v30 = vpop.f32.mrb[44].mxu0 }
0x10b6   :  { %v7093_v32 = vpop.f32.mrb[45].mxu0 }
0x10b7   :  { %v2015_v35 = vpop.f32.mrb[46].mxu0 }
0x10b8   :  { %v7094_v36 = vpop.f32.mrb[47].mxu0 }
0x10bd   :  { %v9117_v37 = vpop.f32.mrb[52].mxu1  ;;  %v2110_v38 = vpop.f32.mrb[48].mxu0 }
0x10be   :  { %v2111_v45 = vadd.f32 %v2110_v38, %v9079_v50  ;;  %v7099_v46 = vpop.f32.mrb[53].mxu1  ;;  %v7105_v47 = vpop.f32.mrb[49].mxu0 }
0x10bf   :  { %v2061_v24 = vpop.f32.mrb[54].mxu1  ;;  %v2113_v29 = vpop.f32.mrb[50].mxu0 }
0x10c0   :  { %v7100_v48 = vpop.f32.mrb[55].mxu1  ;;  %v7106_v49 = vpop.f32.mrb[51].mxu0  ;;  %v2168_v53 = vsel %vm593_vm6, %v2111_v45, -inf }
0x10c1   :  { %2169 = vmax.xlane.f32.xlu1 %v2168_v53 }
0x10c5   :  { %v2162_v54 = vpop.f32.mrb[56].mxu1 }
0x10c6   :  { %v2163_v27 = vadd.f32 %v2162_v54, %v9085_v25  ;;  %v7111_v55 = vpop.f32.mrb[57].mxu1 }
0x10c7   :  { %v2165_v56 = vpop.f32.mrb[58].mxu1 }
0x10c8   :  { %v7112_v18 = vpop.f32.mrb[59].mxu1  ;;  %v2171_v23 = vsel %vm593_vm6, %v2163_v27, -inf }
0x10c9   :  { %2172 = vmax.xlane.f32.xlu0 %v2171_v23 }
0x10d2   :  { %2193 = vrot.lane.b32.xlu1 %v9047_v39, %s8444_s26 }
0x10d6   :  { %2292 = vrot.lane.b32.xlu1 %v9045_v33, %s8429_s0 }
0x10da   :  { %2342 = vrot.lane.b32.xlu1 %v9055_v42, %s8429_s0 }
0x10de   :  { %2290 = vrot.lane.b32.xlu1 %v9057_v43, %s8429_s0 }
0x114e   :  { %v2170_v57 = vpop.xlane.xlu1 %2169 }
0x114f   :  { %v2174_v59 = vsub.f32 %v2111_v45, %v2170_v57 }
0x1151   :  { %v2176_v60 = vmul.f32 1.442695, %v2174_v59 }
0x1152   :  { %v2194_v34 = vpop.permute.xlu1 %2193 }
0x1153   :  { %7450 = vpow2.f32 %v2176_v60  ;;  %v2199_v61 = vsel %vm624_vm3, %v2194_v34, 0 }
0x1154   :  { %7114 = vmatpush3.bf16.msra.mxu0 %v2199_v61 }
0x1155   :  { %7125 = vmatprep.subr.bf16.mxu0 %v8439_v0 }
0x1156   :  { %v2173_v62 = vpop.xlane.xlu0 %2172  ;;  %v2293_v8 = vpop.permute.xlu1 %2292 }
0x1157   :  { %v2175_v41 = vsub.f32 %v2163_v27, %v2173_v62  ;;  %v2298_v12 = vsel %vm1405_vm7, %v2293_v8, 0 }
0x1159   :  { %v2178_v22 = vmul.f32 1.442695, %v2175_v41 }
0x115a   :  { %v2343_v13 = vpop.permute.xlu1 %2342 }
0x115b   :  { %7452 = vpow2.f32 %v2178_v22  ;;  %v2348_v20 = vsel %vm1405_vm7, %v2343_v13, 0 }
0x115d   :  { %v7451_v63 = vpop.eup %7450 }
0x115e   :  { %v2180_v1 = vsel %vm593_vm6, %v7451_v63, 0.0  ;;  %v2291_v19 = vpop.permute.xlu1 %2290 }
0x115f   :  { %2181 = vadd.xlane.f32.xlu0 %v2180_v1 }
0x1165   :  { %v7453_v2 = vpop.eup %7452 }
0x1166   :  { %v2183_v3 = vsel %vm593_vm6, %v7453_v2, 0.0 }
0x1167   :  { %2184 = vadd.xlane.f32.xlu0 %v2183_v3 }
0x117d   :  { %2242 = vrot.lane.b32.xlu0 %v9066_v44, %s8444_s26 }
0x1181   :  { %2340 = vrot.lane.b32.xlu0 %v9068_v52, %s8429_s0 }
0x11ec   :  { %v2182_v4 = vpop.xlane.xlu0 %2181 }
0x11ed   :  { %7454 = vrcp.f32 %v2182_v4 }
0x11f4   :  { %v2185_v5 = vpop.xlane.xlu0 %2184 }
0x11f5   :  { %7456 = vrcp.f32 %v2185_v5 }
0x11f7   :  { %v7455_v6 = vpop.eup %7454 }
0x11f8   :  { %v2243_v31 = vpop.permute.xlu0 %2242  ;;  %v2188_v9 = vmul.f32 %v7455_v6, %v7451_v63 }
0x11f9   :  { %v2248_v10 = vsel %vm624_vm3, %v2243_v31, 0 }
0x11fa   :  { %7120 = vmatpush3.bf16.msra.mxu1 %v2248_v10  ;;  %v2190_v11 = vpack.c.bf16 %v2188_v9, %v2188_v9 }
0x11fb   :  { %7131 = vmatprep.subr.bf16.mxu1 %v8439_v0 }
0x11fc   :  { %7116 = vmatmul.mubr.msk.bf16.vlgmr.msra.gmra.mrb[52].mxu0 %vm593_vm6, %v2190_v11  ;;  %v2341_v21 = vpop.permute.xlu0 %2340 }
0x11fd   :  { %7126 = vmatpush3.bf16.xpose.msra.mxu0 %v2298_v12  ;;  %7127 = vmatprep.mubr.msk.bf16.mxu0 %vm8440_vm0, %v8439_v0 }
0x11fe   :  { %7137 = vmatprep.subr.bf16.mxu0 %v8439_v0 }
0x11ff   :  { %v7457_v15 = vpop.eup %7456 }
0x1200   :  { %v2189_v16 = vmul.f32 %v7457_v15, %v7453_v2 }
0x1202   :  { %v2191_v17 = vpack.c.bf16 %v2189_v16, %v2189_v16 }
0x1204   :  { %7122 = vmatmul.mubr.msk.bf16.vlgmr.msra.gmra.mrb[60].mxu1 %vm593_vm6, %v2191_v17  ;;  %7128 = vmatmul.mubr.msk.bf16.vlgmr.msra.gmra.mrb[56].mxu0 %vm1405_vm7, %v2291_v19 }
0x1205   :  { %7132 = vmatpush3.bf16.xpose.msra.mxu1 %v2348_v20  ;;  %7133 = vmatprep.mubr.msk.bf16.mxu1 %vm8440_vm0, %v8439_v0 }
0x1206   :  { %7143 = vmatprep.subr.bf16.mxu1 %v8439_v0  ;;  %7139 = vmatprep.mubr.msk.bf16.mxu0 %vm8440_vm0, %v8439_v0 }
0x120c   :  { %7134 = vmatmul.mubr.msk.bf16.vlgmr.msra.gmra.mrb[64].mxu1 %vm1405_vm7, %v2341_v21 }
0x120d   :  { %7145 = vmatprep.mubr.msk.bf16.mxu1 %vm8440_vm0, %v8439_v0 }
0x12cf   :  { %v9157_v26 = vpop.f32.mrb[52].mxu0 }
0x12d0   :  { %v7117_v28 = vpop.f32.mrb[53].mxu0 }
0x12d1   :  { %v2238_v32 = vpop.f32.mrb[54].mxu0 }
0x12d2   :  { %v7118_v35 = vpop.f32.mrb[55].mxu0 }
0x12d7   :  { %v9159_v36 = vpop.f32.mrb[60].mxu1  ;;  %v2334_v38 = vpop.f32.mrb[56].mxu0 }
0x12d8   :  { %v7259_v45 = vpack.i.bf16 %v9159_v36, %v9157_v26  ;;  %v2335_v46 = vadd.f32 %v2334_v38, %v9079_v50  ;;  %v7123_v47 = vpop.f32.mrb[61].mxu1  ;;  %v7129_v24 = vpop.f32.mrb[57].mxu0 }
0x12d9   :  { %v2287_v29 = vpop.f32.mrb[62].mxu1  ;;  %v2337_v48 = vpop.f32.mrb[58].mxu0 }
0x12da   :  { %v7124_v49 = vpop.f32.mrb[63].mxu1  ;;  %v7130_v53 = vpop.f32.mrb[59].mxu0  ;;  %v2390_v54 = vsel %vm593_vm6, %v2335_v46, -inf }
0x12db   :  { %2391 = vmax.xlane.f32.xlu1 %v2390_v54 }
0x12df   :  { %v2384_v27 = vpop.f32.mrb[64].mxu1 }
0x12e0   :  { %v2385_v55 = vadd.f32 %v2384_v27, %v9085_v25  ;;  %v7135_v56 = vpop.f32.mrb[65].mxu1 }
0x12e1   :  { %v2387_v18 = vpop.f32.mrb[66].mxu1 }
0x12e2   :  { %v7136_v23 = vpop.f32.mrb[67].mxu1  ;;  %v2393_v57 = vsel %vm593_vm6, %v2385_v55, -inf }
0x12e3   :  { %2394 = vmax.xlane.f32.xlu0 %v2393_v57 }
0x12ec   :  { %2414 = vrot.lane.b32.xlu1 %v9047_v39, %s8429_s0 }
0x12f0   :  { %2512 = vrot.lane.b32.xlu1 %v9045_v33, %s8445_s28 }
0x12f4   :  { %2562 = vrot.lane.b32.xlu1 %v9055_v42, %s8445_s28 }
0x12f8   :  { %2510 = vrot.lane.b32.xlu1 %v9057_v43, %s8445_s28 }
0x1368   :  { %v2392_v59 = vpop.xlane.xlu1 %2391 }
0x1369   :  { %v2396_v60 = vsub.f32 %v2335_v46, %v2392_v59 }
0x136b   :  { %v2398_v34 = vmul.f32 1.442695, %v2396_v60 }
0x136c   :  { %v2415_v61 = vpop.permute.xlu1 %2414 }
0x136d   :  { %7458 = vpow2.f32 %v2398_v34  ;;  %v2420_v62 = vsel %vm624_vm3, %v2415_v61, 0 }
0x136e   :  { %7138 = vmatpush3.bf16.msra.mxu0 %v2420_v62 }
0x136f   :  { %7149 = vmatprep.subr.bf16.mxu0 %v8439_v0 }
0x1370   :  { %v2395_v41 = vpop.xlane.xlu0 %2394  ;;  %v2513_v5 = vpop.permute.xlu1 %2512 }
0x1371   :  { %v2397_v22 = vsub.f32 %v2385_v55, %v2395_v41  ;;  %v2518_v10 = vsel %vm1405_vm7, %v2513_v5, 0  ;;  %v7318_v5 = vld [vmem:[#allocation27 + $0x40] ss:$8 sps:$4 sm:$0xff]  }
0x1373   :  { %v2400_v63 = vmul.f32 1.442695, %v2397_v22 }
0x1374   :  { %v2563_v11 = vpop.permute.xlu1 %2562 }
0x1375   :  { %7460 = vpow2.f32 %v2400_v63  ;;  %v2568_v16 = vsel %vm1405_vm7, %v2563_v11, 0  ;;  %v7329_v11 = vld [vmem:[#allocation27 + $0x74] ss:$8 sps:$4 sm:$0xff]  }
0x1377   :  { %v7459_v33 = vpop.eup %7458 }
0x1378   :  { %v2402_v42 = vsel %vm593_vm6, %v7459_v33, 0.0  ;;  %v2511_v15 = vpop.permute.xlu1 %2510 }
0x1379   :  { %2403 = vadd.xlane.f32.xlu0 %v2402_v42  ;;  %v7320_v42 = vld [vmem:[#allocation27 + $0x44] ss:$8 sps:$4 sm:$0xff]  }
0x137f   :  { %v7461_v1 = vpop.eup %7460 }
0x1380   :  { %v2405_v43 = vsel %vm593_vm6, %v7461_v1, 0.0 }
0x1381   :  { %2406 = vadd.xlane.f32.xlu0 %v2405_v43 }
0x1397   :  { %2462 = vrot.lane.b32.xlu0 %v9066_v44, %s8429_s0 }
0x139b   :  { %2560 = vrot.lane.b32.xlu0 %v9068_v52, %s8445_s28 }
0x1406   :  { %v2404_v2 = vpop.xlane.xlu0 %2403 }
0x1407   :  { %7462 = vrcp.f32 %v2404_v2 }
0x140e   :  { %v2407_v3 = vpop.xlane.xlu0 %2406 }
0x140f   :  { %7464 = vrcp.f32 %v2407_v3 }
0x1411   :  { %v7463_v4 = vpop.eup %7462 }
0x1412   :  { %v2463_v6 = vpop.permute.xlu0 %2462  ;;  %v2410_v8 = vmul.f32 %v7463_v4, %v7459_v33 }
0x1413   :  { %v2468_v31 = vsel %vm624_vm3, %v2463_v6, 0 }
0x1414   :  { %7144 = vmatpush3.bf16.msra.mxu1 %v2468_v31  ;;  %v2412_v9 = vpack.c.bf16 %v2410_v8, %v2410_v8  ;;  %v7323_v8 = vld [vmem:[#allocation27 + $0x54] ss:$8 sps:$4 sm:$0xff]   ;;  %v7321_v31 = vld [vmem:[#allocation27 + $0x50] ss:$8 sps:$4 sm:$0xff]  }
0x1415   :  { %7155 = vmatprep.subr.bf16.mxu1 %v8439_v0 }
0x1416   :  { %7140 = vmatmul.mubr.msk.bf16.vlgmr.msra.gmra.mrb[60].mxu0 %vm593_vm6, %v2412_v9  ;;  %v2561_v17 = vpop.permute.xlu0 %2560  ;;  %v7326_v9 = vld [vmem:[#allocation27 + $0x64] ss:$8 sps:$4 sm:$0xff]  }
0x1417   :  { %7150 = vmatpush3.bf16.xpose.msra.mxu0 %v2518_v10  ;;  %7151 = vmatprep.mubr.msk.bf16.mxu0 %vm8440_vm0, %v8439_v0  ;;  %v7324_v10 = vld [vmem:[#allocation27 + $0x60] ss:$8 sps:$4 sm:$0xff]  }
0x1418   :  { %7161 = vmatprep.subr.bf16.mxu0 %v8439_v0 }
0x1419   :  { %v7465_v52 = vpop.eup %7464 }
0x141a   :  { %v2411_v12 = vmul.f32 %v7465_v52, %v7461_v1  ;;  %v7327_v52 = vld [vmem:[#allocation27 + $0x70] ss:$8 sps:$4 sm:$0xff]  }
0x141c   :  { %v2413_v13 = vpack.c.bf16 %v2411_v12, %v2411_v12  ;;  %v7330_v12 = vld [vmem:[#allocation24] sm:$0xff]  }
0x141e   :  { %7146 = vmatmul.mubr.msk.bf16.vlgmr.msra.gmra.mrb[68].mxu1 %vm593_vm6, %v2413_v13  ;;  %7152 = vmatmul.mubr.msk.bf16.vlgmr.msra.gmra.mrb[64].mxu0 %vm1405_vm7, %v2511_v15  ;;  %v7331_v13 = vld [vmem:[#allocation24 + $0x8] sm:$0xff]   ;;  %v7332_v15 = vld [vmem:[#allocation24 + $0x10] sm:$0xff]  }
0x141f   :  { %7156 = vmatpush3.bf16.xpose.msra.mxu1 %v2568_v16  ;;  %7157 = vmatprep.mubr.msk.bf16.mxu1 %vm8440_vm0, %v8439_v0  ;;  %v7333_v16 = vld [vmem:[#allocation24 + $0x18] sm:$0xff]  }
0x1420   :  { %7167 = vmatprep.subr.bf16.mxu1 %v8439_v0  ;;  %7163 = vmatprep.mubr.msk.bf16.mxu0 %vm8440_vm0, %v8439_v0 }
0x1426   :  { %7158 = vmatmul.mubr.msk.bf16.vlgmr.msra.gmra.mrb[72].mxu1 %vm1405_vm7, %v2561_v17  ;;  %v7334_v17 = vld [vmem:[#allocation24 + $0x20] sm:$0xff]  }
0x1427   :  { %7169 = vmatprep.mubr.msk.bf16.mxu1 %vm8440_vm0, %v8439_v0 }
0x14e9   :  { %v2456_v19 = vpop.f32.mrb[60].mxu0 }
0x14ea   :  { %v7141_v20 = vpop.f32.mrb[61].mxu0 }
0x14eb   :  { %v2459_v21 = vpop.f32.mrb[62].mxu0  ;;  %v7337_v20 = vld [vmem:[#allocation24 + $0x38] sm:$0xff]  }
0x14ec   :  { %v7142_v28 = vpop.f32.mrb[63].mxu0 }
0x14f1   :  { %v2504_v32 = vpop.f32.mrb[68].mxu1  ;;  %v2554_v35 = vpop.f32.mrb[64].mxu0 }
0x14f2   :  { %v7264_v38 = vpack.i.bf16 %v2504_v32, %v2456_v19  ;;  %v2555_v46 = vadd.f32 %v2554_v35, %v9079_v50  ;;  %v7147_v47 = vpop.f32.mrb[69].mxu1  ;;  %v7153_v24 = vpop.f32.mrb[65].mxu0  ;;  %v7336_v19 = vld [vmem:[#allocation24 + $0x30] sm:$0xff]  }
0x14f3   :  { %v2507_v29 = vpop.f32.mrb[70].mxu1  ;;  %v2557_v48 = vpop.f32.mrb[66].mxu0  ;;  %v7343_v47 = vld [vmem:[#allocation27 + $0x14] ss:$8 sps:$4 sm:$0xff]   ;;  %v7341_v24 = vld [vmem:[#allocation27 + $0x10] ss:$8 sps:$4 sm:$0xff]  }
0x14f4   :  { %v7148_v49 = vpop.f32.mrb[71].mxu1  ;;  %v7154_v53 = vpop.f32.mrb[67].mxu0  ;;  %v2610_v54 = vsel %vm593_vm6, %v2555_v46, -inf  ;;  %v7346_v29 = vld [vmem:[#allocation27 + $0x24] ss:$8 sps:$4 sm:$0xff]  }
0x14f5   :  { %2611 = vmax.xlane.f32.xlu1 %v2610_v54 }
0x14f9   :  { %v2604_v27 = vpop.f32.mrb[72].mxu1 }
0x14fa   :  { %v2605_v55 = vadd.f32 %v2604_v27, %v9085_v25  ;;  %v7159_v56 = vpop.f32.mrb[73].mxu1 }
0x14fb   :  { %v2607_v18 = vpop.f32.mrb[74].mxu1  ;;  %v7347_v56 = vld [vmem:[#allocation27 + $0x30] ss:$8 sps:$4 sm:$0xff]  }
0x14fc   :  { %v7160_v23 = vpop.f32.mrb[75].mxu1  ;;  %v2613_v57 = vsel %vm593_vm6, %v2605_v55, -inf  ;;  %v7352_v18 = vld [vmem:[#allocation27 + $0x84] ss:$8 sps:$4 sm:$0xff]  }
0x14fd   :  { %2614 = vmax.xlane.f32.xlu0 %v2613_v57  ;;  %v7350_v23 = vld [vmem:[#allocation27 + $0x80] ss:$8 sps:$4 sm:$0xff]   ;;  %v7355_v57 = vld [vmem:[#allocation27 + $0x94] ss:$8 sps:$4 sm:$0xff]  }
0x1506   :  { %2634 = vrot.lane.b32.xlu1 %v9047_v39, %s8445_s28 }
0x150a   :  { %7260 = vrot.lane.b32.xlu1 %v7259_v45, %s8445_s28 }
0x150e   :  { %7265 = vrot.lane.b32.xlu1 %v7264_v38, %s8429_s0  ;;  %v7338_v38 = vld [vmem:[#allocation27] ss:$8 sps:$4 sm:$0xff]  }
0x1582   :  { %v2612_v50 = vpop.xlane.xlu1 %2611 }
0x1583   :  { %v2616_v59 = vsub.f32 %v2555_v46, %v2612_v50  ;;  %v7340_v46 = vld [vmem:[#allocation27 + $0x4] ss:$8 sps:$4 sm:$0xff]   ;;  %v7353_v50 = vld [vmem:[#allocation27 + $0x90] ss:$8 sps:$4 sm:$0xff]  }
0x1585   :  { %v2618_v60 = vmul.f32 1.442695, %v2616_v59  ;;  %v7358_v59 = vld [vmem:[#allocation27 + $0xa4] ss:$8 sps:$4 sm:$0xff]  }
0x1586   :  { %v2635_v25 = vpop.permute.xlu1 %2634 }
0x1587   :  { %7466 = vpow2.f32 %v2618_v60  ;;  %v2640_v34 = vsel %vm624_vm3, %v2635_v25, 0  ;;  %v7356_v60 = vld [vmem:[#allocation27 + $0xa0] ss:$8 sps:$4 sm:$0xff]   ;;  %v7361_v25 = vld [vmem:[#allocation27 + $0xb4] ss:$8 sps:$4 sm:$0xff]  }
0x1588   :  { %7162 = vmatpush3.bf16.msra.mxu0 %v2640_v34  ;;  %v7359_v34 = vld [vmem:[#allocation27 + $0xb0] ss:$8 sps:$4 sm:$0xff]  }
0x1589   :  { %7173 = vmatprep.subr.bf16.mxu0 %v8439_v0 }
0x158a   :  { %v2615_v61 = vpop.xlane.xlu0 %2614 }
0x158b   :  { %v2617_v62 = vsub.f32 %v2605_v55, %v2615_v61  ;;  %v7349_v55 = vld [vmem:[#allocation27 + $0x34] ss:$8 sps:$4 sm:$0xff]   ;;  %v7364_v61 = vld [vmem:[#allocation27 + $0xc4] ss:$8 sps:$4 sm:$0xff]  }
0x158d   :  { %v2620_v39 = vmul.f32 1.442695, %v2617_v62  ;;  %v7362_v62 = vld [vmem:[#allocation27 + $0xc0] ss:$8 sps:$4 sm:$0xff]  }
0x158f   :  { %7468 = vpow2.f32 %v2620_v39  ;;  %v7367_v39 = vld [vmem:[#allocation27 + $0xd4] ss:$8 sps:$4 sm:$0xff]  }
0x1591   :  { %v7467_v41 = vpop.eup %7466 }
0x1592   :  { %v2622_v26 = vsel %vm593_vm6, %v7467_v41, 0.0 }
0x1593   :  { %2623 = vadd.xlane.f32.xlu0 %v2622_v26  ;;  %v7368_v26 = vld [vmem:[#allocation27 + $0xe0] ss:$8 sps:$4 sm:$0xff]  }
0x1599   :  { %v7469_v36 = vpop.eup %7468 }
0x159a   :  { %v2625_v45 = vsel %vm593_vm6, %v7469_v36, 0.0 }
0x159b   :  { %2626 = vadd.xlane.f32.xlu0 %v2625_v45 }
0x15b1   :  { %2682 = vrot.lane.b32.xlu0 %v9066_v44, %s8445_s28 }
0x1620   :  { %v2624_v22 = vpop.xlane.xlu0 %2623 }
0x1621   :  { %7470 = vrcp.f32 %v2624_v22 }
0x1628   :  { %v2627_v63 = vpop.xlane.xlu0 %2626 }
0x1629   :  { %7472 = vrcp.f32 %v2627_v63 }
0x162b   :  { %v7471_v33 = vpop.eup %7470 }
0x162c   :  { %v2683_v1 = vpop.permute.xlu0 %2682  ;;  %v2630_v43 = vmul.f32 %v7471_v33, %v7467_v41  ;;  %v7370_v41 = vld [vmem:[#allocation27 + $0xe4] ss:$8 sps:$4 sm:$0xff]  }
0x162d   :  { %v2688_v2 = vsel %vm624_vm3, %v2683_v1, 0  ;;  %vm10508_vm3 = vcmask 1047559  }
0x162e   :  { %7168 = vmatpush3.bf16.msra.mxu1 %v2688_v2  ;;  %v2632_v3 = vpack.c.bf16 %v2630_v43, %v2630_v43 }
0x162f   :  { %2931 = vmatprep.subr.bf16.mxu1 %v7320_v42 }
0x1630   :  { %7164 = vmatmul.mubr.msk.bf16.vlgmr.msra.gmra.mrb[68].mxu0 %vm593_vm6, %v2632_v3 }
0x1631   :  { %7189 = vmatprep.mubr.msk.bf16.mxu0 %vm8440_vm0, %v8439_v0  ;;  %7174 = vmatpush3.bf16.msra.mxu0 %v7330_v12  ;;  %vm4204_vm0 = vcmask 1045509  }
0x1632   :  { %7175 = vmatprep.subr.bf16.mxu0 %v8439_v0 }
0x1633   :  { %v7473_v4 = vpop.eup %7472 }
0x1634   :  { %v2631_v44 = vmul.f32 %v7473_v4, %v7469_v36  ;;  %v7261_v36 = vpop.permute.xlu1 %7260 }
0x1635   :  { %7176 = vmatpush3.bf16.msra.mxu0 %v7331_v13  ;;  %v7263_v22 = vunpack.i.h.bf16 %v7261_v36  ;;  %v7262_v63 = vunpack.i.l.bf16 %v7261_v36 }
0x1636   :  { %v2633_v6 = vpack.c.bf16 %v2631_v44, %v2631_v44  ;;  %7177 = vmatprep.subr.bf16.mxu0 %v8439_v0 }
0x1637   :  { %v2755_v43 = vsel %vm1405_vm7, %v9117_v37, %v7263_v22  ;;  %v2754_v2 = vsel %vm1405_vm7, %v9115_v30, %v7262_v63  ;;  %v6676_v37 = vld [vmem:[#allocation25] ss:$0 sm:$0xff] }
0x1638   :  { %7170 = vmatmul.mubr.msk.bf16.vlgmr.msra.gmra.mrb[76].mxu1 %vm593_vm6, %v2633_v6  ;;  %v7266_v45 = vpop.permute.xlu1 %7265  ;;  %vm3789_vm6 = vcmask 259077  }
0x1639   :  { %2932 = vmatpush1.bf16.msra.mxu1 %v7318_v5  ;;  %2963 = vmatprep.mubr.bf16.mxu1 %v8447_v51  ;;  %v7268_v33 = vunpack.i.h.bf16 %v7266_v45  ;;  %v7267_v42 = vunpack.i.l.bf16 %v7266_v45 }
0x163a   :  { %2933 = vmatprep.subr.bf16.mxu1 %v7323_v8  ;;  %7178 = vmatpush3.bf16.msra.mxu0 %v7332_v15 }
0x163b   :  { %7179 = vmatprep.subr.bf16.mxu0 %v8439_v0  ;;  %v2756_v44 = vsel %vm368_vm1, %v2754_v2, %v7267_v42  ;;  %v2757_v5 = vsel %vm368_vm1, %v2755_v43, %v7268_v33 }
0x163d   :  { %2934 = vmatpush1.bf16.msra.mxu1 %v7321_v31 }
0x163e   :  { %2935 = vmatprep.subr.bf16.mxu1 %v7326_v9  ;;  %7180 = vmatpush3.bf16.msra.mxu0 %v7333_v16  ;;  %v7373_v9 = vld [vmem:[#allocation27 + $0xf4] ss:$8 sps:$4 sm:$0xff]  }
0x163f   :  { %7181 = vmatprep.subr.bf16.mxu0 %v8439_v0 }
0x1641   :  { %2936 = vmatpush1.bf16.msra.mxu1 %v7324_v10  ;;  %v7371_v10 = vld [vmem:[#allocation27 + $0xf0] ss:$8 sps:$4 sm:$0xff]  }
0x1642   :  { %2937 = vmatprep.subr.bf16.mxu1 %v7329_v11  ;;  %7182 = vmatpush3.bf16.msra.mxu0 %v7334_v17  ;;  %v3200_v17 = vld [vmem:[%s10496_s16] sm:$0x3] }
0x1643   :  { %7183 = vmatprep.subr.bf16.mxu0 %v8439_v0 }
0x1645   :  { %2938 = vmatpush1.bf16.msra.mxu1 %v7327_v52 }
0x1646   :  { %3014 = vmatprep.subr.bf16.mxu1 %v7340_v46 }
0x1648   :  { %6693 = vmatmul.mubr.msk.bf16.vlgmr.msra.gmra.mrb[80].mxu1 %vm368_vm1, %v9017_v58  ;;  %v7335_v58 = vld [vmem:[#allocation24 + $0x28] sm:$0xff]  }
0x1649   :  { %3046 = vmatprep.mubr.bf16.mxu1 %v8447_v51  ;;  %7184 = vmatpush3.bf16.msra.mxu0 %v7335_v58  ;;  %v3209_v58 = vrot.slane %v3200_v17, %v9040_v7 }
0x164a   :  { %7185 = vmatprep.subr.bf16.mxu0 %v8439_v0  ;;  %3015 = vmatpush1.bf16.msra.mxu1 %v7338_v38 }
0x164b   :  { %3016 = vmatprep.subr.bf16.mxu1 %v7343_v47 }
0x164d   :  { %7186 = vmatpush3.bf16.msra.mxu0 %v7336_v19 }
0x164e   :  { %7187 = vmatprep.subr.bf16.mxu0 %v8439_v0  ;;  %3017 = vmatpush1.bf16.msra.mxu1 %v7341_v24  ;;  %v7344_v0 = vld [vmem:[#allocation27 + $0x20] ss:$8 sps:$4 sm:$0xff]  }
0x164f   :  { %3018 = vmatprep.subr.bf16.mxu1 %v7346_v29 }
0x1651   :  { %7188 = vmatpush3.bf16.msra.mxu0 %v7337_v20  ;;  %v3205_v20 = vrot.slane %v3200_v17, %v8852_v40  ;;  %v9352_v17 = vld [vmem:[%s10522_s5 + $0x34] ss:$8 sps:$4 sm:$0xff]  }
0x1652   :  { %3019 = vmatpush1.bf16.msra.mxu1 %v7344_v0 }
0x1653   :  { %3020 = vmatprep.subr.bf16.mxu1 %v7349_v55 }
0x1656   :  { %3021 = vmatpush1.bf16.msra.mxu1 %v7347_v56 }
0x1657   :  { %3153 = vmatprep.subr.bf16.mxu1 %v7352_v18 }
0x1659   :  { %6702 = vmatmul.mubr.msk.bf16.vlgmr.msra.gmra.mrb[80].mxu1 %vm368_vm1, %v8810_v14  ;;  %v7365_v14 = vld [vmem:[#allocation27 + $0xd0] ss:$8 sps:$4 sm:$0xff]  }
0x165a   :  { %3154 = vmatpush1.bf16.msra.mxu1 %v7350_v23  ;;  %3185 = vmatprep.mubr.bf16.mxu1 %v8447_v51 }
0x165b   :  { %3155 = vmatprep.subr.bf16.mxu1 %v7355_v57 }
0x165e   :  { %3156 = vmatpush1.bf16.msra.mxu1 %v7353_v50 }
0x165f   :  { %3157 = vmatprep.subr.bf16.mxu1 %v7358_v59 }
0x1662   :  { %3158 = vmatpush1.bf16.msra.mxu1 %v7356_v60 }
0x1663   :  { %3159 = vmatprep.subr.bf16.mxu1 %v7361_v25 }
0x1666   :  { %3160 = vmatpush1.bf16.msra.mxu1 %v7359_v34 }
0x1667   :  { %3161 = vmatprep.subr.bf16.mxu1 %v7364_v61 }
0x166a   :  { %3162 = vmatpush1.bf16.msra.mxu1 %v7362_v62 }
0x166b   :  { %3163 = vmatprep.subr.bf16.mxu1 %v7367_v39 }
0x166e   :  { %3164 = vmatpush1.bf16.msra.mxu1 %v7365_v14 }
0x166f   :  { %3165 = vmatprep.subr.bf16.mxu1 %v7370_v41 }
0x1672   :  { %3166 = vmatpush1.bf16.msra.mxu1 %v7368_v26 }
0x1673   :  { %3167 = vmatprep.subr.bf16.mxu1 %v7373_v9  ;;  %v9306_v9 = vld [vmem:[%s10522_s5 + $0x4] ss:$8 sps:$4 sm:$0xff]  }
0x1674   :  { %3399 = vmatprep.subr.bf16.mxu0 %v9306_v9 }
0x1676   :  { %3168 = vmatpush1.bf16.msra.mxu1 %v7371_v10  ;;  %v9311_v10 = vld [vmem:[%s10522_s5] ss:$8 sps:$4 sm:$0xff]  }
0x1677   :  { %4020 = vmatprep.subr.bf16.mxu1 %v9306_v9 }
0x1703   :  { %v2676_v21 = vpop.f32.mrb[68].mxu0 }
0x1704   :  { %v7165_v28 = vpop.f32.mrb[69].mxu0 }
0x1705   :  { %v2679_v32 = vpop.f32.mrb[70].mxu0 }
0x1706   :  { %v7166_v35 = vpop.f32.mrb[71].mxu0 }
0x170b   :  { %v2724_v48 = vpop.f32.mrb[76].mxu1 }
0x170c   :  { %v7269_v49 = vpack.i.bf16 %v2724_v48, %v2676_v21  ;;  %v7171_v53 = vpop.f32.mrb[77].mxu1 }
0x170d   :  { %v2727_v54 = vpop.f32.mrb[78].mxu1 }
0x170e   :  { %v7172_v27 = vpop.f32.mrb[79].mxu1  ;;  %7270 = vrot.lane.b32.xlu1 %v7269_v49, %s8444_s26 }
0x1780   :  { %v7271_v1 = vpop.permute.xlu1 %7270 }
0x1781   :  { %v7273_v3 = vunpack.i.h.bf16 %v7271_v1  ;;  %v7272_v4 = vunpack.i.l.bf16 %v7271_v1 }
0x1783   :  { %v2760_v6 = vsel %vm2758_vm11, %v2757_v5, %v7273_v3  ;;  %v2759_v8 = vsel %vm2758_vm11, %v2756_v44, %v7272_v4  ;;  %vm3569_vm11 = vcmask 254977  }
0x1784   :  { %v2761_v31 = vpack.c.bf16 %v2760_v6, %v2759_v8 }
0x1786   :  { %7190 = vmatmul.mubr.bf16.vlgmr.msra.gmra.mrb[72].mxu0 %v2761_v31 }
0x1787   :  { %3431 = vmatprep.mubr.bf16.mxu0 %v8447_v51  ;;  %3400 = vmatpush1.bf16.msra.mxu0 %v9311_v10 }
0x1859   :  { %v2867_v11 = vpop.f32.mrb[72].mxu0 }
0x185a   :  { %v7191_v52 = vpop.f32.mrb[73].mxu0  ;;  %v2868_v12 = vadd.f32 %v6676_v37, %v2867_v11 }
0x185b   :  { %v2870_v30 = vpop.f32.mrb[74].mxu0 }
0x185c   :  { %v2871_v13 = vadd.f32 %v6676_v37, %v2870_v30  ;;  %v7192_v15 = vpop.f32.mrb[75].mxu0  ;;  %v9316_v37 = vld [vmem:[%s10522_s5 + $0x14] ss:$8 sps:$4 sm:$0xff]   ;;  %v9325_v30 = vld [vmem:[%s10522_s5 + $0x10] ss:$8 sps:$4 sm:$0xff]  }
0x185d   :  { %3401 = vmatprep.subr.bf16.mxu0 %v9316_v37 }
0x185e   :  { %v2874_v16 = vpack.c.bf16 %v2871_v13, %v2868_v12  ;;  %v9332_v12 = vld [vmem:[%s10522_s5 + $0x24] ss:$8 sps:$4 sm:$0xff]   ;;  %3402 = vmatpush1.bf16.msra.mxu0 %v9325_v30 }
0x185f   :  { %3403 = vmatprep.subr.bf16.mxu0 %v9332_v12 }
0x1860   :  { %3186 = vmatmul.mubr.bf16.vlgmr.msra.gmra.mrb[80].mxu1 %v2874_v16  ;;  %v9341_v16 = vld [vmem:[%s10522_s5 + $0x20] ss:$8 sps:$4 sm:$0xff]  }
0x1861   :  { %4052 = vmatprep.mubr.bf16.mxu1 %v8447_v51  ;;  %4021 = vmatpush1.bf16.msra.mxu1 %v9311_v10 }
0x1862   :  { %4022 = vmatprep.subr.bf16.mxu1 %v9316_v37  ;;  %3404 = vmatpush1.bf16.msra.mxu0 %v9341_v16 }
0x1863   :  { %3405 = vmatprep.subr.bf16.mxu0 %v9352_v17 }
0x1865   :  { %4023 = vmatpush1.bf16.msra.mxu1 %v9325_v30 }
0x1866   :  { %4024 = vmatprep.subr.bf16.mxu1 %v9332_v12 }
0x1869   :  { %4025 = vmatpush1.bf16.msra.mxu1 %v9341_v16 }
0x186a   :  { %4026 = vmatprep.subr.bf16.mxu1 %v9352_v17 }
0x1933   :  { %v3187_v19 = vpop.f32.mrb[80].mxu1 }
0x1934   :  { %v3189_v21 = vpop.f32.mrb[81].mxu1  ;;  %v9255_v46 = vadd.f32 %v3205_v20, %v3187_v19 }
0x1935   :  { %v9251_v28 = vadd.f32 %v3209_v58, %v3189_v21  ;;  %v3191_v32 = vpop.f32.mrb[82].mxu1 }
0x1936   :  { %v9253_v35 = vadd.f32 %v3205_v20, %v3191_v32  ;;  %v3193_v38 = vpop.f32.mrb[83].mxu1  ;;  %v6719_v0 = vmul.f32 -1.442695, %v9255_v46 }
0x1937   :  { %7474 = vtanh.f32 %v9251_v28  ;;  %v9258_v47 = vadd.f32 %v3209_v58, %v3193_v38  ;;  %v6721_v53 = vmul.f32 -1.442695, %v9251_v28  ;;  %v9359_v58 = vld [vmem:[%s10522_s5 + $0x30] ss:$8 sps:$4 sm:$0xff]  }
0x1938   :  { %7476 = vtanh.f32 %v9253_v35  ;;  %v6720_v54 = vmul.f32 -1.442695, %v9253_v35  ;;  %3406 = vmatpush1.bf16.msra.mxu0 %v9359_v58  ;;  %4027 = vmatpush1.bf16.msra.mxu1 %v9359_v58 }
0x1939   :  { %7478 = vtanh.f32 %v9255_v46  ;;  %v6722_v27 = vmul.f32 -1.442695, %v9258_v47  ;;  %3607 = vmatprep.subr.bf16.mxu0 %v9306_v9  ;;  %4430 = vmatprep.subr.bf16.mxu1 %v9306_v9 }
0x193a   :  { %7480 = vtanh.f32 %v9258_v47 }
0x193b   :  { %7482 = vpow2.f32 %v6721_v53 }
0x193c   :  { %7484 = vpow2.f32 %v6720_v54 }
0x193d   :  { %7486 = vpow2.f32 %v6719_v0 }
0x193e   :  { %7488 = vpow2.f32 %v6722_v27 }
0x1941   :  { %v7475_v24 = vpop.eup %7474 }
0x1942   :  { %v7477_v29 = vpop.eup %7476  ;;  %3290 = vrot.lane.b32.xlu1 %v7475_v24, %s8429_s0 }
0x1943   :  { %3244 = vrot.lane.b32.xlu0 %v7477_v29, %s8429_s0  ;;  %v7479_v48 = vpop.eup %7478 }
0x1944   :  { %v7481_v49 = vpop.eup %7480 }
0x1945   :  { %v7483_v55 = vpop.eup %7482 }
0x1946   :  { %3242 = vrot.lane.b32.xlu1 %v7479_v48, %s8429_s0  ;;  %v7485_v56 = vpop.eup %7484  ;;  %v3278_v18 = vadd.f32 1.0, %v7483_v55 }
0x1947   :  { %3292 = vrot.lane.b32.xlu0 %v7481_v49, %s8429_s0  ;;  %v7487_v23 = vpop.eup %7486  ;;  %v3231_v57 = vadd.f32 1.0, %v7485_v56 }
0x1948   :  { %v7489_v50 = vpop.eup %7488  ;;  %7490 = vrcp.f32 %v3278_v18  ;;  %v3230_v59 = vadd.f32 1.0, %v7487_v23 }
0x1949   :  { %7492 = vrcp.f32 %v3231_v57  ;;  %v3279_v60 = vadd.f32 1.0, %v7489_v50 }
0x194a   :  { %7494 = vrcp.f32 %v3230_v59 }
0x194b   :  { %7496 = vrcp.f32 %v3279_v60 }
0x1952   :  { %v9271_v25 = vpop.eup %7490 }
0x1953   :  { %v9273_v61 = vpop.eup %7492  ;;  %v3286_v33 = vmul.f32 0.0, %v9271_v25 }
0x1954   :  { %v9278_v41 = vpop.eup %7494  ;;  %v3239_v1 = vmul.f32 0.0, %v9273_v61 }
0x1955   :  { %v9281_v36 = vpop.eup %7496  ;;  %v3238_v4 = vmul.f32 0.0, %v9278_v41 }
0x1956   :  { %v3287_v5 = vmul.f32 0.0, %v9281_v36 }
0x19b4   :  { %v3291_v34 = vpop.permute.xlu1 %3290 }
0x19b5   :  { %v3296_v62 = vmul.f32 %v9271_v25, %v3291_v34  ;;  %v3245_v39 = vpop.permute.xlu0 %3244 }
0x19b6   :  { %v3249_v14 = vmul.f32 %v9273_v61, %v3245_v39 }
0x19b7   :  { %3300 = vrot.lane.b32.xlu1 %v3296_v62, %s8445_s28 }
0x19b8   :  { %v3243_v26 = vpop.permute.xlu1 %3242  ;;  %3254 = vrot.lane.b32.xlu0 %v3249_v14, %s8445_s28 }
0x19b9   :  { %v3248_v45 = vmul.f32 %v9278_v41, %v3243_v26  ;;  %v3293_v22 = vpop.permute.xlu0 %3292 }
0x19ba   :  { %v3297_v63 = vmul.f32 %v9281_v36, %v3293_v22 }
0x19bb   :  { %3252 = vrot.lane.b32.xlu1 %v3248_v45, %s8445_s28 }
0x19bc   :  { %3302 = vrot.lane.b32.xlu0 %v3297_v63, %s8445_s28 }
0x1a29   :  { %v3301_v42 = vpop.permute.xlu1 %3300 }
0x1a2a   :  { %v9289_v43 = vadd.f32 %v3301_v42, %v3286_v33  ;;  %v3255_v2 = vpop.permute.xlu0 %3254 }
0x1a2b   :  { %v9291_v3 = vadd.f32 %v3255_v2, %v3239_v1 }
0x1a2c   :  { %7498 = vtanh.f32 %v9289_v43 }
0x1a2d   :  { %7500 = vtanh.f32 %v9291_v3  ;;  %v3253_v44 = vpop.permute.xlu1 %3252 }
0x1a2e   :  { %v9297_v6 = vadd.f32 %v3253_v44, %v3238_v4  ;;  %v3303_v8 = vpop.permute.xlu0 %3302 }
0x1a2f   :  { %v9299_v31 = vadd.f32 %v3303_v8, %v3287_v5 }
0x1a30   :  { %7502 = vtanh.f32 %v9297_v6 }
0x1a31   :  { %7504 = vtanh.f32 %v9299_v31 }
0x1a36   :  { %v7499_v11 = vpop.eup %7498 }
0x1a37   :  { %v7501_v52 = vpop.eup %7500  ;;  %3312 = vrot.lane.b32.xlu1 %v7499_v11, %s8429_s0 }
0x1a38   :  { %3266 = vrot.lane.b32.xlu0 %v7501_v52, %s8429_s0 }
0x1a3a   :  { %v7503_v13 = vpop.eup %7502 }
0x1a3b   :  { %v7505_v15 = vpop.eup %7504  ;;  %3264 = vrot.lane.b32.xlu1 %v7503_v13, %s8429_s0 }
0x1a3c   :  { %3314 = vrot.lane.b32.xlu0 %v7505_v15, %s8429_s0 }
0x1aa9   :  { %v3313_v19 = vpop.permute.xlu1 %3312 }
0x1aaa   :  { %v3267_v20 = vpop.permute.xlu0 %3266  ;;  %v9369_v32 = vmul.f32 %v9271_v25, %v3313_v19 }
0x1aab   :  { %v9364_v21 = vmul.f32 %v9273_v61, %v3267_v20 }
0x1aac   :  { %v3348_v54 = vrot.slane %v9369_v32, 7 }
0x1aad   :  { %v3342_v38 = vrot.slane %v9364_v21, 7  ;;  %v3265_v24 = vpop.permute.xlu1 %3264 }
0x1aae   :  { %v9373_v29 = vmul.f32 %v9278_v41, %v3265_v24  ;;  %v3315_v48 = vpop.permute.xlu0 %3314 }
0x1aaf   :  { %v9376_v49 = vmul.f32 %v9281_v36, %v3315_v48 }
0x1ab0   :  { %v3344_v53 = vsel %vm3343_vm12, %v3342_v38, %v9373_v29 }
0x1ab1   :  { %v3349_v0 = vrot.slane %v9376_v49, 6  ;;  %3345 = vrot.lane.b32.xlu0 %v3344_v53, %s8445_s28 }
0x1ab3   :  { %v3350_v27 = vsel %vm3343_vm12, %v3349_v0, %v3348_v54 }
0x1ab4   :  { %3351 = vrot.lane.b32.xlu1 %v3350_v27, %s8429_s0 }
0x1b23   :  { %v3346_v55 = vpop.permute.xlu0 %3345 }
0x1b26   :  { %v3352_v56 = vpop.permute.xlu1 %3351 }
0x1b27   :  { %v3354_v18 = vsel %vm1405_vm7, %v3346_v55, %v3352_v56 }
0x1b28   :  { %v3355_v23 = vpack.c.bf16 %v3354_v18, %v3354_v18  ;;  %v3470_v18 = vrot.slane %v9291_v3, 7 }
0x1b2a   :  { %6731 = vmatmul.mubr.msk.bf16.vlgmr.msra.gmra.mrb[76].mxu0 %vm368_vm1, %v3355_v23 }
0x1b2b   :  { %3608 = vmatpush1.bf16.msra.mxu0 %v9311_v10  ;;  %3639 = vmatprep.mubr.bf16.mxu0 %v8447_v51 }
0x1b2c   :  { %3609 = vmatprep.subr.bf16.mxu0 %v9316_v37 }
0x1b2f   :  { %3610 = vmatpush1.bf16.msra.mxu0 %v9325_v30 }
0x1b30   :  { %3611 = vmatprep.subr.bf16.mxu0 %v9332_v12 }
0x1b33   :  { %3612 = vmatpush1.bf16.msra.mxu0 %v9341_v16 }
0x1b34   :  { %3613 = vmatprep.subr.bf16.mxu0 %v9352_v17 }
0x1b37   :  { %3614 = vmatpush1.bf16.msra.mxu0 %v9359_v58 }
0x1b38   :  { %3811 = vmatprep.subr.bf16.mxu0 %v9306_v9 }
0x1bfd   :  { %v3433_v57 = vpop.f32.mrb[76].mxu0 }
0x1bfe   :  { %v3445_v50 = vadd.f32 %v3433_v57, %v9253_v35  ;;  %v3435_v59 = vpop.f32.mrb[77].mxu0  ;;  %v3441_v62 = vrot.slane %v3433_v57, 7 }
0x1bff   :  { %v3447_v60 = vrot.slane %v3435_v59, 2  ;;  %v3437_v25 = vpop.f32.mrb[78].mxu0  ;;  %v3448_v34 = vrot.slane %v3435_v59, 3  ;;  %v3523_v59 = vrot.slane %v9289_v43, 1 }
0x1c00   :  { %7506 = vtanh.f32 %v3445_v50  ;;  %v3438_v61 = vpop.f32.mrb[79].mxu0  ;;  %v3444_v41 = vadd.f32 %v3441_v62, %v9255_v46  ;;  %v6733_v63 = vmul.f32 -1.442695, %v3445_v50  ;;  %v3469_v62 = vrot.slane %v9297_v6, 7 }
0x1c01   :  { %v3451_v39 = vadd.f32 %v3447_v60, %v9251_v28  ;;  %v3452_v14 = vadd.f32 %v3448_v34, %v9258_v47  ;;  %v3524_v60 = vrot.slane %v9299_v31, 1 }
0x1c02   :  { %v6732_v1 = vmul.f32 -1.442695, %v3444_v41 }
0x1c03   :  { %7508 = vtanh.f32 %v3451_v39  ;;  %v6734_v33 = vmul.f32 -1.442695, %v3451_v39  ;;  %v6735_v42 = vmul.f32 -1.442695, %v3452_v14 }
0x1c04   :  { %7510 = vtanh.f32 %v3452_v14 }
0x1c05   :  { %7512 = vtanh.f32 %v3444_v41 }
0x1c06   :  { %7514 = vpow2.f32 %v6733_v63 }
0x1c07   :  { %7516 = vpow2.f32 %v6734_v33 }
0x1c08   :  { %7518 = vpow2.f32 %v6735_v42 }
0x1c09   :  { %7520 = vpow2.f32 %v6732_v1 }
0x1c0a   :  { %v7507_v26 = vpop.eup %7506 }
0x1c0b   :  { %3479 = vrot.lane.b32.xlu0 %v7507_v26, %s8429_s0 }
0x1c0d   :  { %v7509_v36 = vpop.eup %7508 }
0x1c0e   :  { %v7511_v45 = vpop.eup %7510  ;;  %3531 = vrot.lane.b32.xlu1 %v7509_v36, %s8429_s0 }
0x1c0f   :  { %3533 = vrot.lane.b32.xlu0 %v7511_v45, %s8429_s0  ;;  %v7513_v22 = vpop.eup %7512 }
0x1c10   :  { %v7515_v2 = vpop.eup %7514 }
0x1c11   :  { %v3460_v4 = vadd.f32 1.0, %v7515_v2  ;;  %v7517_v44 = vpop.eup %7516 }
0x1c12   :  { %3477 = vrot.lane.b32.xlu1 %v7513_v22, %s8429_s0  ;;  %v7519_v5 = vpop.eup %7518  ;;  %v3513_v8 = vadd.f32 1.0, %v7517_v44 }
0x1c13   :  { %7522 = vrcp.f32 %v3460_v4  ;;  %v7521_v11 = vpop.eup %7520  ;;  %v3514_v52 = vadd.f32 1.0, %v7519_v5 }
0x1c14   :  { %v3459_v13 = vadd.f32 1.0, %v7521_v11  ;;  %7524 = vrcp.f32 %v3513_v8 }
0x1c15   :  { %7526 = vrcp.f32 %v3514_v52 }
0x1c16   :  { %7528 = vrcp.f32 %v3459_v13 }
0x1c1d   :  { %v7523_v15 = vpop.eup %7522 }
0x1c1e   :  { %v7525_v38 = vpop.eup %7524  ;;  %v3474_v23 = vmul.f32 %v7523_v15, %v3470_v18 }
0x1c1f   :  { %v7527_v48 = vpop.eup %7526  ;;  %v3527_v25 = vmul.f32 %v7525_v38, %v3523_v59 }
0x1c20   :  { %v7529_v27 = vpop.eup %7528  ;;  %v3528_v61 = vmul.f32 %v7527_v48, %v3524_v60 }
0x1c21   :  { %v3473_v3 = vmul.f32 %v7529_v27, %v3469_v62 }
0x1c7d   :  { %v3480_v19 = vpop.permute.xlu0 %3479 }
0x1c7e   :  { %v3484_v20 = vmul.f32 %v7523_v15, %v3480_v19 }
0x1c80   :  { %3489 = vrot.lane.b32.xlu0 %v3484_v20, %s8445_s28  ;;  %v3532_v24 = vpop.permute.xlu1 %3531 }
0x1c81   :  { %v3537_v53 = vmul.f32 %v7525_v38, %v3532_v24  ;;  %v3534_v54 = vpop.permute.xlu0 %3533 }
0x1c82   :  { %v3538_v0 = vmul.f32 %v7527_v48, %v3534_v54 }
0x1c83   :  { %3541 = vrot.lane.b32.xlu1 %v3537_v53, %s8445_s28 }
0x1c84   :  { %3543 = vrot.lane.b32.xlu0 %v3538_v0, %s8445_s28  ;;  %v3478_v55 = vpop.permute.xlu1 %3477 }
0x1c85   :  { %v3483_v56 = vmul.f32 %v7529_v27, %v3478_v55 }
0x1c87   :  { %3487 = vrot.lane.b32.xlu1 %v3483_v56, %s8445_s28 }
0x1cf2   :  { %v3490_v57 = vpop.permute.xlu0 %3489 }
0x1cf3   :  { %v9409_v50 = vadd.f32 %v3490_v57, %v3474_v23 }
0x1cf5   :  { %7530 = vtanh.f32 %v9409_v50  ;;  %v3542_v34 = vpop.permute.xlu1 %3541 }
0x1cf6   :  { %v9415_v39 = vadd.f32 %v3542_v34, %v3527_v25  ;;  %v3544_v14 = vpop.permute.xlu0 %3543 }
0x1cf7   :  { %v9417_v41 = vadd.f32 %v3544_v14, %v3528_v61 }
0x1cf8   :  { %7532 = vtanh.f32 %v9415_v39 }
0x1cf9   :  { %7534 = vtanh.f32 %v9417_v41  ;;  %v3488_v26 = vpop.permute.xlu1 %3487 }
0x1cfa   :  { %v9421_v36 = vadd.f32 %v3488_v26, %v3473_v3 }
0x1cfc   :  { %7536 = vtanh.f32 %v9421_v36 }
0x1cff   :  { %v7531_v43 = vpop.eup %7530 }
0x1d00   :  { %3501 = vrot.lane.b32.xlu0 %v7531_v43, %s8429_s0 }
0x1d02   :  { %v7533_v31 = vpop.eup %7532 }
0x1d03   :  { %v7535_v6 = vpop.eup %7534  ;;  %3553 = vrot.lane.b32.xlu1 %v7533_v31, %s8429_s0 }
0x1d04   :  { %3555 = vrot.lane.b32.xlu0 %v7535_v6, %s8429_s0 }
0x1d06   :  { %v7537_v45 = vpop.eup %7536 }
0x1d07   :  { %3499 = vrot.lane.b32.xlu1 %v7537_v45, %s8429_s0 }
0x1d72   :  { %v3502_v22 = vpop.permute.xlu0 %3501 }
0x1d73   :  { %v9428_v33 = vmul.f32 %v7523_v15, %v3502_v22 }
0x1d75   :  { %v3554_v63 = vpop.permute.xlu1 %3553  ;;  %v3583_v8 = vrot.slane %v9428_v33, 7 }
0x1d76   :  { %v9430_v42 = vmul.f32 %v7525_v38, %v3554_v63  ;;  %v3556_v1 = vpop.permute.xlu0 %3555 }
0x1d77   :  { %v9432_v2 = vmul.f32 %v7527_v48, %v3556_v1 }
0x1d78   :  { %v3589_v4 = vrot.slane %v9430_v42, 5 }
0x1d79   :  { %v3590_v44 = vrot.slane %v9432_v2, 4  ;;  %v3500_v5 = vpop.permute.xlu1 %3499 }
0x1d7a   :  { %v9437_v11 = vmul.f32 %v7529_v27, %v3500_v5 }
0x1d7b   :  { %v3591_v52 = vsel %vm3584_vm13, %v3590_v44, %v3589_v4 }
0x1d7c   :  { %3592 = vrot.lane.b32.xlu1 %v3591_v52, %s8429_s0  ;;  %v3585_v13 = vsel %vm3584_vm13, %v3583_v8, %v9437_v11 }
0x1d7d   :  { %3586 = vrot.lane.b32.xlu0 %v3585_v13, %s8445_s28 }
0x1dee   :  { %v3593_v15 = vpop.permute.xlu1 %3592 }
0x1def   :  { %v3587_v19 = vpop.permute.xlu0 %3586 }
0x1df0   :  { %v3595_v20 = vsel %vm1405_vm7, %v3587_v19, %v3593_v15 }
0x1df1   :  { %v3596_v38 = vpack.c.bf16 %v3595_v20, %v3595_v20 }
0x1df3   :  { %v3600_v24 = vshll.u32 %v3596_v38, 16  ;;  %v3598_v48 = vshrl.u32 %v3596_v38, 16 }
0x1df5   :  { %v3602_v53 = vrot.slane %v3600_v24, 1 }
0x1df7   :  { %v3603_v54 = vor.u32 %v3602_v53, %v3598_v48 }
0x1df9   :  { %6736 = vmatmul.mubr.msk.bf16.vlgmr.msra.gmra.mrb[80].mxu0 %vm368_vm1, %v3603_v54 }
0x1dfa   :  { %3812 = vmatpush1.bf16.msra.mxu0 %v9311_v10  ;;  %3843 = vmatprep.mubr.bf16.mxu0 %v8447_v51 }
0x1dfb   :  { %3813 = vmatprep.subr.bf16.mxu0 %v9316_v37 }
0x1dfe   :  { %3814 = vmatpush1.bf16.msra.mxu0 %v9325_v30 }
0x1dff   :  { %3815 = vmatprep.subr.bf16.mxu0 %v9332_v12 }
0x1e02   :  { %3816 = vmatpush1.bf16.msra.mxu0 %v9341_v16 }
0x1e03   :  { %3817 = vmatprep.subr.bf16.mxu0 %v9352_v17 }
0x1e06   :  { %3818 = vmatpush1.bf16.msra.mxu0 %v9359_v58 }
0x1e07   :  { %4222 = vmatprep.subr.bf16.mxu0 %v9306_v9 }
0x1ecc   :  { %v3641_v0 = vpop.f32.mrb[80].mxu0 }
0x1ecd   :  { %v3650_v27 = vrot.slane %v3641_v0, 7  ;;  %v3643_v55 = vpop.f32.mrb[81].mxu0  ;;  %v3649_v60 = vrot.slane %v3641_v0, 6 }
0x1ece   :  { %v3645_v56 = vpop.f32.mrb[82].mxu0  ;;  %v3656_v23 = vrot.slane %v3643_v55, 3  ;;  %v3657_v59 = vrot.slane %v3643_v55, 4 }
0x1ecf   :  { %v3654_v18 = vadd.f32 %v3650_v27, %v9253_v35  ;;  %v3646_v57 = vpop.f32.mrb[83].mxu0  ;;  %v3653_v61 = vadd.f32 %v3649_v60, %v9255_v46  ;;  %v3679_v56 = vrot.slane %v9409_v50, 7  ;;  %v3733_v60 = vrot.slane %v9417_v41, 1 }
0x1ed0   :  { %v3660_v25 = vadd.f32 %v3656_v23, %v9251_v28  ;;  %v3661_v34 = vadd.f32 %v3657_v59, %v9258_v47  ;;  %v3732_v59 = vrot.slane %v9415_v39, 1 }
0x1ed1   :  { %7538 = vtanh.f32 %v3654_v18  ;;  %v6738_v43 = vmul.f32 -1.442695, %v3654_v18  ;;  %v6737_v45 = vmul.f32 -1.442695, %v3653_v61 }
0x1ed2   :  { %7540 = vtanh.f32 %v3660_v25  ;;  %v6739_v31 = vmul.f32 -1.442695, %v3660_v25  ;;  %v6740_v6 = vmul.f32 -1.442695, %v3661_v34 }
0x1ed3   :  { %7542 = vtanh.f32 %v3661_v34 }
0x1ed4   :  { %7544 = vtanh.f32 %v3653_v61 }
0x1ed5   :  { %7546 = vpow2.f32 %v6738_v43 }
0x1ed6   :  { %7548 = vpow2.f32 %v6739_v31 }
0x1ed7   :  { %7550 = vpow2.f32 %v6740_v6 }
0x1ed8   :  { %7552 = vpow2.f32 %v6737_v45 }
0x1edb   :  { %v7539_v62 = vpop.eup %7538 }
0x1edc   :  { %3688 = vrot.lane.b32.xlu0 %v7539_v62, %s8429_s0  ;;  %v7541_v14 = vpop.eup %7540  ;;  %v3678_v62 = vrot.slane %v9421_v36, 7 }
0x1edd   :  { %v7543_v3 = vpop.eup %7542  ;;  %3740 = vrot.lane.b32.xlu1 %v7541_v14, %s8429_s0 }
0x1ede   :  { %v7545_v26 = vpop.eup %7544 }
0x1edf   :  { %v7547_v22 = vpop.eup %7546 }
0x1ee0   :  { %3742 = vrot.lane.b32.xlu0 %v7543_v3, %s8429_s0  ;;  %v3669_v63 = vadd.f32 1.0, %v7547_v22  ;;  %v7549_v1 = vpop.eup %7548 }
0x1ee1   :  { %3686 = vrot.lane.b32.xlu1 %v7545_v26, %s8429_s0  ;;  %v7551_v4 = vpop.eup %7550  ;;  %v3722_v44 = vadd.f32 1.0, %v7549_v1 }
0x1ee2   :  { %7554 = vrcp.f32 %v3669_v63  ;;  %v7553_v5 = vpop.eup %7552  ;;  %v3723_v8 = vadd.f32 1.0, %v7551_v4 }
0x1ee3   :  { %v3668_v52 = vadd.f32 1.0, %v7553_v5  ;;  %7556 = vrcp.f32 %v3722_v44 }
0x1ee4   :  { %7558 = vrcp.f32 %v3723_v8 }
0x1ee5   :  { %7560 = vrcp.f32 %v3668_v52 }
0x1eec   :  { %v7555_v13 = vpop.eup %7554 }
0x1eed   :  { %v7557_v20 = vpop.eup %7556  ;;  %v3683_v18 = vmul.f32 %v7555_v13, %v3679_v56 }
0x1eee   :  { %v7559_v24 = vpop.eup %7558  ;;  %v3736_v25 = vmul.f32 %v7557_v20, %v3732_v59 }
0x1eef   :  { %v7561_v0 = vpop.eup %7560  ;;  %v3737_v61 = vmul.f32 %v7559_v24, %v3733_v60 }
0x1ef0   :  { %v3682_v50 = vmul.f32 %v7561_v0, %v3678_v62 }
0x1f4e   :  { %v3689_v15 = vpop.permute.xlu0 %3688 }
0x1f4f   :  { %v3693_v19 = vmul.f32 %v7555_v13, %v3689_v15  ;;  %v3741_v38 = vpop.permute.xlu1 %3740 }
0x1f50   :  { %v3746_v48 = vmul.f32 %v7557_v20, %v3741_v38 }
0x1f51   :  { %3698 = vrot.lane.b32.xlu0 %v3693_v19, %s8445_s28 }
0x1f52   :  { %v3743_v53 = vpop.permute.xlu0 %3742  ;;  %3750 = vrot.lane.b32.xlu1 %v3746_v48, %s8445_s28 }
0x1f53   :  { %v3747_v54 = vmul.f32 %v7559_v24, %v3743_v53  ;;  %v3687_v27 = vpop.permute.xlu1 %3686 }
0x1f54   :  { %v3692_v55 = vmul.f32 %v7561_v0, %v3687_v27 }
0x1f55   :  { %3752 = vrot.lane.b32.xlu0 %v3747_v54, %s8445_s28 }
0x1f56   :  { %3696 = vrot.lane.b32.xlu1 %v3692_v55, %s8445_s28 }
0x1fc3   :  { %v3699_v23 = vpop.permute.xlu0 %3698 }
0x1fc4   :  { %v9468_v57 = vadd.f32 %v3699_v23, %v3683_v18  ;;  %v3751_v34 = vpop.permute.xlu1 %3750 }
0x1fc5   :  { %v9474_v14 = vadd.f32 %v3751_v34, %v3736_v25 }
0x1fc6   :  { %7562 = vtanh.f32 %v9468_v57 }
0x1fc7   :  { %v3753_v3 = vpop.permute.xlu0 %3752  ;;  %7564 = vtanh.f32 %v9474_v14 }
0x1fc8   :  { %v9476_v26 = vadd.f32 %v3753_v3, %v3737_v61  ;;  %v3697_v39 = vpop.permute.xlu1 %3696 }
0x1fc9   :  { %v9480_v43 = vadd.f32 %v3697_v39, %v3682_v50 }
0x1fca   :  { %7566 = vtanh.f32 %v9476_v26 }
0x1fcb   :  { %7568 = vtanh.f32 %v9480_v43 }
0x1fd0   :  { %v7563_v41 = vpop.eup %7562 }
0x1fd1   :  { %3710 = vrot.lane.b32.xlu0 %v7563_v41, %s8429_s0  ;;  %v7565_v31 = vpop.eup %7564 }
0x1fd2   :  { %3762 = vrot.lane.b32.xlu1 %v7565_v31, %s8429_s0 }
0x1fd4   :  { %v7567_v36 = vpop.eup %7566 }
0x1fd5   :  { %3764 = vrot.lane.b32.xlu0 %v7567_v36, %s8429_s0  ;;  %v7569_v6 = vpop.eup %7568 }
0x1fd6   :  { %3708 = vrot.lane.b32.xlu1 %v7569_v6, %s8429_s0 }
0x2043   :  { %v3711_v45 = vpop.permute.xlu0 %3710 }
0x2044   :  { %v3763_v22 = vpop.permute.xlu1 %3762  ;;  %v9487_v63 = vmul.f32 %v7555_v13, %v3711_v45 }
0x2045   :  { %v9489_v1 = vmul.f32 %v7557_v20, %v3763_v22 }
0x2046   :  { %v3792_v15 = vrot.slane %v9487_v63, 7 }
0x2047   :  { %v3765_v4 = vpop.permute.xlu0 %3764  ;;  %v3798_v5 = vrot.slane %v9489_v1, 3 }
0x2048   :  { %v9491_v44 = vmul.f32 %v7559_v24, %v3765_v4  ;;  %v3709_v52 = vpop.permute.xlu1 %3708 }
0x2049   :  { %v9496_v19 = vmul.f32 %v7561_v0, %v3709_v52 }
0x204a   :  { %v3799_v8 = vrot.slane %v9491_v44, 2 }
0x204b   :  { %v3794_v13 = vsel %vm3793_vm14, %v3792_v15, %v9496_v19 }
0x204c   :  { %v3800_v38 = vsel %vm3793_vm14, %v3799_v8, %v3798_v5  ;;  %3795 = vrot.lane.b32.xlu0 %v3794_v13, %s8445_s28 }
0x204d   :  { %3801 = vrot.lane.b32.xlu1 %v3800_v38, %s8429_s0 }
0x20be   :  { %v3796_v24 = vpop.permute.xlu0 %3795 }
0x20bf   :  { %v3802_v20 = vpop.permute.xlu1 %3801 }
0x20c0   :  { %v3804_v48 = vsel %vm1405_vm7, %v3796_v24, %v3802_v20 }
0x20c1   :  { %v3805_v53 = vpack.c.bf16 %v3804_v48, %v3804_v48 }
0x20c3   :  { %v3807_v54 = vrot.slane %v3805_v53, 1 }
0x20c5   :  { %6741 = vmatmul.mubr.msk.bf16.vlgmr.msra.gmra.mrb[84].mxu0 %vm368_vm1, %v3807_v54 }
0x20c6   :  { %4223 = vmatpush1.bf16.msra.mxu0 %v9311_v10  ;;  %4254 = vmatprep.mubr.bf16.mxu0 %v8447_v51 }
0x20c7   :  { %4224 = vmatprep.subr.bf16.mxu0 %v9316_v37 }
0x20ca   :  { %4225 = vmatpush1.bf16.msra.mxu0 %v9325_v30 }
0x20cb   :  { %4226 = vmatprep.subr.bf16.mxu0 %v9332_v12 }
0x20ce   :  { %4227 = vmatpush1.bf16.msra.mxu0 %v9341_v16 }
0x20cf   :  { %4228 = vmatprep.subr.bf16.mxu0 %v9352_v17 }
0x20d2   :  { %4229 = vmatpush1.bf16.msra.mxu0 %v9359_v58 }
0x20d3   :  { %4631 = vmatprep.subr.bf16.mxu0 %v9306_v9 }
0x2198   :  { %v3845_v0 = vpop.f32.mrb[84].mxu0 }
0x2199   :  { %v3854_v27 = vrot.slane %v3845_v0, 6  ;;  %v3847_v55 = vpop.f32.mrb[85].mxu0  ;;  %v3853_v56 = vrot.slane %v3845_v0, 5 }
0x219a   :  { %v3849_v18 = vpop.f32.mrb[86].mxu0  ;;  %v3860_v59 = vrot.slane %v3847_v55, 4  ;;  %v3861_v34 = vrot.slane %v3847_v55, 5 }
0x219b   :  { %v3858_v23 = vadd.f32 %v3854_v27, %v9253_v35  ;;  %v3850_v60 = vpop.f32.mrb[87].mxu0  ;;  %v3857_v25 = vadd.f32 %v3853_v56, %v9255_v46 }
0x219c   :  { %v3864_v61 = vadd.f32 %v3860_v59, %v9251_v28  ;;  %v3865_v62 = vadd.f32 %v3861_v34, %v9258_v47  ;;  %v3883_v59 = vrot.slane %v9468_v57, 7  ;;  %v3882_v34 = vrot.slane %v9480_v43, 7 }
0x219d   :  { %7570 = vtanh.f32 %v3858_v23  ;;  %v6743_v41 = vmul.f32 -1.442695, %v3858_v23  ;;  %v6742_v31 = vmul.f32 -1.442695, %v3857_v25 }
0x219e   :  { %7572 = vtanh.f32 %v3857_v25  ;;  %v6744_v36 = vmul.f32 -1.442695, %v3864_v61  ;;  %v6745_v6 = vmul.f32 -1.442695, %v3865_v62 }
0x219f   :  { %7574 = vtanh.f32 %v3864_v61 }
0x21a0   :  { %7576 = vtanh.f32 %v3865_v62  ;;  %v3936_v62 = vrot.slane %v9474_v14, 1 }
0x21a1   :  { %7578 = vpow2.f32 %v6743_v41 }
0x21a2   :  { %7580 = vpow2.f32 %v6742_v31  ;;  %v3937_v31 = vrot.slane %v9476_v26, 1 }
0x21a3   :  { %7582 = vpow2.f32 %v6744_v36 }
0x21a4   :  { %7584 = vpow2.f32 %v6745_v6 }
0x21a7   :  { %v7571_v9 = vpop.eup %7570 }
0x21a8   :  { %3892 = vrot.lane.b32.xlu0 %v7571_v9, %s8429_s0  ;;  %v7573_v3 = vpop.eup %7572 }
0x21a9   :  { %v7575_v50 = vpop.eup %7574 }
0x21aa   :  { %3944 = vrot.lane.b32.xlu1 %v7575_v50, %s8429_s0  ;;  %v7577_v39 = vpop.eup %7576 }
0x21ab   :  { %v7579_v45 = vpop.eup %7578 }
0x21ac   :  { %3890 = vrot.lane.b32.xlu0 %v7573_v3, %s8429_s0  ;;  %v3873_v22 = vadd.f32 1.0, %v7579_v45  ;;  %v7581_v4 = vpop.eup %7580 }
0x21ad   :  { %v7583_v5 = vpop.eup %7582  ;;  %v3872_v8 = vadd.f32 1.0, %v7581_v4 }
0x21ae   :  { %3946 = vrot.lane.b32.xlu1 %v7577_v39, %s8429_s0  ;;  %7586 = vrcp.f32 %v3873_v22  ;;  %v3926_v52 = vadd.f32 1.0, %v7583_v5  ;;  %v7585_v15 = vpop.eup %7584 }
0x21af   :  { %7588 = vrcp.f32 %v3872_v8  ;;  %v3927_v38 = vadd.f32 1.0, %v7585_v15 }
0x21b0   :  { %7590 = vrcp.f32 %v3926_v52 }
0x21b1   :  { %7592 = vrcp.f32 %v3927_v38 }
0x21b8   :  { %v7587_v13 = vpop.eup %7586 }
0x21b9   :  { %v7589_v48 = vpop.eup %7588  ;;  %v3887_v60 = vmul.f32 %v7587_v13, %v3883_v59 }
0x21ba   :  { %v7591_v54 = vpop.eup %7590  ;;  %v3886_v9 = vmul.f32 %v7589_v48, %v3882_v34 }
0x21bb   :  { %v7593_v56 = vpop.eup %7592  ;;  %v3940_v3 = vmul.f32 %v7591_v54, %v3936_v62 }
0x21bc   :  { %v3941_v57 = vmul.f32 %v7593_v56, %v3937_v31 }
0x221a   :  { %v3893_v20 = vpop.permute.xlu0 %3892 }
0x221b   :  { %v3897_v24 = vmul.f32 %v7587_v13, %v3893_v20 }
0x221c   :  { %v3945_v0 = vpop.permute.xlu1 %3944 }
0x221d   :  { %3902 = vrot.lane.b32.xlu0 %v3897_v24, %s8445_s28  ;;  %v3950_v55 = vmul.f32 %v7591_v54, %v3945_v0 }
0x221e   :  { %v3891_v53 = vpop.permute.xlu0 %3890 }
0x221f   :  { %v3896_v27 = vmul.f32 %v7589_v48, %v3891_v53  ;;  %3954 = vrot.lane.b32.xlu1 %v3950_v55, %s8445_s28 }
0x2220   :  { %v3947_v18 = vpop.permute.xlu1 %3946 }
0x2221   :  { %3900 = vrot.lane.b32.xlu0 %v3896_v27, %s8445_s28  ;;  %v3951_v23 = vmul.f32 %v7593_v56, %v3947_v18 }
0x2223   :  { %3956 = vrot.lane.b32.xlu1 %v3951_v23, %s8445_s28 }
0x228f   :  { %v3903_v25 = vpop.permute.xlu0 %3902 }
0x2290   :  { %v9528_v61 = vadd.f32 %v3903_v25, %v3887_v60 }
0x2291   :  { %v3955_v39 = vpop.permute.xlu1 %3954 }
0x2292   :  { %7594 = vtanh.f32 %v9528_v61  ;;  %v9535_v36 = vadd.f32 %v3955_v39, %v3940_v3 }
0x2293   :  { %v3901_v50 = vpop.permute.xlu0 %3900 }
0x2294   :  { %v9532_v41 = vadd.f32 %v3901_v50, %v3886_v9 }
0x2295   :  { %v3957_v43 = vpop.permute.xlu1 %3956 }
0x2296   :  { %7596 = vtanh.f32 %v9532_v41  ;;  %v9539_v6 = vadd.f32 %v3957_v43, %v3941_v57 }
0x2297   :  { %7598 = vtanh.f32 %v9535_v36 }
0x2298   :  { %7600 = vtanh.f32 %v9539_v6 }
0x229c   :  { %v7595_v14 = vpop.eup %7594 }
0x229d   :  { %3914 = vrot.lane.b32.xlu0 %v7595_v14, %s8429_s0 }
0x22a0   :  { %v7597_v45 = vpop.eup %7596 }
0x22a1   :  { %v7599_v22 = vpop.eup %7598  ;;  %3912 = vrot.lane.b32.xlu0 %v7597_v45, %s8429_s0 }
0x22a2   :  { %3966 = vrot.lane.b32.xlu1 %v7599_v22, %s8429_s0  ;;  %v7601_v26 = vpop.eup %7600 }
0x22a6   :  { %3968 = vrot.lane.b32.xlu1 %v7601_v26, %s8429_s0 }
0x230f   :  { %v3915_v4 = vpop.permute.xlu0 %3914 }
0x2310   :  { %v9546_v5 = vmul.f32 %v7587_v13, %v3915_v4 }
0x2312   :  { %v3996_v52 = vrot.slane %v9546_v5, 7 }
0x2313   :  { %v3913_v8 = vpop.permute.xlu0 %3912 }
0x2314   :  { %v3967_v15 = vpop.permute.xlu1 %3966  ;;  %v9549_v38 = vmul.f32 %v7589_v48, %v3913_v8 }
0x2315   :  { %v9551_v20 = vmul.f32 %v7591_v54, %v3967_v15 }
0x2316   :  { %v3998_v24 = vsel %vm3997_vm15, %v3996_v52, %v9549_v38 }
0x2317   :  { %3999 = vrot.lane.b32.xlu0 %v3998_v24, %s8445_s28  ;;  %v4002_v0 = vrot.slane %v9551_v20, 1 }
0x2318   :  { %v3969_v53 = vpop.permute.xlu1 %3968 }
0x2319   :  { %v9557_v27 = vmul.f32 %v7593_v56, %v3969_v53 }
0x231b   :  { %v4003_v13 = vsel %vm3997_vm15, %v9557_v27, %v4002_v0 }
0x231c   :  { %4004 = vrot.lane.b32.xlu1 %v4003_v13, %s8429_s0 }
0x2389   :  { %v4000_v55 = vpop.permute.xlu0 %3999 }
0x238e   :  { %v4005_v48 = vpop.permute.xlu1 %4004 }
0x238f   :  { %v4007_v54 = vsel %vm1405_vm7, %v4000_v55, %v4005_v48 }
0x2390   :  { %v4008_v18 = vpack.c.bf16 %v4007_v54, %v4007_v54 }
0x2392   :  { %v4010_v23 = vshrl.u32 %v4008_v18, 16  ;;  %v4013_v59 = vshll.u32 %v4008_v18, 16 }
0x2394   :  { %v4012_v60 = vrot.slane %v4010_v23, 1  ;;  %v4015_v25 = vrot.slane %v4013_v59, 2 }
0x2396   :  { %v4016_v34 = vor.u32 %v4015_v25, %v4012_v60 }
0x2398   :  { %6746 = vmatmul.mubr.msk.bf16.vlgmr.msra.gmra.mrb[84].mxu1 %vm368_vm1, %v4016_v34 }
0x2399   :  { %4431 = vmatpush1.bf16.msra.mxu1 %v9311_v10  ;;  %4462 = vmatprep.mubr.bf16.mxu1 %v8447_v51 }
0x239a   :  { %4432 = vmatprep.subr.bf16.mxu1 %v9316_v37 }
0x239d   :  { %4433 = vmatpush1.bf16.msra.mxu1 %v9325_v30 }
0x239e   :  { %4434 = vmatprep.subr.bf16.mxu1 %v9332_v12 }
0x23a1   :  { %4435 = vmatpush1.bf16.msra.mxu1 %v9341_v16 }
0x23a2   :  { %4436 = vmatprep.subr.bf16.mxu1 %v9352_v17 }
0x23a5   :  { %4437 = vmatpush1.bf16.msra.mxu1 %v9359_v58 }
0x246b   :  { %v4054_v56 = vpop.f32.mrb[84].mxu1 }
0x246c   :  { %v4063_v62 = vrot.slane %v4054_v56, 5  ;;  %v4056_v9 = vpop.f32.mrb[85].mxu1  ;;  %v4062_v37 = vrot.slane %v4054_v56, 4 }
0x246d   :  { %v4058_v3 = vpop.f32.mrb[86].mxu1  ;;  %v4069_v50 = vrot.slane %v4056_v9, 5  ;;  %v4070_v31 = vrot.slane %v4056_v9, 6 }
0x246e   :  { %v4067_v10 = vadd.f32 %v4063_v62, %v9253_v35  ;;  %v4059_v39 = vpop.f32.mrb[87].mxu1  ;;  %v4066_v16 = vadd.f32 %v4062_v37, %v9255_v46  ;;  %v4092_v3 = vrot.slane %v9528_v61, 7  ;;  %v4146_v37 = vrot.slane %v9539_v6, 1 }
0x246f   :  { %v4073_v30 = vadd.f32 %v4069_v50, %v9251_v28  ;;  %v4074_v12 = vadd.f32 %v4070_v31, %v9258_v47  ;;  %v4145_v31 = vrot.slane %v9535_v36, 1 }
0x2470   :  { %7602 = vtanh.f32 %v4067_v10  ;;  %v6748_v14 = vmul.f32 -1.442695, %v4067_v10  ;;  %v6747_v26 = vmul.f32 -1.442695, %v4066_v16 }
0x2471   :  { %7604 = vtanh.f32 %v4073_v30  ;;  %v6749_v45 = vmul.f32 -1.442695, %v4073_v30  ;;  %v6750_v22 = vmul.f32 -1.442695, %v4074_v12 }
0x2472   :  { %7606 = vtanh.f32 %v4074_v12 }
0x2473   :  { %7608 = vtanh.f32 %v4066_v16 }
0x2474   :  { %7610 = vpow2.f32 %v6748_v14 }
0x2475   :  { %7612 = vpow2.f32 %v6749_v45 }
0x2476   :  { %7614 = vpow2.f32 %v6750_v22 }
0x2477   :  { %7616 = vpow2.f32 %v6747_v26 }
0x247a   :  { %v7603_v17 = vpop.eup %7602 }
0x247b   :  { %4101 = vrot.lane.b32.xlu0 %v7603_v17, %s8429_s0  ;;  %v7605_v58 = vpop.eup %7604  ;;  %v4091_v17 = vrot.slane %v9532_v41, 7 }
0x247c   :  { %v7607_v57 = vpop.eup %7606  ;;  %4153 = vrot.lane.b32.xlu1 %v7605_v58, %s8429_s0 }
0x247d   :  { %v7609_v43 = vpop.eup %7608 }
0x247e   :  { %v7611_v4 = vpop.eup %7610 }
0x247f   :  { %4155 = vrot.lane.b32.xlu0 %v7607_v57, %s8429_s0  ;;  %v4082_v8 = vadd.f32 1.0, %v7611_v4  ;;  %v7613_v52 = vpop.eup %7612 }
0x2480   :  { %4099 = vrot.lane.b32.xlu1 %v7609_v43, %s8429_s0  ;;  %v7615_v15 = vpop.eup %7614  ;;  %v4135_v24 = vadd.f32 1.0, %v7613_v52 }
0x2481   :  { %7618 = vrcp.f32 %v4082_v8  ;;  %v7617_v53 = vpop.eup %7616  ;;  %v4136_v0 = vadd.f32 1.0, %v7615_v15 }
0x2482   :  { %v4081_v13 = vadd.f32 1.0, %v7617_v53  ;;  %7620 = vrcp.f32 %v4135_v24 }
0x2483   :  { %7622 = vrcp.f32 %v4136_v0 }
0x2484   :  { %7624 = vrcp.f32 %v4081_v13 }
0x248b   :  { %v7619_v55 = vpop.eup %7618 }
0x248c   :  { %v7621_v18 = vpop.eup %7620  ;;  %v4096_v10 = vmul.f32 %v7619_v55, %v4092_v3  ;;  %v7989_v3 = vld [vmem:[%s10522_s5 + $0x24] ss:$8 sps:$4 sm:$0xff]  }
0x248d   :  { %v7623_v59 = vpop.eup %7622  ;;  %v4149_v30 = vmul.f32 %v7621_v18, %v4145_v31  ;;  %v7992_v31 = vld [vmem:[%s10522_s5 + $0x30] ss:$8 sps:$4 sm:$0xff]  }
0x248e   :  { %v7625_v56 = vpop.eup %7624  ;;  %v4150_v16 = vmul.f32 %v7623_v59, %v4146_v37 }
0x248f   :  { %v4095_v61 = vmul.f32 %v7625_v56, %v4091_v17 }
0x24ed   :  { %v4102_v48 = vpop.permute.xlu0 %4101 }
0x24ee   :  { %v4106_v54 = vmul.f32 %v7619_v55, %v4102_v48  ;;  %v4154_v23 = vpop.permute.xlu1 %4153 }
0x24ef   :  { %v4159_v60 = vmul.f32 %v7621_v18, %v4154_v23 }
0x24f0   :  { %4111 = vrot.lane.b32.xlu0 %v4106_v54, %s8445_s28 }
0x24f1   :  { %v4156_v25 = vpop.permute.xlu0 %4155  ;;  %4163 = vrot.lane.b32.xlu1 %v4159_v60, %s8445_s28 }
0x24f2   :  { %v4160_v34 = vmul.f32 %v7623_v59, %v4156_v25  ;;  %v4100_v62 = vpop.permute.xlu1 %4099 }
0x24f3   :  { %v4105_v9 = vmul.f32 %v7625_v56, %v4100_v62  ;;  %v7987_v62 = vld [vmem:[%s10522_s5 + $0x14] ss:$8 sps:$4 sm:$0xff]  }
0x24f4   :  { %4165 = vrot.lane.b32.xlu0 %v4160_v34, %s8445_s28 }
0x24f5   :  { %4109 = vrot.lane.b32.xlu1 %v4105_v9, %s8445_s28  ;;  %v7988_v9 = vld [vmem:[%s10522_s5 + $0x10] ss:$8 sps:$4 sm:$0xff]  }
0x2562   :  { %v4112_v50 = vpop.permute.xlu0 %4111 }
0x2563   :  { %v9585_v39 = vadd.f32 %v4112_v50, %v4096_v10  ;;  %v4164_v12 = vpop.permute.xlu1 %4163  ;;  %v7990_v10 = vld [vmem:[%s10522_s5 + $0x20] ss:$8 sps:$4 sm:$0xff]   ;;  %v7991_v50 = vld [vmem:[%s10522_s5 + $0x34] ss:$8 sps:$4 sm:$0xff]  }
0x2564   :  { %v9591_v58 = vadd.f32 %v4164_v12, %v4149_v30 }
0x2565   :  { %7626 = vtanh.f32 %v9585_v39 }
0x2566   :  { %v4166_v57 = vpop.permute.xlu0 %4165  ;;  %7628 = vtanh.f32 %v9591_v58 }
0x2567   :  { %v9593_v43 = vadd.f32 %v4166_v57, %v4150_v16  ;;  %v4110_v36 = vpop.permute.xlu1 %4109 }
0x2568   :  { %v9597_v14 = vadd.f32 %v4110_v36, %v4095_v61 }
0x2569   :  { %7630 = vtanh.f32 %v9593_v43 }
0x256a   :  { %7632 = vtanh.f32 %v9597_v14 }
0x256f   :  { %v7627_v6 = vpop.eup %7626 }
0x2570   :  { %4123 = vrot.lane.b32.xlu0 %v7627_v6, %s8429_s0  ;;  %v7629_v45 = vpop.eup %7628 }
0x2571   :  { %4175 = vrot.lane.b32.xlu1 %v7629_v45, %s8429_s0 }
0x2573   :  { %v7631_v41 = vpop.eup %7630 }
0x2574   :  { %4177 = vrot.lane.b32.xlu0 %v7631_v41, %s8429_s0  ;;  %v7633_v22 = vpop.eup %7632 }
0x2575   :  { %4121 = vrot.lane.b32.xlu1 %v7633_v22, %s8429_s0 }
0x25e2   :  { %v4124_v26 = vpop.permute.xlu0 %4123 }
0x25e3   :  { %v4176_v4 = vpop.permute.xlu1 %4175  ;;  %v9604_v8 = vmul.f32 %v7619_v55, %v4124_v26 }
0x25e4   :  { %v9606_v52 = vmul.f32 %v7621_v18, %v4176_v4 }
0x25e5   :  { %v4203_v48 = vrot.slane %v9604_v8, 7 }
0x25e6   :  { %v4178_v15 = vpop.permute.xlu0 %4177  ;;  %v4209_v53 = vrot.slane %v9606_v52, 7 }
0x25e7   :  { %v9608_v24 = vmul.f32 %v7623_v59, %v4178_v15  ;;  %v4122_v13 = vpop.permute.xlu1 %4121 }
0x25e8   :  { %v9613_v54 = vmul.f32 %v7625_v56, %v4122_v13  ;;  %v7986_v56 = vld [vmem:[%s10522_s5] ss:$8 sps:$4 sm:$0xff]  }
0x25e9   :  { %v4210_v0 = vrot.slane %v9608_v24, 6 }
0x25ea   :  { %v4205_v55 = vsel %vm4204_vm0, %v4203_v48, %v9613_v54 }
0x25eb   :  { %v4211_v23 = vsel %vm4204_vm0, %v4210_v0, %v4209_v53  ;;  %4206 = vrot.lane.b32.xlu0 %v4205_v55, %s8445_s28 }
0x25ec   :  { %4212 = vrot.lane.b32.xlu1 %v4211_v23, %s8429_s0 }
0x265d   :  { %v4207_v59 = vpop.permute.xlu0 %4206 }
0x265e   :  { %v4213_v18 = vpop.permute.xlu1 %4212 }
0x265f   :  { %v4215_v60 = vsel %vm1405_vm7, %v4207_v59, %v4213_v18 }
0x2660   :  { %v4216_v25 = vpack.c.bf16 %v4215_v60, %v4215_v60 }
0x2662   :  { %v4218_v34 = vrot.slane %v4216_v25, 2 }
0x2664   :  { %6751 = vmatmul.mubr.msk.bf16.vlgmr.msra.gmra.mrb[88].mxu0 %vm368_vm1, %v4218_v34 }
0x2665   :  { %4632 = vmatpush1.bf16.msra.mxu0 %v7986_v56  ;;  %4663 = vmatprep.mubr.bf16.mxu0 %v8447_v51 }
0x2666   :  { %4633 = vmatprep.subr.bf16.mxu0 %v7987_v62 }
0x2669   :  { %4634 = vmatpush1.bf16.msra.mxu0 %v7988_v9 }
0x266a   :  { %4635 = vmatprep.subr.bf16.mxu0 %v7989_v3 }
0x266d   :  { %4636 = vmatpush1.bf16.msra.mxu0 %v7990_v10 }
0x266e   :  { %4637 = vmatprep.subr.bf16.mxu0 %v7991_v50 }
0x2671   :  { %4638 = vmatpush1.bf16.msra.mxu0 %v7992_v31 }
0x2737   :  { %v4256_v37 = vpop.f32.mrb[88].mxu0 }
0x2738   :  { %v4265_v30 = vrot.slane %v4256_v37, 4  ;;  %v4258_v12 = vpop.f32.mrb[89].mxu0  ;;  %v4264_v6 = vrot.slane %v4256_v37, 3 }
0x2739   :  { %v4260_v16 = vpop.f32.mrb[90].mxu0  ;;  %v4271_v57 = vrot.slane %v4258_v12, 6  ;;  %v4272_v36 = vrot.slane %v4258_v12, 7 }
0x273a   :  { %v4269_v17 = vadd.f32 %v4265_v30, %v9253_v35  ;;  %v4261_v61 = vpop.f32.mrb[91].mxu0  ;;  %v4268_v22 = vadd.f32 %v4264_v6, %v9255_v46 }
0x273b   :  { %v4275_v45 = vadd.f32 %v4271_v57, %v9251_v28  ;;  %v4276_v41 = vadd.f32 %v4272_v36, %v9258_v47  ;;  %v4294_v36 = vrot.slane %v9585_v39, 7 }
0x273c   :  { %7634 = vtanh.f32 %v4269_v17  ;;  %v6753_v0 = vmul.f32 -1.442695, %v4269_v17  ;;  %v6752_v23 = vmul.f32 -1.442695, %v4268_v22 }
0x273d   :  { %7636 = vtanh.f32 %v4275_v45  ;;  %v6754_v13 = vmul.f32 -1.442695, %v4275_v45  ;;  %v6755_v48 = vmul.f32 -1.442695, %v4276_v41 }
0x273e   :  { %7638 = vtanh.f32 %v4276_v41 }
0x273f   :  { %7640 = vtanh.f32 %v4268_v22  ;;  %v4347_v22 = vrot.slane %v9591_v58, 1 }
0x2740   :  { %7642 = vpow2.f32 %v6753_v0  ;;  %v4293_v0 = vrot.slane %v9597_v14, 7 }
0x2741   :  { %7644 = vpow2.f32 %v6754_v13 }
0x2742   :  { %7646 = vpow2.f32 %v6755_v48 }
0x2743   :  { %7648 = vpow2.f32 %v6752_v23 }
0x2746   :  { %v7635_v26 = vpop.eup %7634 }
0x2747   :  { %4303 = vrot.lane.b32.xlu0 %v7635_v26, %s8429_s0  ;;  %v7637_v4 = vpop.eup %7636  ;;  %v4348_v26 = vrot.slane %v9593_v43, 1 }
0x2748   :  { %v7639_v15 = vpop.eup %7638  ;;  %4355 = vrot.lane.b32.xlu1 %v7637_v4, %s8429_s0 }
0x2749   :  { %v7641_v53 = vpop.eup %7640 }
0x274a   :  { %v7643_v55 = vpop.eup %7642 }
0x274b   :  { %4357 = vrot.lane.b32.xlu0 %v7639_v15, %s8429_s0  ;;  %v4284_v18 = vadd.f32 1.0, %v7643_v55  ;;  %v7645_v59 = vpop.eup %7644 }
0x274c   :  { %4301 = vrot.lane.b32.xlu1 %v7641_v53, %s8429_s0  ;;  %v7647_v60 = vpop.eup %7646  ;;  %v4337_v25 = vadd.f32 1.0, %v7645_v59 }
0x274d   :  { %7650 = vrcp.f32 %v4284_v18  ;;  %v7649_v34 = vpop.eup %7648  ;;  %v4338_v56 = vadd.f32 1.0, %v7647_v60 }
0x274e   :  { %v4283_v62 = vadd.f32 1.0, %v7649_v34  ;;  %7652 = vrcp.f32 %v4337_v25 }
0x274f   :  { %7654 = vrcp.f32 %v4338_v56 }
0x2750   :  { %7656 = vrcp.f32 %v4283_v62 }
0x2757   :  { %v7651_v9 = vpop.eup %7650 }
0x2758   :  { %v7653_v50 = vpop.eup %7652  ;;  %v4298_v6 = vmul.f32 %v7651_v9, %v4294_v36 }
0x2759   :  { %v7655_v37 = vpop.eup %7654  ;;  %v4351_v4 = vmul.f32 %v7653_v50, %v4347_v22 }
0x275a   :  { %v7657_v17 = vpop.eup %7656  ;;  %v4352_v53 = vmul.f32 %v7655_v37, %v4348_v26 }
0x275b   :  { %v4297_v39 = vmul.f32 %v7657_v17, %v4293_v0 }
0x27b9   :  { %v4304_v3 = vpop.permute.xlu0 %4303 }
0x27ba   :  { %v4308_v10 = vmul.f32 %v7651_v9, %v4304_v3  ;;  %v4356_v31 = vpop.permute.xlu1 %4355 }
0x27bb   :  { %v4361_v30 = vmul.f32 %v7653_v50, %v4356_v31 }
0x27bc   :  { %4313 = vrot.lane.b32.xlu0 %v4308_v10, %s8445_s28 }
0x27bd   :  { %v4358_v12 = vpop.permute.xlu0 %4357  ;;  %4365 = vrot.lane.b32.xlu1 %v4361_v30, %s8445_s28 }
0x27be   :  { %v4362_v16 = vmul.f32 %v7655_v37, %v4358_v12  ;;  %v4302_v57 = vpop.permute.xlu1 %4301 }
0x27bf   :  { %v4307_v61 = vmul.f32 %v7657_v17, %v4302_v57 }
0x27c0   :  { %4367 = vrot.lane.b32.xlu0 %v4362_v16, %s8445_s28 }
0x27c1   :  { %4311 = vrot.lane.b32.xlu1 %v4307_v61, %s8445_s28 }
0x282e   :  { %v4314_v45 = vpop.permute.xlu0 %4313 }
0x282f   :  { %v9657_v41 = vadd.f32 %v4314_v45, %v4298_v6  ;;  %v4366_v15 = vpop.permute.xlu1 %4365 }
0x2830   :  { %v9663_v13 = vadd.f32 %v4366_v15, %v4351_v4 }
0x2831   :  { %7658 = vtanh.f32 %v9657_v41 }
0x2832   :  { %v4368_v48 = vpop.permute.xlu0 %4367  ;;  %7660 = vtanh.f32 %v9663_v13 }
0x2833   :  { %v9665_v23 = vadd.f32 %v4368_v48, %v4352_v53  ;;  %v4312_v58 = vpop.permute.xlu1 %4311 }
0x2834   :  { %v9669_v55 = vadd.f32 %v4312_v58, %v4297_v39 }
0x2835   :  { %7662 = vtanh.f32 %v9665_v23 }
0x2836   :  { %7664 = vtanh.f32 %v9669_v55 }
0x283b   :  { %v7659_v43 = vpop.eup %7658 }
0x283c   :  { %4325 = vrot.lane.b32.xlu0 %v7659_v43, %s8429_s0  ;;  %v7661_v18 = vpop.eup %7660 }
0x283d   :  { %4377 = vrot.lane.b32.xlu1 %v7661_v18, %s8429_s0 }
0x283f   :  { %v7663_v14 = vpop.eup %7662 }
0x2840   :  { %4379 = vrot.lane.b32.xlu0 %v7663_v14, %s8429_s0  ;;  %v7665_v59 = vpop.eup %7664 }
0x2841   :  { %4323 = vrot.lane.b32.xlu1 %v7665_v59, %s8429_s0 }
0x28ae   :  { %v4326_v60 = vpop.permute.xlu0 %4325 }
0x28af   :  { %v4378_v25 = vpop.permute.xlu1 %4377  ;;  %v9676_v34 = vmul.f32 %v7651_v9, %v4326_v60 }
0x28b0   :  { %v9678_v56 = vmul.f32 %v7653_v50, %v4378_v25 }
0x28b1   :  { %v4405_v12 = vrot.slane %v9676_v34, 7 }
0x28b2   :  { %v4380_v62 = vpop.permute.xlu0 %4379  ;;  %v4411_v10 = vrot.slane %v9678_v56, 5 }
0x28b3   :  { %v9680_v3 = vmul.f32 %v7655_v37, %v4380_v62  ;;  %v4324_v30 = vpop.permute.xlu1 %4323 }
0x28b4   :  { %v9685_v16 = vmul.f32 %v7657_v17, %v4324_v30 }
0x28b5   :  { %v4412_v31 = vrot.slane %v9680_v3, 4 }
0x28b6   :  { %v4407_v9 = vsel %vm4406_vm2, %v4405_v12, %v9685_v16 }
0x28b7   :  { %v4413_v57 = vsel %vm4406_vm2, %v4412_v31, %v4411_v10  ;;  %4408 = vrot.lane.b32.xlu0 %v4407_v9, %s8445_s28 }
0x28b8   :  { %4414 = vrot.lane.b32.xlu1 %v4413_v57, %s8429_s0 }
0x2929   :  { %v4409_v37 = vpop.permute.xlu0 %4408 }
0x292a   :  { %v4415_v50 = vpop.permute.xlu1 %4414 }
0x292b   :  { %v4417_v61 = vsel %vm1405_vm7, %v4409_v37, %v4415_v50 }
0x292c   :  { %v4418_v36 = vpack.c.bf16 %v4417_v61, %v4417_v61 }
0x292e   :  { %v4420_v6 = vshrl.u32 %v4418_v36, 16  ;;  %v4423_v45 = vshll.u32 %v4418_v36, 16 }
0x2930   :  { %v4422_v22 = vrot.slane %v4420_v6, 2  ;;  %v4425_v26 = vrot.slane %v4423_v45, 3 }
0x2932   :  { %v4426_v17 = vor.u32 %v4425_v26, %v4422_v22 }
0x2934   :  { %6756 = vmatmul.mubr.msk.bf16.vlgmr.msra.gmra.mrb[88].mxu1 %vm368_vm1, %v4426_v17 }
0x2935   :  { %4882 = vmatprep.mubr.bf16.mxu1 %v8447_v51 }
0x2a07   :  { %v4464_v4 = vpop.f32.mrb[88].mxu1 }
0x2a08   :  { %v4473_v15 = vrot.slane %v4464_v4, 3  ;;  %v4466_v53 = vpop.f32.mrb[89].mxu1  ;;  %v4472_v18 = vrot.slane %v4464_v4, 2 }
0x2a09   :  { %v4468_v0 = vpop.f32.mrb[90].mxu1  ;;  %v4479_v39 = vrot.slane %v4466_v53, 7  ;;  %v4483_v43 = vadd.f32 %v4466_v53, %v9258_v47 }
0x2a0a   :  { %v4477_v48 = vadd.f32 %v4473_v15, %v9253_v35  ;;  %v4469_v58 = vpop.f32.mrb[91].mxu1  ;;  %v4476_v59 = vadd.f32 %v4472_v18, %v9255_v46 }
0x2a0b   :  { %v4482_v14 = vadd.f32 %v4479_v39, %v9251_v28  ;;  %v6760_v30 = vmul.f32 -1.442695, %v4483_v43 }
0x2a0c   :  { %7666 = vtanh.f32 %v4477_v48  ;;  %v6758_v31 = vmul.f32 -1.442695, %v4477_v48  ;;  %v6757_v57 = vmul.f32 -1.442695, %v4476_v59 }
0x2a0d   :  { %7668 = vtanh.f32 %v4483_v43  ;;  %v6759_v12 = vmul.f32 -1.442695, %v4482_v14 }
0x2a0e   :  { %7670 = vtanh.f32 %v4482_v14 }
0x2a0f   :  { %7672 = vtanh.f32 %v4476_v59  ;;  %v4501_v59 = vrot.slane %v9657_v41, 7 }
0x2a10   :  { %7674 = vpow2.f32 %v6758_v31  ;;  %v4554_v31 = vrot.slane %v9663_v13, 1 }
0x2a11   :  { %7676 = vpow2.f32 %v6760_v30 }
0x2a12   :  { %7678 = vpow2.f32 %v6759_v12 }
0x2a13   :  { %7680 = vpow2.f32 %v6757_v57 }
0x2a16   :  { %v7667_v60 = vpop.eup %7666 }
0x2a17   :  { %4510 = vrot.lane.b32.xlu0 %v7667_v60, %s8429_s0  ;;  %v7669_v25 = vpop.eup %7668 }
0x2a18   :  { %v7671_v62 = vpop.eup %7670 }
0x2a19   :  { %4562 = vrot.lane.b32.xlu1 %v7671_v62, %s8429_s0  ;;  %v7673_v10 = vpop.eup %7672  ;;  %v4555_v62 = vrot.slane %v9665_v23, 1 }
0x2a1a   :  { %v7675_v9 = vpop.eup %7674 }
0x2a1b   :  { %4564 = vrot.lane.b32.xlu0 %v7669_v25, %s8429_s0  ;;  %v4491_v50 = vadd.f32 1.0, %v7675_v9  ;;  %v7677_v37 = vpop.eup %7676 }
0x2a1c   :  { %v7679_v61 = vpop.eup %7678  ;;  %v4545_v36 = vadd.f32 1.0, %v7677_v37  ;;  %v4500_v37 = vrot.slane %v9669_v55, 7 }
0x2a1d   :  { %4508 = vrot.lane.b32.xlu1 %v7673_v10, %s8429_s0  ;;  %7682 = vrcp.f32 %v4491_v50  ;;  %v4544_v6 = vadd.f32 1.0, %v7679_v61  ;;  %v7681_v45 = vpop.eup %7680 }
0x2a1e   :  { %7684 = vrcp.f32 %v4545_v36  ;;  %v4490_v22 = vadd.f32 1.0, %v7681_v45 }
0x2a1f   :  { %7686 = vrcp.f32 %v4544_v6 }
0x2a20   :  { %7688 = vrcp.f32 %v4490_v22 }
0x2a27   :  { %v7683_v26 = vpop.eup %7682 }
0x2a28   :  { %v7685_v15 = vpop.eup %7684  ;;  %v4505_v60 = vmul.f32 %v7683_v26, %v4501_v59 }
0x2a29   :  { %v7687_v0 = vpop.eup %7686  ;;  %v4559_v30 = vmul.f32 %v7685_v15, %v4555_v62 }
0x2a2a   :  { %v7689_v43 = vpop.eup %7688  ;;  %v4558_v12 = vmul.f32 %v7687_v0, %v4554_v31 }
0x2a2b   :  { %v4504_v41 = vmul.f32 %v7689_v43, %v4500_v37 }
0x2a89   :  { %v4511_v17 = vpop.permute.xlu0 %4510 }
0x2a8a   :  { %v4515_v4 = vmul.f32 %v7683_v26, %v4511_v17 }
0x2a8b   :  { %v4563_v48 = vpop.permute.xlu1 %4562 }
0x2a8c   :  { %4520 = vrot.lane.b32.xlu0 %v4515_v4, %s8445_s28  ;;  %v4568_v58 = vmul.f32 %v7687_v0, %v4563_v48 }
0x2a8d   :  { %v4565_v53 = vpop.permute.xlu0 %4564 }
0x2a8e   :  { %v4569_v39 = vmul.f32 %v7685_v15, %v4565_v53  ;;  %4572 = vrot.lane.b32.xlu1 %v4568_v58, %s8445_s28 }
0x2a8f   :  { %v4509_v18 = vpop.permute.xlu1 %4508 }
0x2a90   :  { %4574 = vrot.lane.b32.xlu0 %v4569_v39, %s8445_s28  ;;  %v4514_v14 = vmul.f32 %v7689_v43, %v4509_v18 }
0x2a92   :  { %4518 = vrot.lane.b32.xlu1 %v4514_v14, %s8445_s28 }
0x2afe   :  { %v4521_v25 = vpop.permute.xlu0 %4520 }
0x2aff   :  { %v9709_v10 = vadd.f32 %v4521_v25, %v4505_v60 }
0x2b00   :  { %v4573_v9 = vpop.permute.xlu1 %4572 }
0x2b01   :  { %7690 = vtanh.f32 %v9709_v10  ;;  %v9716_v61 = vadd.f32 %v4573_v9, %v4558_v12 }
0x2b02   :  { %v4575_v57 = vpop.permute.xlu0 %4574 }
0x2b03   :  { %v9713_v50 = vadd.f32 %v4575_v57, %v4559_v30 }
0x2b04   :  { %v4519_v23 = vpop.permute.xlu1 %4518 }
0x2b05   :  { %7692 = vtanh.f32 %v9713_v50  ;;  %v9720_v36 = vadd.f32 %v4519_v23, %v4504_v41 }
0x2b06   :  { %7694 = vtanh.f32 %v9716_v61 }
0x2b07   :  { %7696 = vtanh.f32 %v9720_v36 }
0x2b0b   :  { %v7691_v13 = vpop.eup %7690 }
0x2b0c   :  { %4532 = vrot.lane.b32.xlu0 %v7691_v13, %s8429_s0 }
0x2b0f   :  { %v7693_v6 = vpop.eup %7692 }
0x2b10   :  { %v7695_v45 = vpop.eup %7694  ;;  %4586 = vrot.lane.b32.xlu0 %v7693_v6, %s8429_s0 }
0x2b11   :  { %4584 = vrot.lane.b32.xlu1 %v7695_v45, %s8429_s0  ;;  %v7697_v55 = vpop.eup %7696 }
0x2b15   :  { %4530 = vrot.lane.b32.xlu1 %v7697_v55, %s8429_s0 }
0x2b7e   :  { %v4533_v22 = vpop.permute.xlu0 %4532 }
0x2b7f   :  { %v9729_v48 = vmul.f32 %v7683_v26, %v4533_v22 }
0x2b81   :  { %v4612_v59 = vrot.slane %v9729_v48, 7 }
0x2b82   :  { %v4587_v17 = vpop.permute.xlu0 %4586 }
0x2b83   :  { %v4585_v4 = vpop.permute.xlu1 %4584  ;;  %v9727_v53 = vmul.f32 %v7685_v15, %v4587_v17 }
0x2b84   :  { %v9731_v39 = vmul.f32 %v7687_v0, %v4585_v4 }
0x2b85   :  { %v4619_v58 = vrot.slane %v9727_v53, 2 }
0x2b86   :  { %v4618_v18 = vrot.slane %v9731_v39, 3 }
0x2b87   :  { %v4531_v14 = vpop.permute.xlu1 %4530 }
0x2b88   :  { %v9736_v60 = vmul.f32 %v7689_v43, %v4531_v14  ;;  %v4620_v25 = vsel %vm10508_vm3, %v4619_v58, %v4618_v18 }
0x2b89   :  { %4621 = vrot.lane.b32.xlu1 %v4620_v25, %s8429_s0 }
0x2b8a   :  { %v4614_v26 = vsel %vm10508_vm3, %v4612_v59, %v9736_v60  ;;  %vm3328_vm3 = vcmask 253952  }
0x2b8b   :  { %4615 = vrot.lane.b32.xlu0 %v4614_v26, %s8445_s28 }
0x2bfb   :  { %v4622_v15 = vpop.permute.xlu1 %4621 }
0x2bfd   :  { %v4616_v0 = vpop.permute.xlu0 %4615 }
0x2bfe   :  { %v4624_v62 = vsel %vm1405_vm7, %v4616_v0, %v4622_v15 }
0x2bff   :  { %v4625_v31 = vpack.c.bf16 %v4624_v62, %v4624_v62 }
0x2c01   :  { %v4627_v30 = vrot.slane %v4625_v31, 3 }
0x2c03   :  { %6761 = vmatmul.mubr.msk.bf16.vlgmr.msra.gmra.mrb[92].mxu0 %vm368_vm1, %v4627_v30 }
0x2c04   :  { %5187 = vmatprep.mubr.bf16.mxu0 %v8447_v51 }
0x2cd6   :  { %v4665_v43 = vpop.f32.mrb[92].mxu0 }
0x2cd7   :  { %v4673_v12 = vrot.slane %v4665_v43, 1  ;;  %v4667_v57 = vpop.f32.mrb[93].mxu0  ;;  %v4674_v6 = vrot.slane %v4665_v43, 2 }
0x2cd8   :  { %v4683_v9 = vadd.f32 %v4667_v57, %v9251_v28  ;;  %v4669_v37 = vpop.f32.mrb[94].mxu0  ;;  %v4680_v41 = vrot.slane %v4667_v57, 1 }
0x2cd9   :  { %v4670_v23 = vpop.f32.mrb[95].mxu0  ;;  %v4677_v13 = vadd.f32 %v4673_v12, %v9255_v46  ;;  %v4678_v55 = vadd.f32 %v4674_v6, %v9253_v35 }
0x2cda   :  { %7698 = vtanh.f32 %v4683_v9  ;;  %v4684_v45 = vadd.f32 %v4680_v41, %v9258_v47  ;;  %v6764_v46 = vmul.f32 -1.442695, %v4683_v9 }
0x2cdb   :  { %7700 = vtanh.f32 %v4677_v13  ;;  %v6762_v58 = vmul.f32 -1.442695, %v4677_v13  ;;  %v6763_v35 = vmul.f32 -1.442695, %v4678_v55 }
0x2cdc   :  { %7702 = vtanh.f32 %v4684_v45  ;;  %v6765_v47 = vmul.f32 -1.442695, %v4684_v45 }
0x2cdd   :  { %7704 = vtanh.f32 %v4678_v55  ;;  %v4755_v55 = vrot.slane %v9716_v61, 1 }
0x2cde   :  { %7706 = vpow2.f32 %v6764_v46 }
0x2cdf   :  { %7708 = vpow2.f32 %v6762_v58  ;;  %v4756_v58 = vrot.slane %v9713_v50, 1 }
0x2ce0   :  { %7710 = vpow2.f32 %v6765_v47 }
0x2ce1   :  { %7712 = vpow2.f32 %v6763_v35 }
0x2ce4   :  { %v7699_v22 = vpop.eup %7698 }
0x2ce5   :  { %4763 = vrot.lane.b32.xlu0 %v7699_v22, %s8429_s0  ;;  %v7701_v17 = vpop.eup %7700 }
0x2ce6   :  { %v7703_v28 = vpop.eup %7702 }
0x2ce7   :  { %4765 = vrot.lane.b32.xlu1 %v7703_v28, %s8429_s0  ;;  %v7705_v4 = vpop.eup %7704  ;;  %v4701_v28 = vrot.slane %v9720_v36, 7 }
0x2ce8   :  { %v7707_v18 = vpop.eup %7706 }
0x2ce9   :  { %4709 = vrot.lane.b32.xlu0 %v7701_v17, %s8429_s0  ;;  %v4745_v14 = vadd.f32 1.0, %v7707_v18  ;;  %v7709_v59 = vpop.eup %7708 }
0x2cea   :  { %v7711_v25 = vpop.eup %7710  ;;  %v4691_v26 = vadd.f32 1.0, %v7709_v59  ;;  %v4702_v59 = vrot.slane %v9709_v10, 7 }
0x2ceb   :  { %4711 = vrot.lane.b32.xlu1 %v7705_v4, %s8429_s0  ;;  %7714 = vrcp.f32 %v4745_v14  ;;  %v4746_v15 = vadd.f32 1.0, %v7711_v25  ;;  %v7713_v0 = vpop.eup %7712 }
0x2cec   :  { %7716 = vrcp.f32 %v4691_v26  ;;  %v4692_v62 = vadd.f32 1.0, %v7713_v0 }
0x2ced   :  { %7718 = vrcp.f32 %v4746_v15 }
0x2cee   :  { %7720 = vrcp.f32 %v4692_v62 }
0x2cf5   :  { %v9754_v31 = vpop.eup %7714 }
0x2cf6   :  { %v9758_v12 = vpop.eup %7716  ;;  %v4759_v22 = vmul.f32 %v9754_v31, %v4755_v55 }
0x2cf7   :  { %v9761_v37 = vpop.eup %7718  ;;  %v4705_v46 = vmul.f32 %v9758_v12, %v4701_v28 }
0x2cf8   :  { %v9766_v13 = vpop.eup %7720  ;;  %v4760_v18 = vmul.f32 %v9761_v37, %v4756_v58 }
0x2cf9   :  { %v4706_v25 = vmul.f32 %v9766_v13, %v4702_v59 }
0x2d57   :  { %v4764_v30 = vpop.permute.xlu0 %4763 }
0x2d58   :  { %v4769_v43 = vmul.f32 %v9754_v31, %v4764_v30 }
0x2d59   :  { %v4766_v41 = vpop.permute.xlu1 %4765 }
0x2d5a   :  { %4773 = vrot.lane.b32.xlu0 %v4769_v43, %s8445_s28  ;;  %v4770_v23 = vmul.f32 %v9761_v37, %v4766_v41 }
0x2d5b   :  { %v4710_v57 = vpop.permute.xlu0 %4709 }
0x2d5c   :  { %v4715_v9 = vmul.f32 %v9758_v12, %v4710_v57  ;;  %4775 = vrot.lane.b32.xlu1 %v4770_v23, %s8445_s28 }
0x2d5d   :  { %v4712_v6 = vpop.permute.xlu1 %4711 }
0x2d5e   :  { %4719 = vrot.lane.b32.xlu0 %v4715_v9, %s8445_s28  ;;  %v4716_v45 = vmul.f32 %v9766_v13, %v4712_v6 }
0x2d60   :  { %4721 = vrot.lane.b32.xlu1 %v4716_v45, %s8445_s28 }
0x2dcc   :  { %v4774_v17 = vpop.permute.xlu0 %4773 }
0x2dcd   :  { %v4779_v4 = vadd.f32 %v4774_v17, %v4759_v22 }
0x2dce   :  { %v4776_v14 = vpop.permute.xlu1 %4775 }
0x2dcf   :  { %7722 = vtanh.f32 %v4779_v4  ;;  %v4780_v61 = vadd.f32 %v4776_v14, %v4760_v18  ;;  %v7395_v18 = vld [vmem:[#allocation28 + $0x10] ss:$8 sps:$4 sm:$0xff]  }
0x2dd0   :  { %v4720_v47 = vpop.permute.xlu0 %4719 }
0x2dd1   :  { %v4725_v35 = vadd.f32 %v4720_v47, %v4705_v46  ;;  %v7392_v46 = vld [vmem:[#allocation28] ss:$8 sps:$4 sm:$0xff]   ;;  %v7397_v47 = vld [vmem:[#allocation28 + $0x14] ss:$8 sps:$4 sm:$0xff]  }
0x2dd2   :  { %v4722_v26 = vpop.permute.xlu1 %4721 }
0x2dd3   :  { %7724 = vtanh.f32 %v4725_v35  ;;  %v4726_v36 = vadd.f32 %v4722_v26, %v4706_v25  ;;  %v4959_v25 = vld [vmem:[%s10523_s13] sm:$0x3] }
0x2dd4   :  { %7726 = vtanh.f32 %v4780_v61  ;;  %v4968_v26 = vrot.slane %v4959_v25, %v9040_v7 }
0x2dd5   :  { %7728 = vtanh.f32 %v4726_v36 }
0x2dd9   :  { %v7723_v15 = vpop.eup %7722 }
0x2dda   :  { %4785 = vrot.lane.b32.xlu0 %v7723_v15, %s8429_s0  ;;  %v4964_v15 = vrot.slane %v4959_v25, %v8852_v40 }
0x2ddd   :  { %v7725_v0 = vpop.eup %7724 }
0x2dde   :  { %4731 = vrot.lane.b32.xlu0 %v7725_v0, %s8429_s0  ;;  %v7727_v50 = vpop.eup %7726 }
0x2ddf   :  { %4787 = vrot.lane.b32.xlu1 %v7727_v50, %s8429_s0  ;;  %v7729_v10 = vpop.eup %7728 }
0x2de2   :  { %3333 = vrot.lane.b32.xlu0 %v9369_v32, %s8445_s28  ;;  %v7388_v32 = vld [vmem:[#allocation28 + $0x24] ss:$8 sps:$4 sm:$0xff]  }
0x2de3   :  { %4733 = vrot.lane.b32.xlu1 %v7729_v10, %s8429_s0  ;;  %4850 = vmatprep.subr.bf16.mxu1 %v7388_v32 }
0x2de6   :  { %3574 = vrot.lane.b32.xlu0 %v9430_v42, %s8445_s28  ;;  %v7391_v42 = vld [vmem:[#allocation28 + $0x34] ss:$8 sps:$4 sm:$0xff]  }
0x2de7   :  { %3335 = vrot.lane.b32.xlu1 %v9376_v49, %s8445_s28 }
0x2dea   :  { %3783 = vrot.lane.b32.xlu0 %v9489_v1, %s8445_s28 }
0x2deb   :  { %3576 = vrot.lane.b32.xlu1 %v9432_v2, %s8445_s28 }
0x2dee   :  { %3987 = vrot.lane.b32.xlu0 %v9551_v20, %s8445_s28 }
0x2def   :  { %3785 = vrot.lane.b32.xlu1 %v9491_v44, %s8445_s28 }
0x2df2   :  { %4195 = vrot.lane.b32.xlu0 %v9606_v52, %s8445_s28 }
0x2df3   :  { %3989 = vrot.lane.b32.xlu1 %v9557_v27, %s8445_s28 }
0x2df6   :  { %4397 = vrot.lane.b32.xlu0 %v9678_v56, %s8445_s28 }
0x2df7   :  { %4197 = vrot.lane.b32.xlu1 %v9608_v24, %s8445_s28 }
0x2dfa   :  { %4604 = vrot.lane.b32.xlu0 %v9731_v39, %s8445_s28 }
0x2dfb   :  { %4399 = vrot.lane.b32.xlu1 %v9680_v3, %s8445_s28 }
0x2dfe   :  { %3322 = vrot.lane.b32.xlu0 %v9373_v29, %s8445_s28 }
0x2dff   :  { %4606 = vrot.lane.b32.xlu1 %v9727_v53, %s8445_s28 }
0x2e02   :  { %3563 = vrot.lane.b32.xlu0 %v9437_v11, %s8445_s28 }
0x2e03   :  { %3324 = vrot.lane.b32.xlu1 %v9364_v21, %s8445_s28  ;;  %v7386_v21 = vld [vmem:[#allocation28 + $0x20] ss:$8 sps:$4 sm:$0xff]  }
0x2e04   :  { %4851 = vmatpush1.bf16.msra.mxu1 %v7386_v21 }
0x2e05   :  { %4852 = vmatprep.subr.bf16.mxu1 %v7391_v42 }
0x2e06   :  { %3772 = vrot.lane.b32.xlu0 %v9496_v19, %s8445_s28 }
0x2e07   :  { %3565 = vrot.lane.b32.xlu1 %v9428_v33, %s8445_s28  ;;  %v7389_v33 = vld [vmem:[#allocation28 + $0x30] ss:$8 sps:$4 sm:$0xff]  }
0x2e08   :  { %4853 = vmatpush1.bf16.msra.mxu1 %v7389_v33 }
0x2e0a   :  { %3976 = vrot.lane.b32.xlu0 %v9549_v38, %s8445_s28 }
0x2e0b   :  { %3774 = vrot.lane.b32.xlu1 %v9487_v63, %s8445_s28  ;;  %v7394_v63 = vld [vmem:[#allocation28 + $0x4] ss:$8 sps:$4 sm:$0xff]  }
0x2e0c   :  { %4916 = vmatprep.subr.bf16.mxu1 %v7394_v63 }
0x2e0e   :  { %4185 = vrot.lane.b32.xlu0 %v9613_v54, %s8445_s28 }
0x2e0f   :  { %3978 = vrot.lane.b32.xlu1 %v9546_v5, %s8445_s28 }
0x2e13   :  { %4187 = vrot.lane.b32.xlu1 %v9604_v8, %s8445_s28 }
0x2e4c   :  { %v4786_v29 = vpop.permute.xlu0 %4785 }
0x2e4d   :  { %v4791_v49 = vmul.f32 %v9754_v31, %v4786_v29 }
0x2e4f   :  { %4805 = vrot.lane.b32.xlu0 %v4791_v49, %s8445_s28 }
0x2e50   :  { %v4732_v2 = vpop.permute.xlu0 %4731 }
0x2e51   :  { %v4788_v11 = vpop.permute.xlu1 %4787  ;;  %v4737_v38 = vmul.f32 %v9758_v12, %v4732_v2 }
0x2e52   :  { %v4792_v1 = vmul.f32 %v9761_v37, %v4788_v11 }
0x2e53   :  { %4387 = vrot.lane.b32.xlu0 %v9685_v16, %s8445_s28 }
0x2e54   :  { %v3334_v44 = vpop.permute.xlu0 %3333  ;;  %4807 = vrot.lane.b32.xlu1 %v4792_v1, %s8445_s28 }
0x2e55   :  { %3340 = vst.msk [vmem:[#allocation3] sm:$0x80] %vm3339_vm4, %v3334_v44  ;;  %v4734_v19 = vpop.permute.xlu1 %4733 }
0x2e56   :  { %v4738_v52 = vmul.f32 %v9766_v13, %v4734_v19 }
0x2e57   :  { %4594 = vrot.lane.b32.xlu0 %v9736_v60, %s8445_s28 }
0x2e58   :  { %v3575_v5 = vpop.permute.xlu0 %3574  ;;  %4389 = vrot.lane.b32.xlu1 %v9676_v34, %s8445_s28 }
0x2e59   :  { %3581 = vst.msk [vmem:[#allocation3] sm:$0x40] %vm3580_vm5, %v3575_v5  ;;  %v3336_v20 = vpop.permute.xlu1 %3335 }
0x2e5a   :  { %3341 = vst.msk [vmem:[#allocation3 + $0x8] sm:$0x80] %vm3339_vm4, %v3336_v20 }
0x2e5b   :  { %4795 = vrot.lane.b32.xlu0 %v4737_v38, %s8445_s28 }
0x2e5c   :  { %v3784_v27 = vpop.permute.xlu0 %3783  ;;  %4596 = vrot.lane.b32.xlu1 %v9729_v48, %s8445_s28 }
0x2e5d   :  { %3790 = vst.msk [vmem:[#allocation3] sm:$0x20] %vm3789_vm6, %v3784_v27  ;;  %v3577_v8 = vpop.permute.xlu1 %3576 }
0x2e5e   :  { %3582 = vst.msk [vmem:[#allocation3 + $0x8] sm:$0x40] %vm3580_vm5, %v3577_v8 }
0x2e60   :  { %v3988_v24 = vpop.permute.xlu0 %3987  ;;  %4797 = vrot.lane.b32.xlu1 %v4738_v52, %s8445_s28 }
0x2e61   :  { %3994 = vst.msk [vmem:[#allocation3] sm:$0x10] %vm3993_vm8, %v3988_v24  ;;  %v3786_v54 = vpop.permute.xlu1 %3785 }
0x2e62   :  { %3791 = vst.msk [vmem:[#allocation3 + $0x8] sm:$0x20] %vm3789_vm6, %v3786_v54 }
0x2e64   :  { %v4196_v34 = vpop.permute.xlu0 %4195 }
0x2e65   :  { %4201 = vst.msk [vmem:[#allocation3] sm:$0x8] %vm3982_vm9, %v4196_v34  ;;  %v3990_v56 = vpop.permute.xlu1 %3989 }
0x2e66   :  { %3995 = vst.msk [vmem:[#allocation3 + $0x8] sm:$0x10] %vm3993_vm8, %v3990_v56 }
0x2e68   :  { %v4398_v3 = vpop.permute.xlu0 %4397 }
0x2e69   :  { %4403 = vst.msk [vmem:[#allocation3] sm:$0x4] %vm3778_vm10, %v4398_v3  ;;  %v4198_v16 = vpop.permute.xlu1 %4197 }
0x2e6a   :  { %4202 = vst.msk [vmem:[#allocation3 + $0x8] sm:$0x8] %vm3982_vm9, %v4198_v16 }
0x2e6c   :  { %v4605_v53 = vpop.permute.xlu0 %4604 }
0x2e6d   :  { %4610 = vst.msk [vmem:[#allocation3] sm:$0x2] %vm3569_vm11, %v4605_v53  ;;  %v4400_v48 = vpop.permute.xlu1 %4399 }
0x2e6e   :  { %4404 = vst.msk [vmem:[#allocation3 + $0x8] sm:$0x4] %vm3778_vm10, %v4400_v48 }
0x2e70   :  { %v3323_v39 = vpop.permute.xlu0 %3322 }
0x2e71   :  { %3329 = vst.msk [vmem:[#allocation2] sm:$0x1] %vm3328_vm3, %v3323_v39  ;;  %v4607_v60 = vpop.permute.xlu1 %4606 }
0x2e72   :  { %4611 = vst.msk [vmem:[#allocation3 + $0x8] sm:$0x2] %vm3569_vm11, %v4607_v60 }
0x2e74   :  { %v3564_v62 = vpop.permute.xlu0 %3563 }
0x2e75   :  { %3570 = vst.msk [vmem:[#allocation2] sm:$0x2] %vm3569_vm11, %v3564_v62  ;;  %v3325_v31 = vpop.permute.xlu1 %3324 }
0x2e76   :  { %3330 = vst.msk [vmem:[#allocation2 + $0x8] sm:$0x1] %vm3328_vm3, %v3325_v31 }
0x2e78   :  { %v3773_v30 = vpop.permute.xlu0 %3772 }
0x2e79   :  { %3779 = vst.msk [vmem:[#allocation2] sm:$0x4] %vm3778_vm10, %v3773_v30  ;;  %v3566_v43 = vpop.permute.xlu1 %3565 }
0x2e7a   :  { %3571 = vst.msk [vmem:[#allocation2 + $0x8] sm:$0x2] %vm3569_vm11, %v3566_v43 }
0x2e7c   :  { %v3977_v12 = vpop.permute.xlu0 %3976 }
0x2e7d   :  { %3983 = vst.msk [vmem:[#allocation2] sm:$0x8] %vm3982_vm9, %v3977_v12  ;;  %v3775_v57 = vpop.permute.xlu1 %3774 }
0x2e7e   :  { %3780 = vst.msk [vmem:[#allocation2 + $0x8] sm:$0x4] %vm3778_vm10, %v3775_v57 }
0x2e80   :  { %v4186_v9 = vpop.permute.xlu0 %4185 }
0x2e81   :  { %4191 = vst.msk [vmem:[#allocation2] sm:$0x10] %vm3993_vm8, %v4186_v9  ;;  %v3979_v37 = vpop.permute.xlu1 %3978 }
0x2e82   :  { %3984 = vst.msk [vmem:[#allocation2 + $0x8] sm:$0x8] %vm3982_vm9, %v3979_v37 }
0x2e85   :  { %v4188_v41 = vpop.permute.xlu1 %4187 }
0x2e86   :  { %4192 = vst.msk [vmem:[#allocation2 + $0x8] sm:$0x10] %vm3993_vm8, %v4188_v41 }
0x2ec1   :  { %v4806_v23 = vpop.permute.xlu0 %4805 }
0x2ec2   :  { %4811 = vst.msk [vmem:[#allocation3] sm:$0x1] %vm3328_vm3, %v4806_v23 }
0x2ec5   :  { %v4388_v13 = vpop.permute.xlu0 %4387 }
0x2ec6   :  { %4393 = vst.msk [vmem:[#allocation2] sm:$0x20] %vm3789_vm6, %v4388_v13  ;;  %v4808_v6 = vpop.permute.xlu1 %4807 }
0x2ec7   :  { %4812 = vst.msk [vmem:[#allocation3 + $0x8] sm:$0x1] %vm3328_vm3, %v4808_v6 }
0x2ec9   :  { %v4595_v45 = vpop.permute.xlu0 %4594  ;;  %v4816_v28 = vld [vmem:[#allocation3] sm:$0xff] }
0x2eca   :  { %4600 = vst.msk [vmem:[#allocation2] sm:$0x40] %vm3580_vm5, %v4595_v45  ;;  %v4390_v55 = vpop.permute.xlu1 %4389 }
0x2ecb   :  { %4394 = vst.msk [vmem:[#allocation2 + $0x8] sm:$0x20] %vm3789_vm6, %v4390_v55 }
0x2ecd   :  { %v4796_v22 = vpop.permute.xlu0 %4795 }
0x2ece   :  { %4801 = vst.msk [vmem:[#allocation2] sm:$0x80] %vm3339_vm4, %v4796_v22  ;;  %v4597_v17 = vpop.permute.xlu1 %4596  ;;  %v4817_v4 = vld [vmem:[#allocation3 + $0x8] sm:$0xff] }
0x2ecf   :  { %4601 = vst.msk [vmem:[#allocation2 + $0x8] sm:$0x40] %vm3580_vm5, %v4597_v17  ;;  %v4818_v58 = vpack.c.bf16 %v4817_v4, %v4816_v28  ;;  %v9939_v22 = vld [vmem:[#allocation30 + $0x4] ss:$8 sps:$4 sm:$0xff]   ;;  %v9941_v17 = vld [vmem:[#allocation30] ss:$8 sps:$4 sm:$0xff]  }
0x2ed0   :  { %v9943_v28 = vld [vmem:[#allocation30 + $0x14] ss:$8 sps:$4 sm:$0xff]   ;;  %5155 = vmatprep.subr.bf16.mxu0 %v9939_v22 }
0x2ed1   :  { %6770 = vmatmul.mubr.msk.bf16.vlgmr.msra.gmra.mrb[92].mxu1 %vm1405_vm7, %v4818_v58  ;;  %5156 = vmatpush1.bf16.msra.mxu0 %v9941_v17  ;;  %v9949_v58 = vld [vmem:[#allocation30 + $0x10] ss:$8 sps:$4 sm:$0xff]  }
0x2ed2   :  { %4917 = vmatpush1.bf16.msra.mxu1 %v7392_v46  ;;  %v4798_v35 = vpop.permute.xlu1 %4797  ;;  %4948 = vmatprep.mubr.bf16.mxu1 %v8447_v51 }
0x2ed3   :  { %4802 = vst.msk [vmem:[#allocation2 + $0x8] sm:$0x80] %vm3339_vm4, %v4798_v35  ;;  %4918 = vmatprep.subr.bf16.mxu1 %v7397_v47  ;;  %5157 = vmatprep.subr.bf16.mxu0 %v9943_v28  ;;  %v9953_v47 = vld [vmem:[#allocation30 + $0x24] ss:$8 sps:$4 sm:$0xff]  }
0x2ed5   :  { %v4813_v14 = vld [vmem:[#allocation2] sm:$0xff]  ;;  %5158 = vmatpush1.bf16.msra.mxu0 %v9949_v58 }
0x2ed6   :  { %4919 = vmatpush1.bf16.msra.mxu1 %v7395_v18  ;;  %5159 = vmatprep.subr.bf16.mxu0 %v9953_v47 }
0x2ed7   :  { %5360 = vmatprep.subr.bf16.mxu1 %v9939_v22 }
0x2eda   :  { %v4814_v59 = vld [vmem:[#allocation2 + $0x8] sm:$0xff] }
0x2edb   :  { %v4815_v61 = vpack.c.bf16 %v4814_v59, %v4813_v14  ;;  %v9959_v14 = vld [vmem:[#allocation30 + $0x20] ss:$8 sps:$4 sm:$0xff]   ;;  %v9967_v59 = vld [vmem:[#allocation30 + $0x34] ss:$8 sps:$4 sm:$0xff]  }
0x2edc   :  { %5160 = vmatpush1.bf16.msra.mxu0 %v9959_v14 }
0x2edd   :  { %6775 = vmatmul.mubr.msk.bf16.vlgmr.msra.gmra.mrb[92].mxu1 %vm1405_vm7, %v4815_v61  ;;  %5161 = vmatprep.subr.bf16.mxu0 %v9967_v59  ;;  %v9971_v61 = vld [vmem:[#allocation30 + $0x30] ss:$8 sps:$4 sm:$0xff]  }
0x2ede   :  { %5392 = vmatprep.mubr.bf16.mxu1 %v8447_v51  ;;  %5361 = vmatpush1.bf16.msra.mxu1 %v9941_v17 }
0x2edf   :  { %5362 = vmatprep.subr.bf16.mxu1 %v9943_v28 }
0x2ee0   :  { %5162 = vmatpush1.bf16.msra.mxu0 %v9971_v61 }
0x2ee1   :  { %5561 = vmatprep.subr.bf16.mxu0 %v9939_v22 }
0x2ee2   :  { %5363 = vmatpush1.bf16.msra.mxu1 %v9949_v58 }
0x2ee3   :  { %5364 = vmatprep.subr.bf16.mxu1 %v9953_v47 }
0x2ee6   :  { %5365 = vmatpush1.bf16.msra.mxu1 %v9959_v14 }
0x2ee7   :  { %5366 = vmatprep.subr.bf16.mxu1 %v9967_v59 }
0x2eea   :  { %5367 = vmatpush1.bf16.msra.mxu1 %v9971_v61 }
0x2eeb   :  { %5767 = vmatprep.subr.bf16.mxu1 %v9939_v22 }
0x2fb0   :  { %v4950_v36 = vpop.f32.mrb[92].mxu1 }
0x2fb1   :  { %v4952_v0 = vpop.f32.mrb[93].mxu1  ;;  %v9891_v29 = vadd.f32 %v4964_v15, %v4950_v36 }
0x2fb2   :  { %v9887_v50 = vadd.f32 %v4968_v26, %v4952_v0  ;;  %v4954_v10 = vpop.f32.mrb[94].mxu1 }
0x2fb3   :  { %v9889_v21 = vadd.f32 %v4964_v15, %v4954_v10  ;;  %v4956_v32 = vpop.f32.mrb[95].mxu1  ;;  %v6776_v63 = vmul.f32 -1.442695, %v9891_v29 }
0x2fb4   :  { %7730 = vtanh.f32 %v9887_v50  ;;  %v9894_v49 = vadd.f32 %v4968_v26, %v4956_v32  ;;  %v6778_v2 = vmul.f32 -1.442695, %v9887_v50 }
0x2fb5   :  { %7732 = vtanh.f32 %v9889_v21  ;;  %v6777_v11 = vmul.f32 -1.442695, %v9889_v21 }
0x2fb6   :  { %7734 = vtanh.f32 %v9891_v29  ;;  %v6779_v1 = vmul.f32 -1.442695, %v9894_v49 }
0x2fb7   :  { %7736 = vtanh.f32 %v9894_v49 }
0x2fb8   :  { %7738 = vpow2.f32 %v6778_v2 }
0x2fb9   :  { %7740 = vpow2.f32 %v6777_v11 }
0x2fba   :  { %7742 = vpow2.f32 %v6776_v63 }
0x2fbb   :  { %7744 = vpow2.f32 %v6779_v1 }
0x2fbe   :  { %v7731_v40 = vpop.eup %7730 }
0x2fbf   :  { %v7733_v7 = vpop.eup %7732  ;;  %5049 = vrot.lane.b32.xlu1 %v7731_v40, %s8429_s0 }
0x2fc0   :  { %5003 = vrot.lane.b32.xlu0 %v7733_v7, %s8429_s0  ;;  %v7735_v33 = vpop.eup %7734 }
0x2fc1   :  { %v7737_v42 = vpop.eup %7736 }
0x2fc2   :  { %v7739_v44 = vpop.eup %7738 }
0x2fc3   :  { %5001 = vrot.lane.b32.xlu1 %v7735_v33, %s8429_s0  ;;  %v7741_v19 = vpop.eup %7740  ;;  %v5037_v5 = vadd.f32 1.0, %v7739_v44 }
0x2fc4   :  { %5051 = vrot.lane.b32.xlu0 %v7737_v42, %s8429_s0  ;;  %v7743_v38 = vpop.eup %7742  ;;  %v4990_v20 = vadd.f32 1.0, %v7741_v19 }
0x2fc5   :  { %v7745_v27 = vpop.eup %7744  ;;  %7746 = vrcp.f32 %v5037_v5  ;;  %v4989_v8 = vadd.f32 1.0, %v7743_v38 }
0x2fc6   :  { %7748 = vrcp.f32 %v4990_v20  ;;  %v5038_v52 = vadd.f32 1.0, %v7745_v27 }
0x2fc7   :  { %7750 = vrcp.f32 %v4989_v8 }
0x2fc8   :  { %7752 = vrcp.f32 %v5038_v52 }
0x2fcf   :  { %v9907_v24 = vpop.eup %7746 }
0x2fd0   :  { %v9909_v34 = vpop.eup %7748  ;;  %v5045_v30 = vmul.f32 0.0, %v9907_v24 }
0x2fd1   :  { %v9914_v53 = vpop.eup %7750  ;;  %v4998_v12 = vmul.f32 0.0, %v9909_v34 }
0x2fd2   :  { %v9917_v39 = vpop.eup %7752  ;;  %v4997_v41 = vmul.f32 0.0, %v9914_v53 }
0x2fd3   :  { %v5046_v13 = vmul.f32 0.0, %v9917_v39 }
0x3031   :  { %v5050_v54 = vpop.permute.xlu1 %5049 }
0x3032   :  { %v5055_v56 = vmul.f32 %v9907_v24, %v5050_v54  ;;  %v5004_v3 = vpop.permute.xlu0 %5003 }
0x3033   :  { %v5008_v16 = vmul.f32 %v9909_v34, %v5004_v3 }
0x3034   :  { %5059 = vrot.lane.b32.xlu1 %v5055_v56, %s8445_s28 }
0x3035   :  { %v5002_v48 = vpop.permute.xlu1 %5001  ;;  %5013 = vrot.lane.b32.xlu0 %v5008_v16, %s8445_s28 }
0x3036   :  { %v5007_v60 = vmul.f32 %v9914_v53, %v5002_v48  ;;  %v5052_v62 = vpop.permute.xlu0 %5051 }
0x3037   :  { %v5056_v31 = vmul.f32 %v9917_v39, %v5052_v62 }
0x3038   :  { %5011 = vrot.lane.b32.xlu1 %v5007_v60, %s8445_s28 }
0x3039   :  { %5061 = vrot.lane.b32.xlu0 %v5056_v31, %s8445_s28 }
0x30a6   :  { %v5060_v43 = vpop.permute.xlu1 %5059 }
0x30a7   :  { %v9925_v57 = vadd.f32 %v5060_v43, %v5045_v30  ;;  %v5014_v9 = vpop.permute.xlu0 %5013 }
0x30a8   :  { %v9927_v37 = vadd.f32 %v5014_v9, %v4998_v12 }
0x30a9   :  { %7754 = vtanh.f32 %v9925_v57 }
0x30aa   :  { %7756 = vtanh.f32 %v9927_v37  ;;  %v5012_v23 = vpop.permute.xlu1 %5011 }
0x30ab   :  { %v9933_v6 = vadd.f32 %v5012_v23, %v4997_v41  ;;  %v5062_v45 = vpop.permute.xlu0 %5061 }
0x30ac   :  { %v9935_v55 = vadd.f32 %v5062_v45, %v5046_v13 }
0x30ad   :  { %7758 = vtanh.f32 %v9933_v6 }
0x30ae   :  { %7760 = vtanh.f32 %v9935_v55 }
0x30b3   :  { %v7755_v4 = vpop.eup %7754 }
0x30b4   :  { %v7757_v46 = vpop.eup %7756  ;;  %5071 = vrot.lane.b32.xlu1 %v7755_v4, %s8429_s0 }
0x30b5   :  { %5025 = vrot.lane.b32.xlu0 %v7757_v46, %s8429_s0 }
0x30b7   :  { %v7759_v35 = vpop.eup %7758 }
0x30b8   :  { %v7761_v18 = vpop.eup %7760  ;;  %5023 = vrot.lane.b32.xlu1 %v7759_v35, %s8429_s0 }
0x30b9   :  { %5073 = vrot.lane.b32.xlu0 %v7761_v18, %s8429_s0 }
0x3126   :  { %v5072_v25 = vpop.permute.xlu1 %5071 }
0x3127   :  { %v5026_v26 = vpop.permute.xlu0 %5025  ;;  %v9981_v15 = vmul.f32 %v9907_v24, %v5072_v25 }
0x3128   :  { %v9976_v36 = vmul.f32 %v9909_v34, %v5026_v26 }
0x3129   :  { %v5104_v42 = vrot.slane %v9981_v15, 7 }
0x312a   :  { %v5099_v0 = vrot.slane %v9976_v36, 7  ;;  %v5024_v10 = vpop.permute.xlu1 %5023 }
0x312b   :  { %v9985_v32 = vmul.f32 %v9914_v53, %v5024_v10  ;;  %v5074_v40 = vpop.permute.xlu0 %5073 }
0x312c   :  { %v9988_v7 = vmul.f32 %v9917_v39, %v5074_v40 }
0x312d   :  { %v5100_v33 = vsel %vm3343_vm12, %v5099_v0, %v9985_v32 }
0x312e   :  { %v5105_v2 = vrot.slane %v9988_v7, 6  ;;  %5101 = vrot.lane.b32.xlu0 %v5100_v33, %s8445_s28 }
0x3130   :  { %v5106_v11 = vsel %vm3343_vm12, %v5105_v2, %v5104_v42  ;;  %vm10524_vm12 = vcmask 1047559  }
0x3131   :  { %5107 = vrot.lane.b32.xlu1 %v5106_v11, %s8429_s0 }
0x31a0   :  { %v5102_v63 = vpop.permute.xlu0 %5101 }
0x31a3   :  { %v5108_v1 = vpop.permute.xlu1 %5107 }
0x31a4   :  { %v5110_v44 = vsel %vm1405_vm7, %v5102_v63, %v5108_v1  ;;  %v5226_v63 = vrot.slane %v9927_v37, 7 }
0x31a5   :  { %v5111_v19 = vpack.c.bf16 %v5110_v44, %v5110_v44 }
0x31a7   :  { %6788 = vmatmul.mubr.msk.bf16.vlgmr.msra.gmra.mrb[96].mxu0 %vm368_vm1, %v5111_v19 }
0x31a8   :  { %5562 = vmatpush1.bf16.msra.mxu0 %v9941_v17  ;;  %5593 = vmatprep.mubr.bf16.mxu0 %v8447_v51 }
0x31a9   :  { %5563 = vmatprep.subr.bf16.mxu0 %v9943_v28 }
0x31ac   :  { %5564 = vmatpush1.bf16.msra.mxu0 %v9949_v58 }
0x31ad   :  { %5565 = vmatprep.subr.bf16.mxu0 %v9953_v47 }
0x31b0   :  { %5566 = vmatpush1.bf16.msra.mxu0 %v9959_v14 }
0x31b1   :  { %5567 = vmatprep.subr.bf16.mxu0 %v9967_v59 }
0x31b4   :  { %5568 = vmatpush1.bf16.msra.mxu0 %v9971_v61 }
0x31b5   :  { %5968 = vmatprep.subr.bf16.mxu0 %v9939_v22 }
0x327a   :  { %v5189_v5 = vpop.f32.mrb[96].mxu0 }
0x327b   :  { %v5201_v38 = vadd.f32 %v5189_v5, %v9889_v21  ;;  %v5191_v20 = vpop.f32.mrb[97].mxu0  ;;  %v5197_v54 = vrot.slane %v5189_v5, 7  ;;  %v5279_v5 = vrot.slane %v9925_v57, 1 }
0x327c   :  { %v5203_v27 = vrot.slane %v5191_v20, 2  ;;  %v5193_v8 = vpop.f32.mrb[98].mxu0  ;;  %v5204_v52 = vrot.slane %v5191_v20, 3 }
0x327d   :  { %7762 = vtanh.f32 %v5201_v38  ;;  %v5194_v24 = vpop.f32.mrb[99].mxu0  ;;  %v5200_v3 = vadd.f32 %v5197_v54, %v9891_v29  ;;  %v6790_v60 = vmul.f32 -1.442695, %v5201_v38  ;;  %v5280_v38 = vrot.slane %v9935_v55, 1 }
0x327e   :  { %v5207_v34 = vadd.f32 %v5203_v27, %v9887_v50  ;;  %v5208_v56 = vadd.f32 %v5204_v52, %v9894_v49  ;;  %v5225_v52 = vrot.slane %v9933_v6, 7 }
0x327f   :  { %v6789_v30 = vmul.f32 -1.442695, %v5200_v3 }
0x3280   :  { %7764 = vtanh.f32 %v5207_v34  ;;  %v6791_v62 = vmul.f32 -1.442695, %v5207_v34  ;;  %v6792_v31 = vmul.f32 -1.442695, %v5208_v56 }
0x3281   :  { %7766 = vtanh.f32 %v5208_v56 }
0x3282   :  { %7768 = vtanh.f32 %v5200_v3 }
0x3283   :  { %7770 = vpow2.f32 %v6790_v60 }
0x3284   :  { %7772 = vpow2.f32 %v6791_v62 }
0x3285   :  { %7774 = vpow2.f32 %v6792_v31 }
0x3286   :  { %7776 = vpow2.f32 %v6789_v30 }
0x3287   :  { %v7763_v16 = vpop.eup %7762 }
0x3288   :  { %5235 = vrot.lane.b32.xlu0 %v7763_v16, %s8429_s0 }
0x328a   :  { %v7765_v53 = vpop.eup %7764 }
0x328b   :  { %v7767_v48 = vpop.eup %7766  ;;  %5287 = vrot.lane.b32.xlu1 %v7765_v53, %s8429_s0 }
0x328c   :  { %5289 = vrot.lane.b32.xlu0 %v7767_v48, %s8429_s0  ;;  %v7769_v39 = vpop.eup %7768 }
0x328d   :  { %v7771_v43 = vpop.eup %7770 }
0x328e   :  { %v5216_v12 = vadd.f32 1.0, %v7771_v43  ;;  %v7773_v9 = vpop.eup %7772 }
0x328f   :  { %5233 = vrot.lane.b32.xlu1 %v7769_v39, %s8429_s0  ;;  %v7775_v41 = vpop.eup %7774  ;;  %v5269_v23 = vadd.f32 1.0, %v7773_v9 }
0x3290   :  { %7778 = vrcp.f32 %v5216_v12  ;;  %v7777_v13 = vpop.eup %7776  ;;  %v5270_v45 = vadd.f32 1.0, %v7775_v41 }
0x3291   :  { %v5215_v4 = vadd.f32 1.0, %v7777_v13  ;;  %7780 = vrcp.f32 %v5269_v23 }
0x3292   :  { %7782 = vrcp.f32 %v5270_v45 }
0x3293   :  { %7784 = vrcp.f32 %v5215_v4 }
0x329a   :  { %v7779_v46 = vpop.eup %7778 }
0x329b   :  { %v7781_v25 = vpop.eup %7780  ;;  %v5230_v1 = vmul.f32 %v7779_v46, %v5226_v63 }
0x329c   :  { %v7783_v0 = vpop.eup %7782  ;;  %v5283_v20 = vmul.f32 %v7781_v25, %v5279_v5 }
0x329d   :  { %v7785_v42 = vpop.eup %7784  ;;  %v5284_v8 = vmul.f32 %v7783_v0, %v5280_v38 }
0x329e   :  { %v5229_v37 = vmul.f32 %v7785_v42, %v5225_v52 }
0x32fa   :  { %v5236_v35 = vpop.permute.xlu0 %5235 }
0x32fb   :  { %v5240_v18 = vmul.f32 %v7779_v46, %v5236_v35 }
0x32fd   :  { %5245 = vrot.lane.b32.xlu0 %v5240_v18, %s8445_s28  ;;  %v5288_v26 = vpop.permute.xlu1 %5287 }
0x32fe   :  { %v5293_v10 = vmul.f32 %v7781_v25, %v5288_v26  ;;  %v5290_v40 = vpop.permute.xlu0 %5289 }
0x32ff   :  { %v5294_v33 = vmul.f32 %v7783_v0, %v5290_v40 }
0x3300   :  { %5297 = vrot.lane.b32.xlu1 %v5293_v10, %s8445_s28 }
0x3301   :  { %5299 = vrot.lane.b32.xlu0 %v5294_v33, %s8445_s28  ;;  %v5234_v2 = vpop.permute.xlu1 %5233 }
0x3302   :  { %v5239_v11 = vmul.f32 %v7785_v42, %v5234_v2 }
0x3304   :  { %5243 = vrot.lane.b32.xlu1 %v5239_v11, %s8445_s28 }
0x336f   :  { %v5246_v44 = vpop.permute.xlu0 %5245 }
0x3370   :  { %v10021_v19 = vadd.f32 %v5246_v44, %v5230_v1 }
0x3372   :  { %7786 = vtanh.f32 %v10021_v19  ;;  %v5298_v27 = vpop.permute.xlu1 %5297 }
0x3373   :  { %v10027_v24 = vadd.f32 %v5298_v27, %v5283_v20  ;;  %v5300_v54 = vpop.permute.xlu0 %5299 }
0x3374   :  { %v10029_v34 = vadd.f32 %v5300_v54, %v5284_v8 }
0x3375   :  { %7788 = vtanh.f32 %v10027_v24 }
0x3376   :  { %7790 = vtanh.f32 %v10029_v34  ;;  %v5244_v56 = vpop.permute.xlu1 %5243 }
0x3377   :  { %v10033_v3 = vadd.f32 %v5244_v56, %v5229_v37 }
0x3379   :  { %7792 = vtanh.f32 %v10033_v3 }
0x337c   :  { %v7787_v57 = vpop.eup %7786 }
0x337d   :  { %5257 = vrot.lane.b32.xlu0 %v7787_v57, %s8429_s0 }
0x337f   :  { %v7789_v55 = vpop.eup %7788 }
0x3380   :  { %v7791_v6 = vpop.eup %7790  ;;  %5309 = vrot.lane.b32.xlu1 %v7789_v55, %s8429_s0 }
0x3381   :  { %5311 = vrot.lane.b32.xlu0 %v7791_v6, %s8429_s0 }
0x3383   :  { %v7793_v16 = vpop.eup %7792 }
0x3384   :  { %5255 = vrot.lane.b32.xlu1 %v7793_v16, %s8429_s0 }
0x33ef   :  { %v5258_v53 = vpop.permute.xlu0 %5257 }
0x33f0   :  { %v10040_v39 = vmul.f32 %v7779_v46, %v5258_v53 }
0x33f2   :  { %v5310_v48 = vpop.permute.xlu1 %5309  ;;  %v5337_v9 = vrot.slane %v10040_v39, 7 }
0x33f3   :  { %v10042_v60 = vmul.f32 %v7781_v25, %v5310_v48  ;;  %v5312_v62 = vpop.permute.xlu0 %5311 }
0x33f4   :  { %v10044_v31 = vmul.f32 %v7783_v0, %v5312_v62 }
0x33f5   :  { %v5342_v30 = vrot.slane %v10042_v60, 5 }
0x33f6   :  { %v5343_v43 = vrot.slane %v10044_v31, 4  ;;  %v5256_v12 = vpop.permute.xlu1 %5255 }
0x33f7   :  { %v10049_v41 = vmul.f32 %v7785_v42, %v5256_v12 }
0x33f8   :  { %v5344_v23 = vsel %vm3584_vm13, %v5343_v43, %v5342_v30 }
0x33f9   :  { %5345 = vrot.lane.b32.xlu1 %v5344_v23, %s8429_s0  ;;  %v5338_v13 = vsel %vm3584_vm13, %v5337_v9, %v10049_v41  ;;  %vm10525_vm13 = vmmov %vm10524_vm12 }
0x33fa   :  { %5339 = vrot.lane.b32.xlu0 %v5338_v13, %s8445_s28 }
0x346b   :  { %v5346_v45 = vpop.permute.xlu1 %5345 }
0x346c   :  { %v5340_v4 = vpop.permute.xlu0 %5339 }
0x346d   :  { %v5348_v46 = vsel %vm1405_vm7, %v5340_v4, %v5346_v45 }
0x346e   :  { %v5349_v35 = vpack.c.bf16 %v5348_v46, %v5348_v46 }
0x3470   :  { %v5353_v18 = vshll.u32 %v5349_v35, 16  ;;  %v5351_v25 = vshrl.u32 %v5349_v35, 16 }
0x3472   :  { %v5355_v26 = vrot.slane %v5353_v18, 1 }
0x3474   :  { %v5356_v0 = vor.u32 %v5355_v26, %v5351_v25 }
0x3476   :  { %6793 = vmatmul.mubr.msk.bf16.vlgmr.msra.gmra.mrb[96].mxu1 %vm368_vm1, %v5356_v0 }
0x3477   :  { %5768 = vmatpush1.bf16.msra.mxu1 %v9941_v17  ;;  %5799 = vmatprep.mubr.bf16.mxu1 %v8447_v51 }
0x3478   :  { %5769 = vmatprep.subr.bf16.mxu1 %v9943_v28 }
0x347b   :  { %5770 = vmatpush1.bf16.msra.mxu1 %v9949_v58 }
0x347c   :  { %5771 = vmatprep.subr.bf16.mxu1 %v9953_v47 }
0x347f   :  { %5772 = vmatpush1.bf16.msra.mxu1 %v9959_v14 }
0x3480   :  { %5773 = vmatprep.subr.bf16.mxu1 %v9967_v59 }
0x3483   :  { %5774 = vmatpush1.bf16.msra.mxu1 %v9971_v61 }
0x3484   :  { %6175 = vmatprep.subr.bf16.mxu1 %v9939_v22 }
0x3549   :  { %v5394_v10 = vpop.f32.mrb[96].mxu1 }
0x354a   :  { %v5403_v40 = vrot.slane %v5394_v10, 7  ;;  %v5396_v33 = vpop.f32.mrb[97].mxu1  ;;  %v5402_v44 = vrot.slane %v5394_v10, 6 }
0x354b   :  { %v5398_v42 = vpop.f32.mrb[98].mxu1  ;;  %v5409_v11 = vrot.slane %v5396_v33, 3  ;;  %v5410_v1 = vrot.slane %v5396_v33, 4 }
0x354c   :  { %v5407_v2 = vadd.f32 %v5403_v40, %v9889_v21  ;;  %v5399_v63 = vpop.f32.mrb[99].mxu1  ;;  %v5406_v20 = vadd.f32 %v5402_v44, %v9891_v29  ;;  %v5432_v40 = vrot.slane %v10021_v19, 7 }
0x354d   :  { %v5413_v5 = vadd.f32 %v5409_v11, %v9887_v50  ;;  %v5414_v38 = vadd.f32 %v5410_v1, %v9894_v49  ;;  %v5485_v11 = vrot.slane %v10027_v24, 1  ;;  %v5486_v63 = vrot.slane %v10029_v34, 1 }
0x354e   :  { %7794 = vtanh.f32 %v5407_v2  ;;  %v6795_v37 = vmul.f32 -1.442695, %v5407_v2  ;;  %v6794_v55 = vmul.f32 -1.442695, %v5406_v20 }
0x354f   :  { %7796 = vtanh.f32 %v5413_v5  ;;  %v6796_v56 = vmul.f32 -1.442695, %v5413_v5  ;;  %v6797_v57 = vmul.f32 -1.442695, %v5414_v38 }
0x3550   :  { %7798 = vtanh.f32 %v5414_v38  ;;  %v5431_v38 = vrot.slane %v10033_v3, 7 }
0x3551   :  { %7800 = vtanh.f32 %v5406_v20 }
0x3552   :  { %7802 = vpow2.f32 %v6795_v37 }
0x3553   :  { %7804 = vpow2.f32 %v6796_v56 }
0x3554   :  { %7806 = vpow2.f32 %v6797_v57 }
0x3555   :  { %7808 = vpow2.f32 %v6794_v55 }
0x3558   :  { %v7795_v27 = vpop.eup %7794 }
0x3559   :  { %5441 = vrot.lane.b32.xlu0 %v7795_v27, %s8429_s0  ;;  %v7797_v8 = vpop.eup %7796 }
0x355a   :  { %v7799_v52 = vpop.eup %7798  ;;  %5493 = vrot.lane.b32.xlu1 %v7797_v8, %s8429_s0 }
0x355b   :  { %v7801_v54 = vpop.eup %7800 }
0x355c   :  { %v7803_v6 = vpop.eup %7802 }
0x355d   :  { %5495 = vrot.lane.b32.xlu0 %v7799_v52, %s8429_s0  ;;  %v5422_v16 = vadd.f32 1.0, %v7803_v6  ;;  %v7805_v53 = vpop.eup %7804 }
0x355e   :  { %5439 = vrot.lane.b32.xlu1 %v7801_v54, %s8429_s0  ;;  %v7807_v48 = vpop.eup %7806  ;;  %v5475_v62 = vadd.f32 1.0, %v7805_v53 }
0x355f   :  { %7810 = vrcp.f32 %v5422_v16  ;;  %v7809_v30 = vpop.eup %7808  ;;  %v5476_v43 = vadd.f32 1.0, %v7807_v48 }
0x3560   :  { %v5421_v12 = vadd.f32 1.0, %v7809_v30  ;;  %7812 = vrcp.f32 %v5475_v62 }
0x3561   :  { %7814 = vrcp.f32 %v5476_v43 }
0x3562   :  { %7816 = vrcp.f32 %v5421_v12 }
0x3569   :  { %v7811_v9 = vpop.eup %7810 }
0x356a   :  { %v7813_v45 = vpop.eup %7812  ;;  %v5436_v33 = vmul.f32 %v7811_v9, %v5432_v40 }
0x356b   :  { %v7815_v46 = vpop.eup %7814  ;;  %v5489_v1 = vmul.f32 %v7813_v45, %v5485_v11 }
0x356c   :  { %v7817_v26 = vpop.eup %7816  ;;  %v5490_v5 = vmul.f32 %v7815_v46, %v5486_v63 }
0x356d   :  { %v5435_v19 = vmul.f32 %v7817_v26, %v5431_v38 }
0x35cb   :  { %v5442_v23 = vpop.permute.xlu0 %5441 }
0x35cc   :  { %v5446_v13 = vmul.f32 %v7811_v9, %v5442_v23  ;;  %v5494_v4 = vpop.permute.xlu1 %5493 }
0x35cd   :  { %v5499_v35 = vmul.f32 %v7813_v45, %v5494_v4 }
0x35ce   :  { %5451 = vrot.lane.b32.xlu0 %v5446_v13, %s8445_s28 }
0x35cf   :  { %v5496_v18 = vpop.permute.xlu0 %5495  ;;  %5503 = vrot.lane.b32.xlu1 %v5499_v35, %s8445_s28 }
0x35d0   :  { %v5500_v25 = vmul.f32 %v7815_v46, %v5496_v18  ;;  %v5440_v0 = vpop.permute.xlu1 %5439 }
0x35d1   :  { %v5445_v10 = vmul.f32 %v7817_v26, %v5440_v0 }
0x35d2   :  { %5505 = vrot.lane.b32.xlu0 %v5500_v25, %s8445_s28 }
0x35d3   :  { %5449 = vrot.lane.b32.xlu1 %v5445_v10, %s8445_s28 }
0x3640   :  { %v5452_v42 = vpop.permute.xlu0 %5451 }
0x3641   :  { %v10080_v2 = vadd.f32 %v5452_v42, %v5436_v33  ;;  %v5504_v44 = vpop.permute.xlu1 %5503 }
0x3642   :  { %v10086_v20 = vadd.f32 %v5504_v44, %v5489_v1 }
0x3643   :  { %7818 = vtanh.f32 %v10080_v2 }
0x3644   :  { %v5506_v27 = vpop.permute.xlu0 %5505  ;;  %7820 = vtanh.f32 %v10086_v20 }
0x3645   :  { %v10088_v8 = vadd.f32 %v5506_v27, %v5490_v5  ;;  %v5450_v24 = vpop.permute.xlu1 %5449 }
0x3646   :  { %v10092_v52 = vadd.f32 %v5450_v24, %v5435_v19 }
0x3647   :  { %7822 = vtanh.f32 %v10088_v8 }
0x3648   :  { %7824 = vtanh.f32 %v10092_v52 }
0x364d   :  { %v7819_v34 = vpop.eup %7818 }
0x364e   :  { %5463 = vrot.lane.b32.xlu0 %v7819_v34, %s8429_s0  ;;  %v7821_v54 = vpop.eup %7820 }
0x364f   :  { %5515 = vrot.lane.b32.xlu1 %v7821_v54, %s8429_s0 }
0x3651   :  { %v7823_v3 = vpop.eup %7822 }
0x3652   :  { %5517 = vrot.lane.b32.xlu0 %v7823_v3, %s8429_s0  ;;  %v7825_v37 = vpop.eup %7824 }
0x3653   :  { %5461 = vrot.lane.b32.xlu1 %v7825_v37, %s8429_s0 }
0x36c0   :  { %v5464_v56 = vpop.permute.xlu0 %5463 }
0x36c1   :  { %v5516_v57 = vpop.permute.xlu1 %5515  ;;  %v10099_v55 = vmul.f32 %v7811_v9, %v5464_v56 }
0x36c2   :  { %v10101_v6 = vmul.f32 %v7813_v45, %v5516_v57 }
0x36c3   :  { %v5543_v43 = vrot.slane %v10099_v55, 7 }
0x36c4   :  { %v5518_v16 = vpop.permute.xlu0 %5517  ;;  %v5548_v48 = vrot.slane %v10101_v6, 3 }
0x36c5   :  { %v10103_v53 = vmul.f32 %v7815_v46, %v5518_v16  ;;  %v5462_v30 = vpop.permute.xlu1 %5461 }
0x36c6   :  { %v10108_v12 = vmul.f32 %v7817_v26, %v5462_v30 }
0x36c7   :  { %v5549_v62 = vrot.slane %v10103_v53, 2 }
0x36c8   :  { %v5544_v9 = vsel %vm3793_vm14, %v5543_v43, %v10108_v12 }
0x36c9   :  { %v5550_v23 = vsel %vm3793_vm14, %v5549_v62, %v5548_v48  ;;  %5545 = vrot.lane.b32.xlu0 %v5544_v9, %s8445_s28 }
0x36ca   :  { %5551 = vrot.lane.b32.xlu1 %v5550_v23, %s8429_s0 }
0x373b   :  { %v5546_v45 = vpop.permute.xlu0 %5545 }
0x373c   :  { %v5552_v13 = vpop.permute.xlu1 %5551 }
0x373d   :  { %v5554_v4 = vsel %vm1405_vm7, %v5546_v45, %v5552_v13 }
0x373e   :  { %v5555_v46 = vpack.c.bf16 %v5554_v4, %v5554_v4 }
0x3740   :  { %v5557_v35 = vrot.slane %v5555_v46, 1 }
0x3742   :  { %6798 = vmatmul.mubr.msk.bf16.vlgmr.msra.gmra.mrb[100].mxu0 %vm368_vm1, %v5557_v35 }
0x3743   :  { %5969 = vmatpush1.bf16.msra.mxu0 %v9941_v17  ;;  %6000 = vmatprep.mubr.bf16.mxu0 %v8447_v51 }
0x3744   :  { %5970 = vmatprep.subr.bf16.mxu0 %v9943_v28 }
0x3747   :  { %5971 = vmatpush1.bf16.msra.mxu0 %v9949_v58 }
0x3748   :  { %5972 = vmatprep.subr.bf16.mxu0 %v9953_v47 }
0x374b   :  { %5973 = vmatpush1.bf16.msra.mxu0 %v9959_v14 }
0x374c   :  { %5974 = vmatprep.subr.bf16.mxu0 %v9967_v59 }
0x374f   :  { %5975 = vmatpush1.bf16.msra.mxu0 %v9971_v61 }
0x3750   :  { %6375 = vmatprep.subr.bf16.mxu0 %v9939_v22 }
0x3815   :  { %v5595_v18 = vpop.f32.mrb[100].mxu0 }
0x3816   :  { %v5604_v25 = vrot.slane %v5595_v18, 6  ;;  %v5597_v26 = vpop.f32.mrb[101].mxu0  ;;  %v5603_v0 = vrot.slane %v5595_v18, 5 }
0x3817   :  { %v5599_v10 = vpop.f32.mrb[102].mxu0  ;;  %v5610_v33 = vrot.slane %v5597_v26, 4  ;;  %v5611_v63 = vrot.slane %v5597_v26, 5 }
0x3818   :  { %v5608_v40 = vadd.f32 %v5604_v25, %v9889_v21  ;;  %v5600_v42 = vpop.f32.mrb[103].mxu0  ;;  %v5607_v11 = vadd.f32 %v5603_v0, %v9891_v29  ;;  %v5633_v10 = vrot.slane %v10080_v2, 7 }
0x3819   :  { %v5614_v1 = vadd.f32 %v5610_v33, %v9887_v50  ;;  %v5615_v44 = vadd.f32 %v5611_v63, %v9894_v49  ;;  %v5632_v42 = vrot.slane %v10092_v52, 7  ;;  %v5686_v63 = vrot.slane %v10086_v20, 1 }
0x381a   :  { %7826 = vtanh.f32 %v5608_v40  ;;  %v6800_v19 = vmul.f32 -1.442695, %v5608_v40  ;;  %v6799_v24 = vmul.f32 -1.442695, %v5607_v11 }
0x381b   :  { %7828 = vtanh.f32 %v5607_v11  ;;  %v6801_v34 = vmul.f32 -1.442695, %v5614_v1  ;;  %v6802_v54 = vmul.f32 -1.442695, %v5615_v44 }
0x381c   :  { %7830 = vtanh.f32 %v5614_v1 }
0x381d   :  { %7832 = vtanh.f32 %v5615_v44 }
0x381e   :  { %7834 = vpow2.f32 %v6800_v19 }
0x381f   :  { %7836 = vpow2.f32 %v6799_v24 }
0x3820   :  { %7838 = vpow2.f32 %v6801_v34 }
0x3821   :  { %7840 = vpow2.f32 %v6802_v54 }
0x3824   :  { %v7827_v22 = vpop.eup %7826 }
0x3825   :  { %5642 = vrot.lane.b32.xlu0 %v7827_v22, %s8429_s0  ;;  %v7829_v5 = vpop.eup %7828 }
0x3826   :  { %v7831_v38 = vpop.eup %7830 }
0x3827   :  { %5694 = vrot.lane.b32.xlu1 %v7831_v38, %s8429_s0  ;;  %v7833_v27 = vpop.eup %7832 }
0x3828   :  { %v7835_v3 = vpop.eup %7834 }
0x3829   :  { %5640 = vrot.lane.b32.xlu0 %v7829_v5, %s8429_s0  ;;  %v5623_v37 = vadd.f32 1.0, %v7835_v3  ;;  %v7837_v56 = vpop.eup %7836 }
0x382a   :  { %v7839_v57 = vpop.eup %7838  ;;  %v5622_v16 = vadd.f32 1.0, %v7837_v56 }
0x382b   :  { %5696 = vrot.lane.b32.xlu1 %v7833_v27, %s8429_s0  ;;  %7842 = vrcp.f32 %v5623_v37  ;;  %v5676_v48 = vadd.f32 1.0, %v7839_v57  ;;  %v7841_v62 = vpop.eup %7840  ;;  %v5687_v27 = vrot.slane %v10088_v8, 1 }
0x382c   :  { %7844 = vrcp.f32 %v5622_v16  ;;  %v5677_v30 = vadd.f32 1.0, %v7841_v62 }
0x382d   :  { %7846 = vrcp.f32 %v5676_v48 }
0x382e   :  { %7848 = vrcp.f32 %v5677_v30 }
0x3835   :  { %v7843_v43 = vpop.eup %7842 }
0x3836   :  { %v7845_v13 = vpop.eup %7844  ;;  %v5637_v40 = vmul.f32 %v7843_v43, %v5633_v10 }
0x3837   :  { %v7847_v4 = vpop.eup %7846  ;;  %v5636_v1 = vmul.f32 %v7845_v13, %v5632_v42 }
0x3838   :  { %v7849_v25 = vpop.eup %7848  ;;  %v5690_v44 = vmul.f32 %v7847_v4, %v5686_v63 }
0x3839   :  { %v5691_v2 = vmul.f32 %v7849_v25, %v5687_v27 }
0x3897   :  { %v5643_v23 = vpop.permute.xlu0 %5642 }
0x3898   :  { %v5647_v9 = vmul.f32 %v7843_v43, %v5643_v23 }
0x3899   :  { %v5695_v46 = vpop.permute.xlu1 %5694 }
0x389a   :  { %5652 = vrot.lane.b32.xlu0 %v5647_v9, %s8445_s28  ;;  %v5700_v18 = vmul.f32 %v7847_v4, %v5695_v46 }
0x389b   :  { %v5641_v45 = vpop.permute.xlu0 %5640 }
0x389c   :  { %v5646_v35 = vmul.f32 %v7845_v13, %v5641_v45  ;;  %5704 = vrot.lane.b32.xlu1 %v5700_v18, %s8445_s28 }
0x389d   :  { %v5697_v26 = vpop.permute.xlu1 %5696 }
0x389e   :  { %5650 = vrot.lane.b32.xlu0 %v5646_v35, %s8445_s28  ;;  %v5701_v0 = vmul.f32 %v7849_v25, %v5697_v26 }
0x38a0   :  { %5706 = vrot.lane.b32.xlu1 %v5701_v0, %s8445_s28 }
0x390c   :  { %v5653_v33 = vpop.permute.xlu0 %5652 }
0x390d   :  { %v10140_v11 = vadd.f32 %v5653_v33, %v5637_v40 }
0x390e   :  { %v5705_v5 = vpop.permute.xlu1 %5704 }
0x390f   :  { %7850 = vtanh.f32 %v10140_v11  ;;  %v10147_v19 = vadd.f32 %v5705_v5, %v5690_v44 }
0x3910   :  { %v5651_v22 = vpop.permute.xlu0 %5650 }
0x3911   :  { %v10144_v38 = vadd.f32 %v5651_v22, %v5636_v1 }
0x3912   :  { %v5707_v52 = vpop.permute.xlu1 %5706 }
0x3913   :  { %7852 = vtanh.f32 %v10144_v38  ;;  %v10151_v24 = vadd.f32 %v5707_v52, %v5691_v2 }
0x3914   :  { %7854 = vtanh.f32 %v10147_v19 }
0x3915   :  { %7856 = vtanh.f32 %v10151_v24 }
0x3919   :  { %v7851_v20 = vpop.eup %7850 }
0x391a   :  { %5664 = vrot.lane.b32.xlu0 %v7851_v20, %s8429_s0 }
0x391d   :  { %v7853_v34 = vpop.eup %7852 }
0x391e   :  { %v7855_v54 = vpop.eup %7854  ;;  %5662 = vrot.lane.b32.xlu0 %v7853_v34, %s8429_s0 }
0x391f   :  { %5716 = vrot.lane.b32.xlu1 %v7855_v54, %s8429_s0  ;;  %v7857_v8 = vpop.eup %7856 }
0x3923   :  { %5718 = vrot.lane.b32.xlu1 %v7857_v8, %s8429_s0 }
0x398c   :  { %v5665_v3 = vpop.permute.xlu0 %5664 }
0x398d   :  { %v10158_v37 = vmul.f32 %v7843_v43, %v5665_v3 }
0x398f   :  { %v5744_v57 = vrot.slane %v10158_v37, 7 }
0x3990   :  { %v5663_v56 = vpop.permute.xlu0 %5662 }
0x3991   :  { %v5717_v16 = vpop.permute.xlu1 %5716  ;;  %v10161_v48 = vmul.f32 %v7845_v13, %v5663_v56 }
0x3992   :  { %v10163_v62 = vmul.f32 %v7847_v4, %v5717_v16 }
0x3993   :  { %v5745_v30 = vsel %vm3997_vm15, %v5744_v57, %v10161_v48 }
0x3994   :  { %5746 = vrot.lane.b32.xlu0 %v5745_v30, %s8445_s28  ;;  %v5749_v9 = vrot.slane %v10163_v62, 1 }
0x3995   :  { %v5719_v23 = vpop.permute.xlu1 %5718 }
0x3996   :  { %v10169_v45 = vmul.f32 %v7849_v25, %v5719_v23 }
0x3998   :  { %v5750_v43 = vsel %vm3997_vm15, %v10169_v45, %v5749_v9 }
0x3999   :  { %5751 = vrot.lane.b32.xlu1 %v5750_v43, %s8429_s0 }
0x3a06   :  { %v5747_v46 = vpop.permute.xlu0 %5746 }
0x3a0b   :  { %v5752_v13 = vpop.permute.xlu1 %5751 }
0x3a0c   :  { %v5754_v4 = vsel %vm1405_vm7, %v5747_v46, %v5752_v13 }
0x3a0d   :  { %v5755_v35 = vpack.c.bf16 %v5754_v4, %v5754_v4 }
0x3a0f   :  { %v5757_v18 = vshrl.u32 %v5755_v35, 16  ;;  %v5760_v26 = vshll.u32 %v5755_v35, 16 }
0x3a11   :  { %v5759_v0 = vrot.slane %v5757_v18, 1  ;;  %v5762_v10 = vrot.slane %v5760_v26, 2 }
0x3a13   :  { %v5763_v40 = vor.u32 %v5762_v10, %v5759_v0 }
0x3a15   :  { %6803 = vmatmul.mubr.msk.bf16.vlgmr.msra.gmra.mrb[100].mxu1 %vm368_vm1, %v5763_v40 }
0x3a16   :  { %6176 = vmatpush1.bf16.msra.mxu1 %v9941_v17  ;;  %6207 = vmatprep.mubr.bf16.mxu1 %v8447_v51 }
0x3a17   :  { %6177 = vmatprep.subr.bf16.mxu1 %v9943_v28 }
0x3a1a   :  { %6178 = vmatpush1.bf16.msra.mxu1 %v9949_v58 }
0x3a1b   :  { %6179 = vmatprep.subr.bf16.mxu1 %v9953_v47 }
0x3a1e   :  { %6180 = vmatpush1.bf16.msra.mxu1 %v9959_v14 }
0x3a1f   :  { %6181 = vmatprep.subr.bf16.mxu1 %v9967_v59 }
0x3a22   :  { %6182 = vmatpush1.bf16.msra.mxu1 %v9971_v61 }
0x3ae8   :  { %v5801_v25 = vpop.f32.mrb[100].mxu1 }
0x3ae9   :  { %v5810_v33 = vrot.slane %v5801_v25, 5  ;;  %v5803_v42 = vpop.f32.mrb[101].mxu1  ;;  %v5809_v28 = vrot.slane %v5801_v25, 4 }
0x3aea   :  { %v5805_v63 = vpop.f32.mrb[102].mxu1  ;;  %v5816_v1 = vrot.slane %v5803_v42, 5  ;;  %v5817_v22 = vrot.slane %v5803_v42, 6 }
0x3aeb   :  { %v5814_v17 = vadd.f32 %v5810_v33, %v9889_v21  ;;  %v5806_v44 = vpop.f32.mrb[103].mxu1  ;;  %v5813_v14 = vadd.f32 %v5809_v28, %v9891_v29  ;;  %v5839_v63 = vrot.slane %v10140_v11, 7  ;;  %v5893_v28 = vrot.slane %v10151_v24, 1 }
0x3aec   :  { %v5820_v58 = vadd.f32 %v5816_v1, %v9887_v50  ;;  %v5821_v47 = vadd.f32 %v5817_v22, %v9894_v49  ;;  %v5892_v22 = vrot.slane %v10147_v19, 1 }
0x3aed   :  { %7858 = vtanh.f32 %v5814_v17  ;;  %v6805_v20 = vmul.f32 -1.442695, %v5814_v17  ;;  %v6804_v8 = vmul.f32 -1.442695, %v5813_v14 }
0x3aee   :  { %7860 = vtanh.f32 %v5820_v58  ;;  %v6806_v34 = vmul.f32 -1.442695, %v5820_v58  ;;  %v6807_v54 = vmul.f32 -1.442695, %v5821_v47 }
0x3aef   :  { %7862 = vtanh.f32 %v5821_v47 }
0x3af0   :  { %7864 = vtanh.f32 %v5813_v14 }
0x3af1   :  { %7866 = vpow2.f32 %v6805_v20 }
0x3af2   :  { %7868 = vpow2.f32 %v6806_v34 }
0x3af3   :  { %7870 = vpow2.f32 %v6807_v54 }
0x3af4   :  { %7872 = vpow2.f32 %v6804_v8 }
0x3af7   :  { %v7859_v5 = vpop.eup %7858 }
0x3af8   :  { %5848 = vrot.lane.b32.xlu0 %v7859_v5, %s8429_s0  ;;  %v7861_v27 = vpop.eup %7860  ;;  %v5838_v5 = vrot.slane %v10144_v38, 7 }
0x3af9   :  { %v7863_v2 = vpop.eup %7862  ;;  %5900 = vrot.lane.b32.xlu1 %v7861_v27, %s8429_s0 }
0x3afa   :  { %v7865_v52 = vpop.eup %7864 }
0x3afb   :  { %v7867_v3 = vpop.eup %7866 }
0x3afc   :  { %5902 = vrot.lane.b32.xlu0 %v7863_v2, %s8429_s0  ;;  %v5829_v56 = vadd.f32 1.0, %v7867_v3  ;;  %v7869_v57 = vpop.eup %7868 }
0x3afd   :  { %5846 = vrot.lane.b32.xlu1 %v7865_v52, %s8429_s0  ;;  %v7871_v16 = vpop.eup %7870  ;;  %v5882_v30 = vadd.f32 1.0, %v7869_v57 }
0x3afe   :  { %7874 = vrcp.f32 %v5829_v56  ;;  %v7873_v23 = vpop.eup %7872  ;;  %v5883_v9 = vadd.f32 1.0, %v7871_v16 }
0x3aff   :  { %v5828_v43 = vadd.f32 1.0, %v7873_v23  ;;  %7876 = vrcp.f32 %v5882_v30 }
0x3b00   :  { %7878 = vrcp.f32 %v5883_v9 }
0x3b01   :  { %7880 = vrcp.f32 %v5828_v43 }
0x3b08   :  { %v7875_v46 = vpop.eup %7874 }
0x3b09   :  { %v7877_v35 = vpop.eup %7876  ;;  %v5843_v17 = vmul.f32 %v7875_v46, %v5839_v63  ;;  %v7996_v63 = vld [vmem:[#allocation30 + $0x24] ss:$8 sps:$4 sm:$0xff]  }
0x3b0a   :  { %v7879_v26 = vpop.eup %7878  ;;  %v5896_v58 = vmul.f32 %v7877_v35, %v5892_v22 }
0x3b0b   :  { %v7881_v25 = vpop.eup %7880  ;;  %v5897_v14 = vmul.f32 %v7879_v26, %v5893_v28 }
0x3b0c   :  { %v5842_v11 = vmul.f32 %v7881_v25, %v5838_v5 }
0x3b6a   :  { %v5849_v13 = vpop.permute.xlu0 %5848 }
0x3b6b   :  { %v5853_v4 = vmul.f32 %v7875_v46, %v5849_v13  ;;  %v5901_v18 = vpop.permute.xlu1 %5900 }
0x3b6c   :  { %v5906_v0 = vmul.f32 %v7877_v35, %v5901_v18 }
0x3b6d   :  { %5858 = vrot.lane.b32.xlu0 %v5853_v4, %s8445_s28 }
0x3b6e   :  { %v5903_v10 = vpop.permute.xlu0 %5902  ;;  %5910 = vrot.lane.b32.xlu1 %v5906_v0, %s8445_s28 }
0x3b6f   :  { %v5907_v40 = vmul.f32 %v7879_v26, %v5903_v10  ;;  %v5847_v33 = vpop.permute.xlu1 %5846 }
0x3b70   :  { %v5852_v42 = vmul.f32 %v7881_v25, %v5847_v33  ;;  %v7993_v33 = vld [vmem:[#allocation30] ss:$8 sps:$4 sm:$0xff]  }
0x3b71   :  { %5912 = vrot.lane.b32.xlu0 %v5907_v40, %s8445_s28 }
0x3b72   :  { %5856 = vrot.lane.b32.xlu1 %v5852_v42, %s8445_s28  ;;  %v7995_v42 = vld [vmem:[#allocation30 + $0x10] ss:$8 sps:$4 sm:$0xff]  }
0x3bdf   :  { %v5859_v1 = vpop.permute.xlu0 %5858 }
0x3be0   :  { %v10197_v44 = vadd.f32 %v5859_v1, %v5843_v17  ;;  %v5911_v47 = vpop.permute.xlu1 %5910  ;;  %v7997_v17 = vld [vmem:[#allocation30 + $0x20] ss:$8 sps:$4 sm:$0xff]  }
0x3be1   :  { %v10203_v27 = vadd.f32 %v5911_v47, %v5896_v58 }
0x3be2   :  { %7882 = vtanh.f32 %v10197_v44 }
0x3be3   :  { %v5913_v2 = vpop.permute.xlu0 %5912  ;;  %7884 = vtanh.f32 %v10203_v27 }
0x3be4   :  { %v10205_v52 = vadd.f32 %v5913_v2, %v5897_v14  ;;  %v5857_v19 = vpop.permute.xlu1 %5856 }
0x3be5   :  { %v10209_v20 = vadd.f32 %v5857_v19, %v5842_v11 }
0x3be6   :  { %7886 = vtanh.f32 %v10205_v52 }
0x3be7   :  { %7888 = vtanh.f32 %v10209_v20 }
0x3bec   :  { %v7883_v24 = vpop.eup %7882 }
0x3bed   :  { %5870 = vrot.lane.b32.xlu0 %v7883_v24, %s8429_s0  ;;  %v7885_v34 = vpop.eup %7884 }
0x3bee   :  { %5922 = vrot.lane.b32.xlu1 %v7885_v34, %s8429_s0 }
0x3bf0   :  { %v7887_v38 = vpop.eup %7886 }
0x3bf1   :  { %5924 = vrot.lane.b32.xlu0 %v7887_v38, %s8429_s0  ;;  %v7889_v54 = vpop.eup %7888 }
0x3bf2   :  { %5868 = vrot.lane.b32.xlu1 %v7889_v54, %s8429_s0 }
0x3c5f   :  { %v5871_v8 = vpop.permute.xlu0 %5870 }
0x3c60   :  { %v5923_v3 = vpop.permute.xlu1 %5922  ;;  %v10216_v56 = vmul.f32 %v7875_v46, %v5871_v8 }
0x3c61   :  { %v10218_v57 = vmul.f32 %v7877_v35, %v5923_v3 }
0x3c62   :  { %v5950_v13 = vrot.slane %v10216_v56, 7 }
0x3c63   :  { %v5925_v16 = vpop.permute.xlu0 %5924  ;;  %v5955_v23 = vrot.slane %v10218_v57, 7 }
0x3c64   :  { %v10220_v30 = vmul.f32 %v7879_v26, %v5925_v16  ;;  %v5869_v43 = vpop.permute.xlu1 %5868 }
0x3c65   :  { %v10225_v4 = vmul.f32 %v7881_v25, %v5869_v43  ;;  %v7994_v25 = vld [vmem:[#allocation30 + $0x14] ss:$8 sps:$4 sm:$0xff]  }
0x3c66   :  { %v5956_v9 = vrot.slane %v10220_v30, 6 }
0x3c67   :  { %v5951_v46 = vsel %vm4204_vm0, %v5950_v13, %v10225_v4 }
0x3c68   :  { %v5957_v18 = vsel %vm4204_vm0, %v5956_v9, %v5955_v23  ;;  %5952 = vrot.lane.b32.xlu0 %v5951_v46, %s8445_s28 }
0x3c69   :  { %5958 = vrot.lane.b32.xlu1 %v5957_v18, %s8429_s0 }
0x3cda   :  { %v5953_v26 = vpop.permute.xlu0 %5952 }
0x3cdb   :  { %v5959_v35 = vpop.permute.xlu1 %5958 }
0x3cdc   :  { %v5961_v0 = vsel %vm1405_vm7, %v5953_v26, %v5959_v35 }
0x3cdd   :  { %v5962_v10 = vpack.c.bf16 %v5961_v0, %v5961_v0 }
0x3cdf   :  { %v5964_v40 = vrot.slane %v5962_v10, 2 }
0x3ce1   :  { %6808 = vmatmul.mubr.msk.bf16.vlgmr.msra.gmra.mrb[104].mxu0 %vm368_vm1, %v5964_v40 }
0x3ce2   :  { %6376 = vmatpush1.bf16.msra.mxu0 %v7993_v33  ;;  %6407 = vmatprep.mubr.bf16.mxu0 %v8447_v51 }
0x3ce3   :  { %6377 = vmatprep.subr.bf16.mxu0 %v7994_v25 }
0x3ce6   :  { %6378 = vmatpush1.bf16.msra.mxu0 %v7995_v42 }
0x3ce7   :  { %6379 = vmatprep.subr.bf16.mxu0 %v7996_v63 }
0x3cea   :  { %6380 = vmatpush1.bf16.msra.mxu0 %v7997_v17 }
0x3ceb   :  { %6381 = vmatprep.subr.bf16.mxu0 %v9967_v59 }
0x3cee   :  { %6382 = vmatpush1.bf16.msra.mxu0 %v9971_v61 }
0x3db4   :  { %v6002_v1 = vpop.f32.mrb[104].mxu0 }
0x3db5   :  { %v6011_v22 = vrot.slane %v6002_v1, 4  ;;  %v6004_v28 = vpop.f32.mrb[105].mxu0  ;;  %v6010_v2 = vrot.slane %v6002_v1, 3 }
0x3db6   :  { %v6006_v58 = vpop.f32.mrb[106].mxu0  ;;  %v6017_v14 = vrot.slane %v6004_v28, 6  ;;  %v6018_v5 = vrot.slane %v6004_v28, 7 }
0x3db7   :  { %v6015_v47 = vadd.f32 %v6011_v22, %v9889_v21  ;;  %v6007_v51 = vpop.f32.mrb[107].mxu0  ;;  %v6014_v24 = vadd.f32 %v6010_v2, %v9891_v29  ;;  %v6093_v2 = vrot.slane %v10203_v27, 1 }
0x3db8   :  { %v6021_v11 = vadd.f32 %v6017_v14, %v9887_v50  ;;  %v6022_v19 = vadd.f32 %v6018_v5, %v9894_v49 }
0x3db9   :  { %7890 = vtanh.f32 %v6015_v47  ;;  %v6810_v54 = vmul.f32 -1.442695, %v6015_v47  ;;  %v6809_v16 = vmul.f32 -1.442695, %v6014_v24  ;;  %v6040_v47 = vrot.slane %v10197_v44, 7 }
0x3dba   :  { %7892 = vtanh.f32 %v6021_v11  ;;  %v6811_v8 = vmul.f32 -1.442695, %v6021_v11  ;;  %v6812_v3 = vmul.f32 -1.442695, %v6022_v19  ;;  %v6094_v11 = vrot.slane %v10205_v52, 1 }
0x3dbb   :  { %7894 = vtanh.f32 %v6022_v19 }
0x3dbc   :  { %7896 = vtanh.f32 %v6014_v24 }
0x3dbd   :  { %7898 = vpow2.f32 %v6810_v54 }
0x3dbe   :  { %7900 = vpow2.f32 %v6811_v8 }
0x3dbf   :  { %7902 = vpow2.f32 %v6812_v3 }
0x3dc0   :  { %7904 = vpow2.f32 %v6809_v16 }
0x3dc3   :  { %v7891_v59 = vpop.eup %7890 }
0x3dc4   :  { %6049 = vrot.lane.b32.xlu0 %v7891_v59, %s8429_s0  ;;  %v7893_v61 = vpop.eup %7892 }
0x3dc5   :  { %v7895_v34 = vpop.eup %7894  ;;  %6101 = vrot.lane.b32.xlu1 %v7893_v61, %s8429_s0  ;;  %v6039_v61 = vrot.slane %v10209_v20, 7 }
0x3dc6   :  { %v7897_v38 = vpop.eup %7896 }
0x3dc7   :  { %v7899_v23 = vpop.eup %7898 }
0x3dc8   :  { %6103 = vrot.lane.b32.xlu0 %v7895_v34, %s8429_s0  ;;  %v6030_v9 = vadd.f32 1.0, %v7899_v23  ;;  %v7901_v43 = vpop.eup %7900 }
0x3dc9   :  { %6047 = vrot.lane.b32.xlu1 %v7897_v38, %s8429_s0  ;;  %v7903_v13 = vpop.eup %7902  ;;  %v6083_v18 = vadd.f32 1.0, %v7901_v43 }
0x3dca   :  { %7906 = vrcp.f32 %v6030_v9  ;;  %v7905_v46 = vpop.eup %7904  ;;  %v6084_v35 = vadd.f32 1.0, %v7903_v13 }
0x3dcb   :  { %v6029_v26 = vadd.f32 1.0, %v7905_v46  ;;  %7908 = vrcp.f32 %v6083_v18 }
0x3dcc   :  { %7910 = vrcp.f32 %v6084_v35 }
0x3dcd   :  { %7912 = vrcp.f32 %v6029_v26 }
0x3dd4   :  { %v7907_v0 = vpop.eup %7906 }
0x3dd5   :  { %v7909_v33 = vpop.eup %7908  ;;  %v6044_v14 = vmul.f32 %v7907_v0, %v6040_v47 }
0x3dd6   :  { %v7911_v42 = vpop.eup %7910  ;;  %v6097_v19 = vmul.f32 %v7909_v33, %v6093_v2 }
0x3dd7   :  { %v7913_v22 = vpop.eup %7912  ;;  %v6098_v59 = vmul.f32 %v7911_v42, %v6094_v11 }
0x3dd8   :  { %v6043_v44 = vmul.f32 %v7913_v22, %v6039_v61 }
0x3e36   :  { %v6050_v10 = vpop.permute.xlu0 %6049 }
0x3e37   :  { %v6054_v40 = vmul.f32 %v7907_v0, %v6050_v10  ;;  %v6102_v25 = vpop.permute.xlu1 %6101 }
0x3e38   :  { %v6107_v63 = vmul.f32 %v7909_v33, %v6102_v25 }
0x3e39   :  { %6059 = vrot.lane.b32.xlu0 %v6054_v40, %s8445_s28 }
0x3e3a   :  { %v6104_v17 = vpop.permute.xlu0 %6103  ;;  %6111 = vrot.lane.b32.xlu1 %v6107_v63, %s8445_s28 }
0x3e3b   :  { %v6108_v1 = vmul.f32 %v7911_v42, %v6104_v17  ;;  %v6048_v28 = vpop.permute.xlu1 %6047 }
0x3e3c   :  { %v6053_v58 = vmul.f32 %v7913_v22, %v6048_v28 }
0x3e3d   :  { %6113 = vrot.lane.b32.xlu0 %v6108_v1, %s8445_s28 }
0x3e3e   :  { %6057 = vrot.lane.b32.xlu1 %v6053_v58, %s8445_s28 }
0x3eab   :  { %v6060_v51 = vpop.permute.xlu0 %6059 }
0x3eac   :  { %v10250_v5 = vadd.f32 %v6060_v51, %v6044_v14  ;;  %v6112_v24 = vpop.permute.xlu1 %6111 }
0x3ead   :  { %v10256_v34 = vadd.f32 %v6112_v24, %v6097_v19 }
0x3eae   :  { %7914 = vtanh.f32 %v10250_v5 }
0x3eaf   :  { %v6114_v38 = vpop.permute.xlu0 %6113  ;;  %7916 = vtanh.f32 %v10256_v34 }
0x3eb0   :  { %v10258_v54 = vadd.f32 %v6114_v38, %v6098_v59  ;;  %v6058_v27 = vpop.permute.xlu1 %6057 }
0x3eb1   :  { %v10262_v8 = vadd.f32 %v6058_v27, %v6043_v44 }
0x3eb2   :  { %7918 = vtanh.f32 %v10258_v54 }
0x3eb3   :  { %7920 = vtanh.f32 %v10262_v8 }
0x3eb8   :  { %v7915_v52 = vpop.eup %7914 }
0x3eb9   :  { %6071 = vrot.lane.b32.xlu0 %v7915_v52, %s8429_s0  ;;  %v7917_v3 = vpop.eup %7916 }
0x3eba   :  { %6123 = vrot.lane.b32.xlu1 %v7917_v3, %s8429_s0 }
0x3ebc   :  { %v7919_v20 = vpop.eup %7918 }
0x3ebd   :  { %6125 = vrot.lane.b32.xlu0 %v7919_v20, %s8429_s0  ;;  %v7921_v16 = vpop.eup %7920 }
0x3ebe   :  { %6069 = vrot.lane.b32.xlu1 %v7921_v16, %s8429_s0 }
0x3f2b   :  { %v6072_v23 = vpop.permute.xlu0 %6071 }
0x3f2c   :  { %v6124_v9 = vpop.permute.xlu1 %6123  ;;  %v10269_v43 = vmul.f32 %v7907_v0, %v6072_v23 }
0x3f2d   :  { %v10271_v13 = vmul.f32 %v7909_v33, %v6124_v9 }
0x3f2e   :  { %v6151_v40 = vrot.slane %v10269_v43, 7 }
0x3f2f   :  { %v6126_v18 = vpop.permute.xlu0 %6125  ;;  %v6156_v35 = vrot.slane %v10271_v13, 5 }
0x3f30   :  { %v10273_v46 = vmul.f32 %v7911_v42, %v6126_v18  ;;  %v6070_v10 = vpop.permute.xlu1 %6069 }
0x3f31   :  { %v10278_v25 = vmul.f32 %v7913_v22, %v6070_v10 }
0x3f32   :  { %v6157_v26 = vrot.slane %v10273_v46, 4 }
0x3f33   :  { %v6152_v0 = vsel %vm4406_vm2, %v6151_v40, %v10278_v25 }
0x3f34   :  { %v6158_v63 = vsel %vm4406_vm2, %v6157_v26, %v6156_v35  ;;  %6153 = vrot.lane.b32.xlu0 %v6152_v0, %s8445_s28 }
0x3f35   :  { %6159 = vrot.lane.b32.xlu1 %v6158_v63, %s8429_s0 }
0x3fa6   :  { %v6154_v42 = vpop.permute.xlu0 %6153 }
0x3fa7   :  { %v6160_v33 = vpop.permute.xlu1 %6159 }
0x3fa8   :  { %v6162_v17 = vsel %vm1405_vm7, %v6154_v42, %v6160_v33 }
0x3fa9   :  { %v6163_v1 = vpack.c.bf16 %v6162_v17, %v6162_v17 }
0x3fab   :  { %v6165_v28 = vshrl.u32 %v6163_v1, 16  ;;  %v6168_v58 = vshll.u32 %v6163_v1, 16 }
0x3fad   :  { %v6167_v47 = vrot.slane %v6165_v28, 2  ;;  %v6170_v14 = vrot.slane %v6168_v58, 3 }
0x3faf   :  { %v6171_v22 = vor.u32 %v6170_v14, %v6167_v47 }
0x3fb1   :  { %6813 = vmatmul.mubr.msk.bf16.vlgmr.msra.gmra.mrb[104].mxu1 %vm368_vm1, %v6171_v22 }
0x4084   :  { %v6209_v51 = vpop.f32.mrb[104].mxu1 }
0x4085   :  { %v6218_v2 = vrot.slane %v6209_v51, 3  ;;  %v6211_v11 = vpop.f32.mrb[105].mxu1  ;;  %v6217_v44 = vrot.slane %v6209_v51, 2 }
0x4086   :  { %v6213_v19 = vpop.f32.mrb[106].mxu1  ;;  %v6224_v59 = vrot.slane %v6211_v11, 7  ;;  %v6228_v38 = vadd.f32 %v6211_v11, %v9894_v49 }
0x4087   :  { %v6222_v24 = vadd.f32 %v6218_v2, %v9889_v21  ;;  %v6214_v61 = vpop.f32.mrb[107].mxu1  ;;  %v6221_v52 = vadd.f32 %v6217_v44, %v9891_v29 }
0x4088   :  { %v6227_v27 = vadd.f32 %v6224_v59, %v9887_v50  ;;  %v6817_v18 = vmul.f32 -1.442695, %v6228_v38 }
0x4089   :  { %7922 = vtanh.f32 %v6222_v24  ;;  %v6815_v9 = vmul.f32 -1.442695, %v6222_v24  ;;  %v6814_v26 = vmul.f32 -1.442695, %v6221_v52 }
0x408a   :  { %7924 = vtanh.f32 %v6228_v38  ;;  %v6816_v35 = vmul.f32 -1.442695, %v6227_v27  ;;  %v6246_v38 = vrot.slane %v10250_v5, 7 }
0x408b   :  { %7926 = vtanh.f32 %v6227_v27 }
0x408c   :  { %7928 = vtanh.f32 %v6221_v52  ;;  %v6300_v52 = vrot.slane %v10258_v54, 1 }
0x408d   :  { %7930 = vpow2.f32 %v6815_v9 }
0x408e   :  { %7932 = vpow2.f32 %v6817_v18 }
0x408f   :  { %7934 = vpow2.f32 %v6816_v35 }
0x4090   :  { %7936 = vpow2.f32 %v6814_v26  ;;  %v6245_v26 = vrot.slane %v10262_v8, 7 }
0x4093   :  { %v7923_v3 = vpop.eup %7922 }
0x4094   :  { %6255 = vrot.lane.b32.xlu0 %v7923_v3, %s8429_s0  ;;  %v7925_v20 = vpop.eup %7924 }
0x4095   :  { %v7927_v16 = vpop.eup %7926 }
0x4096   :  { %6307 = vrot.lane.b32.xlu1 %v7927_v16, %s8429_s0  ;;  %v7929_v23 = vpop.eup %7928 }
0x4097   :  { %v7931_v10 = vpop.eup %7930 }
0x4098   :  { %6309 = vrot.lane.b32.xlu0 %v7925_v20, %s8429_s0  ;;  %v6236_v40 = vadd.f32 1.0, %v7931_v10  ;;  %v7933_v63 = vpop.eup %7932  ;;  %v6299_v20 = vrot.slane %v10256_v34, 1 }
0x4099   :  { %v7935_v0 = vpop.eup %7934  ;;  %v6290_v33 = vadd.f32 1.0, %v7933_v63 }
0x409a   :  { %6253 = vrot.lane.b32.xlu1 %v7929_v23, %s8429_s0  ;;  %7938 = vrcp.f32 %v6236_v40  ;;  %v6289_v42 = vadd.f32 1.0, %v7935_v0  ;;  %v7937_v17 = vpop.eup %7936 }
0x409b   :  { %7940 = vrcp.f32 %v6290_v33  ;;  %v6235_v1 = vadd.f32 1.0, %v7937_v17 }
0x409c   :  { %7942 = vrcp.f32 %v6289_v42 }
0x409d   :  { %7944 = vrcp.f32 %v6235_v1 }
0x40a4   :  { %v7939_v28 = vpop.eup %7938 }
0x40a5   :  { %v7941_v14 = vpop.eup %7940  ;;  %v6250_v44 = vmul.f32 %v7939_v28, %v6246_v38 }
0x40a6   :  { %v7943_v51 = vpop.eup %7942  ;;  %v6304_v16 = vmul.f32 %v7941_v14, %v6300_v52 }
0x40a7   :  { %v7945_v24 = vpop.eup %7944  ;;  %v6303_v23 = vmul.f32 %v7943_v51, %v6299_v20 }
0x40a8   :  { %v6249_v5 = vmul.f32 %v7945_v24, %v6245_v26 }
0x4106   :  { %v6256_v58 = vpop.permute.xlu0 %6255 }
0x4107   :  { %v6260_v47 = vmul.f32 %v7939_v28, %v6256_v58 }
0x4108   :  { %v6308_v2 = vpop.permute.xlu1 %6307 }
0x4109   :  { %6265 = vrot.lane.b32.xlu0 %v6260_v47, %s8445_s28  ;;  %v6313_v19 = vmul.f32 %v7943_v51, %v6308_v2 }
0x410a   :  { %v6310_v22 = vpop.permute.xlu0 %6309 }
0x410b   :  { %v6314_v11 = vmul.f32 %v7941_v14, %v6310_v22  ;;  %6317 = vrot.lane.b32.xlu1 %v6313_v19, %s8445_s28 }
0x410c   :  { %v6254_v59 = vpop.permute.xlu1 %6253 }
0x410d   :  { %6319 = vrot.lane.b32.xlu0 %v6314_v11, %s8445_s28  ;;  %v6259_v61 = vmul.f32 %v7945_v24, %v6254_v59 }
0x410f   :  { %6263 = vrot.lane.b32.xlu1 %v6259_v61, %s8445_s28 }
0x417b   :  { %v6266_v27 = vpop.permute.xlu0 %6265 }
0x417c   :  { %v10301_v3 = vadd.f32 %v6266_v27, %v6250_v44 }
0x417d   :  { %v6318_v18 = vpop.permute.xlu1 %6317 }
0x417e   :  { %7946 = vtanh.f32 %v10301_v3  ;;  %v10308_v10 = vadd.f32 %v6318_v18, %v6303_v23 }
0x417f   :  { %v6320_v9 = vpop.permute.xlu0 %6319 }
0x4180   :  { %v10305_v35 = vadd.f32 %v6320_v9, %v6304_v16 }
0x4181   :  { %v6264_v54 = vpop.permute.xlu1 %6263 }
0x4182   :  { %7948 = vtanh.f32 %v10305_v35  ;;  %v10312_v40 = vadd.f32 %v6264_v54, %v6249_v5 }
0x4183   :  { %7950 = vtanh.f32 %v10308_v10 }
0x4184   :  { %7952 = vtanh.f32 %v10312_v40 }
0x4188   :  { %v7947_v34 = vpop.eup %7946 }
0x4189   :  { %6277 = vrot.lane.b32.xlu0 %v7947_v34, %s8429_s0 }
0x418c   :  { %v7949_v63 = vpop.eup %7948 }
0x418d   :  { %v7951_v0 = vpop.eup %7950  ;;  %6331 = vrot.lane.b32.xlu0 %v7949_v63, %s8429_s0 }
0x418e   :  { %6329 = vrot.lane.b32.xlu1 %v7951_v0, %s8429_s0  ;;  %v7953_v8 = vpop.eup %7952 }
0x4192   :  { %6275 = vrot.lane.b32.xlu1 %v7953_v8, %s8429_s0 }
0x41fb   :  { %v6278_v33 = vpop.permute.xlu0 %6277 }
0x41fc   :  { %v10321_v58 = vmul.f32 %v7939_v28, %v6278_v33 }
0x41fe   :  { %v6357_v19 = vrot.slane %v10321_v58, 7 }
0x41ff   :  { %v6332_v42 = vpop.permute.xlu0 %6331 }
0x4200   :  { %v6330_v17 = vpop.permute.xlu1 %6329  ;;  %v10319_v1 = vmul.f32 %v7941_v14, %v6332_v42 }
0x4201   :  { %v10323_v47 = vmul.f32 %v7943_v51, %v6330_v17 }
0x4202   :  { %v6363_v22 = vrot.slane %v10319_v1, 2 }
0x4203   :  { %v6362_v2 = vrot.slane %v10323_v47, 3 }
0x4204   :  { %v6276_v11 = vpop.permute.xlu1 %6275 }
0x4205   :  { %v10328_v59 = vmul.f32 %v7945_v24, %v6276_v11  ;;  %v6364_v61 = vsel %vm10524_vm12, %v6363_v22, %v6362_v2 }
0x4206   :  { %6365 = vrot.lane.b32.xlu1 %v6364_v61, %s8429_s0 }
0x4207   :  { %v6358_v14 = vsel %vm10525_vm13, %v6357_v19, %v10328_v59 }
0x4208   :  { %6359 = vrot.lane.b32.xlu0 %v6358_v14, %s8445_s28 }
0x4278   :  { %v6366_v28 = vpop.permute.xlu1 %6365 }
0x427a   :  { %v6360_v51 = vpop.permute.xlu0 %6359 }
0x427b   :  { %v6368_v38 = vsel %vm1405_vm7, %v6360_v51, %v6366_v28 }
0x427c   :  { %v6369_v44 = vpack.c.bf16 %v6368_v38, %v6368_v38 }
0x427e   :  { %v6371_v27 = vrot.slane %v6369_v44, 3 }
0x4280   :  { %6818 = vmatmul.mubr.msk.bf16.vlgmr.msra.gmra.mrb[108].mxu0 %vm368_vm1, %v6371_v27 }
0x4353   :  { %v6409_v52 = vpop.f32.mrb[108].mxu0 }
0x4354   :  { %v6417_v24 = vrot.slane %v6409_v52, 1  ;;  %v6411_v20 = vpop.f32.mrb[109].mxu0  ;;  %v6418_v5 = vrot.slane %v6409_v52, 2 }
0x4355   :  { %v6427_v16 = vadd.f32 %v6411_v20, %v9887_v50  ;;  %v6413_v23 = vpop.f32.mrb[110].mxu0  ;;  %v6424_v9 = vrot.slane %v6411_v20, 1 }
0x4356   :  { %v6414_v18 = vpop.f32.mrb[111].mxu0  ;;  %v6421_v26 = vadd.f32 %v6417_v24, %v9891_v29  ;;  %v6422_v34 = vadd.f32 %v6418_v5, %v9889_v21 }
0x4357   :  { %7954 = vtanh.f32 %v6427_v16  ;;  %v6428_v54 = vadd.f32 %v6424_v9, %v9894_v49  ;;  %v6821_v29 = vmul.f32 -1.442695, %v6427_v16 }
0x4358   :  { %7956 = vtanh.f32 %v6421_v26  ;;  %v6819_v33 = vmul.f32 -1.442695, %v6421_v26  ;;  %v6820_v21 = vmul.f32 -1.442695, %v6422_v34  ;;  %v6499_v26 = vrot.slane %v10308_v10, 1 }
0x4359   :  { %7958 = vtanh.f32 %v6428_v54  ;;  %v6822_v49 = vmul.f32 -1.442695, %v6428_v54 }
0x435a   :  { %7960 = vtanh.f32 %v6422_v34  ;;  %v6445_v34 = vrot.slane %v10312_v40, 7 }
0x435b   :  { %7962 = vpow2.f32 %v6821_v29 }
0x435c   :  { %7964 = vpow2.f32 %v6819_v33 }
0x435d   :  { %7966 = vpow2.f32 %v6822_v49 }
0x435e   :  { %7968 = vpow2.f32 %v6820_v21  ;;  %v6446_v21 = vrot.slane %v10301_v3, 7 }
0x4361   :  { %v7955_v63 = vpop.eup %7954 }
0x4362   :  { %6507 = vrot.lane.b32.xlu0 %v7955_v63, %s8429_s0  ;;  %v7957_v0 = vpop.eup %7956 }
0x4363   :  { %v7959_v50 = vpop.eup %7958 }
0x4364   :  { %6509 = vrot.lane.b32.xlu1 %v7959_v50, %s8429_s0  ;;  %v7961_v8 = vpop.eup %7960  ;;  %v6500_v50 = vrot.slane %v10305_v35, 1 }
0x4365   :  { %v7963_v42 = vpop.eup %7962 }
0x4366   :  { %6453 = vrot.lane.b32.xlu0 %v7957_v0, %s8429_s0  ;;  %v6489_v17 = vadd.f32 1.0, %v7963_v42  ;;  %v7965_v22 = vpop.eup %7964 }
0x4367   :  { %v7967_v2 = vpop.eup %7966  ;;  %v6435_v11 = vadd.f32 1.0, %v7965_v22 }
0x4368   :  { %6455 = vrot.lane.b32.xlu1 %v7961_v8, %s8429_s0  ;;  %7970 = vrcp.f32 %v6489_v17  ;;  %v6490_v19 = vadd.f32 1.0, %v7967_v2  ;;  %v7969_v61 = vpop.eup %7968 }
0x4369   :  { %7972 = vrcp.f32 %v6435_v11  ;;  %v6436_v14 = vadd.f32 1.0, %v7969_v61 }
0x436a   :  { %7974 = vrcp.f32 %v6490_v19 }
0x436b   :  { %7976 = vrcp.f32 %v6436_v14 }
0x4372   :  { %v7971_v28 = vpop.eup %7970 }
0x4373   :  { %v10346_v44 = vpop.eup %7972  ;;  %v6503_v5 = vmul.f32 %v7971_v28, %v6499_v26 }
0x4374   :  { %v7975_v24 = vpop.eup %7974  ;;  %v6449_v0 = vmul.f32 %v10346_v44, %v6445_v34 }
0x4375   :  { %v10351_v23 = vpop.eup %7976  ;;  %v6504_v33 = vmul.f32 %v7975_v24, %v6500_v50 }
0x4376   :  { %v6450_v10 = vmul.f32 %v10351_v23, %v6446_v21 }
0x43d4   :  { %v6508_v51 = vpop.permute.xlu0 %6507 }
0x43d5   :  { %v6513_v38 = vmul.f32 %v7971_v28, %v6508_v51 }
0x43d6   :  { %v6510_v20 = vpop.permute.xlu1 %6509 }
0x43d7   :  { %6517 = vrot.lane.b32.xlu0 %v6513_v38, %s8445_s28  ;;  %v6514_v16 = vmul.f32 %v7975_v24, %v6510_v20 }
0x43d8   :  { %v6454_v27 = vpop.permute.xlu0 %6453 }
0x43d9   :  { %v6459_v52 = vmul.f32 %v10346_v44, %v6454_v27  ;;  %6519 = vrot.lane.b32.xlu1 %v6514_v16, %s8445_s28 }
0x43da   :  { %v6456_v9 = vpop.permute.xlu1 %6455 }
0x43db   :  { %6463 = vrot.lane.b32.xlu0 %v6459_v52, %s8445_s28  ;;  %v6460_v18 = vmul.f32 %v10351_v23, %v6456_v9 }
0x43dd   :  { %6465 = vrot.lane.b32.xlu1 %v6460_v18, %s8445_s28 }
0x4449   :  { %v6518_v54 = vpop.permute.xlu0 %6517 }
0x444a   :  { %v6523_v63 = vadd.f32 %v6518_v54, %v6503_v5 }
0x444b   :  { %v6520_v49 = vpop.permute.xlu1 %6519 }
0x444c   :  { %7978 = vtanh.f32 %v6523_v63  ;;  %v6524_v42 = vadd.f32 %v6520_v49, %v6504_v33 }
0x444d   :  { %v6464_v8 = vpop.permute.xlu0 %6463 }
0x444e   :  { %v6469_v29 = vadd.f32 %v6464_v8, %v6449_v0 }
0x444f   :  { %v6466_v17 = vpop.permute.xlu1 %6465 }
0x4450   :  { %7980 = vtanh.f32 %v6469_v29  ;;  %v6470_v22 = vadd.f32 %v6466_v17, %v6450_v10 }
0x4451   :  { %7982 = vtanh.f32 %v6524_v42 }
0x4452   :  { %7984 = vtanh.f32 %v6470_v22 }
0x4456   :  { %v7979_v40 = vpop.eup %7978 }
0x4457   :  { %6529 = vrot.lane.b32.xlu0 %v7979_v40, %s8429_s0 }
0x445a   :  { %v7981_v2 = vpop.eup %7980 }
0x445b   :  { %6475 = vrot.lane.b32.xlu0 %v7981_v2, %s8429_s0  ;;  %v7983_v35 = vpop.eup %7982 }
0x445c   :  { %6531 = vrot.lane.b32.xlu1 %v7983_v35, %s8429_s0  ;;  %v7985_v3 = vpop.eup %7984 }
0x445f   :  { %5091 = vrot.lane.b32.xlu0 %v9981_v15, %s8445_s28 }
0x4460   :  { %6477 = vrot.lane.b32.xlu1 %v7985_v3, %s8429_s0  ;;  %s8448_s0 = smov [#allocation31]  }
0x4463   :  { %5329 = vrot.lane.b32.xlu0 %v10042_v60, %s8445_s28 }
0x4464   :  { %5093 = vrot.lane.b32.xlu1 %v9988_v7, %s8445_s28 }
0x4467   :  { %5535 = vrot.lane.b32.xlu0 %v10101_v6, %s8445_s28 }
0x4468   :  { %5331 = vrot.lane.b32.xlu1 %v10044_v31, %s8445_s28 }
0x446b   :  { %5736 = vrot.lane.b32.xlu0 %v10163_v62, %s8445_s28 }
0x446c   :  { %5537 = vrot.lane.b32.xlu1 %v10103_v53, %s8445_s28 }
0x446f   :  { %5942 = vrot.lane.b32.xlu0 %v10218_v57, %s8445_s28 }
0x4470   :  { %5738 = vrot.lane.b32.xlu1 %v10169_v45, %s8445_s28 }
0x4473   :  { %6143 = vrot.lane.b32.xlu0 %v10271_v13, %s8445_s28 }
0x4474   :  { %5944 = vrot.lane.b32.xlu1 %v10220_v30, %s8445_s28 }
0x4477   :  { %6349 = vrot.lane.b32.xlu0 %v10323_v47, %s8445_s28 }
0x4478   :  { %6145 = vrot.lane.b32.xlu1 %v10273_v46, %s8445_s28 }
0x447c   :  { %6351 = vrot.lane.b32.xlu1 %v10319_v1, %s8445_s28 }
0x44c9   :  { %v6530_v15 = vpop.permute.xlu0 %6529 }
0x44ca   :  { %v6535_v7 = vmul.f32 %v7971_v28, %v6530_v15 }
0x44cc   :  { %6549 = vrot.lane.b32.xlu0 %v6535_v7, %s8445_s28 }
0x44cd   :  { %v6476_v60 = vpop.permute.xlu0 %6475 }
0x44ce   :  { %v6532_v31 = vpop.permute.xlu1 %6531 }
0x44cf   :  { %v6536_v6 = vmul.f32 %v7975_v24, %v6532_v31 }
0x44d0   :  { %5081 = vrot.lane.b32.xlu0 %v9985_v32, %s8445_s28 }
0x44d1   :  { %v5092_v53 = vpop.permute.xlu0 %5091  ;;  %6551 = vrot.lane.b32.xlu1 %v6536_v6, %s8445_s28 }
0x44d2   :  { %5097 = vst.msk [vmem:[#allocation3] sm:$0x80] %vm3339_vm4, %v5092_v53  ;;  %v6478_v62 = vpop.permute.xlu1 %6477 }
0x44d3   :  { %v6482_v46 = vmul.f32 %v10351_v23, %v6478_v62 }
0x44d4   :  { %5319 = vrot.lane.b32.xlu0 %v10049_v41, %s8445_s28 }
0x44d5   :  { %v5330_v45 = vpop.permute.xlu0 %5329  ;;  %5083 = vrot.lane.b32.xlu1 %v9976_v36, %s8445_s28 }
0x44d6   :  { %5335 = vst.msk [vmem:[#allocation3] sm:$0x40] %vm3580_vm5, %v5330_v45  ;;  %v5094_v57 = vpop.permute.xlu1 %5093 }
0x44d7   :  { %5098 = vst.msk [vmem:[#allocation3 + $0x8] sm:$0x80] %vm3339_vm4, %v5094_v57 }
0x44d8   :  { %5525 = vrot.lane.b32.xlu0 %v10108_v12, %s8445_s28 }
0x44d9   :  { %v5536_v32 = vpop.permute.xlu0 %5535  ;;  %5321 = vrot.lane.b32.xlu1 %v10040_v39, %s8445_s28 }
0x44da   :  { %5541 = vst.msk [vmem:[#allocation3] sm:$0x20] %vm3789_vm6, %v5536_v32  ;;  %v5332_v30 = vpop.permute.xlu1 %5331 }
0x44db   :  { %5336 = vst.msk [vmem:[#allocation3 + $0x8] sm:$0x40] %vm3580_vm5, %v5332_v30 }
0x44dc   :  { %5726 = vrot.lane.b32.xlu0 %v10161_v48, %s8445_s28 }
0x44dd   :  { %v5737_v41 = vpop.permute.xlu0 %5736  ;;  %5527 = vrot.lane.b32.xlu1 %v10099_v55, %s8445_s28 }
0x44de   :  { %5742 = vst.msk [vmem:[#allocation3] sm:$0x10] %vm3993_vm8, %v5737_v41  ;;  %v5538_v36 = vpop.permute.xlu1 %5537 }
0x44df   :  { %5542 = vst.msk [vmem:[#allocation3 + $0x8] sm:$0x20] %vm3789_vm6, %v5538_v36 }
0x44e0   :  { %5932 = vrot.lane.b32.xlu0 %v10225_v4, %s8445_s28 }
0x44e1   :  { %v5943_v12 = vpop.permute.xlu0 %5942  ;;  %5728 = vrot.lane.b32.xlu1 %v10158_v37, %s8445_s28  ;;  %v6481_v37 = vmul.f32 %v10346_v44, %v6476_v60 }
0x44e2   :  { %5948 = vst.msk [vmem:[#allocation3] sm:$0x8] %vm3982_vm9, %v5943_v12  ;;  %v5739_v39 = vpop.permute.xlu1 %5738 }
0x44e3   :  { %5743 = vst.msk [vmem:[#allocation3 + $0x8] sm:$0x10] %vm3993_vm8, %v5739_v39 }
0x44e4   :  { %6133 = vrot.lane.b32.xlu0 %v10278_v25, %s8445_s28 }
0x44e5   :  { %v6144_v48 = vpop.permute.xlu0 %6143  ;;  %5934 = vrot.lane.b32.xlu1 %v10216_v56, %s8445_s28 }
0x44e6   :  { %6149 = vst.msk [vmem:[#allocation3] sm:$0x4] %vm3778_vm10, %v6144_v48  ;;  %v5945_v55 = vpop.permute.xlu1 %5944 }
0x44e7   :  { %5949 = vst.msk [vmem:[#allocation3 + $0x8] sm:$0x8] %vm3982_vm9, %v5945_v55 }
0x44e8   :  { %6339 = vrot.lane.b32.xlu0 %v10328_v59, %s8445_s28 }
0x44e9   :  { %v6350_v4 = vpop.permute.xlu0 %6349  ;;  %6135 = vrot.lane.b32.xlu1 %v10269_v43, %s8445_s28 }
0x44ea   :  { %6355 = vst.msk [vmem:[#allocation3] sm:$0x2] %vm3569_vm11, %v6350_v4  ;;  %v6146_v13 = vpop.permute.xlu1 %6145 }
0x44eb   :  { %6150 = vst.msk [vmem:[#allocation3 + $0x8] sm:$0x4] %vm3778_vm10, %v6146_v13 }
0x44ec   :  { %6539 = vrot.lane.b32.xlu0 %v6481_v37, %s8445_s28 }
0x44ed   :  { %6341 = vrot.lane.b32.xlu1 %v10321_v58, %s8445_s28 }
0x44ee   :  { %v6352_v56 = vpop.permute.xlu1 %6351 }
0x44ef   :  { %6356 = vst.msk [vmem:[#allocation3 + $0x8] sm:$0x2] %vm3569_vm11, %v6352_v56 }
0x44f1   :  { %6541 = vrot.lane.b32.xlu1 %v6482_v46, %s8445_s28 }
0x453e   :  { %v6550_v25 = vpop.permute.xlu0 %6549 }
0x453f   :  { %6555 = vst.msk [vmem:[#allocation3] sm:$0x1] %vm3328_vm3, %v6550_v25 }
0x4542   :  { %v5082_v1 = vpop.permute.xlu0 %5081 }
0x4543   :  { %5087 = vst.msk [vmem:[#allocation2] sm:$0x1] %vm3328_vm3, %v5082_v1  ;;  %v6552_v43 = vpop.permute.xlu1 %6551 }
0x4544   :  { %6556 = vst.msk [vmem:[#allocation3 + $0x8] sm:$0x1] %vm3328_vm3, %v6552_v43 }
0x4546   :  { %v5320_v47 = vpop.permute.xlu0 %5319  ;;  %v6559_v59 = vld [vmem:[#allocation3] sm:$0xff] }
0x4547   :  { %5325 = vst.msk [vmem:[#allocation2] sm:$0x2] %vm3569_vm11, %v5320_v47  ;;  %6563 = vrot.lane.b32.xlu0 %v6559_v59, %s8445_s28  ;;  %v5084_v58 = vpop.permute.xlu1 %5083 }
0x4548   :  { %5088 = vst.msk [vmem:[#allocation2 + $0x8] sm:$0x1] %vm3328_vm3, %v5084_v58 }
0x454a   :  { %v5526_v11 = vpop.permute.xlu0 %5525 }
0x454b   :  { %5531 = vst.msk [vmem:[#allocation2] sm:$0x4] %vm3778_vm10, %v5526_v11  ;;  %v5322_v19 = vpop.permute.xlu1 %5321  ;;  %v6560_v61 = vld [vmem:[#allocation3 + $0x8] sm:$0xff] }
0x454c   :  { %5326 = vst.msk [vmem:[#allocation2 + $0x8] sm:$0x2] %vm3569_vm11, %v5322_v19  ;;  %6565 = vrot.lane.b32.xlu1 %v6560_v61, %s8445_s28  ;;  %s6578_s28 = sshll.u32 %s8448_s0, 4  ;;  %s6579_s28 = int_to_ptr.vmem [resolvable:$true] %s6578_s28 }
0x454d   :  { %s8372_s12 = scalar_lea.vmem %s6579_s28, 256  ;;  %p8377_p11 = scmp.lt.s32.totalorder %s6579_s28, %s6579_s28 }
0x454e   :  { %v5727_v14 = vpop.permute.xlu0 %5726  ;;  %p8373_p10 = scmp.ne.s32.totalorder %s6579_s28, %s8372_s12  ;;  %p8378_p12 = scmp.lt.s32.totalorder %s8372_s12, %s8372_s12 }
0x454f   :  { %5732 = vst.msk [vmem:[#allocation2] sm:$0x8] %vm3982_vm9, %v5727_v14  ;;  %v5528_v28 = vpop.permute.xlu1 %5527 }
0x4550   :  { %5532 = vst.msk [vmem:[#allocation2 + $0x8] sm:$0x4] %vm3778_vm10, %v5528_v28  ;;  %p8379_p13 = por %p8378_p12, %p8377_p11 }
0x4552   :  { %v5933_v51 = vpop.permute.xlu0 %5932  ;;  %p8380_p0 = pnand %p8379_p13, %p8373_p10 }
0x4553   :  { %5938 = vst.msk [vmem:[#allocation2] sm:$0x10] %vm3993_vm8, %v5933_v51  ;;  %v5729_v38 = vpop.permute.xlu1 %5728 }
0x4554   :  { %5733 = vst.msk [vmem:[#allocation2 + $0x8] sm:$0x8] %vm3982_vm9, %v5729_v38 }
0x4556   :  { %v6134_v44 = vpop.permute.xlu0 %6133 }
0x4557   :  { %6139 = vst.msk [vmem:[#allocation2] sm:$0x20] %vm3789_vm6, %v6134_v44  ;;  %v5935_v27 = vpop.permute.xlu1 %5934 }
0x4558   :  { %5939 = vst.msk [vmem:[#allocation2 + $0x8] sm:$0x10] %vm3993_vm8, %v5935_v27 }
0x455a   :  { %v6340_v52 = vpop.permute.xlu0 %6339 }
0x455b   :  { %6345 = vst.msk [vmem:[#allocation2] sm:$0x40] %vm3580_vm5, %v6340_v52  ;;  %v6136_v24 = vpop.permute.xlu1 %6135 }
0x455c   :  { %6140 = vst.msk [vmem:[#allocation2 + $0x8] sm:$0x20] %vm3789_vm6, %v6136_v24 }
0x455e   :  { %v6540_v20 = vpop.permute.xlu0 %6539 }
0x455f   :  { %6545 = vst.msk [vmem:[#allocation2] sm:$0x80] %vm3339_vm4, %v6540_v20  ;;  %v6342_v16 = vpop.permute.xlu1 %6341 }
0x4560   :  { %6346 = vst.msk [vmem:[#allocation2 + $0x8] sm:$0x40] %vm3580_vm5, %v6342_v16 }
0x4563   :  { %v6542_v23 = vpop.permute.xlu1 %6541 }
0x4564   :  { %6546 = vst.msk [vmem:[#allocation2 + $0x8] sm:$0x80] %vm3339_vm4, %v6542_v23 }
0x4566   :  { %v6557_v9 = vld [vmem:[#allocation2] sm:$0xff] }
0x456b   :  { %v6558_v5 = vld [vmem:[#allocation2 + $0x8] sm:$0xff] }
0x45b9   :  { %v6564_v18 = vpop.permute.xlu0 %6563 }
0x45ba   :  { %v6569_v26 = vsel %vm1405_vm7, %v6557_v9, %v6564_v18 }
0x45bb   :  { %6571 = vst.msk [vmem:[#allocation31] sm:$0xff] %vm368_vm1, %v6569_v26 }
0x45be   :  { %v6566_v54 = vpop.permute.xlu1 %6565 }
0x45bf   :  { %v6570_v34 = vsel %vm1405_vm7, %v6558_v5, %v6566_v54 }
0x45c0   :  { %6572 = vst.msk [vmem:[#allocation31 + $0x8] sm:$0xff] %vm368_vm1, %v6570_v34 }
0x45c1   :  { %8383 = shalt.err (!%p8380_p0)
}
0x45c2   :  { %s10526_s15 = sld [smem:[#allocation49_spill]] }
0x45c8   :  { %s8384_s1 = scalar_lea.hbm %s10526_s15, 256 }
0x45c9   :  { %p8385_p1 = scmp.ne.s32.totalorder %s10526_s15, %s8384_s1  ;;  %p8388_p2 = scmp.lt.u32.totalorder %s8384_s1, %s10526_s15 }
0x45cb   :  { %p8390_p3 = pnand %p8388_p2, %p8385_p1 }
0x45cd   :  { %8393 = shalt.err (!%p8390_p3)
}
0x45ce   :  { %6584 = dma.vmem_to_hbm [thread:$0]  %s6579_s28, 256, %s10526_s15, [#allocation6], %s8415_s29, %s8415_s29, %s8416_s30  }
0x45cf   :  { %8412 = dma.done.wait [#allocation6], 256  }
0x45d0   :  { %8413 = vsyncadd [#allocation6], 4294967040 }
0x45d1   :  { %6588 = vsyncpa [#allocation5], 1 }
0x45d2   :  { %6589 = vsyncpa [#allocation8], 1 }
0x45d3   :  { %6590 = vsyncpa [#allocation11], 1 }
0x45d4   :  { %6591 = vsyncpa [#allocation14], 1 }
0x45d5   :  { %6592 = vsyncpa [#allocation17], 1 }
0x45d6   :  { %6593 = vsyncpa [#allocation20], 1 }
0x45d7   :  { %6594 = vsyncpa [#allocation23], 1 }
0x45d8   :  { %6595 = vsyncpa [#allocation26], 1 }
0x45d9   :  { %6596 = vsyncpa [#allocation29], 1 }
0x45da   :  { %6597 = vsyncpa [#allocation6], 1 }

</bundles_post_ra>
